<compile_context>
chip_gen: v6e
topology: v6e:2x2x1
jax: 0.10.0
libtpu: 0.0.40
codegen_flags: <defaults>
</compile_context>

<pallas_src>
import functools

import jax
import jax.numpy as jnp
from jax.experimental import pallas as pl
from jax.experimental.pallas import tpu as pltpu

NUM_CLASSES = 10
DR_RATE = 0.2
ACT_DTYPE = jnp.bfloat16


def _round_up(x, m):
    return (x + m - 1) // m * m


# --------------------------------------------------------------------------- im2col glue
def _im2col(x, kh, kw, stride, pad):
    """x: [N,H,W,C] -> patches [N*Ho*Wo, kh*kw*C] (feature order: kh, kw, cin)."""
    if pad > 0:
        x = jnp.pad(x, ((0, 0), (pad, pad), (pad, pad), (0, 0)))
    N, H, W, C = x.shape
    Ho = (H - kh) // stride + 1
    Wo = (W - kw) // stride + 1
    cols = []
    for i in range(kh):
        for j in range(kw):
            cols.append(x[:, i:i + Ho * stride:stride, j:j + Wo * stride:stride, :])
    patches = jnp.stack(cols, axis=3)                      # [N,Ho,Wo,kh*kw,C]
    return patches.reshape(N * Ho * Wo, kh * kw * C), (N, Ho, Wo)


# ----------------------------------------------------- tiled conv-as-matmul (+bias/res/relu)
def _conv_matmul(patches, wmat, bias, residual, relu, out_dtype):
    """patches [M,K] bf16, wmat [K,Cout] bf16 (BN scale pre-folded), bias [1,Cout] f32,
    residual [M,Cout] bf16 or None. Tiled MXU matmul with f32 VMEM accumulator."""
    M, K = patches.shape
    Cout = wmat.shape[1]
    has_res = residual is not None

    tm = 256 if M >= 256 else _round_up(M, 8)
    M_pad = _round_up(M, tm)
    tk = 256 if K > 128 else 128
    K_pad = _round_up(K, tk)

    if M_pad != M or K_pad != K:
        patches = jnp.pad(patches, ((0, M_pad - M), (0, K_pad - K)))
    if K_pad != K:
        wmat = jnp.pad(wmat, ((0, K_pad - K), (0, 0)))
    if has_res and M_pad != M:
        residual = jnp.pad(residual, ((0, M_pad - M), (0, 0)))

    n_m = M_pad // tm
    n_k = K_pad // tk

    def kernel(*refs):
        if has_res:
            p_ref, w_ref, b_ref, r_ref, o_ref, acc_ref = refs
        else:
            p_ref, w_ref, b_ref, o_ref, acc_ref = refs
        k = pl.program_id(1)

        @pl.when(k == 0)
        def _():
            acc_ref[...] = jnp.zeros_like(acc_ref)

        acc_ref[...] += jnp.dot(p_ref[...], w_ref[...],
                                preferred_element_type=jnp.float32)

        @pl.when(k == pl.num_programs(1) - 1)
        def _():
            y = acc_ref[...] + b_ref[...]
            if has_res:
                y = y + r_ref[...].astype(jnp.float32)
            if relu:
                y = jnp.maximum(y, 0.0)
            o_ref[...] = y.astype(o_ref.dtype)

    in_specs = [
        pl.BlockSpec((tm, tk), lambda i, k: (i, k)),       # patches tile
        pl.BlockSpec((tk, Cout), lambda i, k: (k, 0)),     # weight tile
        pl.BlockSpec((1, Cout), lambda i, k: (0, 0)),      # bias (folded BN)
    ]
    args = [patches, wmat, bias]
    if has_res:
        in_specs.append(pl.BlockSpec((tm, Cout), lambda i, k: (i, 0)))
        args.append(residual)

    itemsize = jnp.dtype(ACT_DTYPE).itemsize
    out = pl.pallas_call(
        kernel,
        grid=(n_m, n_k),
        in_specs=in_specs,
        out_specs=pl.BlockSpec((tm, Cout), lambda i, k: (i, 0)),
        out_shape=jax.ShapeDtypeStruct((M_pad, Cout), out_dtype),
        scratch_shapes=[pltpu.VMEM((tm, Cout), jnp.float32)],
        compiler_params=pltpu.CompilerParams(
            dimension_semantics=("parallel", "arbitrary")),
        cost_estimate=pl.CostEstimate(
            flops=2 * M_pad * K_pad * Cout,
            transcendentals=0,
            bytes_accessed=(M_pad * K_pad * itemsize
                            + n_m * K_pad * Cout * itemsize
                            + M_pad * Cout * itemsize
                            + (M_pad * Cout * itemsize if has_res else 0))),
    )(*args)
    return out[:M] if M_pad != M else out


def conv_bn_act(x, p, stride, pad, relu=True, residual=None):
    w = p["w"]                                             # [Cout, Cin, KH, KW] (PyTorch layout)
    Cout, Cin, KH, KW = w.shape
    patches, (N, Ho, Wo) = _im2col(x, KH, KW, stride, pad)
    # Fold the (inference) batch-norm scale into the weight matrix so the kernel
    # epilogue is just +bias (+residual, +relu).
    wmat = jnp.transpose(w, (2, 3, 1, 0)).reshape(KH * KW * Cin, Cout)
    wmat = (wmat * p["scale"]).astype(ACT_DTYPE)
    res = residual.reshape(N * Ho * Wo, Cout) if residual is not None else None
    out = _conv_matmul(patches.astype(ACT_DTYPE), wmat, p["bias"], res, relu, ACT_DTYPE)
    return out.reshape(N, Ho, Wo, Cout)


# --------------------------------------------------------------------------- pooling
def maxpool3x3_s2(x):
    """Plain-JAX shifted-window max (XLA fuses the 9 maxima; no 9x HBM copy)."""
    N, H, W, C = x.shape
    Ho = (H + 2 - 3) // 2 + 1
    Wo = (W + 2 - 3) // 2 + 1
    neg = jnp.asarray(-jnp.inf, x.dtype)
    xp = jnp.pad(x, ((0, 0), (1, 1), (1, 1), (0, 0)), constant_values=neg)
    out = None
    for i in range(3):
        for j in range(3):
            win = xp[:, i:i + Ho * 2:2, j:j + Wo * 2:2, :]
            out = win if out is None else jnp.maximum(out, win)
    return out


# ---------------------------------------------------- fused head: avgpool + fc + dropout
def _head(x, fc_w, fc_b, drop_mask, num_classes):
    """x: [N,H,W,512] -> global avg-pool -> fc (lane-padded to 128) -> dropout mask."""
    N, H, W, C = x.shape
    CP = 128                                               # lane-dense fc output
    xr = x.reshape(N, H * W, C)
    w_p = jnp.zeros((C, CP), ACT_DTYPE).at[:, :num_classes].set(fc_w.astype(ACT_DTYPE))
    b_p = jnp.zeros((1, CP), jnp.float32).at[:, :num_classes].set(
        fc_b.reshape(1, -1).astype(jnp.float32))

    def kernel(x_ref, w_ref, b_ref, m_ref, o_ref):
        feat = jnp.mean(x_ref[...].astype(jnp.float32), axis=1)         # [N, C]
        logits = jnp.dot(feat.astype(ACT_DTYPE), w_ref[...],
                         preferred_element_type=jnp.float32) + b_ref[...]
        o_ref[...] = (logits * m_ref[...]).astype(o_ref.dtype)

    out = pl.pallas_call(
        kernel,
        grid=(1,),
        in_specs=[
            pl.BlockSpec(xr.shape, lambda i: (0, 0, 0)),
            pl.BlockSpec(w_p.shape, lambda i: (0, 0)),
            pl.BlockSpec(b_p.shape, lambda i: (0, 0)),
            pl.BlockSpec((N, CP), lambda i: (0, 0)),
        ],
        out_specs=pl.BlockSpec((N, CP), lambda i: (0, 0)),
        out_shape=jax.ShapeDtypeStruct((N, CP), jnp.float32),
    )(xr, w_p, b_p, drop_mask)
    return out[:, :num_classes]


def _dropout_mask(seed, shape, p):
    """Inverted-dropout keep/scale mask (training-mode, matching the original module)."""
    if p <= 0.0:
        return jnp.ones(shape, jnp.float32)
    key = jax.random.PRNGKey(seed)
    keep = jax.random.uniform(key, shape) >= p
    return keep.astype(jnp.float32) * (1.0 / (1.0 - p))


# --------------------------------------------------------------------------- parameters
def _make_conv_bn(key, cin, cout, k):
    k1, k2, k3, k4, k5 = jax.random.split(key, 5)
    w = jax.random.normal(k1, (cout, cin, k, k), jnp.float32) * 0.05
    gamma = jax.random.uniform(k2, (cout,), minval=0.5, maxval=1.5)
    beta = jax.random.normal(k3, (cout,)) * 0.05
    mean = jax.random.normal(k4, (cout,)) * 0.05
    var = jax.random.uniform(k5, (cout,), minval=0.5, maxval=1.5)
    scale = gamma / jnp.sqrt(var + 1e-5)                   # folded (inference) batchnorm
    bias = beta - mean * scale
    return {"w": w, "scale": scale.reshape(1, cout).astype(jnp.float32),
            "bias": bias.reshape(1, cout).astype(jnp.float32)}


def init_params(key, num_classes=NUM_CLASSES):
    keys = iter(jax.random.split(key, 64))
    params = {"conv1": _make_conv_bn(next(keys), 3, 64, 7)}
    cfg = [("layer1", 64, 64, 1), ("layer2", 64, 128, 2),
           ("layer3", 128, 256, 2), ("layer4", 256, 512, 2)]
    for name, cin, cout, stride in cfg:
        b0 = {"conv1": _make_conv_bn(next(keys), cin, cout, 3),
              "conv2": _make_conv_bn(next(keys), cout, cout, 3)}
        if stride != 1 or cin != cout:
            b0["downsample"] = _make_conv_bn(next(keys), cin, cout, 1)
        b1 = {"conv1": _make_conv_bn(next(keys), cout, cout, 3),
              "conv2": _make_conv_bn(next(keys), cout, cout, 3)}
        params[name] = [b0, b1]
    kw, kb = jax.random.split(next(keys))
    params["fc_w"] = jax.random.normal(kw, (512, num_classes), jnp.float32) * 0.05
    params["fc_b"] = (jax.random.normal(kb, (num_classes,), jnp.float32) * 0.05).reshape(1, -1)
    return params


# --------------------------------------------------------------------------- forward pass
def basic_block(x, p, stride):
    identity = x
    out = conv_bn_act(x, p["conv1"], stride=stride, pad=1, relu=True)
    if "downsample" in p:
        identity = conv_bn_act(x, p["downsample"], stride=stride, pad=0, relu=False)
    out = conv_bn_act(out, p["conv2"], stride=1, pad=1, relu=True, residual=identity)
    return out


@functools.partial(jax.jit, static_argnames=("dr_rate",))
def resnet18_forward(params, x_nchw, seed, dr_rate=DR_RATE):
    x = jnp.transpose(x_nchw, (0, 2, 3, 1)).astype(ACT_DTYPE)   # NCHW -> NHWC, bf16
    x = conv_bn_act(x, params["conv1"], stride=2, pad=3, relu=True)
    x = maxpool3x3_s2(x)
    for name, stride in [("layer1", 1), ("layer2", 2), ("layer3", 2), ("layer4", 2)]:
        blocks = params[name]
        x = basic_block(x, blocks[0], stride)
        x = basic_block(x, blocks[1], 1)
    N = x.shape[0]
    mask = _dropout_mask(seed, (N, 128), dr_rate)               # dropout after new fc
    return _head(x, params["fc_w"], params["fc_b"], mask, NUM_CLASSES)


# --------------------------------------------------------------------------- main
if __name__ == "__main__":
    root = jax.random.PRNGKey(0)
    k_x, k_p = jax.random.split(root)
    x = jax.random.normal(k_x, (2, 3, 64, 64), jnp.float32)     # NCHW, like PyTorch
    params = init_params(k_p, num_classes=NUM_CLASSES)

    out = resnet18_forward(params, x, 0, dr_rate=DR_RATE)
    out = jax.block_until_ready(out)

    assert out.shape == (2, NUM_CLASSES), out.shape
    assert bool(jnp.all(jnp.isfinite(out)))
    print("KERNEL_OK")
</pallas_src>

<mosaic_0001>
module attributes {stable_mosaic.version = 11 : i64} {
  func.func @kernel(%arg0: i32, %arg1: i32, %arg2: memref<256x256xbf16, #tpu.memory_space<vmem>>, %arg3: memref<256x64xbf16, #tpu.memory_space<vmem>>, %arg4: memref<1x64xf32, #tpu.memory_space<vmem>>, %arg5: memref<256x64xbf16, #tpu.memory_space<vmem>>, %arg6: memref<256x64xf32, #tpu.memory_space<vmem>>) attributes {dimension_semantics = [#tpu.dimension_semantics<parallel>, #tpu.dimension_semantics<arbitrary>], iteration_bounds = array<i64: 8, 1>, scalar_prefetch = 0 : i64, scratch_operands = 1 : i64, tpu.core_type = #tpu.core_type<tc>, window_params = [{transform_indices = @transform_0, window_bounds = array<i64: 256, 256>}, {transform_indices = @transform_1, window_bounds = array<i64: 256, 64>}, {pipeline_mode = #tpu.pipeline_mode<synchronous>, transform_indices = @transform_2, window_bounds = array<i64: 1, 64>}, {transform_indices = @transform_3, window_bounds = array<i64: 256, 64>}]} {
    %c0_i32 = arith.constant 0 : i32
    %0 = arith.cmpi eq, %arg1, %c0_i32 : i32
    %1 = arith.extui %0 : i1 to i32
    %c0_i32_0 = arith.constant 0 : i32
    %2 = arith.cmpi ne, %1, %c0_i32_0 : i32
    scf.if %2 {
      %cst_10 = arith.constant 0.000000e+00 : f32
      %12 = vector.broadcast %cst_10 : f32 to vector<256x64xf32>
      %c0_11 = arith.constant 0 : index
      %c0_12 = arith.constant 0 : index
      %13 = vector.load %arg6[%c0_11, %c0_12] : memref<256x64xf32, #tpu.memory_space<vmem>>, vector<256x64xf32>
      tpu.vector_store %arg6[%c0_11, %c0_12], %12 {strides = array<i32>} : memref<256x64xf32, #tpu.memory_space<vmem>>, vector<256x64xf32>,
    } else {
    }
    %c0 = arith.constant 0 : index
    %c0_1 = arith.constant 0 : index
    %3 = vector.load %arg6[%c0, %c0_1] : memref<256x64xf32, #tpu.memory_space<vmem>>, vector<256x64xf32>
    %c0_2 = arith.constant 0 : index
    %c0_3 = arith.constant 0 : index
    %4 = vector.load %arg2[%c0_2, %c0_3] : memref<256x256xbf16, #tpu.memory_space<vmem>>, vector<256x256xbf16>
    %c0_4 = arith.constant 0 : index
    %c0_5 = arith.constant 0 : index
    %5 = vector.load %arg3[%c0_4, %c0_5] : memref<256x64xbf16, #tpu.memory_space<vmem>>, vector<256x64xbf16>
    %cst = arith.constant dense<0.000000e+00> : vector<256x64xf32>
    %6 = tpu.matmul %4, %5, %cst {dimension_numbers = #tpu.dot_dimension_numbers<[1], [0], [0], [1], [0, 0, 1, 1], [], []>} : vector<256x256xbf16>, vector<256x64xbf16>, vector<256x64xf32> -> vector<256x64xf32>
    %7 = arith.addf %3, %6 : vector<256x64xf32>
    %c0_6 = arith.constant 0 : index
    %c0_7 = arith.constant 0 : index
    %8 = vector.load %arg6[%c0_6, %c0_7] : memref<256x64xf32, #tpu.memory_space<vmem>>, vector<256x64xf32>
    tpu.vector_store %arg6[%c0_6, %c0_7], %7 {strides = array<i32>} : memref<256x64xf32, #tpu.memory_space<vmem>>, vector<256x64xf32>,
    %c0_i32_8 = arith.constant 0 : i32
    %9 = arith.cmpi eq, %arg1, %c0_i32_8 : i32
    %10 = arith.extui %9 : i1 to i32
    %c0_i32_9 = arith.constant 0 : i32
    %11 = arith.cmpi ne, %10, %c0_i32_9 : i32
    scf.if %11 {
      %c0_10 = arith.constant 0 : index
      %c0_11 = arith.constant 0 : index
      %12 = vector.load %arg6[%c0_10, %c0_11] : memref<256x64xf32, #tpu.memory_space<vmem>>, vector<256x64xf32>
      %c0_12 = arith.constant 0 : index
      %c0_13 = arith.constant 0 : index
      %13 = vector.load %arg4[%c0_12, %c0_13] : memref<1x64xf32, #tpu.memory_space<vmem>>, vector<1x64xf32>
      %14 = vector.broadcast %13 : vector<1x64xf32> to vector<256x64xf32>
      %15 = arith.addf %12, %14 : vector<256x64xf32>
      %cst_14 = arith.constant 0.000000e+00 : f32
      %16 = vector.broadcast %cst_14 : f32 to vector<256x64xf32>
      %17 = arith.maximumf %15, %16 : vector<256x64xf32>
      %18 = arith.truncf %17 : vector<256x64xf32> to vector<256x64xbf16>
      %c0_15 = arith.constant 0 : index
      %c0_16 = arith.constant 0 : index
      %19 = vector.load %arg5[%c0_15, %c0_16] : memref<256x64xbf16, #tpu.memory_space<vmem>>, vector<256x64xbf16>
      tpu.vector_store %arg5[%c0_15, %c0_16], %18 {strides = array<i32>} : memref<256x64xbf16, #tpu.memory_space<vmem>>, vector<256x64xbf16>,
    } else {
    }
    return
  }
  func.func @transform_0(%arg0: i32, %arg1: i32) -> (i32, i32) {
    %c0_i32 = arith.constant 0 : i32
    return %arg0, %arg1 : i32, i32
  }
  func.func @transform_1(%arg0: i32, %arg1: i32) -> (i32, i32) {
    %c0_i32 = arith.constant 0 : i32
    %c0_i32_0 = arith.constant 0 : i32
    return %arg1, %c0_i32 : i32, i32
  }
  func.func @transform_2(%arg0: i32, %arg1: i32) -> (i32, i32) {
    %c0_i32 = arith.constant 0 : i32
    %c0_i32_0 = arith.constant 0 : i32
    %c0_i32_1 = arith.constant 0 : i32
    return %c0_i32, %c0_i32_0 : i32, i32
  }
  func.func @transform_3(%arg0: i32, %arg1: i32) -> (i32, i32) {
    %c0_i32 = arith.constant 0 : i32
    %c0_i32_0 = arith.constant 0 : i32
    return %arg0, %c0_i32 : i32, i32
  }
}

module attributes {stable_mosaic.version = 11 : i64} {
  func.func @kernel(%arg0: i32, %arg1: i32, %arg2: memref<256x256xbf16, #tpu.memory_space<vmem>>, %arg3: memref<256x64xbf16, #tpu.memory_space<vmem>>, %arg4: memref<1x64xf32, #tpu.memory_space<vmem>>, %arg5: memref<256x64xbf16, #tpu.memory_space<vmem>>, %arg6: memref<256x64xf32, #tpu.memory_space<vmem>>) attributes {dimension_semantics = [#tpu.dimension_semantics<parallel>, #tpu.dimension_semantics<arbitrary>], iteration_bounds = array<i64: 2, 3>, scalar_prefetch = 0 : i64, scratch_operands = 1 : i64, tpu.core_type = #tpu.core_type<tc>, window_params = [{transform_indices = @transform_0, window_bounds = array<i64: 256, 256>}, {transform_indices = @transform_1, window_bounds = array<i64: 256, 64>}, {pipeline_mode = #tpu.pipeline_mode<synchronous>, transform_indices = @transform_2, window_bounds = array<i64: 1, 64>}, {transform_indices = @transform_3, window_bounds = array<i64: 256, 64>}]} {
    %c0_i32 = arith.constant 0 : i32
    %0 = arith.cmpi eq, %arg1, %c0_i32 : i32
    %1 = arith.extui %0 : i1 to i32
    %c0_i32_0 = arith.constant 0 : i32
    %2 = arith.cmpi ne, %1, %c0_i32_0 : i32
    scf.if %2 {
      %cst_9 = arith.constant 0.000000e+00 : f32
      %12 = vector.broadcast %cst_9 : f32 to vector<256x64xf32>
      %c0_10 = arith.constant 0 : index
      %c0_11 = arith.constant 0 : index
      %13 = vector.load %arg6[%c0_10, %c0_11] : memref<256x64xf32, #tpu.memory_space<vmem>>, vector<256x64xf32>
      tpu.vector_store %arg6[%c0_10, %c0_11], %12 {strides = array<i32>} : memref<256x64xf32, #tpu.memory_space<vmem>>, vector<256x64xf32>,
    } else {
    }
    %c0 = arith.constant 0 : index
    %c0_1 = arith.constant 0 : index
    %3 = vector.load %arg6[%c0, %c0_1] : memref<256x64xf32, #tpu.memory_space<vmem>>, vector<256x64xf32>
    %c0_2 = arith.constant 0 : index
    %c0_3 = arith.constant 0 : index
    %4 = vector.load %arg2[%c0_2, %c0_3] : memref<256x256xbf16, #tpu.memory_space<vmem>>, vector<256x256xbf16>
    %c0_4 = arith.constant 0 : index
    %c0_5 = arith.constant 0 : index
    %5 = vector.load %arg3[%c0_4, %c0_5] : memref<256x64xbf16, #tpu.memory_space<vmem>>, vector<256x64xbf16>
    %cst = arith.constant dense<0.000000e+00> : vector<256x64xf32>
    %6 = tpu.matmul %4, %5, %cst {dimension_numbers = #tpu.dot_dimension_numbers<[1], [0], [0], [1], [0, 0, 1, 1], [], []>} : vector<256x256xbf16>, vector<256x64xbf16>, vector<256x64xf32> -> vector<256x64xf32>
    %7 = arith.addf %3, %6 : vector<256x64xf32>
    %c0_6 = arith.constant 0 : index
    %c0_7 = arith.constant 0 : index
    %8 = vector.load %arg6[%c0_6, %c0_7] : memref<256x64xf32, #tpu.memory_space<vmem>>, vector<256x64xf32>
    tpu.vector_store %arg6[%c0_6, %c0_7], %7 {strides = array<i32>} : memref<256x64xf32, #tpu.memory_space<vmem>>, vector<256x64xf32>,
    %c2_i32 = arith.constant 2 : i32
    %9 = arith.cmpi eq, %arg1, %c2_i32 : i32
    %10 = arith.extui %9 : i1 to i32
    %c0_i32_8 = arith.constant 0 : i32
    %11 = arith.cmpi ne, %10, %c0_i32_8 : i32
    scf.if %11 {
      %c0_9 = arith.constant 0 : index
      %c0_10 = arith.constant 0 : index
      %12 = vector.load %arg6[%c0_9, %c0_10] : memref<256x64xf32, #tpu.memory_space<vmem>>, vector<256x64xf32>
      %c0_11 = arith.constant 0 : index
      %c0_12 = arith.constant 0 : index
      %13 = vector.load %arg4[%c0_11, %c0_12] : memref<1x64xf32, #tpu.memory_space<vmem>>, vector<1x64xf32>
      %14 = vector.broadcast %13 : vector<1x64xf32> to vector<256x64xf32>
      %15 = arith.addf %12, %14 : vector<256x64xf32>
      %cst_13 = arith.constant 0.000000e+00 : f32
      %16 = vector.broadcast %cst_13 : f32 to vector<256x64xf32>
      %17 = arith.maximumf %15, %16 : vector<256x64xf32>
      %18 = arith.truncf %17 : vector<256x64xf32> to vector<256x64xbf16>
      %c0_14 = arith.constant 0 : index
      %c0_15 = arith.constant 0 : index
      %19 = vector.load %arg5[%c0_14, %c0_15] : memref<256x64xbf16, #tpu.memory_space<vmem>>, vector<256x64xbf16>
      tpu.vector_store %arg5[%c0_14, %c0_15], %18 {strides = array<i32>} : memref<256x64xbf16, #tpu.memory_space<vmem>>, vector<256x64xbf16>,
    } else {
    }
    return
  }
  func.func @transform_0(%arg0: i32, %arg1: i32) -> (i32, i32) {
    %c0_i32 = arith.constant 0 : i32
    return %arg0, %arg1 : i32, i32
  }
  func.func @transform_1(%arg0: i32, %arg1: i32) -> (i32, i32) {
    %c0_i32 = arith.constant 0 : i32
    %c0_i32_0 = arith.constant 0 : i32
    return %arg1, %c0_i32 : i32, i32
  }
  func.func @transform_2(%arg0: i32, %arg1: i32) -> (i32, i32) {
    %c0_i32 = arith.constant 0 : i32
    %c0_i32_0 = arith.constant 0 : i32
    %c0_i32_1 = arith.constant 0 : i32
    return %c0_i32, %c0_i32_0 : i32, i32
  }
  func.func @transform_3(%arg0: i32, %arg1: i32) -> (i32, i32) {
    %c0_i32 = arith.constant 0 : i32
    %c0_i32_0 = arith.constant 0 : i32
    return %arg0, %c0_i32 : i32, i32
  }
}

module attributes {stable_mosaic.version = 11 : i64} {
  func.func @kernel(%arg0: i32, %arg1: i32, %arg2: memref<256x256xbf16, #tpu.memory_space<vmem>>, %arg3: memref<256x64xbf16, #tpu.memory_space<vmem>>, %arg4: memref<1x64xf32, #tpu.memory_space<vmem>>, %arg5: memref<256x64xbf16, #tpu.memory_space<vmem>>, %arg6: memref<256x64xbf16, #tpu.memory_space<vmem>>, %arg7: memref<256x64xf32, #tpu.memory_space<vmem>>) attributes {dimension_semantics = [#tpu.dimension_semantics<parallel>, #tpu.dimension_semantics<arbitrary>], iteration_bounds = array<i64: 2, 3>, scalar_prefetch = 0 : i64, scratch_operands = 1 : i64, tpu.core_type = #tpu.core_type<tc>, window_params = [{transform_indices = @transform_0, window_bounds = array<i64: 256, 256>}, {transform_indices = @transform_1, window_bounds = array<i64: 256, 64>}, {pipeline_mode = #tpu.pipeline_mode<synchronous>, transform_indices = @transform_2, window_bounds = array<i64: 1, 64>}, {transform_indices = @transform_3, window_bounds = array<i64: 256, 64>}, {transform_indices = @transform_4, window_bounds = array<i64: 256, 64>}]} {
    %c0_i32 = arith.constant 0 : i32
    %0 = arith.cmpi eq, %arg1, %c0_i32 : i32
    %1 = arith.extui %0 : i1 to i32
    %c0_i32_0 = arith.constant 0 : i32
    %2 = arith.cmpi ne, %1, %c0_i32_0 : i32
    scf.if %2 {
      %cst_9 = arith.constant 0.000000e+00 : f32
      %12 = vector.broadcast %cst_9 : f32 to vector<256x64xf32>
      %c0_10 = arith.constant 0 : index
      %c0_11 = arith.constant 0 : index
      %13 = vector.load %arg7[%c0_10, %c0_11] : memref<256x64xf32, #tpu.memory_space<vmem>>, vector<256x64xf32>
      tpu.vector_store %arg7[%c0_10, %c0_11], %12 {strides = array<i32>} : memref<256x64xf32, #tpu.memory_space<vmem>>, vector<256x64xf32>,
    } else {
    }
    %c0 = arith.constant 0 : index
    %c0_1 = arith.constant 0 : index
    %3 = vector.load %arg7[%c0, %c0_1] : memref<256x64xf32, #tpu.memory_space<vmem>>, vector<256x64xf32>
    %c0_2 = arith.constant 0 : index
    %c0_3 = arith.constant 0 : index
    %4 = vector.load %arg2[%c0_2, %c0_3] : memref<256x256xbf16, #tpu.memory_space<vmem>>, vector<256x256xbf16>
    %c0_4 = arith.constant 0 : index
    %c0_5 = arith.constant 0 : index
    %5 = vector.load %arg3[%c0_4, %c0_5] : memref<256x64xbf16, #tpu.memory_space<vmem>>, vector<256x64xbf16>
    %cst = arith.constant dense<0.000000e+00> : vector<256x64xf32>
    %6 = tpu.matmul %4, %5, %cst {dimension_numbers = #tpu.dot_dimension_numbers<[1], [0], [0], [1], [0, 0, 1, 1], [], []>} : vector<256x256xbf16>, vector<256x64xbf16>, vector<256x64xf32> -> vector<256x64xf32>
    %7 = arith.addf %3, %6 : vector<256x64xf32>
    %c0_6 = arith.constant 0 : index
    %c0_7 = arith.constant 0 : index
    %8 = vector.load %arg7[%c0_6, %c0_7] : memref<256x64xf32, #tpu.memory_space<vmem>>, vector<256x64xf32>
    tpu.vector_store %arg7[%c0_6, %c0_7], %7 {strides = array<i32>} : memref<256x64xf32, #tpu.memory_space<vmem>>, vector<256x64xf32>,
    %c2_i32 = arith.constant 2 : i32
    %9 = arith.cmpi eq, %arg1, %c2_i32 : i32
    %10 = arith.extui %9 : i1 to i32
    %c0_i32_8 = arith.constant 0 : i32
    %11 = arith.cmpi ne, %10, %c0_i32_8 : i32
    scf.if %11 {
      %c0_9 = arith.constant 0 : index
      %c0_10 = arith.constant 0 : index
      %12 = vector.load %arg7[%c0_9, %c0_10] : memref<256x64xf32, #tpu.memory_space<vmem>>, vector<256x64xf32>
      %c0_11 = arith.constant 0 : index
      %c0_12 = arith.constant 0 : index
      %13 = vector.load %arg4[%c0_11, %c0_12] : memref<1x64xf32, #tpu.memory_space<vmem>>, vector<1x64xf32>
      %14 = vector.broadcast %13 : vector<1x64xf32> to vector<256x64xf32>
      %15 = arith.addf %12, %14 : vector<256x64xf32>
      %c0_13 = arith.constant 0 : index
      %c0_14 = arith.constant 0 : index
      %16 = vector.load %arg5[%c0_13, %c0_14] : memref<256x64xbf16, #tpu.memory_space<vmem>>, vector<256x64xbf16>
      %17 = arith.extf %16 : vector<256x64xbf16> to vector<256x64xf32>
      %18 = arith.addf %15, %17 : vector<256x64xf32>
      %cst_15 = arith.constant 0.000000e+00 : f32
      %19 = vector.broadcast %cst_15 : f32 to vector<256x64xf32>
      %20 = arith.maximumf %18, %19 : vector<256x64xf32>
      %21 = arith.truncf %20 : vector<256x64xf32> to vector<256x64xbf16>
      %c0_16 = arith.constant 0 : index
      %c0_17 = arith.constant 0 : index
      %22 = vector.load %arg6[%c0_16, %c0_17] : memref<256x64xbf16, #tpu.memory_space<vmem>>, vector<256x64xbf16>
      tpu.vector_store %arg6[%c0_16, %c0_17], %21 {strides = array<i32>} : memref<256x64xbf16, #tpu.memory_space<vmem>>, vector<256x64xbf16>,
    } else {
    }
    return
  }
  func.func @transform_0(%arg0: i32, %arg1: i32) -> (i32, i32) {
    %c0_i32 = arith.constant 0 : i32
    return %arg0, %arg1 : i32, i32
  }
  func.func @transform_1(%arg0: i32, %arg1: i32) -> (i32, i32) {
    %c0_i32 = arith.constant 0 : i32
    %c0_i32_0 = arith.constant 0 : i32
    return %arg1, %c0_i32 : i32, i32
  }
  func.func @transform_2(%arg0: i32, %arg1: i32) -> (i32, i32) {
    %c0_i32 = arith.constant 0 : i32
    %c0_i32_0 = arith.constant 0 : i32
    %c0_i32_1 = arith.constant 0 : i32
    return %c0_i32, %c0_i32_0 : i32, i32
  }
  func.func @transform_3(%arg0: i32, %arg1: i32) -> (i32, i32) {
    %c0_i32 = arith.constant 0 : i32
    %c0_i32_0 = arith.constant 0 : i32
    return %arg0, %c0_i32 : i32, i32
  }
  func.func @transform_4(%arg0: i32, %arg1: i32) -> (i32, i32) {
    %c0_i32 = arith.constant 0 : i32
    %c0_i32_0 = arith.constant 0 : i32
    return %arg0, %c0_i32 : i32, i32
  }
}

module attributes {stable_mosaic.version = 11 : i64} {
  func.func @kernel(%arg0: i32, %arg1: i32, %arg2: memref<128x256xbf16, #tpu.memory_space<vmem>>, %arg3: memref<256x128xbf16, #tpu.memory_space<vmem>>, %arg4: memref<1x128xf32, #tpu.memory_space<vmem>>, %arg5: memref<128x128xbf16, #tpu.memory_space<vmem>>, %arg6: memref<128x128xf32, #tpu.memory_space<vmem>>) attributes {dimension_semantics = [#tpu.dimension_semantics<parallel>, #tpu.dimension_semantics<arbitrary>], iteration_bounds = array<i64: 1, 3>, scalar_prefetch = 0 : i64, scratch_operands = 1 : i64, tpu.core_type = #tpu.core_type<tc>, window_params = [{transform_indices = @transform_0, window_bounds = array<i64: 128, 256>}, {transform_indices = @transform_1, window_bounds = array<i64: 256, 128>}, {pipeline_mode = #tpu.pipeline_mode<synchronous>, transform_indices = @transform_2, window_bounds = array<i64: 1, 128>}, {transform_indices = @transform_3, window_bounds = array<i64: 128, 128>}]} {
    %c0_i32 = arith.constant 0 : i32
    %0 = arith.cmpi eq, %arg1, %c0_i32 : i32
    %1 = arith.extui %0 : i1 to i32
    %c0_i32_0 = arith.constant 0 : i32
    %2 = arith.cmpi ne, %1, %c0_i32_0 : i32
    scf.if %2 {
      %cst_9 = arith.constant 0.000000e+00 : f32
      %12 = vector.broadcast %cst_9 : f32 to vector<128x128xf32>
      %c0_10 = arith.constant 0 : index
      %c0_11 = arith.constant 0 : index
      %13 = vector.load %arg6[%c0_10, %c0_11] : memref<128x128xf32, #tpu.memory_space<vmem>>, vector<128x128xf32>
      tpu.vector_store %arg6[%c0_10, %c0_11], %12 {strides = array<i32>} : memref<128x128xf32, #tpu.memory_space<vmem>>, vector<128x128xf32>,
    } else {
    }
    %c0 = arith.constant 0 : index
    %c0_1 = arith.constant 0 : index
    %3 = vector.load %arg6[%c0, %c0_1] : memref<128x128xf32, #tpu.memory_space<vmem>>, vector<128x128xf32>
    %c0_2 = arith.constant 0 : index
    %c0_3 = arith.constant 0 : index
    %4 = vector.load %arg2[%c0_2, %c0_3] : memref<128x256xbf16, #tpu.memory_space<vmem>>, vector<128x256xbf16>
    %c0_4 = arith.constant 0 : index
    %c0_5 = arith.constant 0 : index
    %5 = vector.load %arg3[%c0_4, %c0_5] : memref<256x128xbf16, #tpu.memory_space<vmem>>, vector<256x128xbf16>
    %cst = arith.constant dense<0.000000e+00> : vector<128x128xf32>
    %6 = tpu.matmul %4, %5, %cst {dimension_numbers = #tpu.dot_dimension_numbers<[1], [0], [0], [1], [0, 0, 1, 1], [], []>} : vector<128x256xbf16>, vector<256x128xbf16>, vector<128x128xf32> -> vector<128x128xf32>
    %7 = arith.addf %3, %6 : vector<128x128xf32>
    %c0_6 = arith.constant 0 : index
    %c0_7 = arith.constant 0 : index
    %8 = vector.load %arg6[%c0_6, %c0_7] : memref<128x128xf32, #tpu.memory_space<vmem>>, vector<128x128xf32>
    tpu.vector_store %arg6[%c0_6, %c0_7], %7 {strides = array<i32>} : memref<128x128xf32, #tpu.memory_space<vmem>>, vector<128x128xf32>,
    %c2_i32 = arith.constant 2 : i32
    %9 = arith.cmpi eq, %arg1, %c2_i32 : i32
    %10 = arith.extui %9 : i1 to i32
    %c0_i32_8 = arith.constant 0 : i32
    %11 = arith.cmpi ne, %10, %c0_i32_8 : i32
    scf.if %11 {
      %c0_9 = arith.constant 0 : index
      %c0_10 = arith.constant 0 : index
      %12 = vector.load %arg6[%c0_9, %c0_10] : memref<128x128xf32, #tpu.memory_space<vmem>>, vector<128x128xf32>
      %c0_11 = arith.constant 0 : index
      %c0_12 = arith.constant 0 : index
      %13 = vector.load %arg4[%c0_11, %c0_12] : memref<1x128xf32, #tpu.memory_space<vmem>>, vector<1x128xf32>
      %14 = vector.broadcast %13 : vector<1x128xf32> to vector<128x128xf32>
      %15 = arith.addf %12, %14 : vector<128x128xf32>
      %cst_13 = arith.constant 0.000000e+00 : f32
      %16 = vector.broadcast %cst_13 : f32 to vector<128x128xf32>
      %17 = arith.maximumf %15, %16 : vector<128x128xf32>
      %18 = arith.truncf %17 : vector<128x128xf32> to vector<128x128xbf16>
      %c0_14 = arith.constant 0 : index
      %c0_15 = arith.constant 0 : index
      %19 = vector.load %arg5[%c0_14, %c0_15] : memref<128x128xbf16, #tpu.memory_space<vmem>>, vector<128x128xbf16>
      tpu.vector_store %arg5[%c0_14, %c0_15], %18 {strides = array<i32>} : memref<128x128xbf16, #tpu.memory_space<vmem>>, vector<128x128xbf16>,
    } else {
    }
    return
  }
  func.func @transform_0(%arg0: i32, %arg1: i32) -> (i32, i32) {
    %c0_i32 = arith.constant 0 : i32
    return %arg0, %arg1 : i32, i32
  }
  func.func @transform_1(%arg0: i32, %arg1: i32) -> (i32, i32) {
    %c0_i32 = arith.constant 0 : i32
    %c0_i32_0 = arith.constant 0 : i32
    return %arg1, %c0_i32 : i32, i32
  }
  func.func @transform_2(%arg0: i32, %arg1: i32) -> (i32, i32) {
    %c0_i32 = arith.constant 0 : i32
    %c0_i32_0 = arith.constant 0 : i32
    %c0_i32_1 = arith.constant 0 : i32
    return %c0_i32, %c0_i32_0 : i32, i32
  }
  func.func @transform_3(%arg0: i32, %arg1: i32) -> (i32, i32) {
    %c0_i32 = arith.constant 0 : i32
    %c0_i32_0 = arith.constant 0 : i32
    return %arg0, %c0_i32 : i32, i32
  }
}

module attributes {stable_mosaic.version = 11 : i64} {
  func.func @kernel(%arg0: i32, %arg1: i32, %arg2: memref<128x128xbf16, #tpu.memory_space<vmem>>, %arg3: memref<128x128xbf16, #tpu.memory_space<vmem>>, %arg4: memref<1x128xf32, #tpu.memory_space<vmem>>, %arg5: memref<128x128xbf16, #tpu.memory_space<vmem>>, %arg6: memref<128x128xf32, #tpu.memory_space<vmem>>) attributes {dimension_semantics = [#tpu.dimension_semantics<parallel>, #tpu.dimension_semantics<arbitrary>], iteration_bounds = array<i64: 1, 1>, scalar_prefetch = 0 : i64, scratch_operands = 1 : i64, tpu.core_type = #tpu.core_type<tc>, window_params = [{transform_indices = @transform_0, window_bounds = array<i64: 128, 128>}, {transform_indices = @transform_1, window_bounds = array<i64: 128, 128>}, {pipeline_mode = #tpu.pipeline_mode<synchronous>, transform_indices = @transform_2, window_bounds = array<i64: 1, 128>}, {transform_indices = @transform_3, window_bounds = array<i64: 128, 128>}]} {
    %c0_i32 = arith.constant 0 : i32
    %0 = arith.cmpi eq, %arg1, %c0_i32 : i32
    %1 = arith.extui %0 : i1 to i32
    %c0_i32_0 = arith.constant 0 : i32
    %2 = arith.cmpi ne, %1, %c0_i32_0 : i32
    scf.if %2 {
      %cst_10 = arith.constant 0.000000e+00 : f32
      %12 = vector.broadcast %cst_10 : f32 to vector<128x128xf32>
      %c0_11 = arith.constant 0 : index
      %c0_12 = arith.constant 0 : index
      %13 = vector.load %arg6[%c0_11, %c0_12] : memref<128x128xf32, #tpu.memory_space<vmem>>, vector<128x128xf32>
      tpu.vector_store %arg6[%c0_11, %c0_12], %12 {strides = array<i32>} : memref<128x128xf32, #tpu.memory_space<vmem>>, vector<128x128xf32>,
    } else {
    }
    %c0 = arith.constant 0 : index
    %c0_1 = arith.constant 0 : index
    %3 = vector.load %arg6[%c0, %c0_1] : memref<128x128xf32, #tpu.memory_space<vmem>>, vector<128x128xf32>
    %c0_2 = arith.constant 0 : index
    %c0_3 = arith.constant 0 : index
    %4 = vector.load %arg2[%c0_2, %c0_3] : memref<128x128xbf16, #tpu.memory_space<vmem>>, vector<128x128xbf16>
    %c0_4 = arith.constant 0 : index
    %c0_5 = arith.constant 0 : index
    %5 = vector.load %arg3[%c0_4, %c0_5] : memref<128x128xbf16, #tpu.memory_space<vmem>>, vector<128x128xbf16>
    %cst = arith.constant dense<0.000000e+00> : vector<128x128xf32>
    %6 = tpu.matmul %4, %5, %cst {dimension_numbers = #tpu.dot_dimension_numbers<[1], [0], [0], [1], [0, 0, 1, 1], [], []>} : vector<128x128xbf16>, vector<128x128xbf16>, vector<128x128xf32> -> vector<128x128xf32>
    %7 = arith.addf %3, %6 : vector<128x128xf32>
    %c0_6 = arith.constant 0 : index
    %c0_7 = arith.constant 0 : index
    %8 = vector.load %arg6[%c0_6, %c0_7] : memref<128x128xf32, #tpu.memory_space<vmem>>, vector<128x128xf32>
    tpu.vector_store %arg6[%c0_6, %c0_7], %7 {strides = array<i32>} : memref<128x128xf32, #tpu.memory_space<vmem>>, vector<128x128xf32>,
    %c0_i32_8 = arith.constant 0 : i32
    %9 = arith.cmpi eq, %arg1, %c0_i32_8 : i32
    %10 = arith.extui %9 : i1 to i32
    %c0_i32_9 = arith.constant 0 : i32
    %11 = arith.cmpi ne, %10, %c0_i32_9 : i32
    scf.if %11 {
      %c0_10 = arith.constant 0 : index
      %c0_11 = arith.constant 0 : index
      %12 = vector.load %arg6[%c0_10, %c0_11] : memref<128x128xf32, #tpu.memory_space<vmem>>, vector<128x128xf32>
      %c0_12 = arith.constant 0 : index
      %c0_13 = arith.constant 0 : index
      %13 = vector.load %arg4[%c0_12, %c0_13] : memref<1x128xf32, #tpu.memory_space<vmem>>, vector<1x128xf32>
      %14 = vector.broadcast %13 : vector<1x128xf32> to vector<128x128xf32>
      %15 = arith.addf %12, %14 : vector<128x128xf32>
      %16 = arith.truncf %15 : vector<128x128xf32> to vector<128x128xbf16>
      %c0_14 = arith.constant 0 : index
      %c0_15 = arith.constant 0 : index
      %17 = vector.load %arg5[%c0_14, %c0_15] : memref<128x128xbf16, #tpu.memory_space<vmem>>, vector<128x128xbf16>
      tpu.vector_store %arg5[%c0_14, %c0_15], %16 {strides = array<i32>} : memref<128x128xbf16, #tpu.memory_space<vmem>>, vector<128x128xbf16>,
    } else {
    }
    return
  }
  func.func @transform_0(%arg0: i32, %arg1: i32) -> (i32, i32) {
    %c0_i32 = arith.constant 0 : i32
    return %arg0, %arg1 : i32, i32
  }
  func.func @transform_1(%arg0: i32, %arg1: i32) -> (i32, i32) {
    %c0_i32 = arith.constant 0 : i32
    %c0_i32_0 = arith.constant 0 : i32
    return %arg1, %c0_i32 : i32, i32
  }
  func.func @transform_2(%arg0: i32, %arg1: i32) -> (i32, i32) {
    %c0_i32 = arith.constant 0 : i32
    %c0_i32_0 = arith.constant 0 : i32
    %c0_i32_1 = arith.constant 0 : i32
    return %c0_i32, %c0_i32_0 : i32, i32
  }
  func.func @transform_3(%arg0: i32, %arg1: i32) -> (i32, i32) {
    %c0_i32 = arith.constant 0 : i32
    %c0_i32_0 = arith.constant 0 : i32
    return %arg0, %c0_i32 : i32, i32
  }
}

module attributes {stable_mosaic.version = 11 : i64} {
  func.func @kernel(%arg0: i32, %arg1: i32, %arg2: memref<128x256xbf16, #tpu.memory_space<vmem>>, %arg3: memref<256x128xbf16, #tpu.memory_space<vmem>>, %arg4: memref<1x128xf32, #tpu.memory_space<vmem>>, %arg5: memref<128x128xbf16, #tpu.memory_space<vmem>>, %arg6: memref<128x128xbf16, #tpu.memory_space<vmem>>, %arg7: memref<128x128xf32, #tpu.memory_space<vmem>>) attributes {dimension_semantics = [#tpu.dimension_semantics<parallel>, #tpu.dimension_semantics<arbitrary>], iteration_bounds = array<i64: 1, 5>, scalar_prefetch = 0 : i64, scratch_operands = 1 : i64, tpu.core_type = #tpu.core_type<tc>, window_params = [{transform_indices = @transform_0, window_bounds = array<i64: 128, 256>}, {transform_indices = @transform_1, window_bounds = array<i64: 256, 128>}, {pipeline_mode = #tpu.pipeline_mode<synchronous>, transform_indices = @transform_2, window_bounds = array<i64: 1, 128>}, {transform_indices = @transform_3, window_bounds = array<i64: 128, 128>}, {transform_indices = @transform_4, window_bounds = array<i64: 128, 128>}]} {
    %c0_i32 = arith.constant 0 : i32
    %0 = arith.cmpi eq, %arg1, %c0_i32 : i32
    %1 = arith.extui %0 : i1 to i32
    %c0_i32_0 = arith.constant 0 : i32
    %2 = arith.cmpi ne, %1, %c0_i32_0 : i32
    scf.if %2 {
      %cst_9 = arith.constant 0.000000e+00 : f32
      %12 = vector.broadcast %cst_9 : f32 to vector<128x128xf32>
      %c0_10 = arith.constant 0 : index
      %c0_11 = arith.constant 0 : index
      %13 = vector.load %arg7[%c0_10, %c0_11] : memref<128x128xf32, #tpu.memory_space<vmem>>, vector<128x128xf32>
      tpu.vector_store %arg7[%c0_10, %c0_11], %12 {strides = array<i32>} : memref<128x128xf32, #tpu.memory_space<vmem>>, vector<128x128xf32>,
    } else {
    }
    %c0 = arith.constant 0 : index
    %c0_1 = arith.constant 0 : index
    %3 = vector.load %arg7[%c0, %c0_1] : memref<128x128xf32, #tpu.memory_space<vmem>>, vector<128x128xf32>
    %c0_2 = arith.constant 0 : index
    %c0_3 = arith.constant 0 : index
    %4 = vector.load %arg2[%c0_2, %c0_3] : memref<128x256xbf16, #tpu.memory_space<vmem>>, vector<128x256xbf16>
    %c0_4 = arith.constant 0 : index
    %c0_5 = arith.constant 0 : index
    %5 = vector.load %arg3[%c0_4, %c0_5] : memref<256x128xbf16, #tpu.memory_space<vmem>>, vector<256x128xbf16>
    %cst = arith.constant dense<0.000000e+00> : vector<128x128xf32>
    %6 = tpu.matmul %4, %5, %cst {dimension_numbers = #tpu.dot_dimension_numbers<[1], [0], [0], [1], [0, 0, 1, 1], [], []>} : vector<128x256xbf16>, vector<256x128xbf16>, vector<128x128xf32> -> vector<128x128xf32>
    %7 = arith.addf %3, %6 : vector<128x128xf32>
    %c0_6 = arith.constant 0 : index
    %c0_7 = arith.constant 0 : index
    %8 = vector.load %arg7[%c0_6, %c0_7] : memref<128x128xf32, #tpu.memory_space<vmem>>, vector<128x128xf32>
    tpu.vector_store %arg7[%c0_6, %c0_7], %7 {strides = array<i32>} : memref<128x128xf32, #tpu.memory_space<vmem>>, vector<128x128xf32>,
    %c4_i32 = arith.constant 4 : i32
    %9 = arith.cmpi eq, %arg1, %c4_i32 : i32
    %10 = arith.extui %9 : i1 to i32
    %c0_i32_8 = arith.constant 0 : i32
    %11 = arith.cmpi ne, %10, %c0_i32_8 : i32
    scf.if %11 {
      %c0_9 = arith.constant 0 : index
      %c0_10 = arith.constant 0 : index
      %12 = vector.load %arg7[%c0_9, %c0_10] : memref<128x128xf32, #tpu.memory_space<vmem>>, vector<128x128xf32>
      %c0_11 = arith.constant 0 : index
      %c0_12 = arith.constant 0 : index
      %13 = vector.load %arg4[%c0_11, %c0_12] : memref<1x128xf32, #tpu.memory_space<vmem>>, vector<1x128xf32>
      %14 = vector.broadcast %13 : vector<1x128xf32> to vector<128x128xf32>
      %15 = arith.addf %12, %14 : vector<128x128xf32>
      %c0_13 = arith.constant 0 : index
      %c0_14 = arith.constant 0 : index
      %16 = vector.load %arg5[%c0_13, %c0_14] : memref<128x128xbf16, #tpu.memory_space<vmem>>, vector<128x128xbf16>
      %17 = arith.extf %16 : vector<128x128xbf16> to vector<128x128xf32>
      %18 = arith.addf %15, %17 : vector<128x128xf32>
      %cst_15 = arith.constant 0.000000e+00 : f32
      %19 = vector.broadcast %cst_15 : f32 to vector<128x128xf32>
      %20 = arith.maximumf %18, %19 : vector<128x128xf32>
      %21 = arith.truncf %20 : vector<128x128xf32> to vector<128x128xbf16>
      %c0_16 = arith.constant 0 : index
      %c0_17 = arith.constant 0 : index
      %22 = vector.load %arg6[%c0_16, %c0_17] : memref<128x128xbf16, #tpu.memory_space<vmem>>, vector<128x128xbf16>
      tpu.vector_store %arg6[%c0_16, %c0_17], %21 {strides = array<i32>} : memref<128x128xbf16, #tpu.memory_space<vmem>>, vector<128x128xbf16>,
    } else {
    }
    return
  }
  func.func @transform_0(%arg0: i32, %arg1: i32) -> (i32, i32) {
    %c0_i32 = arith.constant 0 : i32
    return %arg0, %arg1 : i32, i32
  }
  func.func @transform_1(%arg0: i32, %arg1: i32) -> (i32, i32) {
    %c0_i32 = arith.constant 0 : i32
    %c0_i32_0 = arith.constant 0 : i32
    return %arg1, %c0_i32 : i32, i32
  }
  func.func @transform_2(%arg0: i32, %arg1: i32) -> (i32, i32) {
    %c0_i32 = arith.constant 0 : i32
    %c0_i32_0 = arith.constant 0 : i32
    %c0_i32_1 = arith.constant 0 : i32
    return %c0_i32, %c0_i32_0 : i32, i32
  }
  func.func @transform_3(%arg0: i32, %arg1: i32) -> (i32, i32) {
    %c0_i32 = arith.constant 0 : i32
    %c0_i32_0 = arith.constant 0 : i32
    return %arg0, %c0_i32 : i32, i32
  }
  func.func @transform_4(%arg0: i32, %arg1: i32) -> (i32, i32) {
    %c0_i32 = arith.constant 0 : i32
    %c0_i32_0 = arith.constant 0 : i32
    return %arg0, %c0_i32 : i32, i32
  }
}

module attributes {stable_mosaic.version = 11 : i64} {
  func.func @kernel(%arg0: i32, %arg1: i32, %arg2: memref<128x256xbf16, #tpu.memory_space<vmem>>, %arg3: memref<256x128xbf16, #tpu.memory_space<vmem>>, %arg4: memref<1x128xf32, #tpu.memory_space<vmem>>, %arg5: memref<128x128xbf16, #tpu.memory_space<vmem>>, %arg6: memref<128x128xf32, #tpu.memory_space<vmem>>) attributes {dimension_semantics = [#tpu.dimension_semantics<parallel>, #tpu.dimension_semantics<arbitrary>], iteration_bounds = array<i64: 1, 5>, scalar_prefetch = 0 : i64, scratch_operands = 1 : i64, tpu.core_type = #tpu.core_type<tc>, window_params = [{transform_indices = @transform_0, window_bounds = array<i64: 128, 256>}, {transform_indices = @transform_1, window_bounds = array<i64: 256, 128>}, {pipeline_mode = #tpu.pipeline_mode<synchronous>, transform_indices = @transform_2, window_bounds = array<i64: 1, 128>}, {transform_indices = @transform_3, window_bounds = array<i64: 128, 128>}]} {
    %c0_i32 = arith.constant 0 : i32
    %0 = arith.cmpi eq, %arg1, %c0_i32 : i32
    %1 = arith.extui %0 : i1 to i32
    %c0_i32_0 = arith.constant 0 : i32
    %2 = arith.cmpi ne, %1, %c0_i32_0 : i32
    scf.if %2 {
      %cst_9 = arith.constant 0.000000e+00 : f32
      %12 = vector.broadcast %cst_9 : f32 to vector<128x128xf32>
      %c0_10 = arith.constant 0 : index
      %c0_11 = arith.constant 0 : index
      %13 = vector.load %arg6[%c0_10, %c0_11] : memref<128x128xf32, #tpu.memory_space<vmem>>, vector<128x128xf32>
      tpu.vector_store %arg6[%c0_10, %c0_11], %12 {strides = array<i32>} : memref<128x128xf32, #tpu.memory_space<vmem>>, vector<128x128xf32>,
    } else {
    }
    %c0 = arith.constant 0 : index
    %c0_1 = arith.constant 0 : index
    %3 = vector.load %arg6[%c0, %c0_1] : memref<128x128xf32, #tpu.memory_space<vmem>>, vector<128x128xf32>
    %c0_2 = arith.constant 0 : index
    %c0_3 = arith.constant 0 : index
    %4 = vector.load %arg2[%c0_2, %c0_3] : memref<128x256xbf16, #tpu.memory_space<vmem>>, vector<128x256xbf16>
    %c0_4 = arith.constant 0 : index
    %c0_5 = arith.constant 0 : index
    %5 = vector.load %arg3[%c0_4, %c0_5] : memref<256x128xbf16, #tpu.memory_space<vmem>>, vector<256x128xbf16>
    %cst = arith.constant dense<0.000000e+00> : vector<128x128xf32>
    %6 = tpu.matmul %4, %5, %cst {dimension_numbers = #tpu.dot_dimension_numbers<[1], [0], [0], [1], [0, 0, 1, 1], [], []>} : vector<128x256xbf16>, vector<256x128xbf16>, vector<128x128xf32> -> vector<128x128xf32>
    %7 = arith.addf %3, %6 : vector<128x128xf32>
    %c0_6 = arith.constant 0 : index
    %c0_7 = arith.constant 0 : index
    %8 = vector.load %arg6[%c0_6, %c0_7] : memref<128x128xf32, #tpu.memory_space<vmem>>, vector<128x128xf32>
    tpu.vector_store %arg6[%c0_6, %c0_7], %7 {strides = array<i32>} : memref<128x128xf32, #tpu.memory_space<vmem>>, vector<128x128xf32>,
    %c4_i32 = arith.constant 4 : i32
    %9 = arith.cmpi eq, %arg1, %c4_i32 : i32
    %10 = arith.extui %9 : i1 to i32
    %c0_i32_8 = arith.constant 0 : i32
    %11 = arith.cmpi ne, %10, %c0_i32_8 : i32
    scf.if %11 {
      %c0_9 = arith.constant 0 : index
      %c0_10 = arith.constant 0 : index
      %12 = vector.load %arg6[%c0_9, %c0_10] : memref<128x128xf32, #tpu.memory_space<vmem>>, vector<128x128xf32>
      %c0_11 = arith.constant 0 : index
      %c0_12 = arith.constant 0 : index
      %13 = vector.load %arg4[%c0_11, %c0_12] : memref<1x128xf32, #tpu.memory_space<vmem>>, vector<1x128xf32>
      %14 = vector.broadcast %13 : vector<1x128xf32> to vector<128x128xf32>
      %15 = arith.addf %12, %14 : vector<128x128xf32>
      %cst_13 = arith.constant 0.000000e+00 : f32
      %16 = vector.broadcast %cst_13 : f32 to vector<128x128xf32>
      %17 = arith.maximumf %15, %16 : vector<128x128xf32>
      %18 = arith.truncf %17 : vector<128x128xf32> to vector<128x128xbf16>
      %c0_14 = arith.constant 0 : index
      %c0_15 = arith.constant 0 : index
      %19 = vector.load %arg5[%c0_14, %c0_15] : memref<128x128xbf16, #tpu.memory_space<vmem>>, vector<128x128xbf16>
      tpu.vector_store %arg5[%c0_14, %c0_15], %18 {strides = array<i32>} : memref<128x128xbf16, #tpu.memory_space<vmem>>, vector<128x128xbf16>,
    } else {
    }
    return
  }
  func.func @transform_0(%arg0: i32, %arg1: i32) -> (i32, i32) {
    %c0_i32 = arith.constant 0 : i32
    return %arg0, %arg1 : i32, i32
  }
  func.func @transform_1(%arg0: i32, %arg1: i32) -> (i32, i32) {
    %c0_i32 = arith.constant 0 : i32
    %c0_i32_0 = arith.constant 0 : i32
    return %arg1, %c0_i32 : i32, i32
  }
  func.func @transform_2(%arg0: i32, %arg1: i32) -> (i32, i32) {
    %c0_i32 = arith.constant 0 : i32
    %c0_i32_0 = arith.constant 0 : i32
    %c0_i32_1 = arith.constant 0 : i32
    return %c0_i32, %c0_i32_0 : i32, i32
  }
  func.func @transform_3(%arg0: i32, %arg1: i32) -> (i32, i32) {
    %c0_i32 = arith.constant 0 : i32
    %c0_i32_0 = arith.constant 0 : i32
    return %arg0, %c0_i32 : i32, i32
  }
}

module attributes {stable_mosaic.version = 11 : i64} {
  func.func @kernel(%arg0: i32, %arg1: i32, %arg2: memref<32x256xbf16, #tpu.memory_space<vmem>>, %arg3: memref<256x256xbf16, #tpu.memory_space<vmem>>, %arg4: memref<1x256xf32, #tpu.memory_space<vmem>>, %arg5: memref<32x256xbf16, #tpu.memory_space<vmem>>, %arg6: memref<32x256xf32, #tpu.memory_space<vmem>>) attributes {dimension_semantics = [#tpu.dimension_semantics<parallel>, #tpu.dimension_semantics<arbitrary>], iteration_bounds = array<i64: 1, 5>, scalar_prefetch = 0 : i64, scratch_operands = 1 : i64, tpu.core_type = #tpu.core_type<tc>, window_params = [{transform_indices = @transform_0, window_bounds = array<i64: 32, 256>}, {transform_indices = @transform_1, window_bounds = array<i64: 256, 256>}, {pipeline_mode = #tpu.pipeline_mode<synchronous>, transform_indices = @transform_2, window_bounds = array<i64: 1, 256>}, {transform_indices = @transform_3, window_bounds = array<i64: 32, 256>}]} {
    %c0_i32 = arith.constant 0 : i32
    %0 = arith.cmpi eq, %arg1, %c0_i32 : i32
    %1 = arith.extui %0 : i1 to i32
    %c0_i32_0 = arith.constant 0 : i32
    %2 = arith.cmpi ne, %1, %c0_i32_0 : i32
    scf.if %2 {
      %cst_9 = arith.constant 0.000000e+00 : f32
      %12 = vector.broadcast %cst_9 : f32 to vector<32x256xf32>
      %c0_10 = arith.constant 0 : index
      %c0_11 = arith.constant 0 : index
      %13 = vector.load %arg6[%c0_10, %c0_11] : memref<32x256xf32, #tpu.memory_space<vmem>>, vector<32x256xf32>
      tpu.vector_store %arg6[%c0_10, %c0_11], %12 {strides = array<i32>} : memref<32x256xf32, #tpu.memory_space<vmem>>, vector<32x256xf32>,
    } else {
    }
    %c0 = arith.constant 0 : index
    %c0_1 = arith.constant 0 : index
    %3 = vector.load %arg6[%c0, %c0_1] : memref<32x256xf32, #tpu.memory_space<vmem>>, vector<32x256xf32>
    %c0_2 = arith.constant 0 : index
    %c0_3 = arith.constant 0 : index
    %4 = vector.load %arg2[%c0_2, %c0_3] : memref<32x256xbf16, #tpu.memory_space<vmem>>, vector<32x256xbf16>
    %c0_4 = arith.constant 0 : index
    %c0_5 = arith.constant 0 : index
    %5 = vector.load %arg3[%c0_4, %c0_5] : memref<256x256xbf16, #tpu.memory_space<vmem>>, vector<256x256xbf16>
    %cst = arith.constant dense<0.000000e+00> : vector<32x256xf32>
    %6 = tpu.matmul %4, %5, %cst {dimension_numbers = #tpu.dot_dimension_numbers<[1], [0], [0], [1], [0, 0, 1, 1], [], []>} : vector<32x256xbf16>, vector<256x256xbf16>, vector<32x256xf32> -> vector<32x256xf32>
    %7 = arith.addf %3, %6 : vector<32x256xf32>
    %c0_6 = arith.constant 0 : index
    %c0_7 = arith.constant 0 : index
    %8 = vector.load %arg6[%c0_6, %c0_7] : memref<32x256xf32, #tpu.memory_space<vmem>>, vector<32x256xf32>
    tpu.vector_store %arg6[%c0_6, %c0_7], %7 {strides = array<i32>} : memref<32x256xf32, #tpu.memory_space<vmem>>, vector<32x256xf32>,
    %c4_i32 = arith.constant 4 : i32
    %9 = arith.cmpi eq, %arg1, %c4_i32 : i32
    %10 = arith.extui %9 : i1 to i32
    %c0_i32_8 = arith.constant 0 : i32
    %11 = arith.cmpi ne, %10, %c0_i32_8 : i32
    scf.if %11 {
      %c0_9 = arith.constant 0 : index
      %c0_10 = arith.constant 0 : index
      %12 = vector.load %arg6[%c0_9, %c0_10] : memref<32x256xf32, #tpu.memory_space<vmem>>, vector<32x256xf32>
      %c0_11 = arith.constant 0 : index
      %c0_12 = arith.constant 0 : index
      %13 = vector.load %arg4[%c0_11, %c0_12] : memref<1x256xf32, #tpu.memory_space<vmem>>, vector<1x256xf32>
      %14 = vector.broadcast %13 : vector<1x256xf32> to vector<32x256xf32>
      %15 = arith.addf %12, %14 : vector<32x256xf32>
      %cst_13 = arith.constant 0.000000e+00 : f32
      %16 = vector.broadcast %cst_13 : f32 to vector<32x256xf32>
      %17 = arith.maximumf %15, %16 : vector<32x256xf32>
      %18 = arith.truncf %17 : vector<32x256xf32> to vector<32x256xbf16>
      %c0_14 = arith.constant 0 : index
      %c0_15 = arith.constant 0 : index
      %19 = vector.load %arg5[%c0_14, %c0_15] : memref<32x256xbf16, #tpu.memory_space<vmem>>, vector<32x256xbf16>
      tpu.vector_store %arg5[%c0_14, %c0_15], %18 {strides = array<i32>} : memref<32x256xbf16, #tpu.memory_space<vmem>>, vector<32x256xbf16>,
    } else {
    }
    return
  }
  func.func @transform_0(%arg0: i32, %arg1: i32) -> (i32, i32) {
    %c0_i32 = arith.constant 0 : i32
    return %arg0, %arg1 : i32, i32
  }
  func.func @transform_1(%arg0: i32, %arg1: i32) -> (i32, i32) {
    %c0_i32 = arith.constant 0 : i32
    %c0_i32_0 = arith.constant 0 : i32
    return %arg1, %c0_i32 : i32, i32
  }
  func.func @transform_2(%arg0: i32, %arg1: i32) -> (i32, i32) {
    %c0_i32 = arith.constant 0 : i32
    %c0_i32_0 = arith.constant 0 : i32
    %c0_i32_1 = arith.constant 0 : i32
    return %c0_i32, %c0_i32_0 : i32, i32
  }
  func.func @transform_3(%arg0: i32, %arg1: i32) -> (i32, i32) {
    %c0_i32 = arith.constant 0 : i32
    %c0_i32_0 = arith.constant 0 : i32
    return %arg0, %c0_i32 : i32, i32
  }
}

module attributes {stable_mosaic.version = 11 : i64} {
  func.func @kernel(%arg0: i32, %arg1: i32, %arg2: memref<32x128xbf16, #tpu.memory_space<vmem>>, %arg3: memref<128x256xbf16, #tpu.memory_space<vmem>>, %arg4: memref<1x256xf32, #tpu.memory_space<vmem>>, %arg5: memref<32x256xbf16, #tpu.memory_space<vmem>>, %arg6: memref<32x256xf32, #tpu.memory_space<vmem>>) attributes {dimension_semantics = [#tpu.dimension_semantics<parallel>, #tpu.dimension_semantics<arbitrary>], iteration_bounds = array<i64: 1, 1>, scalar_prefetch = 0 : i64, scratch_operands = 1 : i64, tpu.core_type = #tpu.core_type<tc>, window_params = [{transform_indices = @transform_0, window_bounds = array<i64: 32, 128>}, {transform_indices = @transform_1, window_bounds = array<i64: 128, 256>}, {pipeline_mode = #tpu.pipeline_mode<synchronous>, transform_indices = @transform_2, window_bounds = array<i64: 1, 256>}, {transform_indices = @transform_3, window_bounds = array<i64: 32, 256>}]} {
    %c0_i32 = arith.constant 0 : i32
    %0 = arith.cmpi eq, %arg1, %c0_i32 : i32
    %1 = arith.extui %0 : i1 to i32
    %c0_i32_0 = arith.constant 0 : i32
    %2 = arith.cmpi ne, %1, %c0_i32_0 : i32
    scf.if %2 {
      %cst_10 = arith.constant 0.000000e+00 : f32
      %12 = vector.broadcast %cst_10 : f32 to vector<32x256xf32>
      %c0_11 = arith.constant 0 : index
      %c0_12 = arith.constant 0 : index
      %13 = vector.load %arg6[%c0_11, %c0_12] : memref<32x256xf32, #tpu.memory_space<vmem>>, vector<32x256xf32>
      tpu.vector_store %arg6[%c0_11, %c0_12], %12 {strides = array<i32>} : memref<32x256xf32, #tpu.memory_space<vmem>>, vector<32x256xf32>,
    } else {
    }
    %c0 = arith.constant 0 : index
    %c0_1 = arith.constant 0 : index
    %3 = vector.load %arg6[%c0, %c0_1] : memref<32x256xf32, #tpu.memory_space<vmem>>, vector<32x256xf32>
    %c0_2 = arith.constant 0 : index
    %c0_3 = arith.constant 0 : index
    %4 = vector.load %arg2[%c0_2, %c0_3] : memref<32x128xbf16, #tpu.memory_space<vmem>>, vector<32x128xbf16>
    %c0_4 = arith.constant 0 : index
    %c0_5 = arith.constant 0 : index
    %5 = vector.load %arg3[%c0_4, %c0_5] : memref<128x256xbf16, #tpu.memory_space<vmem>>, vector<128x256xbf16>
    %cst = arith.constant dense<0.000000e+00> : vector<32x256xf32>
    %6 = tpu.matmul %4, %5, %cst {dimension_numbers = #tpu.dot_dimension_numbers<[1], [0], [0], [1], [0, 0, 1, 1], [], []>} : vector<32x128xbf16>, vector<128x256xbf16>, vector<32x256xf32> -> vector<32x256xf32>
    %7 = arith.addf %3, %6 : vector<32x256xf32>
    %c0_6 = arith.constant 0 : index
    %c0_7 = arith.constant 0 : index
    %8 = vector.load %arg6[%c0_6, %c0_7] : memref<32x256xf32, #tpu.memory_space<vmem>>, vector<32x256xf32>
    tpu.vector_store %arg6[%c0_6, %c0_7], %7 {strides = array<i32>} : memref<32x256xf32, #tpu.memory_space<vmem>>, vector<32x256xf32>,
    %c0_i32_8 = arith.constant 0 : i32
    %9 = arith.cmpi eq, %arg1, %c0_i32_8 : i32
    %10 = arith.extui %9 : i1 to i32
    %c0_i32_9 = arith.constant 0 : i32
    %11 = arith.cmpi ne, %10, %c0_i32_9 : i32
    scf.if %11 {
      %c0_10 = arith.constant 0 : index
      %c0_11 = arith.constant 0 : index
      %12 = vector.load %arg6[%c0_10, %c0_11] : memref<32x256xf32, #tpu.memory_space<vmem>>, vector<32x256xf32>
      %c0_12 = arith.constant 0 : index
      %c0_13 = arith.constant 0 : index
      %13 = vector.load %arg4[%c0_12, %c0_13] : memref<1x256xf32, #tpu.memory_space<vmem>>, vector<1x256xf32>
      %14 = vector.broadcast %13 : vector<1x256xf32> to vector<32x256xf32>
      %15 = arith.addf %12, %14 : vector<32x256xf32>
      %16 = arith.truncf %15 : vector<32x256xf32> to vector<32x256xbf16>
      %c0_14 = arith.constant 0 : index
      %c0_15 = arith.constant 0 : index
      %17 = vector.load %arg5[%c0_14, %c0_15] : memref<32x256xbf16, #tpu.memory_space<vmem>>, vector<32x256xbf16>
      tpu.vector_store %arg5[%c0_14, %c0_15], %16 {strides = array<i32>} : memref<32x256xbf16, #tpu.memory_space<vmem>>, vector<32x256xbf16>,
    } else {
    }
    return
  }
  func.func @transform_0(%arg0: i32, %arg1: i32) -> (i32, i32) {
    %c0_i32 = arith.constant 0 : i32
    return %arg0, %arg1 : i32, i32
  }
  func.func @transform_1(%arg0: i32, %arg1: i32) -> (i32, i32) {
    %c0_i32 = arith.constant 0 : i32
    %c0_i32_0 = arith.constant 0 : i32
    return %arg1, %c0_i32 : i32, i32
  }
  func.func @transform_2(%arg0: i32, %arg1: i32) -> (i32, i32) {
    %c0_i32 = arith.constant 0 : i32
    %c0_i32_0 = arith.constant 0 : i32
    %c0_i32_1 = arith.constant 0 : i32
    return %c0_i32, %c0_i32_0 : i32, i32
  }
  func.func @transform_3(%arg0: i32, %arg1: i32) -> (i32, i32) {
    %c0_i32 = arith.constant 0 : i32
    %c0_i32_0 = arith.constant 0 : i32
    return %arg0, %c0_i32 : i32, i32
  }
}

module attributes {stable_mosaic.version = 11 : i64} {
  func.func @kernel(%arg0: i32, %arg1: i32, %arg2: memref<32x256xbf16, #tpu.memory_space<vmem>>, %arg3: memref<256x256xbf16, #tpu.memory_space<vmem>>, %arg4: memref<1x256xf32, #tpu.memory_space<vmem>>, %arg5: memref<32x256xbf16, #tpu.memory_space<vmem>>, %arg6: memref<32x256xbf16, #tpu.memory_space<vmem>>, %arg7: memref<32x256xf32, #tpu.memory_space<vmem>>) attributes {dimension_semantics = [#tpu.dimension_semantics<parallel>, #tpu.dimension_semantics<arbitrary>], iteration_bounds = array<i64: 1, 9>, scalar_prefetch = 0 : i64, scratch_operands = 1 : i64, tpu.core_type = #tpu.core_type<tc>, window_params = [{transform_indices = @transform_0, window_bounds = array<i64: 32, 256>}, {transform_indices = @transform_1, window_bounds = array<i64: 256, 256>}, {pipeline_mode = #tpu.pipeline_mode<synchronous>, transform_indices = @transform_2, window_bounds = array<i64: 1, 256>}, {transform_indices = @transform_3, window_bounds = array<i64: 32, 256>}, {transform_indices = @transform_4, window_bounds = array<i64: 32, 256>}]} {
    %c0_i32 = arith.constant 0 : i32
    %0 = arith.cmpi eq, %arg1, %c0_i32 : i32
    %1 = arith.extui %0 : i1 to i32
    %c0_i32_0 = arith.constant 0 : i32
    %2 = arith.cmpi ne, %1, %c0_i32_0 : i32
    scf.if %2 {
      %cst_9 = arith.constant 0.000000e+00 : f32
      %12 = vector.broadcast %cst_9 : f32 to vector<32x256xf32>
      %c0_10 = arith.constant 0 : index
      %c0_11 = arith.constant 0 : index
      %13 = vector.load %arg7[%c0_10, %c0_11] : memref<32x256xf32, #tpu.memory_space<vmem>>, vector<32x256xf32>
      tpu.vector_store %arg7[%c0_10, %c0_11], %12 {strides = array<i32>} : memref<32x256xf32, #tpu.memory_space<vmem>>, vector<32x256xf32>,
    } else {
    }
    %c0 = arith.constant 0 : index
    %c0_1 = arith.constant 0 : index
    %3 = vector.load %arg7[%c0, %c0_1] : memref<32x256xf32, #tpu.memory_space<vmem>>, vector<32x256xf32>
    %c0_2 = arith.constant 0 : index
    %c0_3 = arith.constant 0 : index
    %4 = vector.load %arg2[%c0_2, %c0_3] : memref<32x256xbf16, #tpu.memory_space<vmem>>, vector<32x256xbf16>
    %c0_4 = arith.constant 0 : index
    %c0_5 = arith.constant 0 : index
    %5 = vector.load %arg3[%c0_4, %c0_5] : memref<256x256xbf16, #tpu.memory_space<vmem>>, vector<256x256xbf16>
    %cst = arith.constant dense<0.000000e+00> : vector<32x256xf32>
    %6 = tpu.matmul %4, %5, %cst {dimension_numbers = #tpu.dot_dimension_numbers<[1], [0], [0], [1], [0, 0, 1, 1], [], []>} : vector<32x256xbf16>, vector<256x256xbf16>, vector<32x256xf32> -> vector<32x256xf32>
    %7 = arith.addf %3, %6 : vector<32x256xf32>
    %c0_6 = arith.constant 0 : index
    %c0_7 = arith.constant 0 : index
    %8 = vector.load %arg7[%c0_6, %c0_7] : memref<32x256xf32, #tpu.memory_space<vmem>>, vector<32x256xf32>
    tpu.vector_store %arg7[%c0_6, %c0_7], %7 {strides = array<i32>} : memref<32x256xf32, #tpu.memory_space<vmem>>, vector<32x256xf32>,
    %c8_i32 = arith.constant 8 : i32
    %9 = arith.cmpi eq, %arg1, %c8_i32 : i32
    %10 = arith.extui %9 : i1 to i32
    %c0_i32_8 = arith.constant 0 : i32
    %11 = arith.cmpi ne, %10, %c0_i32_8 : i32
    scf.if %11 {
      %c0_9 = arith.constant 0 : index
      %c0_10 = arith.constant 0 : index
      %12 = vector.load %arg7[%c0_9, %c0_10] : memref<32x256xf32, #tpu.memory_space<vmem>>, vector<32x256xf32>
      %c0_11 = arith.constant 0 : index
      %c0_12 = arith.constant 0 : index
      %13 = vector.load %arg4[%c0_11, %c0_12] : memref<1x256xf32, #tpu.memory_space<vmem>>, vector<1x256xf32>
      %14 = vector.broadcast %13 : vector<1x256xf32> to vector<32x256xf32>
      %15 = arith.addf %12, %14 : vector<32x256xf32>
      %c0_13 = arith.constant 0 : index
      %c0_14 = arith.constant 0 : index
      %16 = vector.load %arg5[%c0_13, %c0_14] : memref<32x256xbf16, #tpu.memory_space<vmem>>, vector<32x256xbf16>
      %17 = arith.extf %16 : vector<32x256xbf16> to vector<32x256xf32>
      %18 = arith.addf %15, %17 : vector<32x256xf32>
      %cst_15 = arith.constant 0.000000e+00 : f32
      %19 = vector.broadcast %cst_15 : f32 to vector<32x256xf32>
      %20 = arith.maximumf %18, %19 : vector<32x256xf32>
      %21 = arith.truncf %20 : vector<32x256xf32> to vector<32x256xbf16>
      %c0_16 = arith.constant 0 : index
      %c0_17 = arith.constant 0 : index
      %22 = vector.load %arg6[%c0_16, %c0_17] : memref<32x256xbf16, #tpu.memory_space<vmem>>, vector<32x256xbf16>
      tpu.vector_store %arg6[%c0_16, %c0_17], %21 {strides = array<i32>} : memref<32x256xbf16, #tpu.memory_space<vmem>>, vector<32x256xbf16>,
    } else {
    }
    return
  }
  func.func @transform_0(%arg0: i32, %arg1: i32) -> (i32, i32) {
    %c0_i32 = arith.constant 0 : i32
    return %arg0, %arg1 : i32, i32
  }
  func.func @transform_1(%arg0: i32, %arg1: i32) -> (i32, i32) {
    %c0_i32 = arith.constant 0 : i32
    %c0_i32_0 = arith.constant 0 : i32
    return %arg1, %c0_i32 : i32, i32
  }
  func.func @transform_2(%arg0: i32, %arg1: i32) -> (i32, i32) {
    %c0_i32 = arith.constant 0 : i32
    %c0_i32_0 = arith.constant 0 : i32
    %c0_i32_1 = arith.constant 0 : i32
    return %c0_i32, %c0_i32_0 : i32, i32
  }
  func.func @transform_3(%arg0: i32, %arg1: i32) -> (i32, i32) {
    %c0_i32 = arith.constant 0 : i32
    %c0_i32_0 = arith.constant 0 : i32
    return %arg0, %c0_i32 : i32, i32
  }
  func.func @transform_4(%arg0: i32, %arg1: i32) -> (i32, i32) {
    %c0_i32 = arith.constant 0 : i32
    %c0_i32_0 = arith.constant 0 : i32
    return %arg0, %c0_i32 : i32, i32
  }
}

module attributes {stable_mosaic.version = 11 : i64} {
  func.func @kernel(%arg0: i32, %arg1: i32, %arg2: memref<32x256xbf16, #tpu.memory_space<vmem>>, %arg3: memref<256x256xbf16, #tpu.memory_space<vmem>>, %arg4: memref<1x256xf32, #tpu.memory_space<vmem>>, %arg5: memref<32x256xbf16, #tpu.memory_space<vmem>>, %arg6: memref<32x256xf32, #tpu.memory_space<vmem>>) attributes {dimension_semantics = [#tpu.dimension_semantics<parallel>, #tpu.dimension_semantics<arbitrary>], iteration_bounds = array<i64: 1, 9>, scalar_prefetch = 0 : i64, scratch_operands = 1 : i64, tpu.core_type = #tpu.core_type<tc>, window_params = [{transform_indices = @transform_0, window_bounds = array<i64: 32, 256>}, {transform_indices = @transform_1, window_bounds = array<i64: 256, 256>}, {pipeline_mode = #tpu.pipeline_mode<synchronous>, transform_indices = @transform_2, window_bounds = array<i64: 1, 256>}, {transform_indices = @transform_3, window_bounds = array<i64: 32, 256>}]} {
    %c0_i32 = arith.constant 0 : i32
    %0 = arith.cmpi eq, %arg1, %c0_i32 : i32
    %1 = arith.extui %0 : i1 to i32
    %c0_i32_0 = arith.constant 0 : i32
    %2 = arith.cmpi ne, %1, %c0_i32_0 : i32
    scf.if %2 {
      %cst_9 = arith.constant 0.000000e+00 : f32
      %12 = vector.broadcast %cst_9 : f32 to vector<32x256xf32>
      %c0_10 = arith.constant 0 : index
      %c0_11 = arith.constant 0 : index
      %13 = vector.load %arg6[%c0_10, %c0_11] : memref<32x256xf32, #tpu.memory_space<vmem>>, vector<32x256xf32>
      tpu.vector_store %arg6[%c0_10, %c0_11], %12 {strides = array<i32>} : memref<32x256xf32, #tpu.memory_space<vmem>>, vector<32x256xf32>,
    } else {
    }
    %c0 = arith.constant 0 : index
    %c0_1 = arith.constant 0 : index
    %3 = vector.load %arg6[%c0, %c0_1] : memref<32x256xf32, #tpu.memory_space<vmem>>, vector<32x256xf32>
    %c0_2 = arith.constant 0 : index
    %c0_3 = arith.constant 0 : index
    %4 = vector.load %arg2[%c0_2, %c0_3] : memref<32x256xbf16, #tpu.memory_space<vmem>>, vector<32x256xbf16>
    %c0_4 = arith.constant 0 : index
    %c0_5 = arith.constant 0 : index
    %5 = vector.load %arg3[%c0_4, %c0_5] : memref<256x256xbf16, #tpu.memory_space<vmem>>, vector<256x256xbf16>
    %cst = arith.constant dense<0.000000e+00> : vector<32x256xf32>
    %6 = tpu.matmul %4, %5, %cst {dimension_numbers = #tpu.dot_dimension_numbers<[1], [0], [0], [1], [0, 0, 1, 1], [], []>} : vector<32x256xbf16>, vector<256x256xbf16>, vector<32x256xf32> -> vector<32x256xf32>
    %7 = arith.addf %3, %6 : vector<32x256xf32>
    %c0_6 = arith.constant 0 : index
    %c0_7 = arith.constant 0 : index
    %8 = vector.load %arg6[%c0_6, %c0_7] : memref<32x256xf32, #tpu.memory_space<vmem>>, vector<32x256xf32>
    tpu.vector_store %arg6[%c0_6, %c0_7], %7 {strides = array<i32>} : memref<32x256xf32, #tpu.memory_space<vmem>>, vector<32x256xf32>,
    %c8_i32 = arith.constant 8 : i32
    %9 = arith.cmpi eq, %arg1, %c8_i32 : i32
    %10 = arith.extui %9 : i1 to i32
    %c0_i32_8 = arith.constant 0 : i32
    %11 = arith.cmpi ne, %10, %c0_i32_8 : i32
    scf.if %11 {
      %c0_9 = arith.constant 0 : index
      %c0_10 = arith.constant 0 : index
      %12 = vector.load %arg6[%c0_9, %c0_10] : memref<32x256xf32, #tpu.memory_space<vmem>>, vector<32x256xf32>
      %c0_11 = arith.constant 0 : index
      %c0_12 = arith.constant 0 : index
      %13 = vector.load %arg4[%c0_11, %c0_12] : memref<1x256xf32, #tpu.memory_space<vmem>>, vector<1x256xf32>
      %14 = vector.broadcast %13 : vector<1x256xf32> to vector<32x256xf32>
      %15 = arith.addf %12, %14 : vector<32x256xf32>
      %cst_13 = arith.constant 0.000000e+00 : f32
      %16 = vector.broadcast %cst_13 : f32 to vector<32x256xf32>
      %17 = arith.maximumf %15, %16 : vector<32x256xf32>
      %18 = arith.truncf %17 : vector<32x256xf32> to vector<32x256xbf16>
      %c0_14 = arith.constant 0 : index
      %c0_15 = arith.constant 0 : index
      %19 = vector.load %arg5[%c0_14, %c0_15] : memref<32x256xbf16, #tpu.memory_space<vmem>>, vector<32x256xbf16>
      tpu.vector_store %arg5[%c0_14, %c0_15], %18 {strides = array<i32>} : memref<32x256xbf16, #tpu.memory_space<vmem>>, vector<32x256xbf16>,
    } else {
    }
    return
  }
  func.func @transform_0(%arg0: i32, %arg1: i32) -> (i32, i32) {
    %c0_i32 = arith.constant 0 : i32
    return %arg0, %arg1 : i32, i32
  }
  func.func @transform_1(%arg0: i32, %arg1: i32) -> (i32, i32) {
    %c0_i32 = arith.constant 0 : i32
    %c0_i32_0 = arith.constant 0 : i32
    return %arg1, %c0_i32 : i32, i32
  }
  func.func @transform_2(%arg0: i32, %arg1: i32) -> (i32, i32) {
    %c0_i32 = arith.constant 0 : i32
    %c0_i32_0 = arith.constant 0 : i32
    %c0_i32_1 = arith.constant 0 : i32
    return %c0_i32, %c0_i32_0 : i32, i32
  }
  func.func @transform_3(%arg0: i32, %arg1: i32) -> (i32, i32) {
    %c0_i32 = arith.constant 0 : i32
    %c0_i32_0 = arith.constant 0 : i32
    return %arg0, %c0_i32 : i32, i32
  }
}

module attributes {stable_mosaic.version = 11 : i64} {
  func.func @kernel(%arg0: i32, %arg1: i32, %arg2: memref<8x256xbf16, #tpu.memory_space<vmem>>, %arg3: memref<256x512xbf16, #tpu.memory_space<vmem>>, %arg4: memref<1x512xf32, #tpu.memory_space<vmem>>, %arg5: memref<8x512xbf16, #tpu.memory_space<vmem>>, %arg6: memref<8x512xf32, #tpu.memory_space<vmem>>) attributes {dimension_semantics = [#tpu.dimension_semantics<parallel>, #tpu.dimension_semantics<arbitrary>], iteration_bounds = array<i64: 1, 9>, scalar_prefetch = 0 : i64, scratch_operands = 1 : i64, tpu.core_type = #tpu.core_type<tc>, window_params = [{transform_indices = @transform_0, window_bounds = array<i64: 8, 256>}, {transform_indices = @transform_1, window_bounds = array<i64: 256, 512>}, {pipeline_mode = #tpu.pipeline_mode<synchronous>, transform_indices = @transform_2, window_bounds = array<i64: 1, 512>}, {transform_indices = @transform_3, window_bounds = array<i64: 8, 512>}]} {
    %c0_i32 = arith.constant 0 : i32
    %0 = arith.cmpi eq, %arg1, %c0_i32 : i32
    %1 = arith.extui %0 : i1 to i32
    %c0_i32_0 = arith.constant 0 : i32
    %2 = arith.cmpi ne, %1, %c0_i32_0 : i32
    scf.if %2 {
      %cst_9 = arith.constant 0.000000e+00 : f32
      %12 = vector.broadcast %cst_9 : f32 to vector<8x512xf32>
      %c0_10 = arith.constant 0 : index
      %c0_11 = arith.constant 0 : index
      %13 = vector.load %arg6[%c0_10, %c0_11] : memref<8x512xf32, #tpu.memory_space<vmem>>, vector<8x512xf32>
      tpu.vector_store %arg6[%c0_10, %c0_11], %12 {strides = array<i32>} : memref<8x512xf32, #tpu.memory_space<vmem>>, vector<8x512xf32>,
    } else {
    }
    %c0 = arith.constant 0 : index
    %c0_1 = arith.constant 0 : index
    %3 = vector.load %arg6[%c0, %c0_1] : memref<8x512xf32, #tpu.memory_space<vmem>>, vector<8x512xf32>
    %c0_2 = arith.constant 0 : index
    %c0_3 = arith.constant 0 : index
    %4 = vector.load %arg2[%c0_2, %c0_3] : memref<8x256xbf16, #tpu.memory_space<vmem>>, vector<8x256xbf16>
    %c0_4 = arith.constant 0 : index
    %c0_5 = arith.constant 0 : index
    %5 = vector.load %arg3[%c0_4, %c0_5] : memref<256x512xbf16, #tpu.memory_space<vmem>>, vector<256x512xbf16>
    %cst = arith.constant dense<0.000000e+00> : vector<8x512xf32>
    %6 = tpu.matmul %4, %5, %cst {dimension_numbers = #tpu.dot_dimension_numbers<[1], [0], [0], [1], [0, 0, 1, 1], [], []>} : vector<8x256xbf16>, vector<256x512xbf16>, vector<8x512xf32> -> vector<8x512xf32>
    %7 = arith.addf %3, %6 : vector<8x512xf32>
    %c0_6 = arith.constant 0 : index
    %c0_7 = arith.constant 0 : index
    %8 = vector.load %arg6[%c0_6, %c0_7] : memref<8x512xf32, #tpu.memory_space<vmem>>, vector<8x512xf32>
    tpu.vector_store %arg6[%c0_6, %c0_7], %7 {strides = array<i32>} : memref<8x512xf32, #tpu.memory_space<vmem>>, vector<8x512xf32>,
    %c8_i32 = arith.constant 8 : i32
    %9 = arith.cmpi eq, %arg1, %c8_i32 : i32
    %10 = arith.extui %9 : i1 to i32
    %c0_i32_8 = arith.constant 0 : i32
    %11 = arith.cmpi ne, %10, %c0_i32_8 : i32
    scf.if %11 {
      %c0_9 = arith.constant 0 : index
      %c0_10 = arith.constant 0 : index
      %12 = vector.load %arg6[%c0_9, %c0_10] : memref<8x512xf32, #tpu.memory_space<vmem>>, vector<8x512xf32>
      %c0_11 = arith.constant 0 : index
      %c0_12 = arith.constant 0 : index
      %13 = vector.load %arg4[%c0_11, %c0_12] : memref<1x512xf32, #tpu.memory_space<vmem>>, vector<1x512xf32>
      %14 = vector.broadcast %13 : vector<1x512xf32> to vector<8x512xf32>
      %15 = arith.addf %12, %14 : vector<8x512xf32>
      %cst_13 = arith.constant 0.000000e+00 : f32
      %16 = vector.broadcast %cst_13 : f32 to vector<8x512xf32>
      %17 = arith.maximumf %15, %16 : vector<8x512xf32>
      %18 = arith.truncf %17 : vector<8x512xf32> to vector<8x512xbf16>
      %c0_14 = arith.constant 0 : index
      %c0_15 = arith.constant 0 : index
      %19 = vector.load %arg5[%c0_14, %c0_15] : memref<8x512xbf16, #tpu.memory_space<vmem>>, vector<8x512xbf16>
      tpu.vector_store %arg5[%c0_14, %c0_15], %18 {strides = array<i32>} : memref<8x512xbf16, #tpu.memory_space<vmem>>, vector<8x512xbf16>,
    } else {
    }
    return
  }
  func.func @transform_0(%arg0: i32, %arg1: i32) -> (i32, i32) {
    %c0_i32 = arith.constant 0 : i32
    return %arg0, %arg1 : i32, i32
  }
  func.func @transform_1(%arg0: i32, %arg1: i32) -> (i32, i32) {
    %c0_i32 = arith.constant 0 : i32
    %c0_i32_0 = arith.constant 0 : i32
    return %arg1, %c0_i32 : i32, i32
  }
  func.func @transform_2(%arg0: i32, %arg1: i32) -> (i32, i32) {
    %c0_i32 = arith.constant 0 : i32
    %c0_i32_0 = arith.constant 0 : i32
    %c0_i32_1 = arith.constant 0 : i32
    return %c0_i32, %c0_i32_0 : i32, i32
  }
  func.func @transform_3(%arg0: i32, %arg1: i32) -> (i32, i32) {
    %c0_i32 = arith.constant 0 : i32
    %c0_i32_0 = arith.constant 0 : i32
    return %arg0, %c0_i32 : i32, i32
  }
}

module attributes {stable_mosaic.version = 11 : i64} {
  func.func @kernel(%arg0: i32, %arg1: i32, %arg2: memref<8x256xbf16, #tpu.memory_space<vmem>>, %arg3: memref<256x512xbf16, #tpu.memory_space<vmem>>, %arg4: memref<1x512xf32, #tpu.memory_space<vmem>>, %arg5: memref<8x512xbf16, #tpu.memory_space<vmem>>, %arg6: memref<8x512xf32, #tpu.memory_space<vmem>>) attributes {dimension_semantics = [#tpu.dimension_semantics<parallel>, #tpu.dimension_semantics<arbitrary>], iteration_bounds = array<i64: 1, 1>, scalar_prefetch = 0 : i64, scratch_operands = 1 : i64, tpu.core_type = #tpu.core_type<tc>, window_params = [{transform_indices = @transform_0, window_bounds = array<i64: 8, 256>}, {transform_indices = @transform_1, window_bounds = array<i64: 256, 512>}, {pipeline_mode = #tpu.pipeline_mode<synchronous>, transform_indices = @transform_2, window_bounds = array<i64: 1, 512>}, {transform_indices = @transform_3, window_bounds = array<i64: 8, 512>}]} {
    %c0_i32 = arith.constant 0 : i32
    %0 = arith.cmpi eq, %arg1, %c0_i32 : i32
    %1 = arith.extui %0 : i1 to i32
    %c0_i32_0 = arith.constant 0 : i32
    %2 = arith.cmpi ne, %1, %c0_i32_0 : i32
    scf.if %2 {
      %cst_10 = arith.constant 0.000000e+00 : f32
      %12 = vector.broadcast %cst_10 : f32 to vector<8x512xf32>
      %c0_11 = arith.constant 0 : index
      %c0_12 = arith.constant 0 : index
      %13 = vector.load %arg6[%c0_11, %c0_12] : memref<8x512xf32, #tpu.memory_space<vmem>>, vector<8x512xf32>
      tpu.vector_store %arg6[%c0_11, %c0_12], %12 {strides = array<i32>} : memref<8x512xf32, #tpu.memory_space<vmem>>, vector<8x512xf32>,
    } else {
    }
    %c0 = arith.constant 0 : index
    %c0_1 = arith.constant 0 : index
    %3 = vector.load %arg6[%c0, %c0_1] : memref<8x512xf32, #tpu.memory_space<vmem>>, vector<8x512xf32>
    %c0_2 = arith.constant 0 : index
    %c0_3 = arith.constant 0 : index
    %4 = vector.load %arg2[%c0_2, %c0_3] : memref<8x256xbf16, #tpu.memory_space<vmem>>, vector<8x256xbf16>
    %c0_4 = arith.constant 0 : index
    %c0_5 = arith.constant 0 : index
    %5 = vector.load %arg3[%c0_4, %c0_5] : memref<256x512xbf16, #tpu.memory_space<vmem>>, vector<256x512xbf16>
    %cst = arith.constant dense<0.000000e+00> : vector<8x512xf32>
    %6 = tpu.matmul %4, %5, %cst {dimension_numbers = #tpu.dot_dimension_numbers<[1], [0], [0], [1], [0, 0, 1, 1], [], []>} : vector<8x256xbf16>, vector<256x512xbf16>, vector<8x512xf32> -> vector<8x512xf32>
    %7 = arith.addf %3, %6 : vector<8x512xf32>
    %c0_6 = arith.constant 0 : index
    %c0_7 = arith.constant 0 : index
    %8 = vector.load %arg6[%c0_6, %c0_7] : memref<8x512xf32, #tpu.memory_space<vmem>>, vector<8x512xf32>
    tpu.vector_store %arg6[%c0_6, %c0_7], %7 {strides = array<i32>} : memref<8x512xf32, #tpu.memory_space<vmem>>, vector<8x512xf32>,
    %c0_i32_8 = arith.constant 0 : i32
    %9 = arith.cmpi eq, %arg1, %c0_i32_8 : i32
    %10 = arith.extui %9 : i1 to i32
    %c0_i32_9 = arith.constant 0 : i32
    %11 = arith.cmpi ne, %10, %c0_i32_9 : i32
    scf.if %11 {
      %c0_10 = arith.constant 0 : index
      %c0_11 = arith.constant 0 : index
      %12 = vector.load %arg6[%c0_10, %c0_11] : memref<8x512xf32, #tpu.memory_space<vmem>>, vector<8x512xf32>
      %c0_12 = arith.constant 0 : index
      %c0_13 = arith.constant 0 : index
      %13 = vector.load %arg4[%c0_12, %c0_13] : memref<1x512xf32, #tpu.memory_space<vmem>>, vector<1x512xf32>
      %14 = vector.broadcast %13 : vector<1x512xf32> to vector<8x512xf32>
      %15 = arith.addf %12, %14 : vector<8x512xf32>
      %16 = arith.truncf %15 : vector<8x512xf32> to vector<8x512xbf16>
      %c0_14 = arith.constant 0 : index
      %c0_15 = arith.constant 0 : index
      %17 = vector.load %arg5[%c0_14, %c0_15] : memref<8x512xbf16, #tpu.memory_space<vmem>>, vector<8x512xbf16>
      tpu.vector_store %arg5[%c0_14, %c0_15], %16 {strides = array<i32>} : memref<8x512xbf16, #tpu.memory_space<vmem>>, vector<8x512xbf16>,
    } else {
    }
    return
  }
  func.func @transform_0(%arg0: i32, %arg1: i32) -> (i32, i32) {
    %c0_i32 = arith.constant 0 : i32
    return %arg0, %arg1 : i32, i32
  }
  func.func @transform_1(%arg0: i32, %arg1: i32) -> (i32, i32) {
    %c0_i32 = arith.constant 0 : i32
    %c0_i32_0 = arith.constant 0 : i32
    return %arg1, %c0_i32 : i32, i32
  }
  func.func @transform_2(%arg0: i32, %arg1: i32) -> (i32, i32) {
    %c0_i32 = arith.constant 0 : i32
    %c0_i32_0 = arith.constant 0 : i32
    %c0_i32_1 = arith.constant 0 : i32
    return %c0_i32, %c0_i32_0 : i32, i32
  }
  func.func @transform_3(%arg0: i32, %arg1: i32) -> (i32, i32) {
    %c0_i32 = arith.constant 0 : i32
    %c0_i32_0 = arith.constant 0 : i32
    return %arg0, %c0_i32 : i32, i32
  }
}

module attributes {stable_mosaic.version = 11 : i64} {
  func.func @kernel(%arg0: i32, %arg1: i32, %arg2: memref<8x256xbf16, #tpu.memory_space<vmem>>, %arg3: memref<256x512xbf16, #tpu.memory_space<vmem>>, %arg4: memref<1x512xf32, #tpu.memory_space<vmem>>, %arg5: memref<8x512xbf16, #tpu.memory_space<vmem>>, %arg6: memref<8x512xbf16, #tpu.memory_space<vmem>>, %arg7: memref<8x512xf32, #tpu.memory_space<vmem>>) attributes {dimension_semantics = [#tpu.dimension_semantics<parallel>, #tpu.dimension_semantics<arbitrary>], iteration_bounds = array<i64: 1, 18>, scalar_prefetch = 0 : i64, scratch_operands = 1 : i64, tpu.core_type = #tpu.core_type<tc>, window_params = [{transform_indices = @transform_0, window_bounds = array<i64: 8, 256>}, {transform_indices = @transform_1, window_bounds = array<i64: 256, 512>}, {pipeline_mode = #tpu.pipeline_mode<synchronous>, transform_indices = @transform_2, window_bounds = array<i64: 1, 512>}, {transform_indices = @transform_3, window_bounds = array<i64: 8, 512>}, {transform_indices = @transform_4, window_bounds = array<i64: 8, 512>}]} {
    %c0_i32 = arith.constant 0 : i32
    %0 = arith.cmpi eq, %arg1, %c0_i32 : i32
    %1 = arith.extui %0 : i1 to i32
    %c0_i32_0 = arith.constant 0 : i32
    %2 = arith.cmpi ne, %1, %c0_i32_0 : i32
    scf.if %2 {
      %cst_9 = arith.constant 0.000000e+00 : f32
      %12 = vector.broadcast %cst_9 : f32 to vector<8x512xf32>
      %c0_10 = arith.constant 0 : index
      %c0_11 = arith.constant 0 : index
      %13 = vector.load %arg7[%c0_10, %c0_11] : memref<8x512xf32, #tpu.memory_space<vmem>>, vector<8x512xf32>
      tpu.vector_store %arg7[%c0_10, %c0_11], %12 {strides = array<i32>} : memref<8x512xf32, #tpu.memory_space<vmem>>, vector<8x512xf32>,
    } else {
    }
    %c0 = arith.constant 0 : index
    %c0_1 = arith.constant 0 : index
    %3 = vector.load %arg7[%c0, %c0_1] : memref<8x512xf32, #tpu.memory_space<vmem>>, vector<8x512xf32>
    %c0_2 = arith.constant 0 : index
    %c0_3 = arith.constant 0 : index
    %4 = vector.load %arg2[%c0_2, %c0_3] : memref<8x256xbf16, #tpu.memory_space<vmem>>, vector<8x256xbf16>
    %c0_4 = arith.constant 0 : index
    %c0_5 = arith.constant 0 : index
    %5 = vector.load %arg3[%c0_4, %c0_5] : memref<256x512xbf16, #tpu.memory_space<vmem>>, vector<256x512xbf16>
    %cst = arith.constant dense<0.000000e+00> : vector<8x512xf32>
    %6 = tpu.matmul %4, %5, %cst {dimension_numbers = #tpu.dot_dimension_numbers<[1], [0], [0], [1], [0, 0, 1, 1], [], []>} : vector<8x256xbf16>, vector<256x512xbf16>, vector<8x512xf32> -> vector<8x512xf32>
    %7 = arith.addf %3, %6 : vector<8x512xf32>
    %c0_6 = arith.constant 0 : index
    %c0_7 = arith.constant 0 : index
    %8 = vector.load %arg7[%c0_6, %c0_7] : memref<8x512xf32, #tpu.memory_space<vmem>>, vector<8x512xf32>
    tpu.vector_store %arg7[%c0_6, %c0_7], %7 {strides = array<i32>} : memref<8x512xf32, #tpu.memory_space<vmem>>, vector<8x512xf32>,
    %c17_i32 = arith.constant 17 : i32
    %9 = arith.cmpi eq, %arg1, %c17_i32 : i32
    %10 = arith.extui %9 : i1 to i32
    %c0_i32_8 = arith.constant 0 : i32
    %11 = arith.cmpi ne, %10, %c0_i32_8 : i32
    scf.if %11 {
      %c0_9 = arith.constant 0 : index
      %c0_10 = arith.constant 0 : index
      %12 = vector.load %arg7[%c0_9, %c0_10] : memref<8x512xf32, #tpu.memory_space<vmem>>, vector<8x512xf32>
      %c0_11 = arith.constant 0 : index
      %c0_12 = arith.constant 0 : index
      %13 = vector.load %arg4[%c0_11, %c0_12] : memref<1x512xf32, #tpu.memory_space<vmem>>, vector<1x512xf32>
      %14 = vector.broadcast %13 : vector<1x512xf32> to vector<8x512xf32>
      %15 = arith.addf %12, %14 : vector<8x512xf32>
      %c0_13 = arith.constant 0 : index
      %c0_14 = arith.constant 0 : index
      %16 = vector.load %arg5[%c0_13, %c0_14] : memref<8x512xbf16, #tpu.memory_space<vmem>>, vector<8x512xbf16>
      %17 = arith.extf %16 : vector<8x512xbf16> to vector<8x512xf32>
      %18 = arith.addf %15, %17 : vector<8x512xf32>
      %cst_15 = arith.constant 0.000000e+00 : f32
      %19 = vector.broadcast %cst_15 : f32 to vector<8x512xf32>
      %20 = arith.maximumf %18, %19 : vector<8x512xf32>
      %21 = arith.truncf %20 : vector<8x512xf32> to vector<8x512xbf16>
      %c0_16 = arith.constant 0 : index
      %c0_17 = arith.constant 0 : index
      %22 = vector.load %arg6[%c0_16, %c0_17] : memref<8x512xbf16, #tpu.memory_space<vmem>>, vector<8x512xbf16>
      tpu.vector_store %arg6[%c0_16, %c0_17], %21 {strides = array<i32>} : memref<8x512xbf16, #tpu.memory_space<vmem>>, vector<8x512xbf16>,
    } else {
    }
    return
  }
  func.func @transform_0(%arg0: i32, %arg1: i32) -> (i32, i32) {
    %c0_i32 = arith.constant 0 : i32
    return %arg0, %arg1 : i32, i32
  }
  func.func @transform_1(%arg0: i32, %arg1: i32) -> (i32, i32) {
    %c0_i32 = arith.constant 0 : i32
    %c0_i32_0 = arith.constant 0 : i32
    return %arg1, %c0_i32 : i32, i32
  }
  func.func @transform_2(%arg0: i32, %arg1: i32) -> (i32, i32) {
    %c0_i32 = arith.constant 0 : i32
    %c0_i32_0 = arith.constant 0 : i32
    %c0_i32_1 = arith.constant 0 : i32
    return %c0_i32, %c0_i32_0 : i32, i32
  }
  func.func @transform_3(%arg0: i32, %arg1: i32) -> (i32, i32) {
    %c0_i32 = arith.constant 0 : i32
    %c0_i32_0 = arith.constant 0 : i32
    return %arg0, %c0_i32 : i32, i32
  }
  func.func @transform_4(%arg0: i32, %arg1: i32) -> (i32, i32) {
    %c0_i32 = arith.constant 0 : i32
    %c0_i32_0 = arith.constant 0 : i32
    return %arg0, %c0_i32 : i32, i32
  }
}

module attributes {stable_mosaic.version = 11 : i64} {
  func.func @kernel(%arg0: i32, %arg1: i32, %arg2: memref<8x256xbf16, #tpu.memory_space<vmem>>, %arg3: memref<256x512xbf16, #tpu.memory_space<vmem>>, %arg4: memref<1x512xf32, #tpu.memory_space<vmem>>, %arg5: memref<8x512xbf16, #tpu.memory_space<vmem>>, %arg6: memref<8x512xf32, #tpu.memory_space<vmem>>) attributes {dimension_semantics = [#tpu.dimension_semantics<parallel>, #tpu.dimension_semantics<arbitrary>], iteration_bounds = array<i64: 1, 18>, scalar_prefetch = 0 : i64, scratch_operands = 1 : i64, tpu.core_type = #tpu.core_type<tc>, window_params = [{transform_indices = @transform_0, window_bounds = array<i64: 8, 256>}, {transform_indices = @transform_1, window_bounds = array<i64: 256, 512>}, {pipeline_mode = #tpu.pipeline_mode<synchronous>, transform_indices = @transform_2, window_bounds = array<i64: 1, 512>}, {transform_indices = @transform_3, window_bounds = array<i64: 8, 512>}]} {
    %c0_i32 = arith.constant 0 : i32
    %0 = arith.cmpi eq, %arg1, %c0_i32 : i32
    %1 = arith.extui %0 : i1 to i32
    %c0_i32_0 = arith.constant 0 : i32
    %2 = arith.cmpi ne, %1, %c0_i32_0 : i32
    scf.if %2 {
      %cst_9 = arith.constant 0.000000e+00 : f32
      %12 = vector.broadcast %cst_9 : f32 to vector<8x512xf32>
      %c0_10 = arith.constant 0 : index
      %c0_11 = arith.constant 0 : index
      %13 = vector.load %arg6[%c0_10, %c0_11] : memref<8x512xf32, #tpu.memory_space<vmem>>, vector<8x512xf32>
      tpu.vector_store %arg6[%c0_10, %c0_11], %12 {strides = array<i32>} : memref<8x512xf32, #tpu.memory_space<vmem>>, vector<8x512xf32>,
    } else {
    }
    %c0 = arith.constant 0 : index
    %c0_1 = arith.constant 0 : index
    %3 = vector.load %arg6[%c0, %c0_1] : memref<8x512xf32, #tpu.memory_space<vmem>>, vector<8x512xf32>
    %c0_2 = arith.constant 0 : index
    %c0_3 = arith.constant 0 : index
    %4 = vector.load %arg2[%c0_2, %c0_3] : memref<8x256xbf16, #tpu.memory_space<vmem>>, vector<8x256xbf16>
    %c0_4 = arith.constant 0 : index
    %c0_5 = arith.constant 0 : index
    %5 = vector.load %arg3[%c0_4, %c0_5] : memref<256x512xbf16, #tpu.memory_space<vmem>>, vector<256x512xbf16>
    %cst = arith.constant dense<0.000000e+00> : vector<8x512xf32>
    %6 = tpu.matmul %4, %5, %cst {dimension_numbers = #tpu.dot_dimension_numbers<[1], [0], [0], [1], [0, 0, 1, 1], [], []>} : vector<8x256xbf16>, vector<256x512xbf16>, vector<8x512xf32> -> vector<8x512xf32>
    %7 = arith.addf %3, %6 : vector<8x512xf32>
    %c0_6 = arith.constant 0 : index
    %c0_7 = arith.constant 0 : index
    %8 = vector.load %arg6[%c0_6, %c0_7] : memref<8x512xf32, #tpu.memory_space<vmem>>, vector<8x512xf32>
    tpu.vector_store %arg6[%c0_6, %c0_7], %7 {strides = array<i32>} : memref<8x512xf32, #tpu.memory_space<vmem>>, vector<8x512xf32>,
    %c17_i32 = arith.constant 17 : i32
    %9 = arith.cmpi eq, %arg1, %c17_i32 : i32
    %10 = arith.extui %9 : i1 to i32
    %c0_i32_8 = arith.constant 0 : i32
    %11 = arith.cmpi ne, %10, %c0_i32_8 : i32
    scf.if %11 {
      %c0_9 = arith.constant 0 : index
      %c0_10 = arith.constant 0 : index
      %12 = vector.load %arg6[%c0_9, %c0_10] : memref<8x512xf32, #tpu.memory_space<vmem>>, vector<8x512xf32>
      %c0_11 = arith.constant 0 : index
      %c0_12 = arith.constant 0 : index
      %13 = vector.load %arg4[%c0_11, %c0_12] : memref<1x512xf32, #tpu.memory_space<vmem>>, vector<1x512xf32>
      %14 = vector.broadcast %13 : vector<1x512xf32> to vector<8x512xf32>
      %15 = arith.addf %12, %14 : vector<8x512xf32>
      %cst_13 = arith.constant 0.000000e+00 : f32
      %16 = vector.broadcast %cst_13 : f32 to vector<8x512xf32>
      %17 = arith.maximumf %15, %16 : vector<8x512xf32>
      %18 = arith.truncf %17 : vector<8x512xf32> to vector<8x512xbf16>
      %c0_14 = arith.constant 0 : index
      %c0_15 = arith.constant 0 : index
      %19 = vector.load %arg5[%c0_14, %c0_15] : memref<8x512xbf16, #tpu.memory_space<vmem>>, vector<8x512xbf16>
      tpu.vector_store %arg5[%c0_14, %c0_15], %18 {strides = array<i32>} : memref<8x512xbf16, #tpu.memory_space<vmem>>, vector<8x512xbf16>,
    } else {
    }
    return
  }
  func.func @transform_0(%arg0: i32, %arg1: i32) -> (i32, i32) {
    %c0_i32 = arith.constant 0 : i32
    return %arg0, %arg1 : i32, i32
  }
  func.func @transform_1(%arg0: i32, %arg1: i32) -> (i32, i32) {
    %c0_i32 = arith.constant 0 : i32
    %c0_i32_0 = arith.constant 0 : i32
    return %arg1, %c0_i32 : i32, i32
  }
  func.func @transform_2(%arg0: i32, %arg1: i32) -> (i32, i32) {
    %c0_i32 = arith.constant 0 : i32
    %c0_i32_0 = arith.constant 0 : i32
    %c0_i32_1 = arith.constant 0 : i32
    return %c0_i32, %c0_i32_0 : i32, i32
  }
  func.func @transform_3(%arg0: i32, %arg1: i32) -> (i32, i32) {
    %c0_i32 = arith.constant 0 : i32
    %c0_i32_0 = arith.constant 0 : i32
    return %arg0, %c0_i32 : i32, i32
  }
}

module attributes {stable_mosaic.version = 11 : i64} {
  func.func @kernel(%arg0: i32, %arg1: memref<2x4x512xbf16, #tpu.memory_space<vmem>>, %arg2: memref<512x128xbf16, #tpu.memory_space<vmem>>, %arg3: memref<1x128xf32, #tpu.memory_space<vmem>>, %arg4: memref<2x128xf32, #tpu.memory_space<vmem>>, %arg5: memref<2x128xf32, #tpu.memory_space<vmem>>) attributes {dimension_semantics = [#tpu.dimension_semantics<arbitrary>], iteration_bounds = array<i64: 1>, scalar_prefetch = 0 : i64, scratch_operands = 0 : i64, tpu.core_type = #tpu.core_type<tc>, window_params = [{pipeline_mode = #tpu.pipeline_mode<synchronous>, transform_indices = @transform_0, window_bounds = array<i64: 2, 4, 512>}, {pipeline_mode = #tpu.pipeline_mode<synchronous>, transform_indices = @transform_1, window_bounds = array<i64: 512, 128>}, {pipeline_mode = #tpu.pipeline_mode<synchronous>, transform_indices = @transform_2, window_bounds = array<i64: 1, 128>}, {pipeline_mode = #tpu.pipeline_mode<synchronous>, transform_indices = @transform_3, window_bounds = array<i64: 2, 128>}, {pipeline_mode = #tpu.pipeline_mode<synchronous>, transform_indices = @transform_4, window_bounds = array<i64: 2, 128>}]} {
    %c0 = arith.constant 0 : index
    %c0_0 = arith.constant 0 : index
    %c0_1 = arith.constant 0 : index
    %0 = vector.load %arg1[%c0, %c0_0, %c0_1] : memref<2x4x512xbf16, #tpu.memory_space<vmem>>, vector<2x4x512xbf16>
    %1 = arith.extf %0 : vector<2x4x512xbf16> to vector<2x4x512xf32>
    %cst = arith.constant dense<0.000000e+00> : vector<2x512xf32>
    %2 = vector.multi_reduction <add>, %1, %cst [1] : vector<2x4x512xf32> to vector<2x512xf32>
    %cst_2 = arith.constant 4.000000e+00 : f32
    %3 = vector.broadcast %cst_2 : f32 to vector<2x512xf32>
    %4 = arith.divf %2, %3 : vector<2x512xf32>
    %5 = arith.truncf %4 : vector<2x512xf32> to vector<2x512xbf16>
    %c0_3 = arith.constant 0 : index
    %c0_4 = arith.constant 0 : index
    %6 = vector.load %arg2[%c0_3, %c0_4] : memref<512x128xbf16, #tpu.memory_space<vmem>>, vector<512x128xbf16>
    %cst_5 = arith.constant dense<0.000000e+00> : vector<2x128xf32>
    %7 = tpu.matmul %5, %6, %cst_5 {dimension_numbers = #tpu.dot_dimension_numbers<[1], [0], [0], [1], [0, 0, 1, 1], [], []>} : vector<2x512xbf16>, vector<512x128xbf16>, vector<2x128xf32> -> vector<2x128xf32>
    %c0_6 = arith.constant 0 : index
    %c0_7 = arith.constant 0 : index
    %8 = vector.load %arg3[%c0_6, %c0_7] : memref<1x128xf32, #tpu.memory_space<vmem>>, vector<1x128xf32>
    %9 = vector.broadcast %8 : vector<1x128xf32> to vector<2x128xf32>
    %10 = arith.addf %7, %9 : vector<2x128xf32>
    %c0_8 = arith.constant 0 : index
    %c0_9 = arith.constant 0 : index
    %11 = vector.load %arg4[%c0_8, %c0_9] : memref<2x128xf32, #tpu.memory_space<vmem>>, vector<2x128xf32>
    %12 = arith.mulf %10, %11 : vector<2x128xf32>
    %c0_10 = arith.constant 0 : index
    %c0_11 = arith.constant 0 : index
    %13 = vector.load %arg5[%c0_10, %c0_11] : memref<2x128xf32, #tpu.memory_space<vmem>>, vector<2x128xf32>
    tpu.vector_store %arg5[%c0_10, %c0_11], %12 {strides = array<i32>} : memref<2x128xf32, #tpu.memory_space<vmem>>, vector<2x128xf32>,
    return
  }
  func.func @transform_0(%arg0: i32) -> (i32, i32, i32) {
    %c0_i32 = arith.constant 0 : i32
    %c0_i32_0 = arith.constant 0 : i32
    %c0_i32_1 = arith.constant 0 : i32
    %c0_i32_2 = arith.constant 0 : i32
    return %c0_i32, %c0_i32_0, %c0_i32_1 : i32, i32, i32
  }
  func.func @transform_1(%arg0: i32) -> (i32, i32) {
    %c0_i32 = arith.constant 0 : i32
    %c0_i32_0 = arith.constant 0 : i32
    %c0_i32_1 = arith.constant 0 : i32
    return %c0_i32, %c0_i32_0 : i32, i32
  }
  func.func @transform_2(%arg0: i32) -> (i32, i32) {
    %c0_i32 = arith.constant 0 : i32
    %c0_i32_0 = arith.constant 0 : i32
    %c0_i32_1 = arith.constant 0 : i32
    return %c0_i32, %c0_i32_0 : i32, i32
  }
  func.func @transform_3(%arg0: i32) -> (i32, i32) {
    %c0_i32 = arith.constant 0 : i32
    %c0_i32_0 = arith.constant 0 : i32
    %c0_i32_1 = arith.constant 0 : i32
    return %c0_i32, %c0_i32_0 : i32, i32
  }
  func.func @transform_4(%arg0: i32) -> (i32, i32) {
    %c0_i32 = arith.constant 0 : i32
    %c0_i32_0 = arith.constant 0 : i32
    %c0_i32_1 = arith.constant 0 : i32
    return %c0_i32, %c0_i32_0 : i32, i32
  }
}

</mosaic_0001>

<bundles_post_ra>
// kernel: resnet18_forward.21
= control target key start
LH: loop header
LB: loop body
LE: loop exit
PB: predicated region body
PF: predicated region fallthrough
CT: control target
= control target key end

     0   :  { %s1585_s12 = smov 0   ;;  %s1587_s13 = smov 0   ;;  %s1871_s0 = inlined_call_operand.vmem [shape: bf16[2048,256], index: 0, kind: input, shape index: {}]   ;;  %s1872_s1 = inlined_call_operand.vmem [shape: bf16[256,64], index: 1, kind: input, shape index: {}]   ;;  %s1873_s2 = inlined_call_operand.vmem [shape: f32[1,64], index: 2, kind: input, shape index: {}]   ;;  %s1874_s3 = inlined_call_operand.vmem [shape: bf16[2048,64], index: 3, kind: output, shape index: {}]  }
   0x1   :  { %s1589_s14 = smov 0  }
   0x2 LB: > { %s25_s15 = sadd.s32 1, %s1558_s13  ;;  %p1201_p0 = scmp.ge.s32.totalorder %s1562_s14, 1  ;;  %s1562_s14 = sphi %s1589_s14, %s13_s14   ;;  %s1558_s13 = sphi %s1587_s13, %s1876_s13   ;;  %s1554_s12 = sphi %s1585_s12, %s1875_s12  }
   0x3   : > { %p27_p1 = scmp.ge.s32.totalorder %s25_s15, 8  ;;  %p169_p2 = scmp.lt.s32.totalorder %s1562_s14, 9 }
   0x5   : > { %s1878_s15 = smov (%p27_p1, %s25_s15), 0  ;;  %p170_p3 = pnand %p1201_p0, %p169_p2 }
   0x6   : > { %s1202_s18 = sshll.u32 (!%p170_p3), %s1554_s12, 5 }
   0x7   : > { %173 = sbr.rel (%p170_p3) target bundleno = 320 (0x140), region = 32  ;;  %p205_p4 = scmp.lt.s32.totalorder (!%p170_p3), %s1202_s18, 255 }
   0xc   : > { %v1476_v0 = vld [vmem:[%s1872_s1 + $0x78] sm:$0xff]   ;;  %v1478_v2 = vld [vmem:[%s1872_s1 + $0x70] sm:$0xff]   ;;  %v1480_v4 = vld [vmem:[%s1872_s1 + $0x68] sm:$0xff]   ;;  %s1880_s18 = smov (!%p205_p4, %s1202_s18), 255  ;;  %vm232_vm0 = vcmask 523264   ;;  %v1564_v48 = vmov 0.0  }
   0xd   : > { %v1477_v1 = vld [vmem:[%s1872_s1 + $0x38] sm:$0xff]   ;;  %1323 = vmatprep.subr.bf16.mxu0 %v1476_v0  ;;  %1435 = vmatprep.subr.bf16.mxu1 %v1476_v0  ;;  %v1479_v3 = vld [vmem:[%s1872_s1 + $0x30] sm:$0xff]   ;;  %v1481_v5 = vld [vmem:[%s1872_s1 + $0x28] sm:$0xff]   ;;  %s1290_s6 = sshll.u32 %s1880_s18, 3  ;;  %233 = vst.msk [vmem:[#allocation2] sm:$0xff] %vm232_vm0, %v1564_v48  ;;  %s1206_s5 = sshll.u32 %s1880_s18, 2 }
   0xe   : > { %1324 = vmatpush3.bf16.msra.mxu0 %v1477_v1  ;;  %1443 = vmatpush3.bf16.msra.mxu1 %v1477_v1  ;;  %v1482_v6 = vld [vmem:[%s1872_s1 + $0x60] sm:$0xff]   ;;  %v1484_v8 = vld [vmem:[%s1872_s1 + $0x58] sm:$0xff]   ;;  %s1636_s11 = scalar_lea.vmem %s1871_s0, %s1290_s6  ;;  %v1486_v10 = vld [vmem:[%s1872_s1 + $0x50] sm:$0xff]   ;;  %234 = vst.msk [vmem:[#allocation2 + $0x8] sm:$0xff] %vm232_vm0, %v1564_v48  ;;  %s1740_s18 = scalar_lea.vmem %s1874_s3, %s1206_s5  ;;  %vm1077_vm1 = vcmask 519168  }
   0xf   : > { %1325 = vmatprep.subr.bf16.mxu0 %v1478_v2  ;;  %1436 = vmatprep.subr.bf16.mxu1 %v1478_v2  ;;  %v1483_v7 = vld [vmem:[%s1872_s1 + $0x20] sm:$0xff]   ;;  %v1485_v9 = vld [vmem:[%s1872_s1 + $0x18] sm:$0xff]   ;;  %v1487_v13 = vld [vmem:[%s1872_s1 + $0x10] sm:$0xff]   ;;  %235 = vst.msk [vmem:[#allocation2 + $0x10] sm:$0xff] %vm232_vm0, %v1564_v48 }
  0x10   : > { %v1494_v11 = vld [vmem:[%s1636_s11 + $0x4] ss:$8 sps:$4 sm:$0xff]   ;;  %v1492_v18 = vld [vmem:[%s1636_s11] ss:$8 sps:$4 sm:$0xff]   ;;  %v1498_v20 = vld [vmem:[%s1636_s11 + $0x14] ss:$8 sps:$4 sm:$0xff]  }
  0x11   : > { %v1497_v12 = vld [vmem:[%s1636_s11 + $0x84] ss:$8 sps:$4 sm:$0xff]   ;;  %649 = vmatprep.mubr.bf16.mxu0 %v1494_v11  ;;  %v1495_v19 = vld [vmem:[%s1636_s11 + $0x80] ss:$8 sps:$4 sm:$0xff]   ;;  %v1500_v21 = vld [vmem:[%s1636_s11 + $0x94] ss:$8 sps:$4 sm:$0xff]  }
  0x12   : > { %1326 = vmatpush3.bf16.msra.mxu0 %v1479_v3  ;;  %1444 = vmatpush3.bf16.msra.mxu1 %v1479_v3  ;;  %v1488_v14 = vld [vmem:[%s1872_s1 + $0x48] sm:$0xff]   ;;  %v1490_v16 = vld [vmem:[%s1872_s1 + $0x40] sm:$0xff]   ;;  %v1502_v22 = vld [vmem:[%s1636_s11 + $0x10] ss:$8 sps:$4 sm:$0xff]   ;;  %236 = vst.msk [vmem:[#allocation2 + $0x18] sm:$0xff] %vm232_vm0, %v1564_v48 }
  0x13   : > { %1327 = vmatprep.subr.bf16.mxu0 %v1480_v4  ;;  %1437 = vmatprep.subr.bf16.mxu1 %v1480_v4  ;;  %v1489_v15 = vld [vmem:[%s1872_s1 + $0x8] sm:$0xff]   ;;  %v1491_v17 = vld [vmem:[%s1872_s1] sm:$0xff]   ;;  %v1503_v23 = vld [vmem:[%s1636_s11 + $0x90] ss:$8 sps:$4 sm:$0xff]   ;;  %237 = vst.msk [vmem:[#allocation2 + $0x20] sm:$0xff] %vm232_vm0, %v1564_v48 }
  0x14   : > { %713 = vmatprep.mubr.bf16.mxu1 %v1497_v12  ;;  %v1504_v24 = vld [vmem:[%s1636_s11 + $0x24] ss:$8 sps:$4 sm:$0xff]   ;;  %v1508_v26 = vld [vmem:[%s1636_s11 + $0x20] ss:$8 sps:$4 sm:$0xff]   ;;  %v1510_v28 = vld [vmem:[%s1636_s11 + $0x34] ss:$8 sps:$4 sm:$0xff]  }
  0x15   : > { %v1506_v25 = vld [vmem:[%s1636_s11 + $0xa4] ss:$8 sps:$4 sm:$0xff]   ;;  %v1509_v27 = vld [vmem:[%s1636_s11 + $0xa0] ss:$8 sps:$4 sm:$0xff]   ;;  %v1512_v29 = vld [vmem:[%s1636_s11 + $0xb4] ss:$8 sps:$4 sm:$0xff]  }
  0x16   : > { %1328 = vmatpush3.bf16.msra.mxu0 %v1481_v5  ;;  %1445 = vmatpush3.bf16.msra.mxu1 %v1481_v5  ;;  %v1514_v30 = vld [vmem:[%s1636_s11 + $0x30] ss:$8 sps:$4 sm:$0xff]   ;;  %v1516_v32 = vld [vmem:[%s1636_s11 + $0x44] ss:$8 sps:$4 sm:$0xff]   ;;  %v1520_v34 = vld [vmem:[%s1636_s11 + $0x40] ss:$8 sps:$4 sm:$0xff]  }
  0x17   : > { %1329 = vmatprep.subr.bf16.mxu0 %v1482_v6  ;;  %1438 = vmatprep.subr.bf16.mxu1 %v1482_v6  ;;  %v1515_v31 = vld [vmem:[%s1636_s11 + $0xb0] ss:$8 sps:$4 sm:$0xff]   ;;  %v1518_v33 = vld [vmem:[%s1636_s11 + $0xc4] ss:$8 sps:$4 sm:$0xff]   ;;  %v1521_v35 = vld [vmem:[%s1636_s11 + $0xc0] ss:$8 sps:$4 sm:$0xff]  }
  0x18   : > { %v1522_v36 = vld [vmem:[%s1636_s11 + $0x54] ss:$8 sps:$4 sm:$0xff]   ;;  %v1526_v38 = vld [vmem:[%s1636_s11 + $0x50] ss:$8 sps:$4 sm:$0xff]   ;;  %v1528_v40 = vld [vmem:[%s1636_s11 + $0x64] ss:$8 sps:$4 sm:$0xff]  }
  0x19   : > { %v1524_v37 = vld [vmem:[%s1636_s11 + $0xd4] ss:$8 sps:$4 sm:$0xff]   ;;  %v1527_v39 = vld [vmem:[%s1636_s11 + $0xd0] ss:$8 sps:$4 sm:$0xff]   ;;  %v1530_v41 = vld [vmem:[%s1636_s11 + $0xe4] ss:$8 sps:$4 sm:$0xff]  }
  0x1a   : > { %1330 = vmatpush3.bf16.msra.mxu0 %v1483_v7  ;;  %1446 = vmatpush3.bf16.msra.mxu1 %v1483_v7  ;;  %v1532_v42 = vld [vmem:[%s1636_s11 + $0x60] ss:$8 sps:$4 sm:$0xff]   ;;  %v1534_v44 = vld [vmem:[%s1636_s11 + $0x74] ss:$8 sps:$4 sm:$0xff]   ;;  %v1538_v46 = vld [vmem:[%s1636_s11 + $0x70] ss:$8 sps:$4 sm:$0xff]  }
  0x1b   : > { %1331 = vmatprep.subr.bf16.mxu0 %v1484_v8  ;;  %1439 = vmatprep.subr.bf16.mxu1 %v1484_v8  ;;  %v1533_v43 = vld [vmem:[%s1636_s11 + $0xe0] ss:$8 sps:$4 sm:$0xff]   ;;  %v1536_v45 = vld [vmem:[%s1636_s11 + $0xf4] ss:$8 sps:$4 sm:$0xff]   ;;  %v1539_v47 = vld [vmem:[%s1636_s11 + $0xf0] ss:$8 sps:$4 sm:$0xff]  }
  0x1c   : > { %238 = vst.msk [vmem:[#allocation2 + $0x28] sm:$0xff] %vm232_vm0, %v1564_v48  ;;  %239 = vst.msk [vmem:[#allocation2 + $0x30] sm:$0xff] %vm232_vm0, %v1564_v48  ;;  %v265_v51 = vld [vmem:[#allocation2] sm:$0xff]  ;;  %v266_v61 = vld [vmem:[#allocation2 + $0x8] sm:$0xff] }
  0x1d   : > { %240 = vst.msk [vmem:[#allocation2 + $0x38] sm:$0xff] %vm232_vm0, %v1564_v48  ;;  %241 = vst.msk [vmem:[#allocation2 + $0x40] sm:$0xff] %vm232_vm0, %v1564_v48  ;;  %v267_v7 = vld [vmem:[#allocation2 + $0x10] sm:$0xff] }
  0x1e   : > { %1332 = vmatpush3.bf16.msra.mxu0 %v1485_v9  ;;  %1447 = vmatpush3.bf16.msra.mxu1 %v1485_v9  ;;  %242 = vst.msk [vmem:[#allocation2 + $0x48] sm:$0xff] %vm232_vm0, %v1564_v48  ;;  %243 = vst.msk [vmem:[#allocation2 + $0x50] sm:$0xff] %vm232_vm0, %v1564_v48 }
  0x1f   : > { %1333 = vmatprep.subr.bf16.mxu0 %v1486_v10  ;;  %1440 = vmatprep.subr.bf16.mxu1 %v1486_v10  ;;  %244 = vst.msk [vmem:[#allocation2 + $0x58] sm:$0xff] %vm232_vm0, %v1564_v48  ;;  %245 = vst.msk [vmem:[#allocation2 + $0x60] sm:$0xff] %vm232_vm0, %v1564_v48 }
  0x20   : > { %246 = vst.msk [vmem:[#allocation2 + $0x68] sm:$0xff] %vm232_vm0, %v1564_v48  ;;  %247 = vst.msk [vmem:[#allocation2 + $0x70] sm:$0xff] %vm232_vm0, %v1564_v48 }
  0x21   : > { %248 = vst.msk [vmem:[#allocation2 + $0x78] sm:$0xff] %vm232_vm0, %v1564_v48  ;;  %249 = vst.msk [vmem:[#allocation2 + $0x80] sm:$0xff] %vm232_vm0, %v1564_v48 }
  0x22   : > { %1334 = vmatpush3.bf16.msra.mxu0 %v1487_v13  ;;  %1448 = vmatpush3.bf16.msra.mxu1 %v1487_v13  ;;  %250 = vst.msk [vmem:[#allocation2 + $0x88] sm:$0xff] %vm232_vm0, %v1564_v48  ;;  %251 = vst.msk [vmem:[#allocation2 + $0x90] sm:$0xff] %vm232_vm0, %v1564_v48  ;;  %v1730_v13 = vld [vmem:[%s1873_s2] ss:$0 sm:$0xff] }
  0x23   : > { %1335 = vmatprep.subr.bf16.mxu0 %v1488_v14  ;;  %1441 = vmatprep.subr.bf16.mxu1 %v1488_v14  ;;  %252 = vst.msk [vmem:[#allocation2 + $0x98] sm:$0xff] %vm232_vm0, %v1564_v48  ;;  %253 = vst.msk [vmem:[#allocation2 + $0xa0] sm:$0xff] %vm232_vm0, %v1564_v48 }
  0x24   : > { %254 = vst.msk [vmem:[#allocation2 + $0xa8] sm:$0xff] %vm232_vm0, %v1564_v48  ;;  %255 = vst.msk [vmem:[#allocation2 + $0xb0] sm:$0xff] %vm232_vm0, %v1564_v48 }
  0x25   : > { %256 = vst.msk [vmem:[#allocation2 + $0xb8] sm:$0xff] %vm232_vm0, %v1564_v48  ;;  %257 = vst.msk [vmem:[#allocation2 + $0xc0] sm:$0xff] %vm232_vm0, %v1564_v48 }
  0x26   : > { %1336 = vmatpush3.bf16.msra.mxu0 %v1489_v15  ;;  %1449 = vmatpush3.bf16.msra.mxu1 %v1489_v15  ;;  %258 = vst.msk [vmem:[#allocation2 + $0xc8] sm:$0xff] %vm232_vm0, %v1564_v48  ;;  %259 = vst.msk [vmem:[#allocation2 + $0xd0] sm:$0xff] %vm232_vm0, %v1564_v48 }
  0x27   : > { %1337 = vmatprep.subr.bf16.mxu0 %v1490_v16  ;;  %1442 = vmatprep.subr.bf16.mxu1 %v1490_v16  ;;  %260 = vst.msk [vmem:[#allocation2 + $0xd8] sm:$0xff] %vm232_vm0, %v1564_v48  ;;  %261 = vst.msk [vmem:[#allocation2 + $0xe0] sm:$0xff] %vm232_vm0, %v1564_v48 }
  0x28   : > { %262 = vst.msk [vmem:[#allocation2 + $0xe8] sm:$0xff] %vm232_vm0, %v1564_v48  ;;  %263 = vst.msk [vmem:[#allocation2 + $0xf0] sm:$0xff] %vm232_vm0, %v1564_v48  ;;  %v281_v53 = vld [vmem:[#allocation2 + $0x80] sm:$0xff] }
  0x29   : > { %264 = vst.msk [vmem:[#allocation2 + $0xf8] sm:$0xff] %vm232_vm0, %v1564_v48  ;;  %v282_v63 = vld [vmem:[#allocation2 + $0x88] sm:$0xff]  ;;  %v283_v9 = vld [vmem:[#allocation2 + $0x90] sm:$0xff] }
  0x2a   : > { %1338 = vmatpush3.bf16.msra.mxu0 %v1491_v17  ;;  %1450 = vmatpush3.bf16.msra.mxu1 %v1491_v17 }
  0x2d   : > { %650 = vmatmul.mubr.bf16.vlgmr.msra.gmra.mxu0 %v1492_v18  ;;  %714 = vmatmul.mubr.bf16.vlgmr.msra.gmra.mxu1 %v1495_v19  ;;  %v268_v18 = vld [vmem:[#allocation2 + $0x18] sm:$0xff] }
  0x2e   : > { %657 = vmatprep.mubr.bf16.mxu0 %v1498_v20  ;;  %721 = vmatprep.mubr.bf16.mxu1 %v1500_v21 }
  0x35   : > { %658 = vmatmul.mubr.bf16.gmra.mxu0 %v1502_v22  ;;  %722 = vmatmul.mubr.bf16.gmra.mxu1 %v1503_v23  ;;  %v284_v22 = vld [vmem:[#allocation2 + $0x98] sm:$0xff] }
  0x36   : > { %665 = vmatprep.mubr.bf16.mxu0 %v1504_v24  ;;  %729 = vmatprep.mubr.bf16.mxu1 %v1506_v25 }
  0x3d   : > { %666 = vmatmul.mubr.bf16.gmra.mxu0 %v1508_v26  ;;  %730 = vmatmul.mubr.bf16.gmra.mxu1 %v1509_v27 }
  0x3e   : > { %673 = vmatprep.mubr.bf16.mxu0 %v1510_v28  ;;  %737 = vmatprep.mubr.bf16.mxu1 %v1512_v29 }
  0x45   : > { %674 = vmatmul.mubr.bf16.gmra.mxu0 %v1514_v30  ;;  %738 = vmatmul.mubr.bf16.gmra.mxu1 %v1515_v31 }
  0x46   : > { %681 = vmatprep.mubr.bf16.mxu0 %v1516_v32  ;;  %745 = vmatprep.mubr.bf16.mxu1 %v1518_v33 }
  0x4d   : > { %682 = vmatmul.mubr.bf16.gmra.mxu0 %v1520_v34  ;;  %746 = vmatmul.mubr.bf16.gmra.mxu1 %v1521_v35 }
  0x4e   : > { %689 = vmatprep.mubr.bf16.mxu0 %v1522_v36  ;;  %753 = vmatprep.mubr.bf16.mxu1 %v1524_v37 }
  0x55   : > { %690 = vmatmul.mubr.bf16.gmra.mxu0 %v1526_v38  ;;  %754 = vmatmul.mubr.bf16.gmra.mxu1 %v1527_v39 }
  0x56   : > { %697 = vmatprep.mubr.bf16.mxu0 %v1528_v40  ;;  %761 = vmatprep.mubr.bf16.mxu1 %v1530_v41 }
  0x5d   : > { %698 = vmatmul.mubr.bf16.gmra.mxu0 %v1532_v42  ;;  %762 = vmatmul.mubr.bf16.gmra.mxu1 %v1533_v43  ;;  %v269_v42 = vld [vmem:[#allocation2 + $0x20] sm:$0xff] }
  0x5e   : > { %705 = vmatprep.mubr.bf16.mxu0 %v1534_v44  ;;  %769 = vmatprep.mubr.bf16.mxu1 %v1536_v45  ;;  %v285_v43 = vld [vmem:[#allocation2 + $0xa0] sm:$0xff] }
  0x65   : > { %706 = vmatmul.mubr.bf16.gmra.mxu0 %v1538_v46  ;;  %770 = vmatmul.mubr.bf16.gmra.mxu1 %v1539_v47 }
  0xed   : > { %v1339_v49 = vpop.f32.mrf.mxu0  ;;  %v1387_v50 = vpop.f32.mrf.mxu1 }
  0xef   : > { %v1340_v52 = vpop.f32.mrf.mxu0  ;;  %v1388_v54 = vpop.f32.mrf.mxu1 }
  0xf0   : > { %v1341_v55 = vadd.f32 %v1340_v52, %v1339_v49  ;;  %v1389_v56 = vadd.f32 %v1388_v54, %v1387_v50 }
  0xf1   : > { %v1342_v57 = vpop.f32.mrf.mxu0  ;;  %v1390_v58 = vpop.f32.mrf.mxu1 }
  0xf2   : > { %v778_v59 = vadd.f32 %v1341_v55, %v265_v51  ;;  %v794_v60 = vadd.f32 %v1389_v56, %v281_v53 }
  0xf3   : > { %v1343_v62 = vpop.f32.mrf.mxu0  ;;  %v1391_v0 = vpop.f32.mrf.mxu1 }
  0xf4   : > { %811 = vst.msk [vmem:[#allocation2] sm:$0xff] %vm232_vm0, %v778_v59  ;;  %827 = vst.msk [vmem:[#allocation2 + $0x80] sm:$0xff] %vm232_vm0, %v794_v60  ;;  %v1344_v1 = vadd.f32 %v1343_v62, %v1342_v57  ;;  %v1392_v2 = vadd.f32 %v1391_v0, %v1390_v58  ;;  %v270_v60 = vld [vmem:[#allocation2 + $0x28] sm:$0xff] }
  0xf5   : > { %v1345_v3 = vpop.f32.mrf.mxu0  ;;  %v1393_v4 = vpop.f32.mrf.mxu1 }
  0xf6   : > { %v779_v5 = vadd.f32 %v1344_v1, %v266_v61  ;;  %v795_v6 = vadd.f32 %v1392_v2, %v282_v63  ;;  %v286_v61 = vld [vmem:[#allocation2 + $0xa8] sm:$0xff] }
  0xf7   : > { %v1346_v8 = vpop.f32.mrf.mxu0  ;;  %v1394_v10 = vpop.f32.mrf.mxu1 }
  0xf8   : > { %812 = vst.msk [vmem:[#allocation2 + $0x8] sm:$0xff] %vm232_vm0, %v779_v5  ;;  %828 = vst.msk [vmem:[#allocation2 + $0x88] sm:$0xff] %vm232_vm0, %v795_v6  ;;  %v1347_v11 = vadd.f32 %v1346_v8, %v1345_v3  ;;  %v1395_v12 = vadd.f32 %v1394_v10, %v1393_v4 }
  0xf9   : > { %v1348_v14 = vpop.f32.mrf.mxu0  ;;  %v1396_v15 = vpop.f32.mrf.mxu1 }
  0xfa   : > { %v780_v16 = vadd.f32 %v1347_v11, %v267_v7  ;;  %v796_v17 = vadd.f32 %v1395_v12, %v283_v9 }
  0xfb   : > { %v846_v19 = vld [vmem:[#allocation2] sm:$0xff]  ;;  %v1349_v21 = vpop.f32.mrf.mxu0  ;;  %v1397_v23 = vpop.f32.mrf.mxu1 }
  0xfc   : > { %v862_v20 = vld [vmem:[#allocation2 + $0x80] sm:$0xff]  ;;  %v885_v24 = vadd.f32 %v1730_v13, %v846_v19  ;;  %813 = vst.msk [vmem:[#allocation2 + $0x10] sm:$0xff] %vm232_vm0, %v780_v16  ;;  %829 = vst.msk [vmem:[#allocation2 + $0x90] sm:$0xff] %vm232_vm0, %v796_v17  ;;  %v1350_v26 = vadd.f32 %v1349_v21, %v1348_v14  ;;  %v1398_v27 = vadd.f32 %v1397_v23, %v1396_v15  ;;  %v271_v15 = vld [vmem:[#allocation2 + $0x30] sm:$0xff] }
  0xfd   : > { %v901_v25 = vadd.f32 %v1730_v13, %v862_v20  ;;  %v1351_v28 = vpop.f32.mrf.mxu0  ;;  %v1399_v29 = vpop.f32.mrf.mxu1  ;;  %v287_v16 = vld [vmem:[#allocation2 + $0xb0] sm:$0xff] }
  0xfe   : > { %v917_v30 = vmax.f32 %v885_v24, 0.0  ;;  %v781_v32 = vadd.f32 %v1350_v26, %v268_v18  ;;  %v797_v33 = vadd.f32 %v1398_v27, %v284_v22  ;;  %v288_v27 = vld [vmem:[#allocation2 + $0xb8] sm:$0xff] }
  0xff   : > { %v933_v31 = vmax.f32 %v901_v25, 0.0  ;;  %v847_v34 = vld [vmem:[#allocation2 + $0x8] sm:$0xff]  ;;  %v1352_v36 = vpop.f32.mrf.mxu0  ;;  %v1400_v37 = vpop.f32.mrf.mxu1  ;;  %v272_v25 = vld [vmem:[#allocation2 + $0x38] sm:$0xff] }
 0x100   : > { %v863_v35 = vld [vmem:[#allocation2 + $0x88] sm:$0xff]  ;;  %v1291_v38 = vpack.c.bf16 %v917_v30, %v917_v30  ;;  %v886_v40 = vadd.f32 %v1730_v13, %v847_v34  ;;  %814 = vst.msk [vmem:[#allocation2 + $0x18] sm:$0xff] %vm232_vm0, %v781_v32  ;;  %830 = vst.msk [vmem:[#allocation2 + $0x98] sm:$0xff] %vm232_vm0, %v797_v33  ;;  %v1353_v44 = vadd.f32 %v1352_v36, %v1351_v28 }
 0x101   : > { %v1307_v39 = vpack.c.bf16 %v933_v31, %v933_v31  ;;  %v902_v41 = vadd.f32 %v1730_v13, %v863_v35  ;;  %v1401_v45 = vadd.f32 %v1400_v37, %v1399_v29  ;;  %v1354_v46 = vpop.f32.mrf.mxu0  ;;  %v1402_v47 = vpop.f32.mrf.mxu1 }
 0x102   : > { %1078 = vst.msk [vmem:[%s1740_s18] sm:$0xf] %vm1077_vm1, %v1291_v38  ;;  %v918_v48 = vmax.f32 %v886_v40, 0.0  ;;  %v782_v52 = vadd.f32 %v1353_v44, %v269_v42 }
 0x103   : > { %1094 = vst.msk [vmem:[%s1740_s18 + $0x40] sm:$0xf] %vm1077_vm1, %v1307_v39  ;;  %v934_v49 = vmax.f32 %v902_v41, 0.0  ;;  %v848_v50 = vld [vmem:[#allocation2 + $0x10] sm:$0xff]  ;;  %v798_v53 = vadd.f32 %v1401_v45, %v285_v43  ;;  %v1355_v54 = vpop.f32.mrf.mxu0  ;;  %v1403_v55 = vpop.f32.mrf.mxu1  ;;  %v273_v43 = vld [vmem:[#allocation2 + $0x40] sm:$0xff] }
 0x104   : > { %v864_v51 = vld [vmem:[#allocation2 + $0x90] sm:$0xff]  ;;  %v1292_v56 = vpack.c.bf16 %v918_v48, %v918_v48  ;;  %v887_v58 = vadd.f32 %v1730_v13, %v848_v50  ;;  %815 = vst.msk [vmem:[#allocation2 + $0x20] sm:$0xff] %vm232_vm0, %v782_v52  ;;  %v1356_v62 = vadd.f32 %v1355_v54, %v1354_v46  ;;  %v1404_v63 = vadd.f32 %v1403_v55, %v1402_v47  ;;  %v289_v45 = vld [vmem:[#allocation2 + $0xc0] sm:$0xff] }
 0x105   : > { %v1308_v57 = vpack.c.bf16 %v934_v49, %v934_v49  ;;  %v903_v59 = vadd.f32 %v1730_v13, %v864_v51  ;;  %831 = vst.msk [vmem:[#allocation2 + $0xa0] sm:$0xff] %vm232_vm0, %v798_v53  ;;  %v1357_v0 = vpop.f32.mrf.mxu0  ;;  %v1405_v1 = vpop.f32.mrf.mxu1 }
 0x106   : > { %1079 = vst.msk [vmem:[%s1740_s18 + $0x4] sm:$0xf] %vm1077_vm1, %v1292_v56  ;;  %v919_v2 = vmax.f32 %v887_v58, 0.0  ;;  %v783_v6 = vadd.f32 %v1356_v62, %v270_v60  ;;  %v799_v7 = vadd.f32 %v1404_v63, %v286_v61  ;;  %v274_v61 = vld [vmem:[#allocation2 + $0x48] sm:$0xff] }
 0x107   : > { %1095 = vst.msk [vmem:[%s1740_s18 + $0x44] sm:$0xf] %vm1077_vm1, %v1308_v57  ;;  %v935_v3 = vmax.f32 %v903_v59, 0.0  ;;  %v849_v4 = vld [vmem:[#allocation2 + $0x18] sm:$0xff]  ;;  %v1358_v8 = vpop.f32.mrf.mxu0  ;;  %v1406_v9 = vpop.f32.mrf.mxu1  ;;  %v290_v63 = vld [vmem:[#allocation2 + $0xc8] sm:$0xff] }
 0x108   : > { %v865_v5 = vld [vmem:[#allocation2 + $0x98] sm:$0xff]  ;;  %v1293_v10 = vpack.c.bf16 %v919_v2, %v919_v2  ;;  %v888_v12 = vadd.f32 %v1730_v13, %v849_v4  ;;  %816 = vst.msk [vmem:[#allocation2 + $0x28] sm:$0xff] %vm232_vm0, %v783_v6  ;;  %832 = vst.msk [vmem:[#allocation2 + $0xa8] sm:$0xff] %vm232_vm0, %v799_v7  ;;  %v1359_v17 = vadd.f32 %v1358_v8, %v1357_v0 }
 0x109   : > { %v1309_v11 = vpack.c.bf16 %v935_v3, %v935_v3  ;;  %v904_v14 = vadd.f32 %v1730_v13, %v865_v5  ;;  %v1407_v18 = vadd.f32 %v1406_v9, %v1405_v1  ;;  %v1360_v19 = vpop.f32.mrf.mxu0  ;;  %v1408_v20 = vpop.f32.mrf.mxu1 }
 0x10a   : > { %1080 = vst.msk [vmem:[%s1740_s18 + $0x8] sm:$0xf] %vm1077_vm1, %v1293_v10  ;;  %v920_v21 = vmax.f32 %v888_v12, 0.0  ;;  %v784_v23 = vadd.f32 %v1359_v17, %v271_v15 }
 0x10b   : > { %1096 = vst.msk [vmem:[%s1740_s18 + $0x48] sm:$0xf] %vm1077_vm1, %v1309_v11  ;;  %v936_v22 = vmax.f32 %v904_v14, 0.0  ;;  %v800_v24 = vadd.f32 %v1407_v18, %v287_v16  ;;  %v1361_v26 = vpop.f32.mrf.mxu0  ;;  %v1409_v28 = vpop.f32.mrf.mxu1  ;;  %v850_v31 = vld [vmem:[#allocation2 + $0x20] sm:$0xff]  ;;  %v275_v14 = vld [vmem:[#allocation2 + $0x50] sm:$0xff] }
 0x10c   : > { %v1294_v29 = vpack.c.bf16 %v920_v21, %v920_v21  ;;  %v866_v32 = vld [vmem:[#allocation2 + $0xa0] sm:$0xff]  ;;  %v1362_v33 = vadd.f32 %v1361_v26, %v1360_v19  ;;  %v1410_v34 = vadd.f32 %v1409_v28, %v1408_v20  ;;  %v889_v35 = vadd.f32 %v1730_v13, %v850_v31  ;;  %817 = vst.msk [vmem:[#allocation2 + $0x30] sm:$0xff] %vm232_vm0, %v784_v23  ;;  %v291_v20 = vld [vmem:[#allocation2 + $0xd0] sm:$0xff] }
 0x10d   : > { %v1310_v30 = vpack.c.bf16 %v936_v22, %v936_v22  ;;  %v905_v36 = vadd.f32 %v1730_v13, %v866_v32  ;;  %833 = vst.msk [vmem:[#allocation2 + $0xb0] sm:$0xff] %vm232_vm0, %v800_v24  ;;  %v1363_v37 = vpop.f32.mrf.mxu0  ;;  %v1411_v38 = vpop.f32.mrf.mxu1 }
 0x10e   : > { %1081 = vst.msk [vmem:[%s1740_s18 + $0xc] sm:$0xf] %vm1077_vm1, %v1294_v29  ;;  %v785_v39 = vadd.f32 %v1362_v33, %v272_v25  ;;  %v801_v40 = vadd.f32 %v1410_v34, %v288_v27  ;;  %v921_v41 = vmax.f32 %v889_v35, 0.0 }
 0x10f   : > { %1097 = vst.msk [vmem:[%s1740_s18 + $0x4c] sm:$0xf] %vm1077_vm1, %v1310_v30  ;;  %v937_v42 = vmax.f32 %v905_v36, 0.0  ;;  %v1364_v44 = vpop.f32.mrf.mxu0  ;;  %v1412_v46 = vpop.f32.mrf.mxu1  ;;  %v851_v47 = vld [vmem:[#allocation2 + $0x28] sm:$0xff] }
 0x110   : > { %v867_v48 = vld [vmem:[#allocation2 + $0xa8] sm:$0xff]  ;;  %818 = vst.msk [vmem:[#allocation2 + $0x38] sm:$0xff] %vm232_vm0, %v785_v39  ;;  %834 = vst.msk [vmem:[#allocation2 + $0xb8] sm:$0xff] %vm232_vm0, %v801_v40  ;;  %v1365_v49 = vadd.f32 %v1364_v44, %v1363_v37  ;;  %v1413_v50 = vadd.f32 %v1412_v46, %v1411_v38  ;;  %v1295_v51 = vpack.c.bf16 %v921_v41, %v921_v41 }
 0x111   : > { %v1311_v52 = vpack.c.bf16 %v937_v42, %v937_v42  ;;  %v890_v53 = vadd.f32 %v1730_v13, %v851_v47  ;;  %v906_v54 = vadd.f32 %v1730_v13, %v867_v48  ;;  %v1366_v55 = vpop.f32.mrf.mxu0  ;;  %v1414_v56 = vpop.f32.mrf.mxu1  ;;  %v276_v42 = vld [vmem:[#allocation2 + $0x58] sm:$0xff] }
 0x112   : > { %v786_v57 = vadd.f32 %v1365_v49, %v273_v43  ;;  %v802_v58 = vadd.f32 %v1413_v50, %v289_v45  ;;  %1082 = vst.msk [vmem:[%s1740_s18 + $0x10] sm:$0xf] %vm1077_vm1, %v1295_v51  ;;  %v292_v43 = vld [vmem:[#allocation2 + $0xd8] sm:$0xff] }
 0x113   : > { %1098 = vst.msk [vmem:[%s1740_s18 + $0x50] sm:$0xf] %vm1077_vm1, %v1311_v52  ;;  %v922_v59 = vmax.f32 %v890_v53, 0.0  ;;  %v938_v60 = vmax.f32 %v906_v54, 0.0  ;;  %v1367_v62 = vpop.f32.mrf.mxu0  ;;  %v1415_v0 = vpop.f32.mrf.mxu1  ;;  %v852_v1 = vld [vmem:[#allocation2 + $0x30] sm:$0xff] }
 0x114   : > { %v868_v2 = vld [vmem:[#allocation2 + $0xb0] sm:$0xff]  ;;  %819 = vst.msk [vmem:[#allocation2 + $0x40] sm:$0xff] %vm232_vm0, %v786_v57  ;;  %835 = vst.msk [vmem:[#allocation2 + $0xc0] sm:$0xff] %vm232_vm0, %v802_v58  ;;  %v1368_v3 = vadd.f32 %v1367_v62, %v1366_v55  ;;  %v1416_v4 = vadd.f32 %v1415_v0, %v1414_v56  ;;  %v891_v7 = vadd.f32 %v1730_v13, %v852_v1 }
 0x115   : > { %v1296_v5 = vpack.c.bf16 %v922_v59, %v922_v59  ;;  %v1312_v6 = vpack.c.bf16 %v938_v60, %v938_v60  ;;  %v907_v8 = vadd.f32 %v1730_v13, %v868_v2  ;;  %v1369_v9 = vpop.f32.mrf.mxu0  ;;  %v1417_v10 = vpop.f32.mrf.mxu1  ;;  %v277_v60 = vld [vmem:[#allocation2 + $0x60] sm:$0xff] }
 0x116   : > { %v787_v11 = vadd.f32 %v1368_v3, %v274_v61  ;;  %v803_v12 = vadd.f32 %v1416_v4, %v290_v63  ;;  %v923_v15 = vmax.f32 %v891_v7, 0.0  ;;  %v293_v61 = vld [vmem:[#allocation2 + $0xe0] sm:$0xff] }
 0x117   : > { %1083 = vst.msk [vmem:[%s1740_s18 + $0x14] sm:$0xf] %vm1077_vm1, %v1296_v5  ;;  %1099 = vst.msk [vmem:[%s1740_s18 + $0x54] sm:$0xf] %vm1077_vm1, %v1312_v6  ;;  %v939_v16 = vmax.f32 %v907_v8, 0.0  ;;  %v853_v17 = vld [vmem:[#allocation2 + $0x38] sm:$0xff]  ;;  %v1370_v19 = vpop.f32.mrf.mxu0  ;;  %v1418_v21 = vpop.f32.mrf.mxu1 }
 0x118   : > { %v869_v18 = vld [vmem:[#allocation2 + $0xb8] sm:$0xff]  ;;  %v892_v22 = vadd.f32 %v1730_v13, %v853_v17  ;;  %820 = vst.msk [vmem:[#allocation2 + $0x48] sm:$0xff] %vm232_vm0, %v787_v11  ;;  %836 = vst.msk [vmem:[#allocation2 + $0xc8] sm:$0xff] %vm232_vm0, %v803_v12  ;;  %v1371_v24 = vadd.f32 %v1370_v19, %v1369_v9  ;;  %v1419_v25 = vadd.f32 %v1418_v21, %v1417_v10 }
 0x119   : > { %v908_v23 = vadd.f32 %v1730_v13, %v869_v18  ;;  %v1297_v26 = vpack.c.bf16 %v923_v15, %v923_v15  ;;  %v1313_v27 = vpack.c.bf16 %v939_v16, %v939_v16  ;;  %v1372_v28 = vpop.f32.mrf.mxu0  ;;  %v1420_v29 = vpop.f32.mrf.mxu1  ;;  %v278_v15 = vld [vmem:[#allocation2 + $0x68] sm:$0xff] }
 0x11a   : > { %v924_v30 = vmax.f32 %v892_v22, 0.0  ;;  %v788_v32 = vadd.f32 %v1371_v24, %v275_v14  ;;  %v804_v33 = vadd.f32 %v1419_v25, %v291_v20  ;;  %v294_v16 = vld [vmem:[#allocation2 + $0xe8] sm:$0xff]  ;;  %v279_v25 = vld [vmem:[#allocation2 + $0x70] sm:$0xff] }
 0x11b   : > { %v940_v31 = vmax.f32 %v908_v23, 0.0  ;;  %1084 = vst.msk [vmem:[%s1740_s18 + $0x18] sm:$0xf] %vm1077_vm1, %v1297_v26  ;;  %1100 = vst.msk [vmem:[%s1740_s18 + $0x58] sm:$0xf] %vm1077_vm1, %v1313_v27  ;;  %v854_v34 = vld [vmem:[#allocation2 + $0x40] sm:$0xff]  ;;  %v1373_v36 = vpop.f32.mrf.mxu0  ;;  %v1421_v37 = vpop.f32.mrf.mxu1 }
 0x11c   : > { %v870_v35 = vld [vmem:[#allocation2 + $0xc0] sm:$0xff]  ;;  %v1298_v38 = vpack.c.bf16 %v924_v30, %v924_v30  ;;  %v893_v40 = vadd.f32 %v1730_v13, %v854_v34  ;;  %821 = vst.msk [vmem:[#allocation2 + $0x50] sm:$0xff] %vm232_vm0, %v788_v32  ;;  %837 = vst.msk [vmem:[#allocation2 + $0xd0] sm:$0xff] %vm232_vm0, %v804_v33  ;;  %v1374_v44 = vadd.f32 %v1373_v36, %v1372_v28  ;;  %v295_v27 = vld [vmem:[#allocation2 + $0xf0] sm:$0xff] }
 0x11d   : > { %v1314_v39 = vpack.c.bf16 %v940_v31, %v940_v31  ;;  %v909_v41 = vadd.f32 %v1730_v13, %v870_v35  ;;  %v1422_v45 = vadd.f32 %v1421_v37, %v1420_v29  ;;  %v1375_v46 = vpop.f32.mrf.mxu0  ;;  %v1423_v47 = vpop.f32.mrf.mxu1 }
 0x11e   : > { %1085 = vst.msk [vmem:[%s1740_s18 + $0x1c] sm:$0xf] %vm1077_vm1, %v1298_v38  ;;  %v925_v48 = vmax.f32 %v893_v40, 0.0  ;;  %v789_v52 = vadd.f32 %v1374_v44, %v276_v42 }
 0x11f   : > { %1101 = vst.msk [vmem:[%s1740_s18 + $0x5c] sm:$0xf] %vm1077_vm1, %v1314_v39  ;;  %v941_v49 = vmax.f32 %v909_v41, 0.0  ;;  %v855_v50 = vld [vmem:[#allocation2 + $0x48] sm:$0xff]  ;;  %v805_v53 = vadd.f32 %v1422_v45, %v292_v43  ;;  %v1376_v54 = vpop.f32.mrf.mxu0  ;;  %v1424_v55 = vpop.f32.mrf.mxu1  ;;  %v280_v43 = vld [vmem:[#allocation2 + $0x78] sm:$0xff] }
 0x120   : > { %v871_v51 = vld [vmem:[#allocation2 + $0xc8] sm:$0xff]  ;;  %v1299_v56 = vpack.c.bf16 %v925_v48, %v925_v48  ;;  %v894_v58 = vadd.f32 %v1730_v13, %v855_v50  ;;  %822 = vst.msk [vmem:[#allocation2 + $0x58] sm:$0xff] %vm232_vm0, %v789_v52  ;;  %v1377_v62 = vadd.f32 %v1376_v54, %v1375_v46  ;;  %v1425_v63 = vadd.f32 %v1424_v55, %v1423_v47  ;;  %v296_v45 = vld [vmem:[#allocation2 + $0xf8] sm:$0xff] }
 0x121   : > { %v1315_v57 = vpack.c.bf16 %v941_v49, %v941_v49  ;;  %v910_v59 = vadd.f32 %v1730_v13, %v871_v51  ;;  %838 = vst.msk [vmem:[#allocation2 + $0xd8] sm:$0xff] %vm232_vm0, %v805_v53  ;;  %v1378_v0 = vpop.f32.mrf.mxu0  ;;  %v1426_v1 = vpop.f32.mrf.mxu1 }
 0x122   : > { %1086 = vst.msk [vmem:[%s1740_s18 + $0x20] sm:$0xf] %vm1077_vm1, %v1299_v56  ;;  %v926_v2 = vmax.f32 %v894_v58, 0.0  ;;  %v790_v6 = vadd.f32 %v1377_v62, %v277_v60  ;;  %v806_v7 = vadd.f32 %v1425_v63, %v293_v61 }
 0x123   : > { %1102 = vst.msk [vmem:[%s1740_s18 + $0x60] sm:$0xf] %vm1077_vm1, %v1315_v57  ;;  %v942_v3 = vmax.f32 %v910_v59, 0.0  ;;  %v856_v4 = vld [vmem:[#allocation2 + $0x50] sm:$0xff]  ;;  %v1379_v8 = vpop.f32.mrf.mxu0  ;;  %v1427_v9 = vpop.f32.mrf.mxu1 }
 0x124   : > { %v872_v5 = vld [vmem:[#allocation2 + $0xd0] sm:$0xff]  ;;  %v1300_v10 = vpack.c.bf16 %v926_v2, %v926_v2  ;;  %v895_v12 = vadd.f32 %v1730_v13, %v856_v4  ;;  %823 = vst.msk [vmem:[#allocation2 + $0x60] sm:$0xff] %vm232_vm0, %v790_v6  ;;  %839 = vst.msk [vmem:[#allocation2 + $0xe0] sm:$0xff] %vm232_vm0, %v806_v7  ;;  %v1380_v17 = vadd.f32 %v1379_v8, %v1378_v0 }
 0x125   : > { %v1316_v11 = vpack.c.bf16 %v942_v3, %v942_v3  ;;  %v911_v14 = vadd.f32 %v1730_v13, %v872_v5  ;;  %v1428_v18 = vadd.f32 %v1427_v9, %v1426_v1  ;;  %v1381_v19 = vpop.f32.mrf.mxu0  ;;  %v1429_v20 = vpop.f32.mrf.mxu1 }
 0x126   : > { %1087 = vst.msk [vmem:[%s1740_s18 + $0x24] sm:$0xf] %vm1077_vm1, %v1300_v10  ;;  %v927_v21 = vmax.f32 %v895_v12, 0.0  ;;  %v791_v23 = vadd.f32 %v1380_v17, %v278_v15 }
 0x127   : > { %1103 = vst.msk [vmem:[%s1740_s18 + $0x64] sm:$0xf] %vm1077_vm1, %v1316_v11  ;;  %v943_v22 = vmax.f32 %v911_v14, 0.0  ;;  %v807_v24 = vadd.f32 %v1428_v18, %v294_v16  ;;  %v1382_v26 = vpop.f32.mrf.mxu0  ;;  %v1430_v28 = vpop.f32.mrf.mxu1  ;;  %v857_v31 = vld [vmem:[#allocation2 + $0x58] sm:$0xff] }
 0x128   : > { %v1301_v29 = vpack.c.bf16 %v927_v21, %v927_v21  ;;  %v873_v32 = vld [vmem:[#allocation2 + $0xd8] sm:$0xff]  ;;  %v1383_v33 = vadd.f32 %v1382_v26, %v1381_v19  ;;  %v1431_v34 = vadd.f32 %v1430_v28, %v1429_v20  ;;  %v896_v35 = vadd.f32 %v1730_v13, %v857_v31  ;;  %824 = vst.msk [vmem:[#allocation2 + $0x68] sm:$0xff] %vm232_vm0, %v791_v23 }
 0x129   : > { %v1317_v30 = vpack.c.bf16 %v943_v22, %v943_v22  ;;  %v912_v36 = vadd.f32 %v1730_v13, %v873_v32  ;;  %840 = vst.msk [vmem:[#allocation2 + $0xe8] sm:$0xff] %vm232_vm0, %v807_v24  ;;  %v1384_v37 = vpop.f32.mrf.mxu0  ;;  %v1432_v38 = vpop.f32.mrf.mxu1 }
 0x12a   : > { %1088 = vst.msk [vmem:[%s1740_s18 + $0x28] sm:$0xf] %vm1077_vm1, %v1301_v29  ;;  %v792_v39 = vadd.f32 %v1383_v33, %v279_v25  ;;  %v808_v40 = vadd.f32 %v1431_v34, %v295_v27  ;;  %v928_v41 = vmax.f32 %v896_v35, 0.0 }
 0x12b   : > { %1104 = vst.msk [vmem:[%s1740_s18 + $0x68] sm:$0xf] %vm1077_vm1, %v1317_v30  ;;  %v944_v42 = vmax.f32 %v912_v36, 0.0  ;;  %v1385_v44 = vpop.f32.mrf.mxu0  ;;  %v1433_v46 = vpop.f32.mrf.mxu1  ;;  %v858_v47 = vld [vmem:[#allocation2 + $0x60] sm:$0xff] }
 0x12c   : > { %v874_v48 = vld [vmem:[#allocation2 + $0xe0] sm:$0xff]  ;;  %825 = vst.msk [vmem:[#allocation2 + $0x70] sm:$0xff] %vm232_vm0, %v792_v39  ;;  %841 = vst.msk [vmem:[#allocation2 + $0xf0] sm:$0xff] %vm232_vm0, %v808_v40  ;;  %v1386_v49 = vadd.f32 %v1385_v44, %v1384_v37  ;;  %v1434_v50 = vadd.f32 %v1433_v46, %v1432_v38  ;;  %v1302_v51 = vpack.c.bf16 %v928_v41, %v928_v41 }
 0x12d   : > { %v1318_v52 = vpack.c.bf16 %v944_v42, %v944_v42  ;;  %v897_v53 = vadd.f32 %v1730_v13, %v858_v47  ;;  %v913_v54 = vadd.f32 %v1730_v13, %v874_v48 }
 0x12e   : > { %v793_v55 = vadd.f32 %v1386_v49, %v280_v43  ;;  %v809_v56 = vadd.f32 %v1434_v50, %v296_v45  ;;  %1089 = vst.msk [vmem:[%s1740_s18 + $0x2c] sm:$0xf] %vm1077_vm1, %v1302_v51 }
 0x12f   : > { %1105 = vst.msk [vmem:[%s1740_s18 + $0x6c] sm:$0xf] %vm1077_vm1, %v1318_v52  ;;  %v929_v57 = vmax.f32 %v897_v53, 0.0  ;;  %v945_v58 = vmax.f32 %v913_v54, 0.0  ;;  %v859_v59 = vld [vmem:[#allocation2 + $0x68] sm:$0xff] }
 0x130   : > { %v875_v60 = vld [vmem:[#allocation2 + $0xe8] sm:$0xff]  ;;  %826 = vst.msk [vmem:[#allocation2 + $0x78] sm:$0xff] %vm232_vm0, %v793_v55  ;;  %842 = vst.msk [vmem:[#allocation2 + $0xf8] sm:$0xff] %vm232_vm0, %v809_v56  ;;  %v898_v63 = vadd.f32 %v1730_v13, %v859_v59 }
 0x131   : > { %v1303_v61 = vpack.c.bf16 %v929_v57, %v929_v57  ;;  %v1319_v62 = vpack.c.bf16 %v945_v58, %v945_v58  ;;  %v914_v0 = vadd.f32 %v1730_v13, %v875_v60 }
 0x132   : > { %v930_v1 = vmax.f32 %v898_v63, 0.0 }
 0x133   : > { %1090 = vst.msk [vmem:[%s1740_s18 + $0x30] sm:$0xf] %vm1077_vm1, %v1303_v61  ;;  %1106 = vst.msk [vmem:[%s1740_s18 + $0x70] sm:$0xf] %vm1077_vm1, %v1319_v62  ;;  %v946_v2 = vmax.f32 %v914_v0, 0.0  ;;  %v860_v3 = vld [vmem:[#allocation2 + $0x70] sm:$0xff] }
 0x134   : > { %v876_v4 = vld [vmem:[#allocation2 + $0xf0] sm:$0xff]  ;;  %v899_v5 = vadd.f32 %v1730_v13, %v860_v3  ;;  %v1304_v7 = vpack.c.bf16 %v930_v1, %v930_v1 }
 0x135   : > { %v915_v6 = vadd.f32 %v1730_v13, %v876_v4  ;;  %v1320_v8 = vpack.c.bf16 %v946_v2, %v946_v2 }
 0x136   : > { %v931_v9 = vmax.f32 %v899_v5, 0.0  ;;  %1091 = vst.msk [vmem:[%s1740_s18 + $0x34] sm:$0xf] %vm1077_vm1, %v1304_v7 }
 0x137   : > { %v947_v10 = vmax.f32 %v915_v6, 0.0  ;;  %1107 = vst.msk [vmem:[%s1740_s18 + $0x74] sm:$0xf] %vm1077_vm1, %v1320_v8  ;;  %v861_v11 = vld [vmem:[#allocation2 + $0x78] sm:$0xff] }
 0x138   : > { %v877_v12 = vld [vmem:[#allocation2 + $0xf8] sm:$0xff]  ;;  %v1305_v14 = vpack.c.bf16 %v931_v9, %v931_v9  ;;  %v900_v16 = vadd.f32 %v1730_v13, %v861_v11 }
 0x139   : > { %v1321_v15 = vpack.c.bf16 %v947_v10, %v947_v10  ;;  %v916_v17 = vadd.f32 %v1730_v13, %v877_v12 }
 0x13a   : > { %1092 = vst.msk [vmem:[%s1740_s18 + $0x38] sm:$0xf] %vm1077_vm1, %v1305_v14  ;;  %v932_v18 = vmax.f32 %v900_v16, 0.0 }
 0x13b   : > { %1108 = vst.msk [vmem:[%s1740_s18 + $0x78] sm:$0xf] %vm1077_vm1, %v1321_v15  ;;  %v948_v19 = vmax.f32 %v916_v17, 0.0 }
 0x13c   : > { %v1306_v20 = vpack.c.bf16 %v932_v18, %v932_v18 }
 0x13d   : > { %v1322_v21 = vpack.c.bf16 %v948_v19, %v948_v19 }
 0x13e   : > { %1093 = vst.msk [vmem:[%s1740_s18 + $0x3c] sm:$0xf] %vm1077_vm1, %v1306_v20 }
 0x13f   : > { %1109 = vst.msk [vmem:[%s1740_s18 + $0x7c] sm:$0xf] %vm1077_vm1, %v1322_v21 }
 0x140 PF: > { %s13_s14 = sadd.s32 1, %s1562_s14   ;;  %s1875_s12 = smov %s1558_s13 }
 0x141   : > { %p10_p5 = scmp.ge.s32.totalorder %s13_s14, 10   ;;  %s1876_s13 = smov %s1878_s15 }
 0x143   :  { %12 = sbr.rel (!%p10_p5) target bundleno = 2 (0x2), region = 73 }

// kernel: resnet18_forward.22
= control target key start
LH: loop header
LB: loop body
LE: loop exit
PB: predicated region body
PF: predicated region fallthrough
CT: control target
= control target key end

     0   :  { %s1805_s12 = smov 0   ;;  %s1807_s13 = smov 0   ;;  %s2186_s0 = inlined_call_operand.vmem [shape: bf16[512,768], index: 0, kind: input, shape index: {}]   ;;  %s2187_s1 = inlined_call_operand.vmem [shape: bf16[768,64], index: 1, kind: input, shape index: {}]   ;;  %s2188_s2 = inlined_call_operand.vmem [shape: f32[1,64], index: 2, kind: input, shape index: {}]   ;;  %s2189_s3 = inlined_call_operand.vmem [shape: bf16[512,64], index: 3, kind: output, shape index: {}]  }
   0x1   :  { %s1809_s14 = smov 0   ;;  %s1811_s15 = smov 0  }
   0x2   :  { %s1813_s16 = smov 0   ;;  %s1815_s17 = smov 0  }
   0x3   :  { %s1817_s18 = smov 0  }
   0x4 LB: > { %s22_s19 = sadd.s32 1, %s1774_s16  ;;  %s25_s20 = sadd.s32 1, %s1778_s17  ;;  %s1782_s18 = sphi %s1817_s18, %s13_s18   ;;  %s1778_s17 = sphi %s1815_s17, %s2195_s17   ;;  %s1774_s16 = sphi %s1813_s16, %s2194_s16   ;;  %s1770_s15 = sphi %s1811_s15, %s2193_s15   ;;  %s1766_s14 = sphi %s1809_s14, %s2192_s14   ;;  %s1762_s13 = sphi %s1807_s13, %s2191_s13   ;;  %s1758_s12 = sphi %s1805_s12, %s2190_s12  }
   0x5   : > { %p23_p0 = scmp.ge.s32.totalorder %s22_s19, 3  ;;  %p41_p1 = scmp.ne.s32.totalorder %s1762_s13, %s1758_s12 }
   0x6   : > { %p42_p2 = scmp.eq.s32.totalorder %s1782_s18, 0  ;;  %s34_s24 = sadd.s32 1, %s1762_s13 }
   0x7   : > { %s2197_s19 = smov (%p23_p0, %s22_s19), 0  ;;  %s2199_s20 = smov (!%p23_p0, %s25_s20), %s1778_s17 }
   0x8   : > { %p43_p3 = por %p42_p2, %p41_p1  ;;  %p27_p4 = scmp.ge.s32.totalorder %s2199_s20, 2 }
   0x9   : > { %s30_s21 = ssub.s32 %s1774_s16, %s2197_s19  ;;  %p1349_p6 = scmp.ge.s32.totalorder %s1782_s18, 6 }
   0xa   : > { %s2201_s20 = smov (%p27_p4, %s2199_s20), 0 }
   0xb   : > { %s29_s22 = ssub.s32 %s1778_s17, %s2201_s20  ;;  %143 = sbr.rel (%p1349_p6) target bundleno = 40 (0x28), region = 20 }
   0xc   : > { %s31_s23 = sor.u32 %s30_s21, %s29_s22 }
   0xd   : > { %p32_p5 = scmp.eq.s32.totalorder %s31_s23, 0 }
   0xf   : > { %s1856_s25 = scalar_select %p32_p5, %s1762_s13, %s34_s24  }
  0x10   : > { %146 = sbr.rel (!%p43_p3) target bundleno = 40 (0x28), region = 24  ;;  %s148_s26 = sand.u32 (%p43_p3), 1, %s1762_s13  }
  0x11   : > { %s1352_s27 = sshll.u32 (%p43_p3), %s1774_s16, 1  ;;  %s1350_s28 = sshll.u32 (%p43_p3), %s148_s26, 8 }
  0x12   : > { %s1606_s29 = smul.u32 (%p43_p3), 192, %s1778_s17  ;;  %s1870_s8 = scalar_lea.vmem (%p43_p3), [#allocation3], %s1350_s28 }
  0x14   : > { %s154_s30 = sadd.s32 (%p43_p3), %s1606_s29, %s1352_s27 }
  0x15   : > { %s1354_s4 = sshll.u32 %s154_s30, 2 }
  0x16   : > { %s1865_s7 = scalar_lea.vmem %s2186_s0, %s1354_s4 }
  0x17   : > { %v247_v0 = vld [vmem:[%s1865_s7] sm:$0xff]  ;;  %v249_v1 = vld [vmem:[%s1865_s7 + $0x18] sm:$0xff]  ;;  %v251_v2 = vld [vmem:[%s1865_s7 + $0x30] sm:$0xff] }
  0x18   : > { %248 = vst [vmem:[%s1870_s8] sm:$0xff] %v247_v0  ;;  %250 = vst [vmem:[%s1870_s8 + $0x8] sm:$0xff] %v249_v1  ;;  %v253_v3 = vld [vmem:[%s1865_s7 + $0x48] sm:$0xff]  ;;  %v255_v4 = vld [vmem:[%s1865_s7 + $0x60] sm:$0xff] }
  0x19   : > { %252 = vst [vmem:[%s1870_s8 + $0x10] sm:$0xff] %v251_v2  ;;  %v257_v5 = vld [vmem:[%s1865_s7 + $0x78] sm:$0xff]  ;;  %254 = vst [vmem:[%s1870_s8 + $0x18] sm:$0xff] %v253_v3  ;;  %v259_v6 = vld [vmem:[%s1865_s7 + $0x90] sm:$0xff] }
  0x1a   : > { %256 = vst [vmem:[%s1870_s8 + $0x20] sm:$0xff] %v255_v4  ;;  %258 = vst [vmem:[%s1870_s8 + $0x28] sm:$0xff] %v257_v5  ;;  %v261_v7 = vld [vmem:[%s1865_s7 + $0xa8] sm:$0xff]  ;;  %v263_v8 = vld [vmem:[%s1865_s7 + $0xc0] sm:$0xff] }
  0x1b   : > { %260 = vst [vmem:[%s1870_s8 + $0x30] sm:$0xff] %v259_v6  ;;  %262 = vst [vmem:[%s1870_s8 + $0x38] sm:$0xff] %v261_v7  ;;  %v265_v9 = vld [vmem:[%s1865_s7 + $0xd8] sm:$0xff]  ;;  %v267_v10 = vld [vmem:[%s1865_s7 + $0xf0] sm:$0xff] }
  0x1c   : > { %264 = vst [vmem:[%s1870_s8 + $0x40] sm:$0xff] %v263_v8  ;;  %v269_v11 = vld [vmem:[%s1865_s7 + $0x108] sm:$0xff]  ;;  %266 = vst [vmem:[%s1870_s8 + $0x48] sm:$0xff] %v265_v9  ;;  %v271_v12 = vld [vmem:[%s1865_s7 + $0x120] sm:$0xff] }
  0x1d   : > { %268 = vst [vmem:[%s1870_s8 + $0x50] sm:$0xff] %v267_v10  ;;  %270 = vst [vmem:[%s1870_s8 + $0x58] sm:$0xff] %v269_v11  ;;  %v273_v13 = vld [vmem:[%s1865_s7 + $0x138] sm:$0xff]  ;;  %v275_v14 = vld [vmem:[%s1865_s7 + $0x150] sm:$0xff] }
  0x1e   : > { %272 = vst [vmem:[%s1870_s8 + $0x60] sm:$0xff] %v271_v12  ;;  %274 = vst [vmem:[%s1870_s8 + $0x68] sm:$0xff] %v273_v13  ;;  %v277_v15 = vld [vmem:[%s1865_s7 + $0x168] sm:$0xff]  ;;  %v279_v16 = vld [vmem:[%s1865_s7 + $0x180] sm:$0xff] }
  0x1f   : > { %276 = vst [vmem:[%s1870_s8 + $0x70] sm:$0xff] %v275_v14  ;;  %v281_v17 = vld [vmem:[%s1865_s7 + $0x198] sm:$0xff]  ;;  %278 = vst [vmem:[%s1870_s8 + $0x78] sm:$0xff] %v277_v15  ;;  %v283_v18 = vld [vmem:[%s1865_s7 + $0x1b0] sm:$0xff] }
  0x20   : > { %280 = vst [vmem:[%s1870_s8 + $0x80] sm:$0xff] %v279_v16  ;;  %282 = vst [vmem:[%s1870_s8 + $0x88] sm:$0xff] %v281_v17  ;;  %v285_v19 = vld [vmem:[%s1865_s7 + $0x1c8] sm:$0xff]  ;;  %v287_v20 = vld [vmem:[%s1865_s7 + $0x1e0] sm:$0xff] }
  0x21   : > { %284 = vst [vmem:[%s1870_s8 + $0x90] sm:$0xff] %v283_v18  ;;  %286 = vst [vmem:[%s1870_s8 + $0x98] sm:$0xff] %v285_v19  ;;  %v289_v21 = vld [vmem:[%s1865_s7 + $0x1f8] sm:$0xff]  ;;  %v291_v22 = vld [vmem:[%s1865_s7 + $0x210] sm:$0xff] }
  0x22   : > { %288 = vst [vmem:[%s1870_s8 + $0xa0] sm:$0xff] %v287_v20  ;;  %v293_v23 = vld [vmem:[%s1865_s7 + $0x228] sm:$0xff]  ;;  %290 = vst [vmem:[%s1870_s8 + $0xa8] sm:$0xff] %v289_v21  ;;  %v295_v24 = vld [vmem:[%s1865_s7 + $0x240] sm:$0xff] }
  0x23   : > { %292 = vst [vmem:[%s1870_s8 + $0xb0] sm:$0xff] %v291_v22  ;;  %294 = vst [vmem:[%s1870_s8 + $0xb8] sm:$0xff] %v293_v23  ;;  %v297_v25 = vld [vmem:[%s1865_s7 + $0x258] sm:$0xff]  ;;  %v299_v26 = vld [vmem:[%s1865_s7 + $0x270] sm:$0xff] }
  0x24   : > { %296 = vst [vmem:[%s1870_s8 + $0xc0] sm:$0xff] %v295_v24  ;;  %298 = vst [vmem:[%s1870_s8 + $0xc8] sm:$0xff] %v297_v25  ;;  %v301_v27 = vld [vmem:[%s1865_s7 + $0x288] sm:$0xff]  ;;  %v303_v28 = vld [vmem:[%s1865_s7 + $0x2a0] sm:$0xff] }
  0x25   : > { %300 = vst [vmem:[%s1870_s8 + $0xd0] sm:$0xff] %v299_v26  ;;  %v305_v29 = vld [vmem:[%s1865_s7 + $0x2b8] sm:$0xff]  ;;  %302 = vst [vmem:[%s1870_s8 + $0xd8] sm:$0xff] %v301_v27  ;;  %v307_v30 = vld [vmem:[%s1865_s7 + $0x2d0] sm:$0xff] }
  0x26   : > { %304 = vst [vmem:[%s1870_s8 + $0xe0] sm:$0xff] %v303_v28  ;;  %306 = vst [vmem:[%s1870_s8 + $0xe8] sm:$0xff] %v305_v29  ;;  %v309_v31 = vld [vmem:[%s1865_s7 + $0x2e8] sm:$0xff] }
  0x27   : > { %308 = vst [vmem:[%s1870_s8 + $0xf0] sm:$0xff] %v307_v30  ;;  %310 = vst [vmem:[%s1870_s8 + $0xf8] sm:$0xff] %v309_v31 }
  0x28 PF: > { %p1355_p7 = scmp.ge.s32.totalorder %s1782_s18, 1  ;;  %p324_p8 = scmp.lt.s32.totalorder %s1782_s18, 7 }
  0x2a   : > { %p325_p9 = pnand %p1355_p7, %p324_p8 }
  0x2b   : > { %s331_s9 = sand.u32 (!%p325_p9), 1, %s1758_s12   ;;  %s1357_s10 = sshll.u32 (!%p325_p9), %s1766_s14, 5 }
  0x2c   : > { %328 = sbr.rel (%p325_p9) target bundleno = 397 (0x18d), region = 66  ;;  %s1356_s11 = sshll.u32 (!%p325_p9), %s331_s9, 8 }
  0x2d   : > { %p362_p10 = scmp.lt.s32.totalorder (!%p325_p9), %s1357_s10, 95  ;;  %s1359_s21 = sshll.u32 (!%p325_p9), %s1770_s15, 5 }
  0x2e   : > { %p368_p11 = scmp.lt.s32.totalorder (!%p325_p9), %s1359_s21, 63  ;;  %s1948_s12 = scalar_lea.vmem (!%p325_p9), [#allocation3], %s1356_s11 }
  0x2f   : > { %p1361_p12 = scmp.ne.s32.totalorder (!%p325_p9), %s1766_s14, 0 }
  0x31   : > { %s2203_s10 = smov (!%p362_p10, %s1357_s10), 95  ;;  %s2205_s21 = smov (!%p368_p11, %s1359_s21), 63 }
  0x32   : > { %s1358_s22 = sshll.u32 %s2203_s10, 2  ;;  %s1360_s27 = sshll.u32 %s2205_s21, 2 }
  0x33   : > { %s1941_s26 = scalar_lea.vmem %s2187_s1, %s1358_s22  ;;  %s1946_s30 = scalar_lea.vmem %s2189_s3, %s1360_s27 }
  0x34   : > { %377 = sbr.rel (%p1361_p12) target bundleno = 74 (0x4a), region = 74 }
  0x39   : > { %vm378_vm0 = vcmask 523264   ;;  %v1784_v32 = vmov 0.0  }
  0x3a   : > { %379 = vst.msk [vmem:[#allocation2] sm:$0xff] %vm378_vm0, %v1784_v32  ;;  %380 = vst.msk [vmem:[#allocation2 + $0x8] sm:$0xff] %vm378_vm0, %v1784_v32 }
  0x3b   : > { %381 = vst.msk [vmem:[#allocation2 + $0x10] sm:$0xff] %vm378_vm0, %v1784_v32  ;;  %382 = vst.msk [vmem:[#allocation2 + $0x18] sm:$0xff] %vm378_vm0, %v1784_v32 }
  0x3c   : > { %383 = vst.msk [vmem:[#allocation2 + $0x20] sm:$0xff] %vm378_vm0, %v1784_v32  ;;  %384 = vst.msk [vmem:[#allocation2 + $0x28] sm:$0xff] %vm378_vm0, %v1784_v32 }
  0x3d   : > { %385 = vst.msk [vmem:[#allocation2 + $0x30] sm:$0xff] %vm378_vm0, %v1784_v32  ;;  %386 = vst.msk [vmem:[#allocation2 + $0x38] sm:$0xff] %vm378_vm0, %v1784_v32 }
  0x3e   : > { %387 = vst.msk [vmem:[#allocation2 + $0x40] sm:$0xff] %vm378_vm0, %v1784_v32  ;;  %388 = vst.msk [vmem:[#allocation2 + $0x48] sm:$0xff] %vm378_vm0, %v1784_v32 }
  0x3f   : > { %389 = vst.msk [vmem:[#allocation2 + $0x50] sm:$0xff] %vm378_vm0, %v1784_v32  ;;  %390 = vst.msk [vmem:[#allocation2 + $0x58] sm:$0xff] %vm378_vm0, %v1784_v32 }
  0x40   : > { %391 = vst.msk [vmem:[#allocation2 + $0x60] sm:$0xff] %vm378_vm0, %v1784_v32  ;;  %392 = vst.msk [vmem:[#allocation2 + $0x68] sm:$0xff] %vm378_vm0, %v1784_v32 }
  0x41   : > { %393 = vst.msk [vmem:[#allocation2 + $0x70] sm:$0xff] %vm378_vm0, %v1784_v32  ;;  %394 = vst.msk [vmem:[#allocation2 + $0x78] sm:$0xff] %vm378_vm0, %v1784_v32 }
  0x42   : > { %395 = vst.msk [vmem:[#allocation2 + $0x80] sm:$0xff] %vm378_vm0, %v1784_v32  ;;  %396 = vst.msk [vmem:[#allocation2 + $0x88] sm:$0xff] %vm378_vm0, %v1784_v32 }
  0x43   : > { %397 = vst.msk [vmem:[#allocation2 + $0x90] sm:$0xff] %vm378_vm0, %v1784_v32  ;;  %398 = vst.msk [vmem:[#allocation2 + $0x98] sm:$0xff] %vm378_vm0, %v1784_v32 }
  0x44   : > { %399 = vst.msk [vmem:[#allocation2 + $0xa0] sm:$0xff] %vm378_vm0, %v1784_v32  ;;  %400 = vst.msk [vmem:[#allocation2 + $0xa8] sm:$0xff] %vm378_vm0, %v1784_v32 }
  0x45   : > { %401 = vst.msk [vmem:[#allocation2 + $0xb0] sm:$0xff] %vm378_vm0, %v1784_v32  ;;  %402 = vst.msk [vmem:[#allocation2 + $0xb8] sm:$0xff] %vm378_vm0, %v1784_v32 }
  0x46   : > { %403 = vst.msk [vmem:[#allocation2 + $0xc0] sm:$0xff] %vm378_vm0, %v1784_v32  ;;  %404 = vst.msk [vmem:[#allocation2 + $0xc8] sm:$0xff] %vm378_vm0, %v1784_v32 }
  0x47   : > { %405 = vst.msk [vmem:[#allocation2 + $0xd0] sm:$0xff] %vm378_vm0, %v1784_v32  ;;  %406 = vst.msk [vmem:[#allocation2 + $0xd8] sm:$0xff] %vm378_vm0, %v1784_v32 }
  0x48   : > { %407 = vst.msk [vmem:[#allocation2 + $0xe0] sm:$0xff] %vm378_vm0, %v1784_v32  ;;  %408 = vst.msk [vmem:[#allocation2 + $0xe8] sm:$0xff] %vm378_vm0, %v1784_v32 }
  0x49   : > { %409 = vst.msk [vmem:[#allocation2 + $0xf0] sm:$0xff] %vm378_vm0, %v1784_v32  ;;  %410 = vst.msk [vmem:[#allocation2 + $0xf8] sm:$0xff] %vm378_vm0, %v1784_v32 }
  0x4a PF: > { %v1664_v33 = vld [vmem:[%s1941_s26 + $0x78] sm:$0xff]   ;;  %v1666_v35 = vld [vmem:[%s1941_s26 + $0x70] sm:$0xff]   ;;  %v1668_v37 = vld [vmem:[%s1941_s26 + $0x68] sm:$0xff]   ;;  %vm956_vm1 = vcmask 523264   ;;  %p1410_p13 = scmp.ne.s32.totalorder %s1766_s14, 2 }
  0x4b   : > { %v1665_v34 = vld [vmem:[%s1941_s26 + $0x38] sm:$0xff]   ;;  %1478 = vmatprep.subr.bf16.mxu0 %v1664_v33  ;;  %1590 = vmatprep.subr.bf16.mxu1 %v1664_v33  ;;  %v1667_v36 = vld [vmem:[%s1941_s26 + $0x30] sm:$0xff]   ;;  %v1669_v38 = vld [vmem:[%s1941_s26 + $0x28] sm:$0xff]  }
  0x4c   : > { %1479 = vmatpush3.bf16.msra.mxu0 %v1665_v34  ;;  %1598 = vmatpush3.bf16.msra.mxu1 %v1665_v34  ;;  %v1670_v39 = vld [vmem:[%s1941_s26 + $0x60] sm:$0xff]   ;;  %v1672_v41 = vld [vmem:[%s1941_s26 + $0x58] sm:$0xff]   ;;  %v1674_v43 = vld [vmem:[%s1941_s26 + $0x50] sm:$0xff]  }
  0x4d   : > { %1480 = vmatprep.subr.bf16.mxu0 %v1666_v35  ;;  %1591 = vmatprep.subr.bf16.mxu1 %v1666_v35  ;;  %v1671_v40 = vld [vmem:[%s1941_s26 + $0x20] sm:$0xff]   ;;  %v1673_v42 = vld [vmem:[%s1941_s26 + $0x18] sm:$0xff]   ;;  %v1675_v46 = vld [vmem:[%s1941_s26 + $0x10] sm:$0xff]  }
  0x4e   : > { %v1682_v44 = vld [vmem:[%s1948_s12 + $0x4] ss:$8 sps:$4 sm:$0xff]   ;;  %v1680_v51 = vld [vmem:[%s1948_s12] ss:$8 sps:$4 sm:$0xff]   ;;  %v1686_v53 = vld [vmem:[%s1948_s12 + $0x14] ss:$8 sps:$4 sm:$0xff]  }
  0x4f   : > { %v1685_v45 = vld [vmem:[%s1948_s12 + $0x84] ss:$8 sps:$4 sm:$0xff]   ;;  %795 = vmatprep.mubr.bf16.mxu0 %v1682_v44  ;;  %v1683_v52 = vld [vmem:[%s1948_s12 + $0x80] ss:$8 sps:$4 sm:$0xff]   ;;  %v1688_v54 = vld [vmem:[%s1948_s12 + $0x94] ss:$8 sps:$4 sm:$0xff]  }
  0x50   : > { %1481 = vmatpush3.bf16.msra.mxu0 %v1667_v36  ;;  %1599 = vmatpush3.bf16.msra.mxu1 %v1667_v36  ;;  %v1676_v47 = vld [vmem:[%s1941_s26 + $0x48] sm:$0xff]   ;;  %v1678_v49 = vld [vmem:[%s1941_s26 + $0x40] sm:$0xff]   ;;  %v1690_v55 = vld [vmem:[%s1948_s12 + $0x10] ss:$8 sps:$4 sm:$0xff]  }
  0x51   : > { %1482 = vmatprep.subr.bf16.mxu0 %v1668_v37  ;;  %1592 = vmatprep.subr.bf16.mxu1 %v1668_v37  ;;  %v1677_v48 = vld [vmem:[%s1941_s26 + $0x8] sm:$0xff]   ;;  %v1679_v50 = vld [vmem:[%s1941_s26] sm:$0xff]   ;;  %v1691_v56 = vld [vmem:[%s1948_s12 + $0x90] ss:$8 sps:$4 sm:$0xff]  }
  0x52   : > { %859 = vmatprep.mubr.bf16.mxu1 %v1685_v45  ;;  %v1692_v57 = vld [vmem:[%s1948_s12 + $0x24] ss:$8 sps:$4 sm:$0xff]   ;;  %v1696_v59 = vld [vmem:[%s1948_s12 + $0x20] ss:$8 sps:$4 sm:$0xff]   ;;  %v1698_v61 = vld [vmem:[%s1948_s12 + $0x34] ss:$8 sps:$4 sm:$0xff]  }
  0x53   : > { %v1694_v58 = vld [vmem:[%s1948_s12 + $0xa4] ss:$8 sps:$4 sm:$0xff]   ;;  %v1697_v60 = vld [vmem:[%s1948_s12 + $0xa0] ss:$8 sps:$4 sm:$0xff]   ;;  %v1700_v62 = vld [vmem:[%s1948_s12 + $0xb4] ss:$8 sps:$4 sm:$0xff]  }
  0x54   : > { %1483 = vmatpush3.bf16.msra.mxu0 %v1669_v38  ;;  %1600 = vmatpush3.bf16.msra.mxu1 %v1669_v38  ;;  %v1702_v63 = vld [vmem:[%s1948_s12 + $0x30] ss:$8 sps:$4 sm:$0xff]   ;;  %v1704_v1 = vld [vmem:[%s1948_s12 + $0x44] ss:$8 sps:$4 sm:$0xff]   ;;  %v1708_v3 = vld [vmem:[%s1948_s12 + $0x40] ss:$8 sps:$4 sm:$0xff]  }
  0x55   : > { %1484 = vmatprep.subr.bf16.mxu0 %v1670_v39  ;;  %1593 = vmatprep.subr.bf16.mxu1 %v1670_v39  ;;  %v1703_v0 = vld [vmem:[%s1948_s12 + $0xb0] ss:$8 sps:$4 sm:$0xff]   ;;  %v1706_v2 = vld [vmem:[%s1948_s12 + $0xc4] ss:$8 sps:$4 sm:$0xff]   ;;  %v1709_v4 = vld [vmem:[%s1948_s12 + $0xc0] ss:$8 sps:$4 sm:$0xff]  }
  0x56   : > { %v1710_v5 = vld [vmem:[%s1948_s12 + $0x54] ss:$8 sps:$4 sm:$0xff]   ;;  %v1714_v7 = vld [vmem:[%s1948_s12 + $0x50] ss:$8 sps:$4 sm:$0xff]   ;;  %v1716_v9 = vld [vmem:[%s1948_s12 + $0x64] ss:$8 sps:$4 sm:$0xff]  }
  0x57   : > { %v1712_v6 = vld [vmem:[%s1948_s12 + $0xd4] ss:$8 sps:$4 sm:$0xff]   ;;  %v1715_v8 = vld [vmem:[%s1948_s12 + $0xd0] ss:$8 sps:$4 sm:$0xff]   ;;  %v1718_v10 = vld [vmem:[%s1948_s12 + $0xe4] ss:$8 sps:$4 sm:$0xff]  }
  0x58   : > { %1485 = vmatpush3.bf16.msra.mxu0 %v1671_v40  ;;  %1601 = vmatpush3.bf16.msra.mxu1 %v1671_v40  ;;  %v1720_v11 = vld [vmem:[%s1948_s12 + $0x60] ss:$8 sps:$4 sm:$0xff]   ;;  %v1722_v13 = vld [vmem:[%s1948_s12 + $0x74] ss:$8 sps:$4 sm:$0xff]   ;;  %v1726_v15 = vld [vmem:[%s1948_s12 + $0x70] ss:$8 sps:$4 sm:$0xff]  }
  0x59   : > { %1486 = vmatprep.subr.bf16.mxu0 %v1672_v41  ;;  %1594 = vmatprep.subr.bf16.mxu1 %v1672_v41  ;;  %v1721_v12 = vld [vmem:[%s1948_s12 + $0xe0] ss:$8 sps:$4 sm:$0xff]   ;;  %v1724_v14 = vld [vmem:[%s1948_s12 + $0xf4] ss:$8 sps:$4 sm:$0xff]   ;;  %v1727_v16 = vld [vmem:[%s1948_s12 + $0xf0] ss:$8 sps:$4 sm:$0xff]  }
  0x5a   : > { %v411_v19 = vld [vmem:[#allocation2] sm:$0xff]  ;;  %v412_v29 = vld [vmem:[#allocation2 + $0x8] sm:$0xff]  ;;  %v413_v39 = vld [vmem:[#allocation2 + $0x10] sm:$0xff] }
  0x5b   : > { %v427_v21 = vld [vmem:[#allocation2 + $0x80] sm:$0xff]  ;;  %v428_v31 = vld [vmem:[#allocation2 + $0x88] sm:$0xff]  ;;  %v429_v41 = vld [vmem:[#allocation2 + $0x90] sm:$0xff] }
  0x5c   : > { %1487 = vmatpush3.bf16.msra.mxu0 %v1673_v42  ;;  %1602 = vmatpush3.bf16.msra.mxu1 %v1673_v42 }
  0x5d   : > { %1488 = vmatprep.subr.bf16.mxu0 %v1674_v43  ;;  %1595 = vmatprep.subr.bf16.mxu1 %v1674_v43 }
  0x60   : > { %1489 = vmatpush3.bf16.msra.mxu0 %v1675_v46  ;;  %1603 = vmatpush3.bf16.msra.mxu1 %v1675_v46 }
  0x61   : > { %1490 = vmatprep.subr.bf16.mxu0 %v1676_v47  ;;  %1596 = vmatprep.subr.bf16.mxu1 %v1676_v47 }
  0x64   : > { %1491 = vmatpush3.bf16.msra.mxu0 %v1677_v48  ;;  %1604 = vmatpush3.bf16.msra.mxu1 %v1677_v48 }
  0x65   : > { %1492 = vmatprep.subr.bf16.mxu0 %v1678_v49  ;;  %1597 = vmatprep.subr.bf16.mxu1 %v1678_v49  ;;  %v414_v49 = vld [vmem:[#allocation2 + $0x18] sm:$0xff] }
  0x68   : > { %1493 = vmatpush3.bf16.msra.mxu0 %v1679_v50  ;;  %1605 = vmatpush3.bf16.msra.mxu1 %v1679_v50 }
  0x6b   : > { %796 = vmatmul.mubr.bf16.vlgmr.msra.gmra.mxu0 %v1680_v51  ;;  %860 = vmatmul.mubr.bf16.vlgmr.msra.gmra.mxu1 %v1683_v52  ;;  %v430_v51 = vld [vmem:[#allocation2 + $0x98] sm:$0xff] }
  0x6c   : > { %803 = vmatprep.mubr.bf16.mxu0 %v1686_v53  ;;  %867 = vmatprep.mubr.bf16.mxu1 %v1688_v54 }
  0x73   : > { %804 = vmatmul.mubr.bf16.gmra.mxu0 %v1690_v55  ;;  %868 = vmatmul.mubr.bf16.gmra.mxu1 %v1691_v56 }
  0x74   : > { %811 = vmatprep.mubr.bf16.mxu0 %v1692_v57  ;;  %875 = vmatprep.mubr.bf16.mxu1 %v1694_v58 }
  0x7b   : > { %812 = vmatmul.mubr.bf16.gmra.mxu0 %v1696_v59  ;;  %876 = vmatmul.mubr.bf16.gmra.mxu1 %v1697_v60  ;;  %v415_v59 = vld [vmem:[#allocation2 + $0x20] sm:$0xff] }
  0x7c   : > { %819 = vmatprep.mubr.bf16.mxu0 %v1698_v61  ;;  %883 = vmatprep.mubr.bf16.mxu1 %v1700_v62  ;;  %v431_v61 = vld [vmem:[#allocation2 + $0xa0] sm:$0xff] }
  0x83   : > { %820 = vmatmul.mubr.bf16.gmra.mxu0 %v1702_v63  ;;  %884 = vmatmul.mubr.bf16.gmra.mxu1 %v1703_v0 }
  0x84   : > { %827 = vmatprep.mubr.bf16.mxu0 %v1704_v1  ;;  %891 = vmatprep.mubr.bf16.mxu1 %v1706_v2 }
  0x8b   : > { %828 = vmatmul.mubr.bf16.gmra.mxu0 %v1708_v3  ;;  %892 = vmatmul.mubr.bf16.gmra.mxu1 %v1709_v4 }
  0x8c   : > { %835 = vmatprep.mubr.bf16.mxu0 %v1710_v5  ;;  %899 = vmatprep.mubr.bf16.mxu1 %v1712_v6  ;;  %v416_v5 = vld [vmem:[#allocation2 + $0x28] sm:$0xff] }
  0x93   : > { %836 = vmatmul.mubr.bf16.gmra.mxu0 %v1714_v7  ;;  %900 = vmatmul.mubr.bf16.gmra.mxu1 %v1715_v8  ;;  %v432_v7 = vld [vmem:[#allocation2 + $0xa8] sm:$0xff] }
  0x94   : > { %843 = vmatprep.mubr.bf16.mxu0 %v1716_v9  ;;  %907 = vmatprep.mubr.bf16.mxu1 %v1718_v10 }
  0x9b   : > { %844 = vmatmul.mubr.bf16.gmra.mxu0 %v1720_v11  ;;  %908 = vmatmul.mubr.bf16.gmra.mxu1 %v1721_v12 }
  0x9c   : > { %851 = vmatprep.mubr.bf16.mxu0 %v1722_v13  ;;  %915 = vmatprep.mubr.bf16.mxu1 %v1724_v14 }
  0xa3   : > { %852 = vmatmul.mubr.bf16.gmra.mxu0 %v1726_v15  ;;  %916 = vmatmul.mubr.bf16.gmra.mxu1 %v1727_v16  ;;  %v417_v15 = vld [vmem:[#allocation2 + $0x30] sm:$0xff] }
 0x12b   : > { %v1494_v17 = vpop.f32.mrf.mxu0  ;;  %v1542_v18 = vpop.f32.mrf.mxu1 }
 0x12d   : > { %v1495_v20 = vpop.f32.mrf.mxu0  ;;  %v1543_v22 = vpop.f32.mrf.mxu1 }
 0x12e   : > { %v1496_v23 = vadd.f32 %v1495_v20, %v1494_v17  ;;  %v1544_v24 = vadd.f32 %v1543_v22, %v1542_v18  ;;  %v433_v17 = vld [vmem:[#allocation2 + $0xb0] sm:$0xff] }
 0x12f   : > { %v1497_v25 = vpop.f32.mrf.mxu0  ;;  %v1545_v26 = vpop.f32.mrf.mxu1 }
 0x130   : > { %v924_v27 = vadd.f32 %v1496_v23, %v411_v19  ;;  %v940_v28 = vadd.f32 %v1544_v24, %v427_v21 }
 0x131   : > { %v1498_v30 = vpop.f32.mrf.mxu0  ;;  %v1546_v32 = vpop.f32.mrf.mxu1 }
 0x132   : > { %957 = vst.msk [vmem:[#allocation2] sm:$0xff] %vm956_vm1, %v924_v27  ;;  %973 = vst.msk [vmem:[#allocation2 + $0x80] sm:$0xff] %vm956_vm1, %v940_v28  ;;  %v1499_v33 = vadd.f32 %v1498_v30, %v1497_v25  ;;  %v1547_v34 = vadd.f32 %v1546_v32, %v1545_v26  ;;  %v418_v25 = vld [vmem:[#allocation2 + $0x38] sm:$0xff] }
 0x133   : > { %v1500_v35 = vpop.f32.mrf.mxu0  ;;  %v1548_v36 = vpop.f32.mrf.mxu1  ;;  %v434_v27 = vld [vmem:[#allocation2 + $0xb8] sm:$0xff] }
 0x134   : > { %v925_v37 = vadd.f32 %v1499_v33, %v412_v29  ;;  %v941_v38 = vadd.f32 %v1547_v34, %v428_v31 }
 0x135   : > { %v1501_v40 = vpop.f32.mrf.mxu0  ;;  %v1549_v42 = vpop.f32.mrf.mxu1 }
 0x136   : > { %958 = vst.msk [vmem:[#allocation2 + $0x8] sm:$0xff] %vm956_vm1, %v925_v37  ;;  %974 = vst.msk [vmem:[#allocation2 + $0x88] sm:$0xff] %vm956_vm1, %v941_v38  ;;  %v1502_v43 = vadd.f32 %v1501_v40, %v1500_v35  ;;  %v1550_v44 = vadd.f32 %v1549_v42, %v1548_v36  ;;  %v419_v35 = vld [vmem:[#allocation2 + $0x40] sm:$0xff] }
 0x137   : > { %v1503_v45 = vpop.f32.mrf.mxu0  ;;  %v1551_v46 = vpop.f32.mrf.mxu1  ;;  %v435_v37 = vld [vmem:[#allocation2 + $0xc0] sm:$0xff] }
 0x138   : > { %v926_v47 = vadd.f32 %v1502_v43, %v413_v39  ;;  %v942_v48 = vadd.f32 %v1550_v44, %v429_v41 }
 0x139   : > { %v1504_v50 = vpop.f32.mrf.mxu0  ;;  %v1552_v52 = vpop.f32.mrf.mxu1 }
 0x13a   : > { %959 = vst.msk [vmem:[#allocation2 + $0x10] sm:$0xff] %vm956_vm1, %v926_v47  ;;  %975 = vst.msk [vmem:[#allocation2 + $0x90] sm:$0xff] %vm956_vm1, %v942_v48  ;;  %v1505_v53 = vadd.f32 %v1504_v50, %v1503_v45  ;;  %v1553_v54 = vadd.f32 %v1552_v52, %v1551_v46  ;;  %v420_v45 = vld [vmem:[#allocation2 + $0x48] sm:$0xff] }
 0x13b   : > { %v1506_v55 = vpop.f32.mrf.mxu0  ;;  %v1554_v56 = vpop.f32.mrf.mxu1  ;;  %v436_v47 = vld [vmem:[#allocation2 + $0xc8] sm:$0xff] }
 0x13c   : > { %v927_v57 = vadd.f32 %v1505_v53, %v414_v49  ;;  %v943_v58 = vadd.f32 %v1553_v54, %v430_v51 }
 0x13d   : > { %v1507_v60 = vpop.f32.mrf.mxu0  ;;  %v1555_v62 = vpop.f32.mrf.mxu1 }
 0x13e   : > { %960 = vst.msk [vmem:[#allocation2 + $0x18] sm:$0xff] %vm956_vm1, %v927_v57  ;;  %976 = vst.msk [vmem:[#allocation2 + $0x98] sm:$0xff] %vm956_vm1, %v943_v58  ;;  %v1508_v63 = vadd.f32 %v1507_v60, %v1506_v55  ;;  %v1556_v0 = vadd.f32 %v1555_v62, %v1554_v56  ;;  %v421_v55 = vld [vmem:[#allocation2 + $0x50] sm:$0xff] }
 0x13f   : > { %v1509_v1 = vpop.f32.mrf.mxu0  ;;  %v1557_v2 = vpop.f32.mrf.mxu1  ;;  %v437_v57 = vld [vmem:[#allocation2 + $0xd0] sm:$0xff] }
 0x140   : > { %v928_v3 = vadd.f32 %v1508_v63, %v415_v59  ;;  %v944_v4 = vadd.f32 %v1556_v0, %v431_v61 }
 0x141   : > { %v1510_v6 = vpop.f32.mrf.mxu0  ;;  %v1558_v8 = vpop.f32.mrf.mxu1 }
 0x142   : > { %961 = vst.msk [vmem:[#allocation2 + $0x20] sm:$0xff] %vm956_vm1, %v928_v3  ;;  %977 = vst.msk [vmem:[#allocation2 + $0xa0] sm:$0xff] %vm956_vm1, %v944_v4  ;;  %v1511_v9 = vadd.f32 %v1510_v6, %v1509_v1  ;;  %v1559_v10 = vadd.f32 %v1558_v8, %v1557_v2  ;;  %v422_v1 = vld [vmem:[#allocation2 + $0x58] sm:$0xff] }
 0x143   : > { %v1512_v11 = vpop.f32.mrf.mxu0  ;;  %v1560_v12 = vpop.f32.mrf.mxu1  ;;  %v438_v3 = vld [vmem:[#allocation2 + $0xd8] sm:$0xff] }
 0x144   : > { %v929_v13 = vadd.f32 %v1511_v9, %v416_v5  ;;  %v945_v14 = vadd.f32 %v1559_v10, %v432_v7 }
 0x145   : > { %v1513_v16 = vpop.f32.mrf.mxu0  ;;  %v1561_v18 = vpop.f32.mrf.mxu1 }
 0x146   : > { %962 = vst.msk [vmem:[#allocation2 + $0x28] sm:$0xff] %vm956_vm1, %v929_v13  ;;  %978 = vst.msk [vmem:[#allocation2 + $0xa8] sm:$0xff] %vm956_vm1, %v945_v14  ;;  %v1514_v19 = vadd.f32 %v1513_v16, %v1512_v11  ;;  %v1562_v20 = vadd.f32 %v1561_v18, %v1560_v12  ;;  %v423_v11 = vld [vmem:[#allocation2 + $0x60] sm:$0xff] }
 0x147   : > { %v1515_v21 = vpop.f32.mrf.mxu0  ;;  %v1563_v22 = vpop.f32.mrf.mxu1  ;;  %v439_v13 = vld [vmem:[#allocation2 + $0xe0] sm:$0xff] }
 0x148   : > { %v930_v23 = vadd.f32 %v1514_v19, %v417_v15  ;;  %v946_v24 = vadd.f32 %v1562_v20, %v433_v17 }
 0x149   : > { %v1516_v26 = vpop.f32.mrf.mxu0  ;;  %v1564_v28 = vpop.f32.mrf.mxu1 }
 0x14a   : > { %963 = vst.msk [vmem:[#allocation2 + $0x30] sm:$0xff] %vm956_vm1, %v930_v23  ;;  %979 = vst.msk [vmem:[#allocation2 + $0xb0] sm:$0xff] %vm956_vm1, %v946_v24  ;;  %v1517_v29 = vadd.f32 %v1516_v26, %v1515_v21  ;;  %v1565_v30 = vadd.f32 %v1564_v28, %v1563_v22  ;;  %v424_v21 = vld [vmem:[#allocation2 + $0x68] sm:$0xff] }
 0x14b   : > { %v1518_v31 = vpop.f32.mrf.mxu0  ;;  %v1566_v32 = vpop.f32.mrf.mxu1  ;;  %v440_v23 = vld [vmem:[#allocation2 + $0xe8] sm:$0xff] }
 0x14c   : > { %v931_v33 = vadd.f32 %v1517_v29, %v418_v25  ;;  %v947_v34 = vadd.f32 %v1565_v30, %v434_v27 }
 0x14d   : > { %v1519_v36 = vpop.f32.mrf.mxu0  ;;  %v1567_v38 = vpop.f32.mrf.mxu1 }
 0x14e   : > { %964 = vst.msk [vmem:[#allocation2 + $0x38] sm:$0xff] %vm956_vm1, %v931_v33  ;;  %980 = vst.msk [vmem:[#allocation2 + $0xb8] sm:$0xff] %vm956_vm1, %v947_v34  ;;  %v1520_v39 = vadd.f32 %v1519_v36, %v1518_v31  ;;  %v1568_v40 = vadd.f32 %v1567_v38, %v1566_v32  ;;  %v425_v31 = vld [vmem:[#allocation2 + $0x70] sm:$0xff] }
 0x14f   : > { %v1521_v41 = vpop.f32.mrf.mxu0  ;;  %v1569_v42 = vpop.f32.mrf.mxu1  ;;  %v441_v33 = vld [vmem:[#allocation2 + $0xf0] sm:$0xff] }
 0x150   : > { %v932_v43 = vadd.f32 %v1520_v39, %v419_v35  ;;  %v948_v44 = vadd.f32 %v1568_v40, %v435_v37 }
 0x151   : > { %v1522_v46 = vpop.f32.mrf.mxu0  ;;  %v1570_v48 = vpop.f32.mrf.mxu1 }
 0x152   : > { %965 = vst.msk [vmem:[#allocation2 + $0x40] sm:$0xff] %vm956_vm1, %v932_v43  ;;  %981 = vst.msk [vmem:[#allocation2 + $0xc0] sm:$0xff] %vm956_vm1, %v948_v44  ;;  %v1523_v49 = vadd.f32 %v1522_v46, %v1521_v41  ;;  %v1571_v50 = vadd.f32 %v1570_v48, %v1569_v42  ;;  %v426_v41 = vld [vmem:[#allocation2 + $0x78] sm:$0xff] }
 0x153   : > { %v1524_v51 = vpop.f32.mrf.mxu0  ;;  %v1572_v52 = vpop.f32.mrf.mxu1  ;;  %v442_v43 = vld [vmem:[#allocation2 + $0xf8] sm:$0xff] }
 0x154   : > { %v933_v53 = vadd.f32 %v1523_v49, %v420_v45  ;;  %v949_v54 = vadd.f32 %v1571_v50, %v436_v47 }
 0x155   : > { %v1525_v56 = vpop.f32.mrf.mxu0  ;;  %v1573_v58 = vpop.f32.mrf.mxu1 }
 0x156   : > { %966 = vst.msk [vmem:[#allocation2 + $0x48] sm:$0xff] %vm956_vm1, %v933_v53  ;;  %982 = vst.msk [vmem:[#allocation2 + $0xc8] sm:$0xff] %vm956_vm1, %v949_v54  ;;  %v1526_v59 = vadd.f32 %v1525_v56, %v1524_v51  ;;  %v1574_v60 = vadd.f32 %v1573_v58, %v1572_v52 }
 0x157   : > { %v1527_v61 = vpop.f32.mrf.mxu0  ;;  %v1575_v62 = vpop.f32.mrf.mxu1 }
 0x158   : > { %v934_v63 = vadd.f32 %v1526_v59, %v421_v55  ;;  %v950_v0 = vadd.f32 %v1574_v60, %v437_v57 }
 0x159   : > { %v1528_v2 = vpop.f32.mrf.mxu0  ;;  %v1576_v4 = vpop.f32.mrf.mxu1 }
 0x15a   : > { %967 = vst.msk [vmem:[#allocation2 + $0x50] sm:$0xff] %vm956_vm1, %v934_v63  ;;  %983 = vst.msk [vmem:[#allocation2 + $0xd0] sm:$0xff] %vm956_vm1, %v950_v0  ;;  %v1529_v5 = vadd.f32 %v1528_v2, %v1527_v61  ;;  %v1577_v6 = vadd.f32 %v1576_v4, %v1575_v62 }
 0x15b   : > { %v1530_v7 = vpop.f32.mrf.mxu0  ;;  %v1578_v8 = vpop.f32.mrf.mxu1 }
 0x15c   : > { %v935_v9 = vadd.f32 %v1529_v5, %v422_v1  ;;  %v951_v10 = vadd.f32 %v1577_v6, %v438_v3 }
 0x15d   : > { %v1531_v12 = vpop.f32.mrf.mxu0  ;;  %v1579_v14 = vpop.f32.mrf.mxu1 }
 0x15e   : > { %968 = vst.msk [vmem:[#allocation2 + $0x58] sm:$0xff] %vm956_vm1, %v935_v9  ;;  %984 = vst.msk [vmem:[#allocation2 + $0xd8] sm:$0xff] %vm956_vm1, %v951_v10  ;;  %v1532_v15 = vadd.f32 %v1531_v12, %v1530_v7  ;;  %v1580_v16 = vadd.f32 %v1579_v14, %v1578_v8 }
 0x15f   : > { %v1533_v17 = vpop.f32.mrf.mxu0  ;;  %v1581_v18 = vpop.f32.mrf.mxu1 }
 0x160   : > { %v936_v19 = vadd.f32 %v1532_v15, %v423_v11  ;;  %v952_v20 = vadd.f32 %v1580_v16, %v439_v13 }
 0x161   : > { %v1534_v22 = vpop.f32.mrf.mxu0  ;;  %v1582_v24 = vpop.f32.mrf.mxu1 }
 0x162   : > { %969 = vst.msk [vmem:[#allocation2 + $0x60] sm:$0xff] %vm956_vm1, %v936_v19  ;;  %985 = vst.msk [vmem:[#allocation2 + $0xe0] sm:$0xff] %vm956_vm1, %v952_v20  ;;  %v1535_v25 = vadd.f32 %v1534_v22, %v1533_v17  ;;  %v1583_v26 = vadd.f32 %v1582_v24, %v1581_v18 }
 0x163   : > { %v1536_v27 = vpop.f32.mrf.mxu0  ;;  %v1584_v28 = vpop.f32.mrf.mxu1 }
 0x164   : > { %v937_v29 = vadd.f32 %v1535_v25, %v424_v21  ;;  %v953_v30 = vadd.f32 %v1583_v26, %v440_v23 }
 0x165   : > { %v1537_v32 = vpop.f32.mrf.mxu0  ;;  %v1585_v34 = vpop.f32.mrf.mxu1 }
 0x166   : > { %970 = vst.msk [vmem:[#allocation2 + $0x68] sm:$0xff] %vm956_vm1, %v937_v29  ;;  %986 = vst.msk [vmem:[#allocation2 + $0xe8] sm:$0xff] %vm956_vm1, %v953_v30  ;;  %v1538_v35 = vadd.f32 %v1537_v32, %v1536_v27  ;;  %v1586_v36 = vadd.f32 %v1585_v34, %v1584_v28 }
 0x167   : > { %v1539_v37 = vpop.f32.mrf.mxu0  ;;  %v1587_v38 = vpop.f32.mrf.mxu1 }
 0x168   : > { %v938_v39 = vadd.f32 %v1538_v35, %v425_v31  ;;  %v954_v40 = vadd.f32 %v1586_v36, %v441_v33 }
 0x169   : > { %v1540_v42 = vpop.f32.mrf.mxu0  ;;  %v1588_v44 = vpop.f32.mrf.mxu1 }
 0x16a   : > { %971 = vst.msk [vmem:[#allocation2 + $0x70] sm:$0xff] %vm956_vm1, %v938_v39  ;;  %987 = vst.msk [vmem:[#allocation2 + $0xf0] sm:$0xff] %vm956_vm1, %v954_v40  ;;  %v1541_v45 = vadd.f32 %v1540_v42, %v1539_v37  ;;  %v1589_v46 = vadd.f32 %v1588_v44, %v1587_v38  ;;  %992 = sbr.rel (%p1410_p13) target bundleno = 397 (0x18d), region = 78 }
 0x16c   : > { %v939_v47 = vadd.f32 %v1541_v45, %v426_v41  ;;  %v955_v48 = vadd.f32 %v1589_v46, %v442_v43 }
 0x16e   : > { %972 = vst.msk [vmem:[#allocation2 + $0x78] sm:$0xff] %vm956_vm1, %v939_v47  ;;  %988 = vst.msk [vmem:[#allocation2 + $0xf8] sm:$0xff] %vm956_vm1, %v955_v48 }
 0x16f   : > { %v993_v49 = vld [vmem:[#allocation2] sm:$0xff]  ;;  %v994_v51 = vld [vmem:[#allocation2 + $0x8] sm:$0xff]  ;;  %v995_v54 = vld [vmem:[#allocation2 + $0x10] sm:$0xff]  ;;  %vm1224_vm2 = vcmask 519168  }
 0x170   : > { %v2067_v50 = vld [vmem:[%s2188_s2] ss:$0 sm:$0xff]  ;;  %v996_v55 = vld [vmem:[#allocation2 + $0x18] sm:$0xff]  ;;  %v998_v60 = vld [vmem:[#allocation2 + $0x28] sm:$0xff] }
 0x171   : > { %v1032_v52 = vadd.f32 %v2067_v50, %v993_v49  ;;  %v1033_v53 = vadd.f32 %v2067_v50, %v994_v51  ;;  %v997_v56 = vld [vmem:[#allocation2 + $0x20] sm:$0xff]  ;;  %v1034_v57 = vadd.f32 %v2067_v50, %v995_v54  ;;  %v1035_v58 = vadd.f32 %v2067_v50, %v996_v55  ;;  %v999_v61 = vld [vmem:[#allocation2 + $0x30] sm:$0xff]  ;;  %v1000_v62 = vld [vmem:[#allocation2 + $0x38] sm:$0xff] }
 0x172   : > { %v1036_v59 = vadd.f32 %v2067_v50, %v997_v56  ;;  %v1037_v1 = vadd.f32 %v2067_v50, %v998_v60  ;;  %v1038_v2 = vadd.f32 %v2067_v50, %v999_v61  ;;  %v1039_v6 = vadd.f32 %v2067_v50, %v1000_v62  ;;  %v1001_v7 = vld [vmem:[#allocation2 + $0x40] sm:$0xff]  ;;  %v1002_v8 = vld [vmem:[#allocation2 + $0x48] sm:$0xff]  ;;  %v1003_v13 = vld [vmem:[#allocation2 + $0x50] sm:$0xff] }
 0x173   : > { %v1064_v63 = vmax.f32 %v1032_v52, 0.0  ;;  %v1065_v0 = vmax.f32 %v1033_v53, 0.0  ;;  %v1066_v3 = vmax.f32 %v1034_v57, 0.0  ;;  %v1067_v4 = vmax.f32 %v1035_v58, 0.0  ;;  %v1004_v14 = vld [vmem:[#allocation2 + $0x58] sm:$0xff]  ;;  %v1005_v15 = vld [vmem:[#allocation2 + $0x60] sm:$0xff] }
 0x174   : > { %v1068_v5 = vmax.f32 %v1036_v59, 0.0  ;;  %v1069_v11 = vmax.f32 %v1037_v1, 0.0  ;;  %v1070_v12 = vmax.f32 %v1038_v2, 0.0  ;;  %v1071_v19 = vmax.f32 %v1039_v6, 0.0  ;;  %v1006_v20 = vld [vmem:[#allocation2 + $0x68] sm:$0xff]  ;;  %v1007_v21 = vld [vmem:[#allocation2 + $0x70] sm:$0xff] }
 0x175   : > { %v1446_v9 = vpack.c.bf16 %v1064_v63, %v1064_v63  ;;  %v1447_v10 = vpack.c.bf16 %v1065_v0, %v1065_v0  ;;  %v1448_v16 = vpack.c.bf16 %v1066_v3, %v1066_v3  ;;  %v1449_v17 = vpack.c.bf16 %v1067_v4, %v1067_v4  ;;  %v1008_v26 = vld [vmem:[#allocation2 + $0x78] sm:$0xff]  ;;  %v1009_v39 = vld [vmem:[#allocation2 + $0x80] sm:$0xff]  ;;  %v1010_v40 = vld [vmem:[#allocation2 + $0x88] sm:$0xff] }
 0x176   : > { %v1450_v18 = vpack.c.bf16 %v1068_v5, %v1068_v5  ;;  %v1451_v22 = vpack.c.bf16 %v1069_v11, %v1069_v11  ;;  %v1452_v23 = vpack.c.bf16 %v1070_v12, %v1070_v12  ;;  %v1040_v24 = vadd.f32 %v2067_v50, %v1001_v7  ;;  %v1011_v45 = vld [vmem:[#allocation2 + $0x90] sm:$0xff]  ;;  %v1012_v46 = vld [vmem:[#allocation2 + $0x98] sm:$0xff]  ;;  %v1013_v47 = vld [vmem:[#allocation2 + $0xa0] sm:$0xff] }
 0x177   : > { %1225 = vst.msk [vmem:[%s1946_s30] sm:$0xf] %vm1224_vm2, %v1446_v9  ;;  %1226 = vst.msk [vmem:[%s1946_s30 + $0x4] sm:$0xf] %vm1224_vm2, %v1447_v10  ;;  %v1041_v25 = vadd.f32 %v2067_v50, %v1002_v8  ;;  %v1453_v27 = vpack.c.bf16 %v1071_v19, %v1071_v19  ;;  %v1042_v28 = vadd.f32 %v2067_v50, %v1003_v13  ;;  %v1014_v53 = vld [vmem:[#allocation2 + $0xa8] sm:$0xff]  ;;  %v1015_v54 = vld [vmem:[#allocation2 + $0xb0] sm:$0xff] }
 0x178   : > { %1227 = vst.msk [vmem:[%s1946_s30 + $0x8] sm:$0xf] %vm1224_vm2, %v1448_v16  ;;  %1228 = vst.msk [vmem:[%s1946_s30 + $0xc] sm:$0xf] %vm1224_vm2, %v1449_v17  ;;  %v1043_v29 = vadd.f32 %v2067_v50, %v1004_v14  ;;  %v1044_v30 = vadd.f32 %v2067_v50, %v1005_v15  ;;  %v1072_v31 = vmax.f32 %v1040_v24, 0.0  ;;  %v1045_v33 = vadd.f32 %v2067_v50, %v1006_v20  ;;  %v1016_v59 = vld [vmem:[#allocation2 + $0xb8] sm:$0xff] }
 0x179   : > { %1229 = vst.msk [vmem:[%s1946_s30 + $0x10] sm:$0xf] %vm1224_vm2, %v1450_v18  ;;  %1230 = vst.msk [vmem:[%s1946_s30 + $0x14] sm:$0xf] %vm1224_vm2, %v1451_v22  ;;  %v1073_v32 = vmax.f32 %v1041_v25, 0.0  ;;  %v1046_v34 = vadd.f32 %v2067_v50, %v1007_v21  ;;  %v1074_v35 = vmax.f32 %v1042_v28, 0.0  ;;  %v1047_v38 = vadd.f32 %v2067_v50, %v1008_v26 }
 0x17a   : > { %1231 = vst.msk [vmem:[%s1946_s30 + $0x18] sm:$0xf] %vm1224_vm2, %v1452_v23  ;;  %1232 = vst.msk [vmem:[%s1946_s30 + $0x1c] sm:$0xf] %vm1224_vm2, %v1453_v27  ;;  %v1075_v36 = vmax.f32 %v1043_v29, 0.0  ;;  %v1076_v37 = vmax.f32 %v1044_v30, 0.0  ;;  %v1454_v41 = vpack.c.bf16 %v1072_v31, %v1072_v31  ;;  %v1048_v57 = vadd.f32 %v2067_v50, %v1009_v39 }
 0x17b   : > { %v1455_v42 = vpack.c.bf16 %v1073_v32, %v1073_v32  ;;  %v1077_v43 = vmax.f32 %v1045_v33, 0.0  ;;  %v1078_v44 = vmax.f32 %v1046_v34, 0.0  ;;  %v1456_v48 = vpack.c.bf16 %v1074_v35, %v1074_v35  ;;  %v1017_v8 = vld [vmem:[#allocation2 + $0xc0] sm:$0xff]  ;;  %v1018_v9 = vld [vmem:[#allocation2 + $0xc8] sm:$0xff]  ;;  %v1019_v14 = vld [vmem:[#allocation2 + $0xd0] sm:$0xff] }
 0x17c   : > { %v1457_v49 = vpack.c.bf16 %v1075_v36, %v1075_v36  ;;  %v1458_v51 = vpack.c.bf16 %v1076_v37, %v1076_v37  ;;  %v1079_v52 = vmax.f32 %v1047_v38, 0.0  ;;  %1233 = vst.msk [vmem:[%s1946_s30 + $0x20] sm:$0xf] %vm1224_vm2, %v1454_v41  ;;  %v1049_v58 = vadd.f32 %v2067_v50, %v1010_v40  ;;  %v1020_v15 = vld [vmem:[#allocation2 + $0xd8] sm:$0xff]  ;;  %v1021_v16 = vld [vmem:[#allocation2 + $0xe0] sm:$0xff]  ;;  %v1022_v21 = vld [vmem:[#allocation2 + $0xe8] sm:$0xff] }
 0x17d   : > { %1234 = vst.msk [vmem:[%s1946_s30 + $0x24] sm:$0xf] %vm1224_vm2, %v1455_v42  ;;  %v1459_v55 = vpack.c.bf16 %v1077_v43, %v1077_v43  ;;  %v1460_v56 = vpack.c.bf16 %v1078_v44, %v1078_v44  ;;  %1235 = vst.msk [vmem:[%s1946_s30 + $0x28] sm:$0xf] %vm1224_vm2, %v1456_v48  ;;  %v1050_v61 = vadd.f32 %v2067_v50, %v1011_v45  ;;  %v1080_v0 = vmax.f32 %v1048_v57, 0.0  ;;  %v1023_v22 = vld [vmem:[#allocation2 + $0xf0] sm:$0xff] }
 0x17e   : > { %1236 = vst.msk [vmem:[%s1946_s30 + $0x2c] sm:$0xf] %vm1224_vm2, %v1457_v49  ;;  %1237 = vst.msk [vmem:[%s1946_s30 + $0x30] sm:$0xf] %vm1224_vm2, %v1458_v51  ;;  %v1461_v60 = vpack.c.bf16 %v1079_v52, %v1079_v52  ;;  %v1051_v62 = vadd.f32 %v2067_v50, %v1012_v46  ;;  %v1052_v63 = vadd.f32 %v2067_v50, %v1013_v47  ;;  %v1081_v1 = vmax.f32 %v1049_v58, 0.0  ;;  %v1024_v27 = vld [vmem:[#allocation2 + $0xf8] sm:$0xff] }
 0x17f   : > { %1238 = vst.msk [vmem:[%s1946_s30 + $0x34] sm:$0xf] %vm1224_vm2, %v1459_v55  ;;  %1239 = vst.msk [vmem:[%s1946_s30 + $0x38] sm:$0xf] %vm1224_vm2, %v1460_v56  ;;  %v1053_v2 = vadd.f32 %v2067_v50, %v1014_v53  ;;  %v1054_v3 = vadd.f32 %v2067_v50, %v1015_v54  ;;  %v1082_v4 = vmax.f32 %v1050_v61, 0.0  ;;  %v1055_v7 = vadd.f32 %v2067_v50, %v1016_v59 }
 0x180   : > { %1240 = vst.msk [vmem:[%s1946_s30 + $0x3c] sm:$0xf] %vm1224_vm2, %v1461_v60  ;;  %v1083_v5 = vmax.f32 %v1051_v62, 0.0  ;;  %v1084_v6 = vmax.f32 %v1052_v63, 0.0  ;;  %v1462_v10 = vpack.c.bf16 %v1080_v0, %v1080_v0  ;;  %v1463_v11 = vpack.c.bf16 %v1081_v1, %v1081_v1 }
 0x181   : > { %v1085_v12 = vmax.f32 %v1053_v2, 0.0  ;;  %v1086_v13 = vmax.f32 %v1054_v3, 0.0  ;;  %v1464_v17 = vpack.c.bf16 %v1082_v4, %v1082_v4  ;;  %v1087_v20 = vmax.f32 %v1055_v7, 0.0 }
 0x182   : > { %v1465_v18 = vpack.c.bf16 %v1083_v5, %v1083_v5  ;;  %v1466_v19 = vpack.c.bf16 %v1084_v6, %v1084_v6  ;;  %1241 = vst.msk [vmem:[%s1946_s30 + $0x40] sm:$0xf] %vm1224_vm2, %v1462_v10  ;;  %1242 = vst.msk [vmem:[%s1946_s30 + $0x44] sm:$0xf] %vm1224_vm2, %v1463_v11  ;;  %v1056_v25 = vadd.f32 %v2067_v50, %v1017_v8 }
 0x183   : > { %v1467_v23 = vpack.c.bf16 %v1085_v12, %v1085_v12  ;;  %v1468_v24 = vpack.c.bf16 %v1086_v13, %v1086_v13  ;;  %v1057_v26 = vadd.f32 %v2067_v50, %v1018_v9  ;;  %1243 = vst.msk [vmem:[%s1946_s30 + $0x48] sm:$0xf] %vm1224_vm2, %v1464_v17  ;;  %v1469_v28 = vpack.c.bf16 %v1087_v20, %v1087_v20 }
 0x184   : > { %1244 = vst.msk [vmem:[%s1946_s30 + $0x4c] sm:$0xf] %vm1224_vm2, %v1465_v18  ;;  %1245 = vst.msk [vmem:[%s1946_s30 + $0x50] sm:$0xf] %vm1224_vm2, %v1466_v19  ;;  %v1058_v29 = vadd.f32 %v2067_v50, %v1019_v14  ;;  %v1059_v30 = vadd.f32 %v2067_v50, %v1020_v15  ;;  %v1060_v31 = vadd.f32 %v2067_v50, %v1021_v16  ;;  %v1088_v32 = vmax.f32 %v1056_v25, 0.0 }
 0x185   : > { %1246 = vst.msk [vmem:[%s1946_s30 + $0x54] sm:$0xf] %vm1224_vm2, %v1467_v23  ;;  %1247 = vst.msk [vmem:[%s1946_s30 + $0x58] sm:$0xf] %vm1224_vm2, %v1468_v24  ;;  %v1089_v33 = vmax.f32 %v1057_v26, 0.0  ;;  %v1061_v34 = vadd.f32 %v2067_v50, %v1022_v21  ;;  %v1062_v35 = vadd.f32 %v2067_v50, %v1023_v22  ;;  %v1063_v39 = vadd.f32 %v2067_v50, %v1024_v27 }
 0x186   : > { %1248 = vst.msk [vmem:[%s1946_s30 + $0x5c] sm:$0xf] %vm1224_vm2, %v1469_v28  ;;  %v1090_v36 = vmax.f32 %v1058_v29, 0.0  ;;  %v1091_v37 = vmax.f32 %v1059_v30, 0.0  ;;  %v1092_v38 = vmax.f32 %v1060_v31, 0.0  ;;  %v1470_v40 = vpack.c.bf16 %v1088_v32, %v1088_v32 }
 0x187   : > { %v1471_v41 = vpack.c.bf16 %v1089_v33, %v1089_v33  ;;  %v1093_v42 = vmax.f32 %v1061_v34, 0.0  ;;  %v1094_v43 = vmax.f32 %v1062_v35, 0.0  ;;  %v1095_v47 = vmax.f32 %v1063_v39, 0.0 }
 0x188   : > { %v1472_v44 = vpack.c.bf16 %v1090_v36, %v1090_v36  ;;  %v1473_v45 = vpack.c.bf16 %v1091_v37, %v1091_v37  ;;  %v1474_v46 = vpack.c.bf16 %v1092_v38, %v1092_v38  ;;  %1249 = vst.msk [vmem:[%s1946_s30 + $0x60] sm:$0xf] %vm1224_vm2, %v1470_v40 }
 0x189   : > { %1250 = vst.msk [vmem:[%s1946_s30 + $0x64] sm:$0xf] %vm1224_vm2, %v1471_v41  ;;  %v1475_v48 = vpack.c.bf16 %v1093_v42, %v1093_v42  ;;  %v1476_v49 = vpack.c.bf16 %v1094_v43, %v1094_v43  ;;  %v1477_v50 = vpack.c.bf16 %v1095_v47, %v1095_v47 }
 0x18a   : > { %1251 = vst.msk [vmem:[%s1946_s30 + $0x68] sm:$0xf] %vm1224_vm2, %v1472_v44  ;;  %1252 = vst.msk [vmem:[%s1946_s30 + $0x6c] sm:$0xf] %vm1224_vm2, %v1473_v45 }
 0x18b   : > { %1253 = vst.msk [vmem:[%s1946_s30 + $0x70] sm:$0xf] %vm1224_vm2, %v1474_v46  ;;  %1254 = vst.msk [vmem:[%s1946_s30 + $0x74] sm:$0xf] %vm1224_vm2, %v1475_v48 }
 0x18c   : > { %1255 = vst.msk [vmem:[%s1946_s30 + $0x78] sm:$0xf] %vm1224_vm2, %v1476_v49  ;;  %1256 = vst.msk [vmem:[%s1946_s30 + $0x7c] sm:$0xf] %vm1224_vm2, %v1477_v50 }
 0x18d PF: > { %s13_s18 = sadd.s32 1, %s1782_s18   ;;  %s2190_s12 = smov %s1762_s13 }
 0x18e   : > { %p10_p0 = scmp.ge.s32.totalorder %s13_s18, 8   ;;  %s2191_s13 = smov %s1856_s25 }
 0x18f   : > { %s2192_s14 = smov %s1774_s16  ;;  %s2193_s15 = smov %s1778_s17 }
 0x190   : > { %s2194_s16 = smov %s2197_s19  ;;  %s2195_s17 = smov %s2201_s20 }
 0x191   :  { %12 = sbr.rel (!%p10_p0) target bundleno = 4 (0x4), region = 116 }

// kernel: resnet18_forward.23
= control target key start
LH: loop header
LB: loop body
LE: loop exit
PB: predicated region body
PF: predicated region fallthrough
CT: control target
= control target key end

     0   :  { %s2048_s15 = smov 0   ;;  %s2050_s16 = smov 0   ;;  %s2450_s0 = inlined_call_operand.vmem [shape: bf16[512,768], index: 0, kind: input, shape index: {}]   ;;  %s2451_s1 = inlined_call_operand.vmem [shape: bf16[768,64], index: 1, kind: input, shape index: {}]   ;;  %s2452_s2 = inlined_call_operand.vmem [shape: f32[1,64], index: 2, kind: input, shape index: {}]   ;;  %s2453_s3 = inlined_call_operand.vmem [shape: bf16[512,64], index: 3, kind: input, shape index: {}]   ;;  %s2454_s4 = inlined_call_operand.vmem [shape: bf16[512,64], index: 4, kind: output, shape index: {}]  }
   0x1   :  { %s2052_s17 = smov 0   ;;  %s2054_s18 = smov 0  }
   0x2   :  { %s2056_s19 = smov 0   ;;  %s2058_s20 = smov 0  }
   0x3   :  { %s2060_s21 = smov 0  }
   0x4 LB: > { %s23_s22 = sadd.s32 1, %s2012_s19  ;;  %s26_s23 = sadd.s32 1, %s2016_s20  ;;  %s2020_s21 = sphi %s2060_s21, %s14_s21   ;;  %s2016_s20 = sphi %s2058_s20, %s2460_s20   ;;  %s2012_s19 = sphi %s2056_s19, %s2459_s19   ;;  %s2008_s18 = sphi %s2054_s18, %s2458_s18   ;;  %s2004_s17 = sphi %s2052_s17, %s2457_s17   ;;  %s2000_s16 = sphi %s2050_s16, %s2456_s16   ;;  %s1996_s15 = sphi %s2048_s15, %s2455_s15  }
   0x5   : > { %p24_p0 = scmp.ge.s32.totalorder %s23_s22, 3  ;;  %p42_p1 = scmp.ne.s32.totalorder %s2000_s16, %s1996_s15 }
   0x6   : > { %p43_p2 = scmp.eq.s32.totalorder %s2020_s21, 0  ;;  %s35_s27 = sadd.s32 1, %s2000_s16 }
   0x7   : > { %s2462_s22 = smov (%p24_p0, %s23_s22), 0  ;;  %s2464_s23 = smov (!%p24_p0, %s26_s23), %s2016_s20 }
   0x8   : > { %p44_p3 = por %p43_p2, %p42_p1  ;;  %p28_p4 = scmp.ge.s32.totalorder %s2464_s23, 2 }
   0x9   : > { %s31_s24 = ssub.s32 %s2012_s19, %s2462_s22  ;;  %p1506_p6 = scmp.ge.s32.totalorder %s2020_s21, 6 }
   0xa   : > { %s2466_s23 = smov (%p28_p4, %s2464_s23), 0 }
   0xb   : > { %s30_s25 = ssub.s32 %s2016_s20, %s2466_s23  ;;  %170 = sbr.rel (%p1506_p6) target bundleno = 40 (0x28), region = 20 }
   0xc   : > { %s32_s26 = sor.u32 %s31_s24, %s30_s25 }
   0xd   : > { %p33_p5 = scmp.eq.s32.totalorder %s32_s26, 0 }
   0xf   : > { %s2099_s28 = scalar_select %p33_p5, %s2000_s16, %s35_s27  }
  0x10   : > { %173 = sbr.rel (!%p44_p3) target bundleno = 40 (0x28), region = 24  ;;  %s175_s29 = sand.u32 (%p44_p3), 1, %s2000_s16  }
  0x11   : > { %s1509_s30 = sshll.u32 (%p44_p3), %s2012_s19, 1  ;;  %s1507_s5 = sshll.u32 (%p44_p3), %s175_s29, 8 }
  0x12   : > { %s1844_s6 = smul.u32 (%p44_p3), 192, %s2016_s20  ;;  %s2113_s12 = scalar_lea.vmem (%p44_p3), [#allocation3], %s1507_s5 }
  0x14   : > { %s181_s7 = sadd.s32 (%p44_p3), %s1844_s6, %s1509_s30 }
  0x15   : > { %s1511_s8 = sshll.u32 %s181_s7, 2 }
  0x16   : > { %s2108_s11 = scalar_lea.vmem %s2450_s0, %s1511_s8 }
  0x17   : > { %v274_v0 = vld [vmem:[%s2108_s11] sm:$0xff]  ;;  %v276_v1 = vld [vmem:[%s2108_s11 + $0x18] sm:$0xff]  ;;  %v278_v2 = vld [vmem:[%s2108_s11 + $0x30] sm:$0xff] }
  0x18   : > { %275 = vst [vmem:[%s2113_s12] sm:$0xff] %v274_v0  ;;  %277 = vst [vmem:[%s2113_s12 + $0x8] sm:$0xff] %v276_v1  ;;  %v280_v3 = vld [vmem:[%s2108_s11 + $0x48] sm:$0xff]  ;;  %v282_v4 = vld [vmem:[%s2108_s11 + $0x60] sm:$0xff] }
  0x19   : > { %279 = vst [vmem:[%s2113_s12 + $0x10] sm:$0xff] %v278_v2  ;;  %v284_v5 = vld [vmem:[%s2108_s11 + $0x78] sm:$0xff]  ;;  %281 = vst [vmem:[%s2113_s12 + $0x18] sm:$0xff] %v280_v3  ;;  %v286_v6 = vld [vmem:[%s2108_s11 + $0x90] sm:$0xff] }
  0x1a   : > { %283 = vst [vmem:[%s2113_s12 + $0x20] sm:$0xff] %v282_v4  ;;  %285 = vst [vmem:[%s2113_s12 + $0x28] sm:$0xff] %v284_v5  ;;  %v288_v7 = vld [vmem:[%s2108_s11 + $0xa8] sm:$0xff]  ;;  %v290_v8 = vld [vmem:[%s2108_s11 + $0xc0] sm:$0xff] }
  0x1b   : > { %287 = vst [vmem:[%s2113_s12 + $0x30] sm:$0xff] %v286_v6  ;;  %289 = vst [vmem:[%s2113_s12 + $0x38] sm:$0xff] %v288_v7  ;;  %v292_v9 = vld [vmem:[%s2108_s11 + $0xd8] sm:$0xff]  ;;  %v294_v10 = vld [vmem:[%s2108_s11 + $0xf0] sm:$0xff] }
  0x1c   : > { %291 = vst [vmem:[%s2113_s12 + $0x40] sm:$0xff] %v290_v8  ;;  %v296_v11 = vld [vmem:[%s2108_s11 + $0x108] sm:$0xff]  ;;  %293 = vst [vmem:[%s2113_s12 + $0x48] sm:$0xff] %v292_v9  ;;  %v298_v12 = vld [vmem:[%s2108_s11 + $0x120] sm:$0xff] }
  0x1d   : > { %295 = vst [vmem:[%s2113_s12 + $0x50] sm:$0xff] %v294_v10  ;;  %297 = vst [vmem:[%s2113_s12 + $0x58] sm:$0xff] %v296_v11  ;;  %v300_v13 = vld [vmem:[%s2108_s11 + $0x138] sm:$0xff]  ;;  %v302_v14 = vld [vmem:[%s2108_s11 + $0x150] sm:$0xff] }
  0x1e   : > { %299 = vst [vmem:[%s2113_s12 + $0x60] sm:$0xff] %v298_v12  ;;  %301 = vst [vmem:[%s2113_s12 + $0x68] sm:$0xff] %v300_v13  ;;  %v304_v15 = vld [vmem:[%s2108_s11 + $0x168] sm:$0xff]  ;;  %v306_v16 = vld [vmem:[%s2108_s11 + $0x180] sm:$0xff] }
  0x1f   : > { %303 = vst [vmem:[%s2113_s12 + $0x70] sm:$0xff] %v302_v14  ;;  %v308_v17 = vld [vmem:[%s2108_s11 + $0x198] sm:$0xff]  ;;  %305 = vst [vmem:[%s2113_s12 + $0x78] sm:$0xff] %v304_v15  ;;  %v310_v18 = vld [vmem:[%s2108_s11 + $0x1b0] sm:$0xff] }
  0x20   : > { %307 = vst [vmem:[%s2113_s12 + $0x80] sm:$0xff] %v306_v16  ;;  %309 = vst [vmem:[%s2113_s12 + $0x88] sm:$0xff] %v308_v17  ;;  %v312_v19 = vld [vmem:[%s2108_s11 + $0x1c8] sm:$0xff]  ;;  %v314_v20 = vld [vmem:[%s2108_s11 + $0x1e0] sm:$0xff] }
  0x21   : > { %311 = vst [vmem:[%s2113_s12 + $0x90] sm:$0xff] %v310_v18  ;;  %313 = vst [vmem:[%s2113_s12 + $0x98] sm:$0xff] %v312_v19  ;;  %v316_v21 = vld [vmem:[%s2108_s11 + $0x1f8] sm:$0xff]  ;;  %v318_v22 = vld [vmem:[%s2108_s11 + $0x210] sm:$0xff] }
  0x22   : > { %315 = vst [vmem:[%s2113_s12 + $0xa0] sm:$0xff] %v314_v20  ;;  %v320_v23 = vld [vmem:[%s2108_s11 + $0x228] sm:$0xff]  ;;  %317 = vst [vmem:[%s2113_s12 + $0xa8] sm:$0xff] %v316_v21  ;;  %v322_v24 = vld [vmem:[%s2108_s11 + $0x240] sm:$0xff] }
  0x23   : > { %319 = vst [vmem:[%s2113_s12 + $0xb0] sm:$0xff] %v318_v22  ;;  %321 = vst [vmem:[%s2113_s12 + $0xb8] sm:$0xff] %v320_v23  ;;  %v324_v25 = vld [vmem:[%s2108_s11 + $0x258] sm:$0xff]  ;;  %v326_v26 = vld [vmem:[%s2108_s11 + $0x270] sm:$0xff] }
  0x24   : > { %323 = vst [vmem:[%s2113_s12 + $0xc0] sm:$0xff] %v322_v24  ;;  %325 = vst [vmem:[%s2113_s12 + $0xc8] sm:$0xff] %v324_v25  ;;  %v328_v27 = vld [vmem:[%s2108_s11 + $0x288] sm:$0xff]  ;;  %v330_v28 = vld [vmem:[%s2108_s11 + $0x2a0] sm:$0xff] }
  0x25   : > { %327 = vst [vmem:[%s2113_s12 + $0xd0] sm:$0xff] %v326_v26  ;;  %v332_v29 = vld [vmem:[%s2108_s11 + $0x2b8] sm:$0xff]  ;;  %329 = vst [vmem:[%s2113_s12 + $0xd8] sm:$0xff] %v328_v27  ;;  %v334_v30 = vld [vmem:[%s2108_s11 + $0x2d0] sm:$0xff] }
  0x26   : > { %331 = vst [vmem:[%s2113_s12 + $0xe0] sm:$0xff] %v330_v28  ;;  %333 = vst [vmem:[%s2113_s12 + $0xe8] sm:$0xff] %v332_v29  ;;  %v336_v31 = vld [vmem:[%s2108_s11 + $0x2e8] sm:$0xff] }
  0x27   : > { %335 = vst [vmem:[%s2113_s12 + $0xf0] sm:$0xff] %v334_v30  ;;  %337 = vst [vmem:[%s2113_s12 + $0xf8] sm:$0xff] %v336_v31 }
  0x28 PF: > { %p1512_p7 = scmp.ge.s32.totalorder %s2020_s21, 1  ;;  %p360_p8 = scmp.lt.s32.totalorder %s2020_s21, 7 }
  0x2a   : > { %p361_p9 = pnand %p1512_p7, %p360_p8 }
  0x2b   : > { %s367_s13 = sand.u32 (!%p361_p9), 1, %s1996_s15   ;;  %s1514_s14 = sshll.u32 (!%p361_p9), %s2004_s17, 5 }
  0x2c   : > { %364 = sbr.rel (%p361_p9) target bundleno = 415 (0x19f), region = 70  ;;  %s1513_s24 = sshll.u32 (!%p361_p9), %s367_s13, 8 }
  0x2d   : > { %p405_p10 = scmp.lt.s32.totalorder (!%p361_p9), %s1514_s14, 95  ;;  %s1516_s25 = sshll.u32 (!%p361_p9), %s2008_s18, 5 }
  0x2e   : > { %p411_p11 = scmp.lt.s32.totalorder (!%p361_p9), %s1516_s25, 63  ;;  %s2196_s18 = scalar_lea.vmem (!%p361_p9), [#allocation3], %s1513_s24 }
  0x2f   : > { %p1520_p12 = scmp.ne.s32.totalorder (!%p361_p9), %s2004_s17, 0 }
  0x31   : > { %s2468_s14 = smov (!%p405_p10, %s1514_s14), 95  ;;  %s2470_s25 = smov (!%p411_p11, %s1516_s25), 63 }
  0x32   : > { %s1515_s26 = sshll.u32 %s2468_s14, 2  ;;  %s1517_s5 = sshll.u32 %s2470_s25, 2 }
  0x33   : > { %s2184_s30 = scalar_lea.vmem %s2451_s1, %s1515_s26  ;;  %s2189_s8 = scalar_lea.vmem %s2453_s3, %s1517_s5 }
  0x34   : > { %s2194_s10 = scalar_lea.vmem %s2454_s4, %s1517_s5  ;;  %426 = sbr.rel (%p1520_p12) target bundleno = 74 (0x4a), region = 78 }
  0x39   : > { %vm427_vm0 = vcmask 523264   ;;  %v2022_v32 = vmov 0.0  }
  0x3a   : > { %428 = vst.msk [vmem:[#allocation2] sm:$0xff] %vm427_vm0, %v2022_v32  ;;  %429 = vst.msk [vmem:[#allocation2 + $0x8] sm:$0xff] %vm427_vm0, %v2022_v32 }
  0x3b   : > { %430 = vst.msk [vmem:[#allocation2 + $0x10] sm:$0xff] %vm427_vm0, %v2022_v32  ;;  %431 = vst.msk [vmem:[#allocation2 + $0x18] sm:$0xff] %vm427_vm0, %v2022_v32 }
  0x3c   : > { %432 = vst.msk [vmem:[#allocation2 + $0x20] sm:$0xff] %vm427_vm0, %v2022_v32  ;;  %433 = vst.msk [vmem:[#allocation2 + $0x28] sm:$0xff] %vm427_vm0, %v2022_v32 }
  0x3d   : > { %434 = vst.msk [vmem:[#allocation2 + $0x30] sm:$0xff] %vm427_vm0, %v2022_v32  ;;  %435 = vst.msk [vmem:[#allocation2 + $0x38] sm:$0xff] %vm427_vm0, %v2022_v32 }
  0x3e   : > { %436 = vst.msk [vmem:[#allocation2 + $0x40] sm:$0xff] %vm427_vm0, %v2022_v32  ;;  %437 = vst.msk [vmem:[#allocation2 + $0x48] sm:$0xff] %vm427_vm0, %v2022_v32 }
  0x3f   : > { %438 = vst.msk [vmem:[#allocation2 + $0x50] sm:$0xff] %vm427_vm0, %v2022_v32  ;;  %439 = vst.msk [vmem:[#allocation2 + $0x58] sm:$0xff] %vm427_vm0, %v2022_v32 }
  0x40   : > { %440 = vst.msk [vmem:[#allocation2 + $0x60] sm:$0xff] %vm427_vm0, %v2022_v32  ;;  %441 = vst.msk [vmem:[#allocation2 + $0x68] sm:$0xff] %vm427_vm0, %v2022_v32 }
  0x41   : > { %442 = vst.msk [vmem:[#allocation2 + $0x70] sm:$0xff] %vm427_vm0, %v2022_v32  ;;  %443 = vst.msk [vmem:[#allocation2 + $0x78] sm:$0xff] %vm427_vm0, %v2022_v32 }
  0x42   : > { %444 = vst.msk [vmem:[#allocation2 + $0x80] sm:$0xff] %vm427_vm0, %v2022_v32  ;;  %445 = vst.msk [vmem:[#allocation2 + $0x88] sm:$0xff] %vm427_vm0, %v2022_v32 }
  0x43   : > { %446 = vst.msk [vmem:[#allocation2 + $0x90] sm:$0xff] %vm427_vm0, %v2022_v32  ;;  %447 = vst.msk [vmem:[#allocation2 + $0x98] sm:$0xff] %vm427_vm0, %v2022_v32 }
  0x44   : > { %448 = vst.msk [vmem:[#allocation2 + $0xa0] sm:$0xff] %vm427_vm0, %v2022_v32  ;;  %449 = vst.msk [vmem:[#allocation2 + $0xa8] sm:$0xff] %vm427_vm0, %v2022_v32 }
  0x45   : > { %450 = vst.msk [vmem:[#allocation2 + $0xb0] sm:$0xff] %vm427_vm0, %v2022_v32  ;;  %451 = vst.msk [vmem:[#allocation2 + $0xb8] sm:$0xff] %vm427_vm0, %v2022_v32 }
  0x46   : > { %452 = vst.msk [vmem:[#allocation2 + $0xc0] sm:$0xff] %vm427_vm0, %v2022_v32  ;;  %453 = vst.msk [vmem:[#allocation2 + $0xc8] sm:$0xff] %vm427_vm0, %v2022_v32 }
  0x47   : > { %454 = vst.msk [vmem:[#allocation2 + $0xd0] sm:$0xff] %vm427_vm0, %v2022_v32  ;;  %455 = vst.msk [vmem:[#allocation2 + $0xd8] sm:$0xff] %vm427_vm0, %v2022_v32 }
  0x48   : > { %456 = vst.msk [vmem:[#allocation2 + $0xe0] sm:$0xff] %vm427_vm0, %v2022_v32  ;;  %457 = vst.msk [vmem:[#allocation2 + $0xe8] sm:$0xff] %vm427_vm0, %v2022_v32 }
  0x49   : > { %458 = vst.msk [vmem:[#allocation2 + $0xf0] sm:$0xff] %vm427_vm0, %v2022_v32  ;;  %459 = vst.msk [vmem:[#allocation2 + $0xf8] sm:$0xff] %vm427_vm0, %v2022_v32 }
  0x4a PF: > { %v1902_v33 = vld [vmem:[%s2184_s30 + $0x78] sm:$0xff]   ;;  %v1904_v35 = vld [vmem:[%s2184_s30 + $0x70] sm:$0xff]   ;;  %v1906_v37 = vld [vmem:[%s2184_s30 + $0x68] sm:$0xff]   ;;  %vm1005_vm1 = vcmask 523264   ;;  %p1569_p13 = scmp.ne.s32.totalorder %s2004_s17, 2 }
  0x4b   : > { %v1903_v34 = vld [vmem:[%s2184_s30 + $0x38] sm:$0xff]   ;;  %1716 = vmatprep.subr.bf16.mxu0 %v1902_v33  ;;  %1828 = vmatprep.subr.bf16.mxu1 %v1902_v33  ;;  %v1905_v36 = vld [vmem:[%s2184_s30 + $0x30] sm:$0xff]   ;;  %v1907_v38 = vld [vmem:[%s2184_s30 + $0x28] sm:$0xff]  }
  0x4c   : > { %1717 = vmatpush3.bf16.msra.mxu0 %v1903_v34  ;;  %1836 = vmatpush3.bf16.msra.mxu1 %v1903_v34  ;;  %v1908_v39 = vld [vmem:[%s2184_s30 + $0x60] sm:$0xff]   ;;  %v1910_v41 = vld [vmem:[%s2184_s30 + $0x58] sm:$0xff]   ;;  %v1912_v43 = vld [vmem:[%s2184_s30 + $0x50] sm:$0xff]  }
  0x4d   : > { %1718 = vmatprep.subr.bf16.mxu0 %v1904_v35  ;;  %1829 = vmatprep.subr.bf16.mxu1 %v1904_v35  ;;  %v1909_v40 = vld [vmem:[%s2184_s30 + $0x20] sm:$0xff]   ;;  %v1911_v42 = vld [vmem:[%s2184_s30 + $0x18] sm:$0xff]   ;;  %v1913_v46 = vld [vmem:[%s2184_s30 + $0x10] sm:$0xff]  }
  0x4e   : > { %v1920_v44 = vld [vmem:[%s2196_s18 + $0x4] ss:$8 sps:$4 sm:$0xff]   ;;  %v1918_v51 = vld [vmem:[%s2196_s18] ss:$8 sps:$4 sm:$0xff]   ;;  %v1924_v53 = vld [vmem:[%s2196_s18 + $0x14] ss:$8 sps:$4 sm:$0xff]  }
  0x4f   : > { %v1923_v45 = vld [vmem:[%s2196_s18 + $0x84] ss:$8 sps:$4 sm:$0xff]   ;;  %844 = vmatprep.mubr.bf16.mxu0 %v1920_v44  ;;  %v1921_v52 = vld [vmem:[%s2196_s18 + $0x80] ss:$8 sps:$4 sm:$0xff]   ;;  %v1926_v54 = vld [vmem:[%s2196_s18 + $0x94] ss:$8 sps:$4 sm:$0xff]  }
  0x50   : > { %1719 = vmatpush3.bf16.msra.mxu0 %v1905_v36  ;;  %1837 = vmatpush3.bf16.msra.mxu1 %v1905_v36  ;;  %v1914_v47 = vld [vmem:[%s2184_s30 + $0x48] sm:$0xff]   ;;  %v1916_v49 = vld [vmem:[%s2184_s30 + $0x40] sm:$0xff]   ;;  %v1928_v55 = vld [vmem:[%s2196_s18 + $0x10] ss:$8 sps:$4 sm:$0xff]  }
  0x51   : > { %1720 = vmatprep.subr.bf16.mxu0 %v1906_v37  ;;  %1830 = vmatprep.subr.bf16.mxu1 %v1906_v37  ;;  %v1915_v48 = vld [vmem:[%s2184_s30 + $0x8] sm:$0xff]   ;;  %v1917_v50 = vld [vmem:[%s2184_s30] sm:$0xff]   ;;  %v1929_v56 = vld [vmem:[%s2196_s18 + $0x90] ss:$8 sps:$4 sm:$0xff]  }
  0x52   : > { %908 = vmatprep.mubr.bf16.mxu1 %v1923_v45  ;;  %v1930_v57 = vld [vmem:[%s2196_s18 + $0x24] ss:$8 sps:$4 sm:$0xff]   ;;  %v1934_v59 = vld [vmem:[%s2196_s18 + $0x20] ss:$8 sps:$4 sm:$0xff]   ;;  %v1936_v61 = vld [vmem:[%s2196_s18 + $0x34] ss:$8 sps:$4 sm:$0xff]  }
  0x53   : > { %v1932_v58 = vld [vmem:[%s2196_s18 + $0xa4] ss:$8 sps:$4 sm:$0xff]   ;;  %v1935_v60 = vld [vmem:[%s2196_s18 + $0xa0] ss:$8 sps:$4 sm:$0xff]   ;;  %v1938_v62 = vld [vmem:[%s2196_s18 + $0xb4] ss:$8 sps:$4 sm:$0xff]  }
  0x54   : > { %1721 = vmatpush3.bf16.msra.mxu0 %v1907_v38  ;;  %1838 = vmatpush3.bf16.msra.mxu1 %v1907_v38  ;;  %v1940_v63 = vld [vmem:[%s2196_s18 + $0x30] ss:$8 sps:$4 sm:$0xff]   ;;  %v1942_v1 = vld [vmem:[%s2196_s18 + $0x44] ss:$8 sps:$4 sm:$0xff]   ;;  %v1946_v3 = vld [vmem:[%s2196_s18 + $0x40] ss:$8 sps:$4 sm:$0xff]  }
  0x55   : > { %1722 = vmatprep.subr.bf16.mxu0 %v1908_v39  ;;  %1831 = vmatprep.subr.bf16.mxu1 %v1908_v39  ;;  %v1941_v0 = vld [vmem:[%s2196_s18 + $0xb0] ss:$8 sps:$4 sm:$0xff]   ;;  %v1944_v2 = vld [vmem:[%s2196_s18 + $0xc4] ss:$8 sps:$4 sm:$0xff]   ;;  %v1947_v4 = vld [vmem:[%s2196_s18 + $0xc0] ss:$8 sps:$4 sm:$0xff]  }
  0x56   : > { %v1948_v5 = vld [vmem:[%s2196_s18 + $0x54] ss:$8 sps:$4 sm:$0xff]   ;;  %v1952_v7 = vld [vmem:[%s2196_s18 + $0x50] ss:$8 sps:$4 sm:$0xff]   ;;  %v1954_v9 = vld [vmem:[%s2196_s18 + $0x64] ss:$8 sps:$4 sm:$0xff]  }
  0x57   : > { %v1950_v6 = vld [vmem:[%s2196_s18 + $0xd4] ss:$8 sps:$4 sm:$0xff]   ;;  %v1953_v8 = vld [vmem:[%s2196_s18 + $0xd0] ss:$8 sps:$4 sm:$0xff]   ;;  %v1956_v10 = vld [vmem:[%s2196_s18 + $0xe4] ss:$8 sps:$4 sm:$0xff]  }
  0x58   : > { %1723 = vmatpush3.bf16.msra.mxu0 %v1909_v40  ;;  %1839 = vmatpush3.bf16.msra.mxu1 %v1909_v40  ;;  %v1958_v11 = vld [vmem:[%s2196_s18 + $0x60] ss:$8 sps:$4 sm:$0xff]   ;;  %v1960_v13 = vld [vmem:[%s2196_s18 + $0x74] ss:$8 sps:$4 sm:$0xff]   ;;  %v1964_v15 = vld [vmem:[%s2196_s18 + $0x70] ss:$8 sps:$4 sm:$0xff]  }
  0x59   : > { %1724 = vmatprep.subr.bf16.mxu0 %v1910_v41  ;;  %1832 = vmatprep.subr.bf16.mxu1 %v1910_v41  ;;  %v1959_v12 = vld [vmem:[%s2196_s18 + $0xe0] ss:$8 sps:$4 sm:$0xff]   ;;  %v1962_v14 = vld [vmem:[%s2196_s18 + $0xf4] ss:$8 sps:$4 sm:$0xff]   ;;  %v1965_v16 = vld [vmem:[%s2196_s18 + $0xf0] ss:$8 sps:$4 sm:$0xff]  }
  0x5a   : > { %v460_v19 = vld [vmem:[#allocation2] sm:$0xff]  ;;  %v461_v29 = vld [vmem:[#allocation2 + $0x8] sm:$0xff]  ;;  %v462_v39 = vld [vmem:[#allocation2 + $0x10] sm:$0xff] }
  0x5b   : > { %v476_v21 = vld [vmem:[#allocation2 + $0x80] sm:$0xff]  ;;  %v477_v31 = vld [vmem:[#allocation2 + $0x88] sm:$0xff]  ;;  %v478_v41 = vld [vmem:[#allocation2 + $0x90] sm:$0xff] }
  0x5c   : > { %1725 = vmatpush3.bf16.msra.mxu0 %v1911_v42  ;;  %1840 = vmatpush3.bf16.msra.mxu1 %v1911_v42 }
  0x5d   : > { %1726 = vmatprep.subr.bf16.mxu0 %v1912_v43  ;;  %1833 = vmatprep.subr.bf16.mxu1 %v1912_v43 }
  0x60   : > { %1727 = vmatpush3.bf16.msra.mxu0 %v1913_v46  ;;  %1841 = vmatpush3.bf16.msra.mxu1 %v1913_v46 }
  0x61   : > { %1728 = vmatprep.subr.bf16.mxu0 %v1914_v47  ;;  %1834 = vmatprep.subr.bf16.mxu1 %v1914_v47 }
  0x64   : > { %1729 = vmatpush3.bf16.msra.mxu0 %v1915_v48  ;;  %1842 = vmatpush3.bf16.msra.mxu1 %v1915_v48 }
  0x65   : > { %1730 = vmatprep.subr.bf16.mxu0 %v1916_v49  ;;  %1835 = vmatprep.subr.bf16.mxu1 %v1916_v49  ;;  %v463_v49 = vld [vmem:[#allocation2 + $0x18] sm:$0xff] }
  0x68   : > { %1731 = vmatpush3.bf16.msra.mxu0 %v1917_v50  ;;  %1843 = vmatpush3.bf16.msra.mxu1 %v1917_v50 }
  0x6b   : > { %845 = vmatmul.mubr.bf16.vlgmr.msra.gmra.mxu0 %v1918_v51  ;;  %909 = vmatmul.mubr.bf16.vlgmr.msra.gmra.mxu1 %v1921_v52  ;;  %v479_v51 = vld [vmem:[#allocation2 + $0x98] sm:$0xff] }
  0x6c   : > { %852 = vmatprep.mubr.bf16.mxu0 %v1924_v53  ;;  %916 = vmatprep.mubr.bf16.mxu1 %v1926_v54 }
  0x73   : > { %853 = vmatmul.mubr.bf16.gmra.mxu0 %v1928_v55  ;;  %917 = vmatmul.mubr.bf16.gmra.mxu1 %v1929_v56 }
  0x74   : > { %860 = vmatprep.mubr.bf16.mxu0 %v1930_v57  ;;  %924 = vmatprep.mubr.bf16.mxu1 %v1932_v58 }
  0x7b   : > { %861 = vmatmul.mubr.bf16.gmra.mxu0 %v1934_v59  ;;  %925 = vmatmul.mubr.bf16.gmra.mxu1 %v1935_v60  ;;  %v464_v59 = vld [vmem:[#allocation2 + $0x20] sm:$0xff] }
  0x7c   : > { %868 = vmatprep.mubr.bf16.mxu0 %v1936_v61  ;;  %932 = vmatprep.mubr.bf16.mxu1 %v1938_v62  ;;  %v480_v61 = vld [vmem:[#allocation2 + $0xa0] sm:$0xff] }
  0x83   : > { %869 = vmatmul.mubr.bf16.gmra.mxu0 %v1940_v63  ;;  %933 = vmatmul.mubr.bf16.gmra.mxu1 %v1941_v0 }
  0x84   : > { %876 = vmatprep.mubr.bf16.mxu0 %v1942_v1  ;;  %940 = vmatprep.mubr.bf16.mxu1 %v1944_v2 }
  0x8b   : > { %877 = vmatmul.mubr.bf16.gmra.mxu0 %v1946_v3  ;;  %941 = vmatmul.mubr.bf16.gmra.mxu1 %v1947_v4 }
  0x8c   : > { %884 = vmatprep.mubr.bf16.mxu0 %v1948_v5  ;;  %948 = vmatprep.mubr.bf16.mxu1 %v1950_v6  ;;  %v465_v5 = vld [vmem:[#allocation2 + $0x28] sm:$0xff] }
  0x93   : > { %885 = vmatmul.mubr.bf16.gmra.mxu0 %v1952_v7  ;;  %949 = vmatmul.mubr.bf16.gmra.mxu1 %v1953_v8  ;;  %v481_v7 = vld [vmem:[#allocation2 + $0xa8] sm:$0xff] }
  0x94   : > { %892 = vmatprep.mubr.bf16.mxu0 %v1954_v9  ;;  %956 = vmatprep.mubr.bf16.mxu1 %v1956_v10 }
  0x9b   : > { %893 = vmatmul.mubr.bf16.gmra.mxu0 %v1958_v11  ;;  %957 = vmatmul.mubr.bf16.gmra.mxu1 %v1959_v12 }
  0x9c   : > { %900 = vmatprep.mubr.bf16.mxu0 %v1960_v13  ;;  %964 = vmatprep.mubr.bf16.mxu1 %v1962_v14 }
  0xa3   : > { %901 = vmatmul.mubr.bf16.gmra.mxu0 %v1964_v15  ;;  %965 = vmatmul.mubr.bf16.gmra.mxu1 %v1965_v16  ;;  %v466_v15 = vld [vmem:[#allocation2 + $0x30] sm:$0xff] }
 0x12b   : > { %v1732_v17 = vpop.f32.mrf.mxu0  ;;  %v1780_v18 = vpop.f32.mrf.mxu1 }
 0x12d   : > { %v1733_v20 = vpop.f32.mrf.mxu0  ;;  %v1781_v22 = vpop.f32.mrf.mxu1 }
 0x12e   : > { %v1734_v23 = vadd.f32 %v1733_v20, %v1732_v17  ;;  %v1782_v24 = vadd.f32 %v1781_v22, %v1780_v18  ;;  %v482_v17 = vld [vmem:[#allocation2 + $0xb0] sm:$0xff] }
 0x12f   : > { %v1735_v25 = vpop.f32.mrf.mxu0  ;;  %v1783_v26 = vpop.f32.mrf.mxu1 }
 0x130   : > { %v973_v27 = vadd.f32 %v1734_v23, %v460_v19  ;;  %v989_v28 = vadd.f32 %v1782_v24, %v476_v21 }
 0x131   : > { %v1736_v30 = vpop.f32.mrf.mxu0  ;;  %v1784_v32 = vpop.f32.mrf.mxu1 }
 0x132   : > { %1006 = vst.msk [vmem:[#allocation2] sm:$0xff] %vm1005_vm1, %v973_v27  ;;  %1022 = vst.msk [vmem:[#allocation2 + $0x80] sm:$0xff] %vm1005_vm1, %v989_v28  ;;  %v1737_v33 = vadd.f32 %v1736_v30, %v1735_v25  ;;  %v1785_v34 = vadd.f32 %v1784_v32, %v1783_v26  ;;  %v467_v25 = vld [vmem:[#allocation2 + $0x38] sm:$0xff] }
 0x133   : > { %v1738_v35 = vpop.f32.mrf.mxu0  ;;  %v1786_v36 = vpop.f32.mrf.mxu1  ;;  %v483_v27 = vld [vmem:[#allocation2 + $0xb8] sm:$0xff] }
 0x134   : > { %v974_v37 = vadd.f32 %v1737_v33, %v461_v29  ;;  %v990_v38 = vadd.f32 %v1785_v34, %v477_v31 }
 0x135   : > { %v1739_v40 = vpop.f32.mrf.mxu0  ;;  %v1787_v42 = vpop.f32.mrf.mxu1 }
 0x136   : > { %1007 = vst.msk [vmem:[#allocation2 + $0x8] sm:$0xff] %vm1005_vm1, %v974_v37  ;;  %1023 = vst.msk [vmem:[#allocation2 + $0x88] sm:$0xff] %vm1005_vm1, %v990_v38  ;;  %v1740_v43 = vadd.f32 %v1739_v40, %v1738_v35  ;;  %v1788_v44 = vadd.f32 %v1787_v42, %v1786_v36  ;;  %v468_v35 = vld [vmem:[#allocation2 + $0x40] sm:$0xff] }
 0x137   : > { %v1741_v45 = vpop.f32.mrf.mxu0  ;;  %v1789_v46 = vpop.f32.mrf.mxu1  ;;  %v484_v37 = vld [vmem:[#allocation2 + $0xc0] sm:$0xff] }
 0x138   : > { %v975_v47 = vadd.f32 %v1740_v43, %v462_v39  ;;  %v991_v48 = vadd.f32 %v1788_v44, %v478_v41 }
 0x139   : > { %v1742_v50 = vpop.f32.mrf.mxu0  ;;  %v1790_v52 = vpop.f32.mrf.mxu1 }
 0x13a   : > { %1008 = vst.msk [vmem:[#allocation2 + $0x10] sm:$0xff] %vm1005_vm1, %v975_v47  ;;  %1024 = vst.msk [vmem:[#allocation2 + $0x90] sm:$0xff] %vm1005_vm1, %v991_v48  ;;  %v1743_v53 = vadd.f32 %v1742_v50, %v1741_v45  ;;  %v1791_v54 = vadd.f32 %v1790_v52, %v1789_v46  ;;  %v469_v45 = vld [vmem:[#allocation2 + $0x48] sm:$0xff] }
 0x13b   : > { %v1744_v55 = vpop.f32.mrf.mxu0  ;;  %v1792_v56 = vpop.f32.mrf.mxu1  ;;  %v485_v47 = vld [vmem:[#allocation2 + $0xc8] sm:$0xff] }
 0x13c   : > { %v976_v57 = vadd.f32 %v1743_v53, %v463_v49  ;;  %v992_v58 = vadd.f32 %v1791_v54, %v479_v51 }
 0x13d   : > { %v1745_v60 = vpop.f32.mrf.mxu0  ;;  %v1793_v62 = vpop.f32.mrf.mxu1 }
 0x13e   : > { %1009 = vst.msk [vmem:[#allocation2 + $0x18] sm:$0xff] %vm1005_vm1, %v976_v57  ;;  %1025 = vst.msk [vmem:[#allocation2 + $0x98] sm:$0xff] %vm1005_vm1, %v992_v58  ;;  %v1746_v63 = vadd.f32 %v1745_v60, %v1744_v55  ;;  %v1794_v0 = vadd.f32 %v1793_v62, %v1792_v56  ;;  %v470_v55 = vld [vmem:[#allocation2 + $0x50] sm:$0xff] }
 0x13f   : > { %v1747_v1 = vpop.f32.mrf.mxu0  ;;  %v1795_v2 = vpop.f32.mrf.mxu1  ;;  %v486_v57 = vld [vmem:[#allocation2 + $0xd0] sm:$0xff] }
 0x140   : > { %v977_v3 = vadd.f32 %v1746_v63, %v464_v59  ;;  %v993_v4 = vadd.f32 %v1794_v0, %v480_v61 }
 0x141   : > { %v1748_v6 = vpop.f32.mrf.mxu0  ;;  %v1796_v8 = vpop.f32.mrf.mxu1 }
 0x142   : > { %1010 = vst.msk [vmem:[#allocation2 + $0x20] sm:$0xff] %vm1005_vm1, %v977_v3  ;;  %1026 = vst.msk [vmem:[#allocation2 + $0xa0] sm:$0xff] %vm1005_vm1, %v993_v4  ;;  %v1749_v9 = vadd.f32 %v1748_v6, %v1747_v1  ;;  %v1797_v10 = vadd.f32 %v1796_v8, %v1795_v2  ;;  %v471_v1 = vld [vmem:[#allocation2 + $0x58] sm:$0xff] }
 0x143   : > { %v1750_v11 = vpop.f32.mrf.mxu0  ;;  %v1798_v12 = vpop.f32.mrf.mxu1  ;;  %v487_v3 = vld [vmem:[#allocation2 + $0xd8] sm:$0xff] }
 0x144   : > { %v978_v13 = vadd.f32 %v1749_v9, %v465_v5  ;;  %v994_v14 = vadd.f32 %v1797_v10, %v481_v7 }
 0x145   : > { %v1751_v16 = vpop.f32.mrf.mxu0  ;;  %v1799_v18 = vpop.f32.mrf.mxu1 }
 0x146   : > { %1011 = vst.msk [vmem:[#allocation2 + $0x28] sm:$0xff] %vm1005_vm1, %v978_v13  ;;  %1027 = vst.msk [vmem:[#allocation2 + $0xa8] sm:$0xff] %vm1005_vm1, %v994_v14  ;;  %v1752_v19 = vadd.f32 %v1751_v16, %v1750_v11  ;;  %v1800_v20 = vadd.f32 %v1799_v18, %v1798_v12  ;;  %v472_v11 = vld [vmem:[#allocation2 + $0x60] sm:$0xff] }
 0x147   : > { %v1753_v21 = vpop.f32.mrf.mxu0  ;;  %v1801_v22 = vpop.f32.mrf.mxu1  ;;  %v488_v13 = vld [vmem:[#allocation2 + $0xe0] sm:$0xff] }
 0x148   : > { %v979_v23 = vadd.f32 %v1752_v19, %v466_v15  ;;  %v995_v24 = vadd.f32 %v1800_v20, %v482_v17 }
 0x149   : > { %v1754_v26 = vpop.f32.mrf.mxu0  ;;  %v1802_v28 = vpop.f32.mrf.mxu1 }
 0x14a   : > { %1012 = vst.msk [vmem:[#allocation2 + $0x30] sm:$0xff] %vm1005_vm1, %v979_v23  ;;  %1028 = vst.msk [vmem:[#allocation2 + $0xb0] sm:$0xff] %vm1005_vm1, %v995_v24  ;;  %v1755_v29 = vadd.f32 %v1754_v26, %v1753_v21  ;;  %v1803_v30 = vadd.f32 %v1802_v28, %v1801_v22  ;;  %v473_v21 = vld [vmem:[#allocation2 + $0x68] sm:$0xff] }
 0x14b   : > { %v1756_v31 = vpop.f32.mrf.mxu0  ;;  %v1804_v32 = vpop.f32.mrf.mxu1  ;;  %v489_v23 = vld [vmem:[#allocation2 + $0xe8] sm:$0xff] }
 0x14c   : > { %v980_v33 = vadd.f32 %v1755_v29, %v467_v25  ;;  %v996_v34 = vadd.f32 %v1803_v30, %v483_v27 }
 0x14d   : > { %v1757_v36 = vpop.f32.mrf.mxu0  ;;  %v1805_v38 = vpop.f32.mrf.mxu1 }
 0x14e   : > { %1013 = vst.msk [vmem:[#allocation2 + $0x38] sm:$0xff] %vm1005_vm1, %v980_v33  ;;  %1029 = vst.msk [vmem:[#allocation2 + $0xb8] sm:$0xff] %vm1005_vm1, %v996_v34  ;;  %v1758_v39 = vadd.f32 %v1757_v36, %v1756_v31  ;;  %v1806_v40 = vadd.f32 %v1805_v38, %v1804_v32  ;;  %v474_v31 = vld [vmem:[#allocation2 + $0x70] sm:$0xff] }
 0x14f   : > { %v1759_v41 = vpop.f32.mrf.mxu0  ;;  %v1807_v42 = vpop.f32.mrf.mxu1  ;;  %v490_v33 = vld [vmem:[#allocation2 + $0xf0] sm:$0xff] }
 0x150   : > { %v981_v43 = vadd.f32 %v1758_v39, %v468_v35  ;;  %v997_v44 = vadd.f32 %v1806_v40, %v484_v37 }
 0x151   : > { %v1760_v46 = vpop.f32.mrf.mxu0  ;;  %v1808_v48 = vpop.f32.mrf.mxu1 }
 0x152   : > { %1014 = vst.msk [vmem:[#allocation2 + $0x40] sm:$0xff] %vm1005_vm1, %v981_v43  ;;  %1030 = vst.msk [vmem:[#allocation2 + $0xc0] sm:$0xff] %vm1005_vm1, %v997_v44  ;;  %v1761_v49 = vadd.f32 %v1760_v46, %v1759_v41  ;;  %v1809_v50 = vadd.f32 %v1808_v48, %v1807_v42  ;;  %v475_v41 = vld [vmem:[#allocation2 + $0x78] sm:$0xff] }
 0x153   : > { %v1762_v51 = vpop.f32.mrf.mxu0  ;;  %v1810_v52 = vpop.f32.mrf.mxu1  ;;  %v491_v43 = vld [vmem:[#allocation2 + $0xf8] sm:$0xff] }
 0x154   : > { %v982_v53 = vadd.f32 %v1761_v49, %v469_v45  ;;  %v998_v54 = vadd.f32 %v1809_v50, %v485_v47 }
 0x155   : > { %v1763_v56 = vpop.f32.mrf.mxu0  ;;  %v1811_v58 = vpop.f32.mrf.mxu1 }
 0x156   : > { %1015 = vst.msk [vmem:[#allocation2 + $0x48] sm:$0xff] %vm1005_vm1, %v982_v53  ;;  %1031 = vst.msk [vmem:[#allocation2 + $0xc8] sm:$0xff] %vm1005_vm1, %v998_v54  ;;  %v1764_v59 = vadd.f32 %v1763_v56, %v1762_v51  ;;  %v1812_v60 = vadd.f32 %v1811_v58, %v1810_v52 }
 0x157   : > { %v1765_v61 = vpop.f32.mrf.mxu0  ;;  %v1813_v62 = vpop.f32.mrf.mxu1 }
 0x158   : > { %v983_v63 = vadd.f32 %v1764_v59, %v470_v55  ;;  %v999_v0 = vadd.f32 %v1812_v60, %v486_v57 }
 0x159   : > { %v1766_v2 = vpop.f32.mrf.mxu0  ;;  %v1814_v4 = vpop.f32.mrf.mxu1 }
 0x15a   : > { %1016 = vst.msk [vmem:[#allocation2 + $0x50] sm:$0xff] %vm1005_vm1, %v983_v63  ;;  %1032 = vst.msk [vmem:[#allocation2 + $0xd0] sm:$0xff] %vm1005_vm1, %v999_v0  ;;  %v1767_v5 = vadd.f32 %v1766_v2, %v1765_v61  ;;  %v1815_v6 = vadd.f32 %v1814_v4, %v1813_v62 }
 0x15b   : > { %v1768_v7 = vpop.f32.mrf.mxu0  ;;  %v1816_v8 = vpop.f32.mrf.mxu1 }
 0x15c   : > { %v984_v9 = vadd.f32 %v1767_v5, %v471_v1  ;;  %v1000_v10 = vadd.f32 %v1815_v6, %v487_v3 }
 0x15d   : > { %v1769_v12 = vpop.f32.mrf.mxu0  ;;  %v1817_v14 = vpop.f32.mrf.mxu1 }
 0x15e   : > { %1017 = vst.msk [vmem:[#allocation2 + $0x58] sm:$0xff] %vm1005_vm1, %v984_v9  ;;  %1033 = vst.msk [vmem:[#allocation2 + $0xd8] sm:$0xff] %vm1005_vm1, %v1000_v10  ;;  %v1770_v15 = vadd.f32 %v1769_v12, %v1768_v7  ;;  %v1818_v16 = vadd.f32 %v1817_v14, %v1816_v8 }
 0x15f   : > { %v1771_v17 = vpop.f32.mrf.mxu0  ;;  %v1819_v18 = vpop.f32.mrf.mxu1 }
 0x160   : > { %v985_v19 = vadd.f32 %v1770_v15, %v472_v11  ;;  %v1001_v20 = vadd.f32 %v1818_v16, %v488_v13 }
 0x161   : > { %v1772_v22 = vpop.f32.mrf.mxu0  ;;  %v1820_v24 = vpop.f32.mrf.mxu1 }
 0x162   : > { %1018 = vst.msk [vmem:[#allocation2 + $0x60] sm:$0xff] %vm1005_vm1, %v985_v19  ;;  %1034 = vst.msk [vmem:[#allocation2 + $0xe0] sm:$0xff] %vm1005_vm1, %v1001_v20  ;;  %v1773_v25 = vadd.f32 %v1772_v22, %v1771_v17  ;;  %v1821_v26 = vadd.f32 %v1820_v24, %v1819_v18 }
 0x163   : > { %v1774_v27 = vpop.f32.mrf.mxu0  ;;  %v1822_v28 = vpop.f32.mrf.mxu1 }
 0x164   : > { %v986_v29 = vadd.f32 %v1773_v25, %v473_v21  ;;  %v1002_v30 = vadd.f32 %v1821_v26, %v489_v23 }
 0x165   : > { %v1775_v32 = vpop.f32.mrf.mxu0  ;;  %v1823_v34 = vpop.f32.mrf.mxu1 }
 0x166   : > { %1019 = vst.msk [vmem:[#allocation2 + $0x68] sm:$0xff] %vm1005_vm1, %v986_v29  ;;  %1035 = vst.msk [vmem:[#allocation2 + $0xe8] sm:$0xff] %vm1005_vm1, %v1002_v30  ;;  %v1776_v35 = vadd.f32 %v1775_v32, %v1774_v27  ;;  %v1824_v36 = vadd.f32 %v1823_v34, %v1822_v28 }
 0x167   : > { %v1777_v37 = vpop.f32.mrf.mxu0  ;;  %v1825_v38 = vpop.f32.mrf.mxu1 }
 0x168   : > { %v987_v39 = vadd.f32 %v1776_v35, %v474_v31  ;;  %v1003_v40 = vadd.f32 %v1824_v36, %v490_v33 }
 0x169   : > { %v1778_v42 = vpop.f32.mrf.mxu0  ;;  %v1826_v44 = vpop.f32.mrf.mxu1 }
 0x16a   : > { %1020 = vst.msk [vmem:[#allocation2 + $0x70] sm:$0xff] %vm1005_vm1, %v987_v39  ;;  %1036 = vst.msk [vmem:[#allocation2 + $0xf0] sm:$0xff] %vm1005_vm1, %v1003_v40  ;;  %v1779_v45 = vadd.f32 %v1778_v42, %v1777_v37  ;;  %v1827_v46 = vadd.f32 %v1826_v44, %v1825_v38  ;;  %1041 = sbr.rel (%p1569_p13) target bundleno = 415 (0x19f), region = 82 }
 0x16c   : > { %v988_v47 = vadd.f32 %v1779_v45, %v475_v41  ;;  %v1004_v48 = vadd.f32 %v1827_v46, %v491_v43 }
 0x16e   : > { %1021 = vst.msk [vmem:[#allocation2 + $0x78] sm:$0xff] %vm1005_vm1, %v988_v47  ;;  %1037 = vst.msk [vmem:[#allocation2 + $0xf8] sm:$0xff] %vm1005_vm1, %v1004_v48 }
 0x16f   : > { %v1042_v49 = vld [vmem:[#allocation2] sm:$0xff]  ;;  %vm1369_vm2 = vcmask 519168   ;;  %v1043_v54 = vld [vmem:[#allocation2 + $0x8] sm:$0xff]  ;;  %v1044_v56 = vld [vmem:[#allocation2 + $0x10] sm:$0xff] }
 0x170   : > { %v2315_v50 = vld [vmem:[%s2452_s2] ss:$0 sm:$0xff]  ;;  %v1701_v57 = vld [vmem:[%s2189_s8 + $0x8] sm:$0xff]   ;;  %v1045_v61 = vld [vmem:[#allocation2 + $0x18] sm:$0xff] }
 0x171   : > { %v1638_v51 = vld [vmem:[%s2189_s8] sm:$0xff]   ;;  %v1081_v52 = vadd.f32 %v2315_v50, %v1042_v49  ;;  %v1082_v58 = vadd.f32 %v2315_v50, %v1043_v54  ;;  %v1083_v59 = vadd.f32 %v2315_v50, %v1044_v56  ;;  %v1643_v60 = vunpack.c.l.bf16 %v1701_v57  ;;  %v1702_v0 = vld [vmem:[%s2189_s8 + $0x10] sm:$0xff]   ;;  %v1047_v5 = vld [vmem:[#allocation2 + $0x28] sm:$0xff] }
 0x172   : > { %v1639_v53 = vunpack.c.l.bf16 %v1638_v51  ;;  %v1640_v55 = vunpack.c.h.bf16 %v1638_v51  ;;  %v1644_v62 = vunpack.c.h.bf16 %v1701_v57  ;;  %v1046_v63 = vld [vmem:[#allocation2 + $0x20] sm:$0xff]  ;;  %v1084_v2 = vadd.f32 %v2315_v50, %v1045_v61  ;;  %v1048_v6 = vld [vmem:[#allocation2 + $0x30] sm:$0xff]  ;;  %v1703_v7 = vld [vmem:[%s2189_s8 + $0x18] sm:$0xff]  }
 0x173   : > { %v1085_v3 = vadd.f32 %v2315_v50, %v1046_v63  ;;  %v1647_v4 = vunpack.c.l.bf16 %v1702_v0  ;;  %v1179_v9 = vadd.f32 %v1643_v60, %v1083_v59  ;;  %v1086_v10 = vadd.f32 %v2315_v50, %v1047_v5  ;;  %v1049_v12 = vld [vmem:[#allocation2 + $0x38] sm:$0xff]  ;;  %v1050_v21 = vld [vmem:[#allocation2 + $0x40] sm:$0xff]  ;;  %v1051_v27 = vld [vmem:[#allocation2 + $0x48] sm:$0xff] }
 0x174   : > { %v1177_v1 = vadd.f32 %v1639_v53, %v1081_v52  ;;  %v1178_v8 = vadd.f32 %v1640_v55, %v1082_v58  ;;  %v1648_v11 = vunpack.c.h.bf16 %v1702_v0  ;;  %v1180_v14 = vadd.f32 %v1644_v62, %v1084_v2  ;;  %v1704_v26 = vld [vmem:[%s2189_s8 + $0x20] sm:$0xff]   ;;  %v1052_v32 = vld [vmem:[#allocation2 + $0x50] sm:$0xff]  ;;  %v1705_v33 = vld [vmem:[%s2189_s8 + $0x28] sm:$0xff]  }
 0x175   : > { %v1181_v15 = vadd.f32 %v1647_v4, %v1085_v3  ;;  %v1087_v16 = vadd.f32 %v2315_v50, %v1048_v6  ;;  %v1211_v18 = vmax.f32 %v1179_v9, 0.0  ;;  %v1651_v20 = vunpack.c.l.bf16 %v1703_v7  ;;  %v1053_v38 = vld [vmem:[#allocation2 + $0x58] sm:$0xff]  ;;  %v1054_v43 = vld [vmem:[#allocation2 + $0x60] sm:$0xff]  ;;  %v1706_v48 = vld [vmem:[%s2189_s8 + $0x30] sm:$0xff]  }
 0x176   : > { %v1209_v13 = vmax.f32 %v1177_v1, 0.0  ;;  %v1210_v17 = vmax.f32 %v1178_v8, 0.0  ;;  %v1182_v19 = vadd.f32 %v1648_v11, %v1086_v10  ;;  %v1212_v23 = vmax.f32 %v1180_v14, 0.0  ;;  %v1055_v49 = vld [vmem:[#allocation2 + $0x68] sm:$0xff]  ;;  %v1056_v59 = vld [vmem:[#allocation2 + $0x70] sm:$0xff]  ;;  %v1707_v0 = vld [vmem:[%s2189_s8 + $0x38] sm:$0xff]  }
 0x177   : > { %v1213_v24 = vmax.f32 %v1181_v15, 0.0  ;;  %v1088_v25 = vadd.f32 %v2315_v50, %v1049_v12  ;;  %v1607_v29 = vpack.c.bf16 %v1211_v18, %v1211_v18  ;;  %v1183_v31 = vadd.f32 %v1651_v20, %v1087_v16  ;;  %v1057_v5 = vld [vmem:[#allocation2 + $0x78] sm:$0xff]  ;;  %v1058_v10 = vld [vmem:[#allocation2 + $0x80] sm:$0xff]  ;;  %v1059_v16 = vld [vmem:[#allocation2 + $0x88] sm:$0xff] }
 0x178   : > { %v1605_v22 = vpack.c.bf16 %v1209_v13, %v1209_v13  ;;  %v1606_v28 = vpack.c.bf16 %v1210_v17, %v1210_v17  ;;  %v1214_v30 = vmax.f32 %v1182_v19, 0.0  ;;  %v1608_v34 = vpack.c.bf16 %v1212_v23, %v1212_v23  ;;  %v1708_v11 = vld [vmem:[%s2189_s8 + $0x40] sm:$0xff]  }
 0x179   : > { %v1609_v35 = vpack.c.bf16 %v1213_v24, %v1213_v24  ;;  %v1652_v36 = vunpack.c.h.bf16 %v1703_v7  ;;  %v1089_v37 = vadd.f32 %v2315_v50, %v1050_v21  ;;  %1372 = vst.msk [vmem:[%s2194_s10 + $0x8] sm:$0xf] %vm1369_vm2, %v1607_v29  ;;  %v1215_v40 = vmax.f32 %v1183_v31, 0.0  ;;  %v1060_v21 = vld [vmem:[#allocation2 + $0x90] sm:$0xff] }
 0x17a   : > { %1370 = vst.msk [vmem:[%s2194_s10] sm:$0xf] %vm1369_vm2, %v1605_v22  ;;  %1371 = vst.msk [vmem:[%s2194_s10 + $0x4] sm:$0xf] %vm1369_vm2, %v1606_v28  ;;  %v1610_v39 = vpack.c.bf16 %v1214_v30, %v1214_v30  ;;  %v1655_v41 = vunpack.c.l.bf16 %v1704_v26  ;;  %v1090_v42 = vadd.f32 %v2315_v50, %v1051_v27  ;;  %v1656_v45 = vunpack.c.h.bf16 %v1704_v26  ;;  %v1709_v26 = vld [vmem:[%s2189_s8 + $0x48] sm:$0xff]   ;;  %v1061_v27 = vld [vmem:[#allocation2 + $0x98] sm:$0xff] }
 0x17b   : > { %1373 = vst.msk [vmem:[%s2194_s10 + $0xc] sm:$0xf] %vm1369_vm2, %v1608_v34  ;;  %1374 = vst.msk [vmem:[%s2194_s10 + $0x10] sm:$0xf] %vm1369_vm2, %v1609_v35  ;;  %v1184_v44 = vadd.f32 %v1652_v36, %v1088_v25  ;;  %v1091_v46 = vadd.f32 %v2315_v50, %v1052_v32  ;;  %v1659_v47 = vunpack.c.l.bf16 %v1705_v33  ;;  %v1611_v51 = vpack.c.bf16 %v1215_v40, %v1215_v40  ;;  %v1062_v32 = vld [vmem:[#allocation2 + $0xa0] sm:$0xff] }
 0x17c   : > { %1375 = vst.msk [vmem:[%s2194_s10 + $0x14] sm:$0xf] %vm1369_vm2, %v1610_v39  ;;  %v1185_v52 = vadd.f32 %v1655_v41, %v1089_v37  ;;  %v1092_v53 = vadd.f32 %v2315_v50, %v1053_v38  ;;  %v1660_v54 = vunpack.c.h.bf16 %v1705_v33  ;;  %v1186_v56 = vadd.f32 %v1656_v45, %v1090_v42  ;;  %v1710_v37 = vld [vmem:[%s2189_s8 + $0x50] sm:$0xff]   ;;  %v1063_v42 = vld [vmem:[#allocation2 + $0xa8] sm:$0xff] }
 0x17d   : > { %v1216_v55 = vmax.f32 %v1184_v44, 0.0  ;;  %v1187_v57 = vadd.f32 %v1659_v47, %v1091_v46  ;;  %v1093_v58 = vadd.f32 %v2315_v50, %v1054_v43  ;;  %1376 = vst.msk [vmem:[%s2194_s10 + $0x18] sm:$0xf] %vm1369_vm2, %v1611_v51  ;;  %v1663_v62 = vunpack.c.l.bf16 %v1706_v48  ;;  %v1064_v47 = vld [vmem:[#allocation2 + $0xb0] sm:$0xff] }
 0x17e   : > { %v1217_v60 = vmax.f32 %v1185_v52, 0.0  ;;  %v1188_v61 = vadd.f32 %v1660_v54, %v1092_v53  ;;  %v1094_v63 = vadd.f32 %v2315_v50, %v1055_v49  ;;  %v1218_v2 = vmax.f32 %v1186_v56, 0.0  ;;  %v1711_v53 = vld [vmem:[%s2189_s8 + $0x58] sm:$0xff]  }
 0x17f   : > { %v1612_v1 = vpack.c.bf16 %v1216_v55, %v1216_v55  ;;  %v1219_v3 = vmax.f32 %v1187_v57, 0.0  ;;  %v1664_v4 = vunpack.c.h.bf16 %v1706_v48  ;;  %v1189_v8 = vadd.f32 %v1663_v62, %v1093_v58  ;;  %v1065_v54 = vld [vmem:[#allocation2 + $0xb8] sm:$0xff] }
 0x180   : > { %v1613_v6 = vpack.c.bf16 %v1217_v60, %v1217_v60  ;;  %v1220_v7 = vmax.f32 %v1188_v61, 0.0  ;;  %v1095_v9 = vadd.f32 %v2315_v50, %v1056_v59  ;;  %v1614_v12 = vpack.c.bf16 %v1218_v2, %v1218_v2  ;;  %v1066_v59 = vld [vmem:[#allocation2 + $0xc0] sm:$0xff] }
 0x181   : > { %1377 = vst.msk [vmem:[%s2194_s10 + $0x1c] sm:$0xf] %vm1369_vm2, %v1612_v1  ;;  %v1615_v13 = vpack.c.bf16 %v1219_v3, %v1219_v3  ;;  %v1190_v14 = vadd.f32 %v1664_v4, %v1094_v63  ;;  %v1667_v15 = vunpack.c.l.bf16 %v1707_v0  ;;  %v1221_v18 = vmax.f32 %v1189_v8, 0.0 }
 0x182   : > { %1378 = vst.msk [vmem:[%s2194_s10 + $0x20] sm:$0xf] %vm1369_vm2, %v1613_v6  ;;  %v1616_v17 = vpack.c.bf16 %v1220_v7, %v1220_v7  ;;  %v1096_v19 = vadd.f32 %v2315_v50, %v1057_v5  ;;  %v1668_v20 = vunpack.c.h.bf16 %v1707_v0  ;;  %1379 = vst.msk [vmem:[%s2194_s10 + $0x24] sm:$0xf] %vm1369_vm2, %v1614_v12  ;;  %v1097_v24 = vadd.f32 %v2315_v50, %v1058_v10  ;;  %v1712_v0 = vld [vmem:[%s2189_s8 + $0x60] sm:$0xff]   ;;  %v1067_v5 = vld [vmem:[#allocation2 + $0xc8] sm:$0xff] }
 0x183   : > { %1380 = vst.msk [vmem:[%s2194_s10 + $0x28] sm:$0xf] %vm1369_vm2, %v1615_v13  ;;  %v1222_v22 = vmax.f32 %v1190_v14, 0.0  ;;  %v1191_v23 = vadd.f32 %v1667_v15, %v1095_v9  ;;  %v1671_v25 = vunpack.c.l.bf16 %v1708_v11  ;;  %v1617_v28 = vpack.c.bf16 %v1221_v18, %v1221_v18  ;;  %v1068_v10 = vld [vmem:[#allocation2 + $0xd0] sm:$0xff]  ;;  %v1713_v15 = vld [vmem:[%s2189_s8 + $0x68] sm:$0xff]  }
 0x184   : > { %1381 = vst.msk [vmem:[%s2194_s10 + $0x2c] sm:$0xf] %vm1369_vm2, %v1616_v17  ;;  %v1192_v29 = vadd.f32 %v1668_v20, %v1096_v19  ;;  %v1098_v30 = vadd.f32 %v2315_v50, %v1059_v16  ;;  %v1672_v31 = vunpack.c.h.bf16 %v1708_v11  ;;  %v1099_v36 = vadd.f32 %v2315_v50, %v1060_v21  ;;  %v1069_v16 = vld [vmem:[#allocation2 + $0xd8] sm:$0xff]  ;;  %v1070_v21 = vld [vmem:[#allocation2 + $0xe0] sm:$0xff] }
 0x185   : > { %v1618_v33 = vpack.c.bf16 %v1222_v22, %v1222_v22  ;;  %v1223_v34 = vmax.f32 %v1191_v23, 0.0  ;;  %v1193_v35 = vadd.f32 %v1671_v25, %v1097_v24  ;;  %1382 = vst.msk [vmem:[%s2194_s10 + $0x30] sm:$0xf] %vm1369_vm2, %v1617_v28  ;;  %v1675_v40 = vunpack.c.l.bf16 %v1709_v26 }
 0x186   : > { %v1224_v38 = vmax.f32 %v1192_v29, 0.0  ;;  %v1194_v39 = vadd.f32 %v1672_v31, %v1098_v30  ;;  %v1100_v41 = vadd.f32 %v2315_v50, %v1061_v27  ;;  %v1676_v45 = vunpack.c.h.bf16 %v1709_v26  ;;  %v1714_v26 = vld [vmem:[%s2189_s8 + $0x70] sm:$0xff]   ;;  %v1071_v31 = vld [vmem:[#allocation2 + $0xe8] sm:$0xff] }
 0x187   : > { %1383 = vst.msk [vmem:[%s2194_s10 + $0x34] sm:$0xf] %vm1369_vm2, %v1618_v33  ;;  %v1619_v43 = vpack.c.bf16 %v1223_v34, %v1223_v34  ;;  %v1225_v44 = vmax.f32 %v1193_v35, 0.0  ;;  %v1101_v46 = vadd.f32 %v2315_v50, %v1062_v32  ;;  %v1195_v51 = vadd.f32 %v1675_v40, %v1099_v36  ;;  %v1072_v36 = vld [vmem:[#allocation2 + $0xf0] sm:$0xff] }
 0x188   : > { %v1620_v48 = vpack.c.bf16 %v1224_v38, %v1224_v38  ;;  %v1226_v49 = vmax.f32 %v1194_v39, 0.0  ;;  %v1679_v52 = vunpack.c.l.bf16 %v1710_v37  ;;  %v1196_v56 = vadd.f32 %v1676_v45, %v1100_v41  ;;  %v1715_v41 = vld [vmem:[%s2189_s8 + $0x78] sm:$0xff]  }
 0x189   : > { %1384 = vst.msk [vmem:[%s2194_s10 + $0x38] sm:$0xf] %vm1369_vm2, %v1619_v43  ;;  %v1621_v55 = vpack.c.bf16 %v1225_v44, %v1225_v44  ;;  %v1102_v57 = vadd.f32 %v2315_v50, %v1063_v42  ;;  %v1680_v58 = vunpack.c.h.bf16 %v1710_v37  ;;  %v1227_v61 = vmax.f32 %v1195_v51, 0.0  ;;  %v1073_v42 = vld [vmem:[#allocation2 + $0xf8] sm:$0xff] }
 0x18a   : > { %1385 = vst.msk [vmem:[%s2194_s10 + $0x3c] sm:$0xf] %vm1369_vm2, %v1620_v48  ;;  %v1622_v60 = vpack.c.bf16 %v1226_v49, %v1226_v49  ;;  %v1197_v62 = vadd.f32 %v1679_v52, %v1101_v46  ;;  %v1103_v63 = vadd.f32 %v2315_v50, %v1064_v47  ;;  %v1228_v1 = vmax.f32 %v1196_v56, 0.0 }
 0x18b   : > { %1386 = vst.msk [vmem:[%s2194_s10 + $0x40] sm:$0xf] %vm1369_vm2, %v1621_v55  ;;  %v1198_v2 = vadd.f32 %v1680_v58, %v1102_v57  ;;  %v1683_v3 = vunpack.c.l.bf16 %v1711_v53  ;;  %v1104_v4 = vadd.f32 %v2315_v50, %v1065_v54  ;;  %v1623_v6 = vpack.c.bf16 %v1227_v61, %v1227_v61 }
 0x18c   : > { %1387 = vst.msk [vmem:[%s2194_s10 + $0x44] sm:$0xf] %vm1369_vm2, %v1622_v60  ;;  %v1229_v7 = vmax.f32 %v1197_v62, 0.0  ;;  %v1684_v8 = vunpack.c.h.bf16 %v1711_v53  ;;  %v1105_v9 = vadd.f32 %v2315_v50, %v1066_v59  ;;  %v1624_v11 = vpack.c.bf16 %v1228_v1, %v1228_v1 }
 0x18d   : > { %v1230_v12 = vmax.f32 %v1198_v2, 0.0  ;;  %v1199_v13 = vadd.f32 %v1683_v3, %v1103_v63  ;;  %v1687_v14 = vunpack.c.l.bf16 %v1712_v0  ;;  %1388 = vst.msk [vmem:[%s2194_s10 + $0x48] sm:$0xf] %vm1369_vm2, %v1623_v6  ;;  %v1106_v19 = vadd.f32 %v2315_v50, %v1067_v5 }
 0x18e   : > { %v1625_v17 = vpack.c.bf16 %v1229_v7, %v1229_v7  ;;  %v1200_v18 = vadd.f32 %v1684_v8, %v1104_v4  ;;  %v1688_v20 = vunpack.c.h.bf16 %v1712_v0  ;;  %1389 = vst.msk [vmem:[%s2194_s10 + $0x4c] sm:$0xf] %vm1369_vm2, %v1624_v11  ;;  %v1107_v25 = vadd.f32 %v2315_v50, %v1068_v10 }
 0x18f   : > { %v1626_v22 = vpack.c.bf16 %v1230_v12, %v1230_v12  ;;  %v1231_v23 = vmax.f32 %v1199_v13, 0.0  ;;  %v1201_v24 = vadd.f32 %v1687_v14, %v1105_v9  ;;  %v1691_v29 = vunpack.c.l.bf16 %v1713_v15 }
 0x190   : > { %1390 = vst.msk [vmem:[%s2194_s10 + $0x50] sm:$0xf] %vm1369_vm2, %v1625_v17  ;;  %v1232_v27 = vmax.f32 %v1200_v18, 0.0  ;;  %v1202_v28 = vadd.f32 %v1688_v20, %v1106_v19  ;;  %v1108_v30 = vadd.f32 %v2315_v50, %v1069_v16  ;;  %v1692_v34 = vunpack.c.h.bf16 %v1713_v15 }
 0x191   : > { %1391 = vst.msk [vmem:[%s2194_s10 + $0x54] sm:$0xf] %vm1369_vm2, %v1626_v22  ;;  %v1627_v32 = vpack.c.bf16 %v1231_v23, %v1231_v23  ;;  %v1233_v33 = vmax.f32 %v1201_v24, 0.0  ;;  %v1109_v35 = vadd.f32 %v2315_v50, %v1070_v21  ;;  %v1203_v39 = vadd.f32 %v1691_v29, %v1107_v25 }
 0x192   : > { %v1628_v37 = vpack.c.bf16 %v1232_v27, %v1232_v27  ;;  %v1234_v38 = vmax.f32 %v1202_v28, 0.0  ;;  %v1695_v40 = vunpack.c.l.bf16 %v1714_v26  ;;  %v1204_v44 = vadd.f32 %v1692_v34, %v1108_v30 }
 0x193   : > { %1392 = vst.msk [vmem:[%s2194_s10 + $0x58] sm:$0xf] %vm1369_vm2, %v1627_v32  ;;  %v1629_v43 = vpack.c.bf16 %v1233_v33, %v1233_v33  ;;  %v1110_v45 = vadd.f32 %v2315_v50, %v1071_v31  ;;  %v1696_v46 = vunpack.c.h.bf16 %v1714_v26  ;;  %v1235_v48 = vmax.f32 %v1203_v39, 0.0 }
 0x194   : > { %1393 = vst.msk [vmem:[%s2194_s10 + $0x5c] sm:$0xf] %vm1369_vm2, %v1628_v37  ;;  %v1630_v47 = vpack.c.bf16 %v1234_v38, %v1234_v38  ;;  %v1205_v49 = vadd.f32 %v1695_v40, %v1109_v35  ;;  %v1111_v51 = vadd.f32 %v2315_v50, %v1072_v36  ;;  %v1236_v52 = vmax.f32 %v1204_v44, 0.0 }
 0x195   : > { %1394 = vst.msk [vmem:[%s2194_s10 + $0x60] sm:$0xf] %vm1369_vm2, %v1629_v43  ;;  %v1206_v53 = vadd.f32 %v1696_v46, %v1110_v45  ;;  %v1699_v54 = vunpack.c.l.bf16 %v1715_v41  ;;  %v1112_v55 = vadd.f32 %v2315_v50, %v1073_v42  ;;  %v1631_v56 = vpack.c.bf16 %v1235_v48, %v1235_v48 }
 0x196   : > { %1395 = vst.msk [vmem:[%s2194_s10 + $0x64] sm:$0xf] %vm1369_vm2, %v1630_v47  ;;  %v1237_v57 = vmax.f32 %v1205_v49, 0.0  ;;  %v1700_v58 = vunpack.c.h.bf16 %v1715_v41  ;;  %v1632_v59 = vpack.c.bf16 %v1236_v52, %v1236_v52 }
 0x197   : > { %v1238_v60 = vmax.f32 %v1206_v53, 0.0  ;;  %v1207_v61 = vadd.f32 %v1699_v54, %v1111_v51  ;;  %1396 = vst.msk [vmem:[%s2194_s10 + $0x68] sm:$0xf] %vm1369_vm2, %v1631_v56 }
 0x198   : > { %v1633_v62 = vpack.c.bf16 %v1237_v57, %v1237_v57  ;;  %v1208_v63 = vadd.f32 %v1700_v58, %v1112_v55  ;;  %1397 = vst.msk [vmem:[%s2194_s10 + $0x6c] sm:$0xf] %vm1369_vm2, %v1632_v59 }
 0x199   : > { %v1634_v0 = vpack.c.bf16 %v1238_v60, %v1238_v60  ;;  %v1239_v1 = vmax.f32 %v1207_v61, 0.0 }
 0x19a   : > { %1398 = vst.msk [vmem:[%s2194_s10 + $0x70] sm:$0xf] %vm1369_vm2, %v1633_v62  ;;  %v1240_v50 = vmax.f32 %v1208_v63, 0.0 }
 0x19b   : > { %1399 = vst.msk [vmem:[%s2194_s10 + $0x74] sm:$0xf] %vm1369_vm2, %v1634_v0  ;;  %v1635_v2 = vpack.c.bf16 %v1239_v1, %v1239_v1 }
 0x19c   : > { %v1636_v3 = vpack.c.bf16 %v1240_v50, %v1240_v50 }
 0x19d   : > { %1400 = vst.msk [vmem:[%s2194_s10 + $0x78] sm:$0xf] %vm1369_vm2, %v1635_v2 }
 0x19e   : > { %1401 = vst.msk [vmem:[%s2194_s10 + $0x7c] sm:$0xf] %vm1369_vm2, %v1636_v3 }
 0x19f PF: > { %s14_s21 = sadd.s32 1, %s2020_s21   ;;  %s2455_s15 = smov %s2000_s16 }
 0x1a0   : > { %p11_p0 = scmp.ge.s32.totalorder %s14_s21, 8   ;;  %s2456_s16 = smov %s2099_s28 }
 0x1a1   : > { %s2457_s17 = smov %s2012_s19  ;;  %s2458_s18 = smov %s2016_s20 }
 0x1a2   : > { %s2459_s19 = smov %s2462_s22  ;;  %s2460_s20 = smov %s2466_s23 }
 0x1a3   :  { %13 = sbr.rel (!%p11_p0) target bundleno = 4 (0x4), region = 123 }

// kernel: resnet18_forward.26
= control target key start
LH: loop header
LB: loop body
LE: loop exit
PB: predicated region body
PF: predicated region fallthrough
CT: control target
= control target key end

     0   :  { %s1272_s12 = smov 0   ;;  %s1274_s13 = smov 0   ;;  %s1420_s0 = inlined_call_operand.vmem [shape: bf16[128,768], index: 0, kind: input, shape index: {}]   ;;  %s1421_s1 = inlined_call_operand.vmem [shape: bf16[768,128], index: 1, kind: input, shape index: {}]   ;;  %s1422_s2 = inlined_call_operand.vmem [shape: f32[1,128], index: 2, kind: input, shape index: {}]   ;;  %s1423_s3 = inlined_call_operand.vmem [shape: bf16[128,128], index: 3, kind: output, shape index: {}]  }
   0x1   :  { %s1276_s14 = smov 0   ;;  %s1278_s15 = smov 0  }
   0x2   :  { %s1280_s16 = smov 0  }
   0x3 LB: > { %s22_s17 = sadd.s32 1, %s1245_s15  ;;  %p41_p1 = scmp.ne.s32.totalorder %s1237_s13, %s1233_s12  ;;  %s1249_s16 = sphi %s1280_s16, %s13_s16   ;;  %s1245_s15 = sphi %s1278_s15, %s1427_s15   ;;  %s1241_s14 = sphi %s1276_s14, %s1426_s14   ;;  %s1237_s13 = sphi %s1274_s13, %s1425_s13   ;;  %s1233_s12 = sphi %s1272_s12, %s1424_s12  }
   0x4   : > { %p23_p0 = scmp.ge.s32.totalorder %s22_s17, 3  ;;  %p42_p2 = scmp.eq.s32.totalorder %s1249_s16, 0 }
   0x5   : > { %s34_s19 = sadd.s32 1, %s1237_s13  ;;  %p923_p5 = scmp.ge.s32.totalorder %s1249_s16, 3 }
   0x6   : > { %s1429_s17 = smov (%p23_p0, %s22_s17), 0  ;;  %p43_p3 = por %p42_p2, %p41_p1 }
   0x7   : > { %s30_s18 = ssub.s32 %s1245_s15, %s1429_s17  ;;  %143 = sbr.rel (%p923_p5) target bundleno = 24 (0x18), region = 20 }
   0x8   : > { %p32_p4 = scmp.eq.s32.totalorder %s30_s18, 0 }
   0xa   : > { %s1307_s20 = scalar_select %p32_p4, %s1237_s13, %s34_s19  }
   0xc   : > { %146 = sbr.rel (!%p43_p3) target bundleno = 24 (0x18), region = 24  ;;  %s148_s21 = sand.u32 (%p43_p3), 1, %s1237_s13  }
   0xd   : > { %s986_s22 = sshll.u32 (%p43_p3), %s1245_s15, 3  ;;  %s924_s23 = sshll.u32 (%p43_p3), %s148_s21, 7 }
   0xe   : > { %s1315_s26 = scalar_lea.vmem (%p43_p3), %s1420_s0, %s986_s22  ;;  %s150_s27 = scalar_lea.vmem (%p43_p3), [#allocation3], %s924_s23 }
   0xf   : > { %v215_v0 = vld [vmem:[%s1315_s26] sm:$0xff] (%p43_p3)  ;;  %v217_v1 = vld [vmem:[%s1315_s26 + $0x18] sm:$0xff] (%p43_p3)  ;;  %v219_v2 = vld [vmem:[%s1315_s26 + $0x30] sm:$0xff] (%p43_p3) }
  0x10   : > { %216 = vst [vmem:[%s150_s27] sm:$0xff] (%p43_p3), %v215_v0  ;;  %218 = vst [vmem:[%s150_s27 + $0x8] sm:$0xff] (%p43_p3), %v217_v1  ;;  %v221_v3 = vld [vmem:[%s1315_s26 + $0x48] sm:$0xff] (%p43_p3)  ;;  %v223_v4 = vld [vmem:[%s1315_s26 + $0x60] sm:$0xff] (%p43_p3) }
  0x11   : > { %220 = vst [vmem:[%s150_s27 + $0x10] sm:$0xff] %v219_v2  ;;  %v225_v5 = vld [vmem:[%s1315_s26 + $0x78] sm:$0xff]  ;;  %222 = vst [vmem:[%s150_s27 + $0x18] sm:$0xff] %v221_v3  ;;  %v227_v6 = vld [vmem:[%s1315_s26 + $0x90] sm:$0xff] }
  0x12   : > { %224 = vst [vmem:[%s150_s27 + $0x20] sm:$0xff] %v223_v4  ;;  %226 = vst [vmem:[%s150_s27 + $0x28] sm:$0xff] %v225_v5  ;;  %v229_v7 = vld [vmem:[%s1315_s26 + $0xa8] sm:$0xff]  ;;  %v231_v8 = vld [vmem:[%s1315_s26 + $0xc0] sm:$0xff] }
  0x13   : > { %228 = vst [vmem:[%s150_s27 + $0x30] sm:$0xff] %v227_v6  ;;  %230 = vst [vmem:[%s150_s27 + $0x38] sm:$0xff] %v229_v7  ;;  %v233_v9 = vld [vmem:[%s1315_s26 + $0xd8] sm:$0xff]  ;;  %v235_v10 = vld [vmem:[%s1315_s26 + $0xf0] sm:$0xff] }
  0x14   : > { %232 = vst [vmem:[%s150_s27 + $0x40] sm:$0xff] %v231_v8  ;;  %v237_v11 = vld [vmem:[%s1315_s26 + $0x108] sm:$0xff]  ;;  %234 = vst [vmem:[%s150_s27 + $0x48] sm:$0xff] %v233_v9  ;;  %v239_v12 = vld [vmem:[%s1315_s26 + $0x120] sm:$0xff] }
  0x15   : > { %236 = vst [vmem:[%s150_s27 + $0x50] sm:$0xff] %v235_v10  ;;  %238 = vst [vmem:[%s150_s27 + $0x58] sm:$0xff] %v237_v11  ;;  %v241_v13 = vld [vmem:[%s1315_s26 + $0x138] sm:$0xff]  ;;  %v243_v14 = vld [vmem:[%s1315_s26 + $0x150] sm:$0xff] }
  0x16   : > { %240 = vst [vmem:[%s150_s27 + $0x60] sm:$0xff] %v239_v12  ;;  %242 = vst [vmem:[%s150_s27 + $0x68] sm:$0xff] %v241_v13  ;;  %v245_v15 = vld [vmem:[%s1315_s26 + $0x168] sm:$0xff] }
  0x17   : > { %244 = vst [vmem:[%s150_s27 + $0x70] sm:$0xff] %v243_v14  ;;  %246 = vst [vmem:[%s150_s27 + $0x78] sm:$0xff] %v245_v15 }
  0x18 PF: > { %p927_p6 = scmp.ge.s32.totalorder %s1249_s16, 1  ;;  %p260_p7 = scmp.lt.s32.totalorder %s1249_s16, 4 }
  0x1a   : > { %p261_p8 = pnand %p927_p6, %p260_p7 }
  0x1b   : > { %s267_s28 = sand.u32 (!%p261_p8), 1, %s1233_s12   ;;  %s929_s29 = sshll.u32 (!%p261_p8), %s1241_s14, 5 }
  0x1c   : > { %264 = sbr.rel (%p261_p8) target bundleno = 324 (0x144), region = 66  ;;  %s928_s30 = sshll.u32 (!%p261_p8), %s267_s28, 7 }
  0x1d   : > { %p298_p9 = scmp.lt.s32.totalorder (!%p261_p8), %s929_s29, 95  ;;  %s1342_s8 = scalar_lea.vmem (!%p261_p8), [#allocation3], %s928_s30 }
  0x1e   : > { %p931_p10 = scmp.ne.s32.totalorder (!%p261_p8), %s1241_s14, 0 }
  0x21   : > { %s1431_s29 = smov (!%p298_p9, %s929_s29), 95  ;;  %313 = sbr.rel (%p931_p10) target bundleno = 47 (0x2f), region = 74 }
  0x22   : > { %s930_s4 = sshll.u32 %s1431_s29, 2 }
  0x23   : > { %s1340_s7 = scalar_lea.vmem %s1421_s1, %s930_s4 }
  0x26   : > { %v1251_v16 = vmov 0.0  }
  0x27   : > { %314 = vst [vmem:[#allocation2 + $0x30] sm:$0xff] %v1251_v16  ;;  %315 = vst [vmem:[#allocation2] sm:$0xff] %v1251_v16 }
  0x28   : > { %316 = vst [vmem:[#allocation2 + $0x58] sm:$0xff] %v1251_v16  ;;  %317 = vst [vmem:[#allocation2 + $0x18] sm:$0xff] %v1251_v16 }
  0x29   : > { %318 = vst [vmem:[#allocation2 + $0x50] sm:$0xff] %v1251_v16  ;;  %319 = vst [vmem:[#allocation2 + $0x68] sm:$0xff] %v1251_v16 }
  0x2a   : > { %320 = vst [vmem:[#allocation2 + $0x8] sm:$0xff] %v1251_v16  ;;  %321 = vst [vmem:[#allocation2 + $0x48] sm:$0xff] %v1251_v16 }
  0x2b   : > { %322 = vst [vmem:[#allocation2 + $0x40] sm:$0xff] %v1251_v16  ;;  %323 = vst [vmem:[#allocation2 + $0x20] sm:$0xff] %v1251_v16 }
  0x2c   : > { %324 = vst [vmem:[#allocation2 + $0x10] sm:$0xff] %v1251_v16  ;;  %325 = vst [vmem:[#allocation2 + $0x38] sm:$0xff] %v1251_v16 }
  0x2d   : > { %326 = vst [vmem:[#allocation2 + $0x60] sm:$0xff] %v1251_v16  ;;  %327 = vst [vmem:[#allocation2 + $0x70] sm:$0xff] %v1251_v16 }
  0x2e   : > { %328 = vst [vmem:[#allocation2 + $0x78] sm:$0xff] %v1251_v16  ;;  %329 = vst [vmem:[#allocation2 + $0x28] sm:$0xff] %v1251_v16 }
  0x2f PF: > { %v1171_v17 = vld [vmem:[%s1340_s7 + $0x78] sm:$0xff]   ;;  %v1173_v19 = vld [vmem:[%s1340_s7 + $0x70] sm:$0xff]   ;;  %v1175_v21 = vld [vmem:[%s1340_s7 + $0x68] sm:$0xff]   ;;  %p964_p11 = scmp.ne.s32.totalorder %s1241_s14, 2 }
  0x30   : > { %v1172_v18 = vld [vmem:[%s1340_s7 + $0x38] sm:$0xff]   ;;  %1050 = vmatprep.subr.bf16.mxu0 %v1171_v17  ;;  %1114 = vmatprep.subr.bf16.mxu1 %v1171_v17  ;;  %v1174_v20 = vld [vmem:[%s1340_s7 + $0x30] sm:$0xff]   ;;  %v1176_v22 = vld [vmem:[%s1340_s7 + $0x28] sm:$0xff]  }
  0x31   : > { %1051 = vmatpush3.bf16.msra.mxu0 %v1172_v18  ;;  %1122 = vmatpush3.bf16.msra.mxu1 %v1172_v18  ;;  %v1177_v23 = vld [vmem:[%s1340_s7 + $0x60] sm:$0xff]   ;;  %v1179_v25 = vld [vmem:[%s1340_s7 + $0x58] sm:$0xff]   ;;  %v1181_v27 = vld [vmem:[%s1340_s7 + $0x50] sm:$0xff]  }
  0x32   : > { %1052 = vmatprep.subr.bf16.mxu0 %v1173_v19  ;;  %1115 = vmatprep.subr.bf16.mxu1 %v1173_v19  ;;  %v1178_v24 = vld [vmem:[%s1340_s7 + $0x20] sm:$0xff]   ;;  %v1180_v26 = vld [vmem:[%s1340_s7 + $0x18] sm:$0xff]   ;;  %v1182_v30 = vld [vmem:[%s1340_s7 + $0x10] sm:$0xff]  }
  0x33   : > { %v1189_v28 = vld [vmem:[%s1342_s8 + $0x4] ss:$8 sps:$4 sm:$0xff]   ;;  %v1187_v35 = vld [vmem:[%s1342_s8] ss:$8 sps:$4 sm:$0xff]   ;;  %v1193_v37 = vld [vmem:[%s1342_s8 + $0x14] ss:$8 sps:$4 sm:$0xff]  }
  0x34   : > { %v1192_v29 = vld [vmem:[%s1342_s8 + $0x44] ss:$8 sps:$4 sm:$0xff]   ;;  %602 = vmatprep.mubr.bf16.mxu0 %v1189_v28  ;;  %v1190_v36 = vld [vmem:[%s1342_s8 + $0x40] ss:$8 sps:$4 sm:$0xff]   ;;  %v1195_v38 = vld [vmem:[%s1342_s8 + $0x54] ss:$8 sps:$4 sm:$0xff]  }
  0x35   : > { %1053 = vmatpush3.bf16.msra.mxu0 %v1174_v20  ;;  %1123 = vmatpush3.bf16.msra.mxu1 %v1174_v20  ;;  %v1183_v31 = vld [vmem:[%s1340_s7 + $0x48] sm:$0xff]   ;;  %v1185_v33 = vld [vmem:[%s1340_s7 + $0x40] sm:$0xff]   ;;  %v1197_v39 = vld [vmem:[%s1342_s8 + $0x10] ss:$8 sps:$4 sm:$0xff]  }
  0x36   : > { %1054 = vmatprep.subr.bf16.mxu0 %v1175_v21  ;;  %1116 = vmatprep.subr.bf16.mxu1 %v1175_v21  ;;  %v1184_v32 = vld [vmem:[%s1340_s7 + $0x8] sm:$0xff]   ;;  %v1186_v34 = vld [vmem:[%s1340_s7] sm:$0xff]   ;;  %v1198_v40 = vld [vmem:[%s1342_s8 + $0x50] ss:$8 sps:$4 sm:$0xff]  }
  0x37   : > { %634 = vmatprep.mubr.bf16.mxu1 %v1192_v29  ;;  %v1199_v41 = vld [vmem:[%s1342_s8 + $0x24] ss:$8 sps:$4 sm:$0xff]   ;;  %v1203_v43 = vld [vmem:[%s1342_s8 + $0x20] ss:$8 sps:$4 sm:$0xff]   ;;  %v1205_v45 = vld [vmem:[%s1342_s8 + $0x34] ss:$8 sps:$4 sm:$0xff]  }
  0x38   : > { %v1201_v42 = vld [vmem:[%s1342_s8 + $0x64] ss:$8 sps:$4 sm:$0xff]   ;;  %v1204_v44 = vld [vmem:[%s1342_s8 + $0x60] ss:$8 sps:$4 sm:$0xff]   ;;  %v1207_v46 = vld [vmem:[%s1342_s8 + $0x74] ss:$8 sps:$4 sm:$0xff]  }
  0x39   : > { %1055 = vmatpush3.bf16.msra.mxu0 %v1176_v22  ;;  %1124 = vmatpush3.bf16.msra.mxu1 %v1176_v22  ;;  %v1209_v47 = vld [vmem:[%s1342_s8 + $0x30] ss:$8 sps:$4 sm:$0xff]   ;;  %v338_v53 = vld [vmem:[#allocation2 + $0x40] sm:$0xff] }
  0x3a   : > { %1056 = vmatprep.subr.bf16.mxu0 %v1177_v23  ;;  %1117 = vmatprep.subr.bf16.mxu1 %v1177_v23  ;;  %v1210_v48 = vld [vmem:[%s1342_s8 + $0x70] ss:$8 sps:$4 sm:$0xff]   ;;  %v331_v61 = vld [vmem:[#allocation2] sm:$0xff] }
  0x3b   : > { %v330_v51 = vld [vmem:[#allocation2 + $0x30] sm:$0xff]  ;;  %v339_v63 = vld [vmem:[#allocation2 + $0x20] sm:$0xff]  ;;  %v332_v7 = vld [vmem:[#allocation2 + $0x58] sm:$0xff] }
  0x3c   : > { %v340_v9 = vld [vmem:[#allocation2 + $0x10] sm:$0xff]  ;;  %v333_v17 = vld [vmem:[#allocation2 + $0x18] sm:$0xff]  ;;  %v342_v29 = vld [vmem:[#allocation2 + $0x60] sm:$0xff] }
  0x3d   : > { %1057 = vmatpush3.bf16.msra.mxu0 %v1178_v24  ;;  %1125 = vmatpush3.bf16.msra.mxu1 %v1178_v24  ;;  %v341_v19 = vld [vmem:[#allocation2 + $0x38] sm:$0xff] }
  0x3e   : > { %1058 = vmatprep.subr.bf16.mxu0 %v1179_v25  ;;  %1118 = vmatprep.subr.bf16.mxu1 %v1179_v25 }
  0x41   : > { %1059 = vmatpush3.bf16.msra.mxu0 %v1180_v26  ;;  %1126 = vmatpush3.bf16.msra.mxu1 %v1180_v26 }
  0x42   : > { %1060 = vmatprep.subr.bf16.mxu0 %v1181_v27  ;;  %1119 = vmatprep.subr.bf16.mxu1 %v1181_v27  ;;  %v334_v27 = vld [vmem:[#allocation2 + $0x50] sm:$0xff] }
  0x45   : > { %1061 = vmatpush3.bf16.msra.mxu0 %v1182_v30  ;;  %1127 = vmatpush3.bf16.msra.mxu1 %v1182_v30 }
  0x46   : > { %1062 = vmatprep.subr.bf16.mxu0 %v1183_v31  ;;  %1120 = vmatprep.subr.bf16.mxu1 %v1183_v31 }
  0x49   : > { %1063 = vmatpush3.bf16.msra.mxu0 %v1184_v32  ;;  %1128 = vmatpush3.bf16.msra.mxu1 %v1184_v32 }
  0x4a   : > { %1064 = vmatprep.subr.bf16.mxu0 %v1185_v33  ;;  %1121 = vmatprep.subr.bf16.mxu1 %v1185_v33 }
  0x4d   : > { %1065 = vmatpush3.bf16.msra.mxu0 %v1186_v34  ;;  %1129 = vmatpush3.bf16.msra.mxu1 %v1186_v34 }
  0x50   : > { %603 = vmatmul.mubr.bf16.vlgmr.msra.gmra.mxu0 %v1187_v35  ;;  %635 = vmatmul.mubr.bf16.vlgmr.msra.gmra.mxu1 %v1190_v36 }
  0x51   : > { %610 = vmatprep.mubr.bf16.mxu0 %v1193_v37  ;;  %642 = vmatprep.mubr.bf16.mxu1 %v1195_v38  ;;  %v335_v37 = vld [vmem:[#allocation2 + $0x68] sm:$0xff] }
  0x58   : > { %611 = vmatmul.mubr.bf16.gmra.mxu0 %v1197_v39  ;;  %643 = vmatmul.mubr.bf16.gmra.mxu1 %v1198_v40  ;;  %v343_v39 = vld [vmem:[#allocation2 + $0x70] sm:$0xff] }
  0x59   : > { %618 = vmatprep.mubr.bf16.mxu0 %v1199_v41  ;;  %650 = vmatprep.mubr.bf16.mxu1 %v1201_v42 }
  0x60   : > { %619 = vmatmul.mubr.bf16.gmra.mxu0 %v1203_v43  ;;  %651 = vmatmul.mubr.bf16.gmra.mxu1 %v1204_v44 }
  0x61   : > { %626 = vmatprep.mubr.bf16.mxu0 %v1205_v45  ;;  %658 = vmatprep.mubr.bf16.mxu1 %v1207_v46 }
  0x68   : > { %627 = vmatmul.mubr.bf16.gmra.mxu0 %v1209_v47  ;;  %659 = vmatmul.mubr.bf16.gmra.mxu1 %v1210_v48  ;;  %v336_v47 = vld [vmem:[#allocation2 + $0x8] sm:$0xff] }
 0x110   : > { %v1066_v49 = vpop.f32.mrf.mxu0  ;;  %v1090_v50 = vpop.f32.mrf.mxu1 }
 0x112   : > { %v1067_v52 = vpop.f32.mrf.mxu0  ;;  %v1091_v54 = vpop.f32.mrf.mxu1 }
 0x113   : > { %v1068_v55 = vadd.f32 %v1067_v52, %v1066_v49  ;;  %v1092_v56 = vadd.f32 %v1091_v54, %v1090_v50  ;;  %v344_v49 = vld [vmem:[#allocation2 + $0x78] sm:$0xff] }
 0x114   : > { %v1069_v57 = vpop.f32.mrf.mxu0  ;;  %v1093_v58 = vpop.f32.mrf.mxu1 }
 0x115   : > { %v667_v59 = vadd.f32 %v1068_v55, %v330_v51  ;;  %v675_v60 = vadd.f32 %v1092_v56, %v338_v53 }
 0x116   : > { %v1070_v62 = vpop.f32.mrf.mxu0  ;;  %v1094_v0 = vpop.f32.mrf.mxu1 }
 0x117   : > { %683 = vst [vmem:[#allocation2 + $0x30] sm:$0xff] %v667_v59  ;;  %691 = vst [vmem:[#allocation2 + $0x40] sm:$0xff] %v675_v60  ;;  %v1071_v1 = vadd.f32 %v1070_v62, %v1069_v57  ;;  %v1095_v2 = vadd.f32 %v1094_v0, %v1093_v58  ;;  %v337_v57 = vld [vmem:[#allocation2 + $0x48] sm:$0xff] }
 0x118   : > { %v1072_v3 = vpop.f32.mrf.mxu0  ;;  %v1096_v4 = vpop.f32.mrf.mxu1  ;;  %v345_v59 = vld [vmem:[#allocation2 + $0x28] sm:$0xff] }
 0x119   : > { %v668_v5 = vadd.f32 %v1071_v1, %v331_v61  ;;  %v676_v6 = vadd.f32 %v1095_v2, %v339_v63 }
 0x11a   : > { %v1073_v8 = vpop.f32.mrf.mxu0  ;;  %v1097_v10 = vpop.f32.mrf.mxu1 }
 0x11b   : > { %684 = vst [vmem:[#allocation2] sm:$0xff] %v668_v5  ;;  %692 = vst [vmem:[#allocation2 + $0x20] sm:$0xff] %v676_v6  ;;  %v1074_v11 = vadd.f32 %v1073_v8, %v1072_v3  ;;  %v1098_v12 = vadd.f32 %v1097_v10, %v1096_v4 }
 0x11c   : > { %v1075_v13 = vpop.f32.mrf.mxu0  ;;  %v1099_v14 = vpop.f32.mrf.mxu1 }
 0x11d   : > { %v669_v15 = vadd.f32 %v1074_v11, %v332_v7  ;;  %v677_v16 = vadd.f32 %v1098_v12, %v340_v9 }
 0x11e   : > { %v1076_v18 = vpop.f32.mrf.mxu0  ;;  %v1100_v20 = vpop.f32.mrf.mxu1 }
 0x11f   : > { %685 = vst [vmem:[#allocation2 + $0x58] sm:$0xff] %v669_v15  ;;  %693 = vst [vmem:[#allocation2 + $0x10] sm:$0xff] %v677_v16  ;;  %v1077_v21 = vadd.f32 %v1076_v18, %v1075_v13  ;;  %v1101_v22 = vadd.f32 %v1100_v20, %v1099_v14 }
 0x120   : > { %v1078_v23 = vpop.f32.mrf.mxu0  ;;  %v1102_v24 = vpop.f32.mrf.mxu1 }
 0x121   : > { %v670_v25 = vadd.f32 %v1077_v21, %v333_v17  ;;  %v678_v26 = vadd.f32 %v1101_v22, %v341_v19 }
 0x122   : > { %v1079_v28 = vpop.f32.mrf.mxu0  ;;  %v1103_v30 = vpop.f32.mrf.mxu1 }
 0x123   : > { %686 = vst [vmem:[#allocation2 + $0x18] sm:$0xff] %v670_v25  ;;  %694 = vst [vmem:[#allocation2 + $0x38] sm:$0xff] %v678_v26  ;;  %v1080_v31 = vadd.f32 %v1079_v28, %v1078_v23  ;;  %v1104_v32 = vadd.f32 %v1103_v30, %v1102_v24 }
 0x124   : > { %v1081_v33 = vpop.f32.mrf.mxu0  ;;  %v1105_v34 = vpop.f32.mrf.mxu1 }
 0x125   : > { %v671_v35 = vadd.f32 %v1080_v31, %v334_v27  ;;  %v679_v36 = vadd.f32 %v1104_v32, %v342_v29 }
 0x126   : > { %v1082_v38 = vpop.f32.mrf.mxu0  ;;  %v1106_v40 = vpop.f32.mrf.mxu1 }
 0x127   : > { %687 = vst [vmem:[#allocation2 + $0x50] sm:$0xff] %v671_v35  ;;  %695 = vst [vmem:[#allocation2 + $0x60] sm:$0xff] %v679_v36  ;;  %v1083_v41 = vadd.f32 %v1082_v38, %v1081_v33  ;;  %v1107_v42 = vadd.f32 %v1106_v40, %v1105_v34 }
 0x128   : > { %v1084_v43 = vpop.f32.mrf.mxu0  ;;  %v1108_v44 = vpop.f32.mrf.mxu1 }
 0x129   : > { %v672_v45 = vadd.f32 %v1083_v41, %v335_v37  ;;  %v680_v46 = vadd.f32 %v1107_v42, %v343_v39 }
 0x12a   : > { %v1085_v48 = vpop.f32.mrf.mxu0  ;;  %v1109_v50 = vpop.f32.mrf.mxu1 }
 0x12b   : > { %688 = vst [vmem:[#allocation2 + $0x68] sm:$0xff] %v672_v45  ;;  %696 = vst [vmem:[#allocation2 + $0x70] sm:$0xff] %v680_v46  ;;  %v1086_v51 = vadd.f32 %v1085_v48, %v1084_v43  ;;  %v1110_v52 = vadd.f32 %v1109_v50, %v1108_v44 }
 0x12c   : > { %v1087_v53 = vpop.f32.mrf.mxu0  ;;  %v1111_v54 = vpop.f32.mrf.mxu1 }
 0x12d   : > { %v673_v55 = vadd.f32 %v1086_v51, %v336_v47  ;;  %v681_v56 = vadd.f32 %v1110_v52, %v344_v49 }
 0x12e   : > { %v1088_v58 = vpop.f32.mrf.mxu0  ;;  %v1112_v60 = vpop.f32.mrf.mxu1 }
 0x12f   : > { %689 = vst [vmem:[#allocation2 + $0x8] sm:$0xff] %v673_v55  ;;  %697 = vst [vmem:[#allocation2 + $0x78] sm:$0xff] %v681_v56  ;;  %v1089_v61 = vadd.f32 %v1088_v58, %v1087_v53  ;;  %v1113_v62 = vadd.f32 %v1112_v60, %v1111_v54  ;;  %702 = sbr.rel (%p964_p11) target bundleno = 324 (0x144), region = 78 }
 0x131   : > { %v674_v63 = vadd.f32 %v1089_v61, %v337_v57  ;;  %v682_v0 = vadd.f32 %v1113_v62, %v345_v59 }
 0x133   : > { %690 = vst [vmem:[#allocation2 + $0x48] sm:$0xff] %v674_v63  ;;  %698 = vst [vmem:[#allocation2 + $0x28] sm:$0xff] %v682_v0 }
 0x134   : > { %v703_v1 = vld [vmem:[#allocation2 + $0x30] sm:$0xff]  ;;  %v704_v2 = vld [vmem:[#allocation2] sm:$0xff]  ;;  %v705_v6 = vld [vmem:[#allocation2 + $0x58] sm:$0xff] }
 0x135   : > { %v965_v3 = vld [vmem:[%s1422_s2] ss:$0 sm:$0xff]  ;;  %v706_v7 = vld [vmem:[#allocation2 + $0x18] sm:$0xff]  ;;  %v707_v8 = vld [vmem:[#allocation2 + $0x50] sm:$0xff] }
 0x136   : > { %v726_v4 = vadd.f32 %v965_v3, %v703_v1  ;;  %v727_v5 = vadd.f32 %v965_v3, %v704_v2  ;;  %v728_v9 = vadd.f32 %v965_v3, %v705_v6  ;;  %v729_v10 = vadd.f32 %v965_v3, %v706_v7  ;;  %v708_v11 = vld [vmem:[#allocation2 + $0x68] sm:$0xff]  ;;  %v711_v19 = vld [vmem:[#allocation2 + $0x40] sm:$0xff]  ;;  %v713_v21 = vld [vmem:[#allocation2 + $0x10] sm:$0xff] }
 0x137   : > { %v730_v12 = vadd.f32 %v965_v3, %v707_v8  ;;  %v709_v13 = vld [vmem:[#allocation2 + $0x8] sm:$0xff]  ;;  %v731_v17 = vadd.f32 %v965_v3, %v708_v11  ;;  %v712_v20 = vld [vmem:[#allocation2 + $0x20] sm:$0xff]  ;;  %v714_v26 = vld [vmem:[#allocation2 + $0x38] sm:$0xff]  ;;  %v734_v31 = vadd.f32 %v965_v3, %v711_v19  ;;  %v736_v36 = vadd.f32 %v965_v3, %v713_v21 }
 0x138   : > { %v742_v15 = vmax.f32 %v726_v4, 0.0  ;;  %v743_v16 = vmax.f32 %v727_v5, 0.0  ;;  %v732_v18 = vadd.f32 %v965_v3, %v709_v13  ;;  %v744_v22 = vmax.f32 %v728_v9, 0.0  ;;  %v715_v27 = vld [vmem:[#allocation2 + $0x60] sm:$0xff]  ;;  %v716_v32 = vld [vmem:[#allocation2 + $0x70] sm:$0xff]  ;;  %v717_v37 = vld [vmem:[#allocation2 + $0x78] sm:$0xff] }
 0x139   : > { %v745_v23 = vmax.f32 %v729_v10, 0.0  ;;  %v746_v24 = vmax.f32 %v730_v12, 0.0  ;;  %v747_v29 = vmax.f32 %v731_v17, 0.0  ;;  %v735_v35 = vadd.f32 %v965_v3, %v712_v20 }
 0x13a   : > { %v710_v14 = vld [vmem:[#allocation2 + $0x48] sm:$0xff]  ;;  %v1006_v28 = vpack.c.bf16 %v743_v16, %v742_v15  ;;  %v748_v30 = vmax.f32 %v732_v18, 0.0  ;;  %v750_v40 = vmax.f32 %v734_v31, 0.0  ;;  %v737_v41 = vadd.f32 %v965_v3, %v714_v26 }
 0x13b   : > { %v733_v25 = vadd.f32 %v965_v3, %v710_v14  ;;  %v1011_v33 = vpack.c.bf16 %v745_v23, %v744_v22  ;;  %v718_v38 = vld [vmem:[#allocation2 + $0x28] sm:$0xff]  ;;  %v1016_v39 = vpack.c.bf16 %v747_v29, %v746_v24  ;;  %v738_v42 = vadd.f32 %v965_v3, %v715_v27 }
 0x13c   : > { %1007 = vst [vmem:[%s1423_s3] sm:$0xff] %v1006_v28   ;;  %v751_v44 = vmax.f32 %v735_v35, 0.0  ;;  %v752_v45 = vmax.f32 %v736_v36, 0.0  ;;  %v739_v46 = vadd.f32 %v965_v3, %v716_v32  ;;  %v753_v47 = vmax.f32 %v737_v41, 0.0 }
 0x13d   : > { %v749_v34 = vmax.f32 %v733_v25, 0.0  ;;  %1043 = vst [vmem:[%s1423_s3 + $0x8] sm:$0xff] %v1011_v33   ;;  %1044 = vst [vmem:[%s1423_s3 + $0x10] sm:$0xff] %v1016_v39   ;;  %v754_v48 = vmax.f32 %v738_v42, 0.0  ;;  %v740_v49 = vadd.f32 %v965_v3, %v717_v37  ;;  %v741_v50 = vadd.f32 %v965_v3, %v718_v38 }
 0x13e   : > { %v1026_v51 = vpack.c.bf16 %v751_v44, %v750_v40  ;;  %v755_v52 = vmax.f32 %v739_v46, 0.0  ;;  %v1031_v53 = vpack.c.bf16 %v753_v47, %v752_v45 }
 0x13f   : > { %v1021_v43 = vpack.c.bf16 %v749_v34, %v748_v30  ;;  %v756_v54 = vmax.f32 %v740_v49, 0.0  ;;  %v757_v55 = vmax.f32 %v741_v50, 0.0 }
 0x140   : > { %1046 = vst [vmem:[%s1423_s3 + $0x20] sm:$0xff] %v1026_v51   ;;  %v1036_v56 = vpack.c.bf16 %v755_v52, %v754_v48  ;;  %1047 = vst [vmem:[%s1423_s3 + $0x28] sm:$0xff] %v1031_v53  }
 0x141   : > { %1045 = vst [vmem:[%s1423_s3 + $0x18] sm:$0xff] %v1021_v43   ;;  %v1041_v57 = vpack.c.bf16 %v757_v55, %v756_v54 }
 0x142   : > { %1048 = vst [vmem:[%s1423_s3 + $0x30] sm:$0xff] %v1036_v56  }
 0x143   : > { %1049 = vst [vmem:[%s1423_s3 + $0x38] sm:$0xff] %v1041_v57  }
 0x144 PF: > { %s13_s16 = sadd.s32 1, %s1249_s16   ;;  %s1424_s12 = smov %s1237_s13 }
 0x145   : > { %p10_p12 = scmp.ge.s32.totalorder %s13_s16, 5   ;;  %s1425_s13 = smov %s1307_s20 }
 0x146   : > { %s1426_s14 = smov %s1245_s15  ;;  %s1427_s15 = smov %s1429_s17 }
 0x147   :  { %12 = sbr.rel (!%p10_p12) target bundleno = 3 (0x3), region = 116 }

// kernel: resnet18_forward.27
= control target key start
LH: loop header
LB: loop body
LE: loop exit
PB: predicated region body
PF: predicated region fallthrough
CT: control target
= control target key end

     0   :  { %s705_s1 = inlined_call_operand.vmem [shape: bf16[128,128], index: 1, kind: input, shape index: {}]   ;;  %s706_s0 = inlined_call_operand.vmem [shape: bf16[128,128], index: 0, kind: input, shape index: {}]   ;;  %s707_s2 = inlined_call_operand.vmem [shape: f32[1,128], index: 2, kind: input, shape index: {}]   ;;  %s708_s3 = inlined_call_operand.vmem [shape: bf16[128,128], index: 3, kind: output, shape index: {}]  }
   0x1   :  { %v594_v0 = vld [vmem:[%s705_s1 + $0x38] sm:$0xff]   ;;  %v595_v1 = vld [vmem:[%s705_s1 + $0x30] sm:$0xff]   ;;  %v596_v2 = vld [vmem:[%s705_s1 + $0x28] sm:$0xff]  }
   0x2   :  { %546 = vmatprep.subr.bf16.mxu0 %v594_v0  ;;  %578 = vmatprep.subr.bf16.mxu1 %v594_v0  ;;  %v597_v3 = vld [vmem:[%s705_s1 + $0x20] sm:$0xff]   ;;  %v598_v6 = vld [vmem:[%s705_s1 + $0x18] sm:$0xff]   ;;  %v599_v7 = vld [vmem:[%s705_s1 + $0x10] sm:$0xff]  }
   0x3   :  { %547 = vmatpush3.bf16.msra.mxu0 %v594_v0  ;;  %586 = vmatpush3.bf16.msra.mxu1 %v594_v0  ;;  %v602_v4 = vld [vmem:[%s706_s0] sm:$0xff]   ;;  %v600_v8 = vld [vmem:[%s705_s1 + $0x8] sm:$0xff]   ;;  %v606_v12 = vld [vmem:[%s706_s0 + $0x10] sm:$0xff]  }
   0x4   :  { %548 = vmatprep.subr.bf16.mxu0 %v595_v1  ;;  %579 = vmatprep.subr.bf16.mxu1 %v595_v1  ;;  %v603_v5 = vld [vmem:[%s706_s0 + $0x20] sm:$0xff]   ;;  %v604_v10 = vld [vmem:[%s706_s0 + $0x8] sm:$0xff]   ;;  %v607_v13 = vld [vmem:[%s706_s0 + $0x30] sm:$0xff]  }
   0x5   :  { %562 = vmatprep.mubr.bf16.mxu0 %v602_v4  ;;  %570 = vmatprep.mubr.bf16.mxu1 %v603_v5  ;;  %v601_v9 = vld [vmem:[%s705_s1] sm:$0xff]   ;;  %v605_v11 = vld [vmem:[%s706_s0 + $0x28] sm:$0xff]   ;;  %v608_v14 = vld [vmem:[%s706_s0 + $0x18] sm:$0xff]  }
   0x6   :  { %v609_v15 = vld [vmem:[%s706_s0 + $0x38] sm:$0xff]   ;;  %v450_v18 = vld [vmem:[%s707_s2] ss:$0 sm:$0xff] }
   0x7   :  { %549 = vmatpush3.bf16.msra.mxu0 %v595_v1  ;;  %587 = vmatpush3.bf16.msra.mxu1 %v595_v1 }
   0x8   :  { %550 = vmatprep.subr.bf16.mxu0 %v596_v2  ;;  %580 = vmatprep.subr.bf16.mxu1 %v596_v2 }
   0xb   :  { %551 = vmatpush3.bf16.msra.mxu0 %v596_v2  ;;  %588 = vmatpush3.bf16.msra.mxu1 %v596_v2 }
   0xc   :  { %552 = vmatprep.subr.bf16.mxu0 %v597_v3  ;;  %581 = vmatprep.subr.bf16.mxu1 %v597_v3 }
   0xf   :  { %553 = vmatpush3.bf16.msra.mxu0 %v597_v3  ;;  %589 = vmatpush3.bf16.msra.mxu1 %v597_v3 }
  0x10   :  { %554 = vmatprep.subr.bf16.mxu0 %v598_v6  ;;  %582 = vmatprep.subr.bf16.mxu1 %v598_v6 }
  0x13   :  { %555 = vmatpush3.bf16.msra.mxu0 %v598_v6  ;;  %590 = vmatpush3.bf16.msra.mxu1 %v598_v6 }
  0x14   :  { %556 = vmatprep.subr.bf16.mxu0 %v599_v7  ;;  %583 = vmatprep.subr.bf16.mxu1 %v599_v7 }
  0x17   :  { %557 = vmatpush3.bf16.msra.mxu0 %v599_v7  ;;  %591 = vmatpush3.bf16.msra.mxu1 %v599_v7 }
  0x18   :  { %558 = vmatprep.subr.bf16.mxu0 %v600_v8  ;;  %584 = vmatprep.subr.bf16.mxu1 %v600_v8 }
  0x1b   :  { %559 = vmatpush3.bf16.msra.mxu0 %v600_v8  ;;  %592 = vmatpush3.bf16.msra.mxu1 %v600_v8 }
  0x1c   :  { %560 = vmatprep.subr.bf16.mxu0 %v601_v9  ;;  %585 = vmatprep.subr.bf16.mxu1 %v601_v9 }
  0x1f   :  { %561 = vmatpush3.bf16.msra.mxu0 %v601_v9  ;;  %593 = vmatpush3.bf16.msra.mxu1 %v601_v9 }
  0x22   :  { %563 = vmatmul.mubr.bf16.vlgmr.msra.gmra.mxu0 %v604_v10  ;;  %571 = vmatmul.mubr.bf16.vlgmr.msra.gmra.mxu1 %v605_v11 }
  0x23   :  { %566 = vmatprep.mubr.bf16.mxu0 %v606_v12  ;;  %574 = vmatprep.mubr.bf16.mxu1 %v607_v13 }
  0x2a   :  { %567 = vmatmul.mubr.bf16.gmra.mxu0 %v608_v14  ;;  %575 = vmatmul.mubr.bf16.gmra.mxu1 %v609_v15 }
  0xe2   :  { %v564_v16 = vpop.f32.mrf.mxu0  ;;  %v572_v17 = vpop.f32.mrf.mxu1 }
  0xe3   :  { %v336_v23 = vadd.f32 %v564_v16, %v450_v18  ;;  %v344_v24 = vadd.f32 %v572_v17, %v450_v18 }
  0xe4   :  { %v213_v19 = vpop.f32.mrf.mxu0  ;;  %v245_v20 = vpop.f32.mrf.mxu1 }
  0xe5   :  { %v334_v27 = vadd.f32 %v450_v18, %v213_v19  ;;  %v342_v28 = vadd.f32 %v450_v18, %v245_v20 }
  0xe6   :  { %v565_v21 = vpop.f32.mrf.mxu0  ;;  %v573_v22 = vpop.f32.mrf.mxu1 }
  0xe7   :  { %v337_v25 = vadd.f32 %v565_v21, %v450_v18  ;;  %v345_v26 = vadd.f32 %v573_v22, %v450_v18 }
  0xe8   :  { %v216_v29 = vpop.f32.mrf.mxu0  ;;  %v248_v30 = vpop.f32.mrf.mxu1 }
  0xe9   :  { %v491_v31 = vpack.c.bf16 %v337_v25, %v336_v23  ;;  %v511_v32 = vpack.c.bf16 %v345_v26, %v344_v24  ;;  %v335_v33 = vadd.f32 %v450_v18, %v216_v29  ;;  %v343_v34 = vadd.f32 %v450_v18, %v248_v30 }
  0xea   :  { %v568_v35 = vpop.f32.mrf.mxu0  ;;  %v576_v36 = vpop.f32.mrf.mxu1 }
  0xeb   :  { %523 = vst [vmem:[%s708_s3 + $0x8] sm:$0xff] %v491_v31   ;;  %527 = vst [vmem:[%s708_s3 + $0x28] sm:$0xff] %v511_v32   ;;  %v486_v37 = vpack.c.bf16 %v335_v33, %v334_v27  ;;  %v506_v38 = vpack.c.bf16 %v343_v34, %v342_v28  ;;  %v340_v43 = vadd.f32 %v568_v35, %v450_v18 }
  0xec   :  { %v229_v39 = vpop.f32.mrf.mxu0  ;;  %v261_v40 = vpop.f32.mrf.mxu1  ;;  %v348_v44 = vadd.f32 %v576_v36, %v450_v18 }
  0xed   :  { %487 = vst [vmem:[%s708_s3] sm:$0xff] %v486_v37   ;;  %526 = vst [vmem:[%s708_s3 + $0x20] sm:$0xff] %v506_v38   ;;  %v338_v47 = vadd.f32 %v450_v18, %v229_v39  ;;  %v346_v48 = vadd.f32 %v450_v18, %v261_v40 }
  0xee   :  { %v569_v41 = vpop.f32.mrf.mxu0  ;;  %v577_v42 = vpop.f32.mrf.mxu1 }
  0xef   :  { %v341_v45 = vadd.f32 %v569_v41, %v450_v18  ;;  %v349_v46 = vadd.f32 %v577_v42, %v450_v18 }
  0xf0   :  { %v232_v49 = vpop.f32.mrf.mxu0  ;;  %v264_v50 = vpop.f32.mrf.mxu1 }
  0xf1   :  { %v501_v51 = vpack.c.bf16 %v341_v45, %v340_v43  ;;  %v521_v52 = vpack.c.bf16 %v349_v46, %v348_v44  ;;  %v339_v53 = vadd.f32 %v450_v18, %v232_v49  ;;  %v347_v54 = vadd.f32 %v450_v18, %v264_v50 }
  0xf3   :  { %525 = vst [vmem:[%s708_s3 + $0x18] sm:$0xff] %v501_v51   ;;  %529 = vst [vmem:[%s708_s3 + $0x38] sm:$0xff] %v521_v52   ;;  %v496_v55 = vpack.c.bf16 %v339_v53, %v338_v47  ;;  %v516_v56 = vpack.c.bf16 %v347_v54, %v346_v48 }
  0xf5   :  { %524 = vst [vmem:[%s708_s3 + $0x10] sm:$0xff] %v496_v55   ;;  %528 = vst [vmem:[%s708_s3 + $0x30] sm:$0xff] %v516_v56  }

// kernel: resnet18_forward.28
= control target key start
LH: loop header
LB: loop body
LE: loop exit
PB: predicated region body
PF: predicated region fallthrough
CT: control target
= control target key end

     0   :  { %s1429_s15 = smov 0   ;;  %s1431_s16 = smov 0   ;;  %s1619_s0 = inlined_call_operand.vmem [shape: bf16[128,1280], index: 0, kind: input, shape index: {}]   ;;  %s1620_s1 = inlined_call_operand.vmem [shape: bf16[1280,128], index: 1, kind: input, shape index: {}]   ;;  %s1621_s2 = inlined_call_operand.vmem [shape: f32[1,128], index: 2, kind: input, shape index: {}]   ;;  %s1622_s3 = inlined_call_operand.vmem [shape: bf16[128,128], index: 3, kind: input, shape index: {}]   ;;  %s1623_s4 = inlined_call_operand.vmem [shape: bf16[128,128], index: 4, kind: output, shape index: {}]  }
   0x1   :  { %s1433_s17 = smov 0   ;;  %s1435_s18 = smov 0  }
   0x2   :  { %s1437_s19 = smov 0  }
   0x3 LB: > { %s23_s20 = sadd.s32 1, %s1397_s18  ;;  %p42_p1 = scmp.ne.s32.totalorder %s1389_s16, %s1385_s15  ;;  %s1401_s19 = sphi %s1437_s19, %s14_s19   ;;  %s1397_s18 = sphi %s1435_s18, %s1627_s18   ;;  %s1393_s17 = sphi %s1433_s17, %s1626_s17   ;;  %s1389_s16 = sphi %s1431_s16, %s1625_s16   ;;  %s1385_s15 = sphi %s1429_s15, %s1624_s15  }
   0x4   : > { %p24_p0 = scmp.ge.s32.totalorder %s23_s20, 5  ;;  %p43_p2 = scmp.eq.s32.totalorder %s1401_s19, 0 }
   0x5   : > { %s35_s22 = sadd.s32 1, %s1389_s16  ;;  %p1036_p5 = scmp.ge.s32.totalorder %s1401_s19, 5 }
   0x6   : > { %s1629_s20 = smov (%p24_p0, %s23_s20), 0  ;;  %p44_p3 = por %p43_p2, %p42_p1 }
   0x7   : > { %s31_s21 = ssub.s32 %s1397_s18, %s1629_s20  ;;  %179 = sbr.rel (%p1036_p5) target bundleno = 24 (0x18), region = 24 }
   0x8   : > { %p33_p4 = scmp.eq.s32.totalorder %s31_s21, 0 }
   0xa   : > { %s1464_s23 = scalar_select %p33_p4, %s1389_s16, %s35_s22  }
   0xc   : > { %182 = sbr.rel (!%p44_p3) target bundleno = 24 (0x18), region = 28  ;;  %s184_s24 = sand.u32 (%p44_p3), 1, %s1389_s16  }
   0xd   : > { %s1099_s25 = sshll.u32 (%p44_p3), %s1397_s18, 3  ;;  %s1037_s26 = sshll.u32 (%p44_p3), %s184_s24, 7 }
   0xe   : > { %s1472_s29 = scalar_lea.vmem (%p44_p3), %s1619_s0, %s1099_s25  ;;  %s186_s30 = scalar_lea.vmem (%p44_p3), [#allocation3], %s1037_s26 }
   0xf   : > { %v251_v0 = vld [vmem:[%s1472_s29] sm:$0xff] (%p44_p3)  ;;  %v253_v1 = vld [vmem:[%s1472_s29 + $0x28] sm:$0xff] (%p44_p3)  ;;  %v255_v2 = vld [vmem:[%s1472_s29 + $0x50] sm:$0xff] (%p44_p3) }
  0x10   : > { %252 = vst [vmem:[%s186_s30] sm:$0xff] (%p44_p3), %v251_v0  ;;  %254 = vst [vmem:[%s186_s30 + $0x8] sm:$0xff] (%p44_p3), %v253_v1  ;;  %v257_v3 = vld [vmem:[%s1472_s29 + $0x78] sm:$0xff] (%p44_p3)  ;;  %v259_v4 = vld [vmem:[%s1472_s29 + $0xa0] sm:$0xff] (%p44_p3) }
  0x11   : > { %256 = vst [vmem:[%s186_s30 + $0x10] sm:$0xff] %v255_v2  ;;  %v261_v5 = vld [vmem:[%s1472_s29 + $0xc8] sm:$0xff]  ;;  %258 = vst [vmem:[%s186_s30 + $0x18] sm:$0xff] %v257_v3  ;;  %v263_v6 = vld [vmem:[%s1472_s29 + $0xf0] sm:$0xff] }
  0x12   : > { %260 = vst [vmem:[%s186_s30 + $0x20] sm:$0xff] %v259_v4  ;;  %262 = vst [vmem:[%s186_s30 + $0x28] sm:$0xff] %v261_v5  ;;  %v265_v7 = vld [vmem:[%s1472_s29 + $0x118] sm:$0xff]  ;;  %v267_v8 = vld [vmem:[%s1472_s29 + $0x140] sm:$0xff] }
  0x13   : > { %264 = vst [vmem:[%s186_s30 + $0x30] sm:$0xff] %v263_v6  ;;  %266 = vst [vmem:[%s186_s30 + $0x38] sm:$0xff] %v265_v7  ;;  %v269_v9 = vld [vmem:[%s1472_s29 + $0x168] sm:$0xff]  ;;  %v271_v10 = vld [vmem:[%s1472_s29 + $0x190] sm:$0xff] }
  0x14   : > { %268 = vst [vmem:[%s186_s30 + $0x40] sm:$0xff] %v267_v8  ;;  %v273_v11 = vld [vmem:[%s1472_s29 + $0x1b8] sm:$0xff]  ;;  %270 = vst [vmem:[%s186_s30 + $0x48] sm:$0xff] %v269_v9  ;;  %v275_v12 = vld [vmem:[%s1472_s29 + $0x1e0] sm:$0xff] }
  0x15   : > { %272 = vst [vmem:[%s186_s30 + $0x50] sm:$0xff] %v271_v10  ;;  %274 = vst [vmem:[%s186_s30 + $0x58] sm:$0xff] %v273_v11  ;;  %v277_v13 = vld [vmem:[%s1472_s29 + $0x208] sm:$0xff]  ;;  %v279_v14 = vld [vmem:[%s1472_s29 + $0x230] sm:$0xff] }
  0x16   : > { %276 = vst [vmem:[%s186_s30 + $0x60] sm:$0xff] %v275_v12  ;;  %278 = vst [vmem:[%s186_s30 + $0x68] sm:$0xff] %v277_v13  ;;  %v281_v15 = vld [vmem:[%s1472_s29 + $0x258] sm:$0xff] }
  0x17   : > { %280 = vst [vmem:[%s186_s30 + $0x70] sm:$0xff] %v279_v14  ;;  %282 = vst [vmem:[%s186_s30 + $0x78] sm:$0xff] %v281_v15 }
  0x18 PF: > { %p1040_p6 = scmp.ge.s32.totalorder %s1401_s19, 1  ;;  %p296_p7 = scmp.lt.s32.totalorder %s1401_s19, 6 }
  0x1a   : > { %p297_p8 = pnand %p1040_p6, %p296_p7 }
  0x1b   : > { %s303_s5 = sand.u32 (!%p297_p8), 1, %s1385_s15   ;;  %s1042_s6 = sshll.u32 (!%p297_p8), %s1393_s17, 5 }
  0x1c   : > { %300 = sbr.rel (%p297_p8) target bundleno = 334 (0x14e), region = 70  ;;  %s1041_s7 = sshll.u32 (!%p297_p8), %s303_s5, 7 }
  0x1d   : > { %p341_p9 = scmp.lt.s32.totalorder (!%p297_p8), %s1042_s6, 159  ;;  %s1499_s12 = scalar_lea.vmem (!%p297_p8), [#allocation3], %s1041_s7 }
  0x1e   : > { %p1044_p10 = scmp.ne.s32.totalorder (!%p297_p8), %s1393_s17, 0 }
  0x21   : > { %s1631_s6 = smov (!%p341_p9, %s1042_s6), 159  ;;  %362 = sbr.rel (%p1044_p10) target bundleno = 47 (0x2f), region = 78 }
  0x22   : > { %s1043_s8 = sshll.u32 %s1631_s6, 2 }
  0x23   : > { %s1497_s11 = scalar_lea.vmem %s1620_s1, %s1043_s8 }
  0x26   : > { %v1403_v16 = vmov 0.0  }
  0x27   : > { %363 = vst [vmem:[#allocation2 + $0x30] sm:$0xff] %v1403_v16  ;;  %364 = vst [vmem:[#allocation2] sm:$0xff] %v1403_v16 }
  0x28   : > { %365 = vst [vmem:[#allocation2 + $0x58] sm:$0xff] %v1403_v16  ;;  %366 = vst [vmem:[#allocation2 + $0x18] sm:$0xff] %v1403_v16 }
  0x29   : > { %367 = vst [vmem:[#allocation2 + $0x50] sm:$0xff] %v1403_v16  ;;  %368 = vst [vmem:[#allocation2 + $0x68] sm:$0xff] %v1403_v16 }
  0x2a   : > { %369 = vst [vmem:[#allocation2 + $0x8] sm:$0xff] %v1403_v16  ;;  %370 = vst [vmem:[#allocation2 + $0x48] sm:$0xff] %v1403_v16 }
  0x2b   : > { %371 = vst [vmem:[#allocation2 + $0x40] sm:$0xff] %v1403_v16  ;;  %372 = vst [vmem:[#allocation2 + $0x20] sm:$0xff] %v1403_v16 }
  0x2c   : > { %373 = vst [vmem:[#allocation2 + $0x10] sm:$0xff] %v1403_v16  ;;  %374 = vst [vmem:[#allocation2 + $0x38] sm:$0xff] %v1403_v16 }
  0x2d   : > { %375 = vst [vmem:[#allocation2 + $0x60] sm:$0xff] %v1403_v16  ;;  %376 = vst [vmem:[#allocation2 + $0x70] sm:$0xff] %v1403_v16 }
  0x2e   : > { %377 = vst [vmem:[#allocation2 + $0x78] sm:$0xff] %v1403_v16  ;;  %378 = vst [vmem:[#allocation2 + $0x28] sm:$0xff] %v1403_v16 }
  0x2f PF: > { %v1323_v17 = vld [vmem:[%s1497_s11 + $0x78] sm:$0xff]   ;;  %v1325_v19 = vld [vmem:[%s1497_s11 + $0x70] sm:$0xff]   ;;  %v1327_v21 = vld [vmem:[%s1497_s11 + $0x68] sm:$0xff]   ;;  %p1077_p11 = scmp.ne.s32.totalorder %s1393_s17, 4 }
  0x30   : > { %v1324_v18 = vld [vmem:[%s1497_s11 + $0x38] sm:$0xff]   ;;  %1202 = vmatprep.subr.bf16.mxu0 %v1323_v17  ;;  %1266 = vmatprep.subr.bf16.mxu1 %v1323_v17  ;;  %v1326_v20 = vld [vmem:[%s1497_s11 + $0x30] sm:$0xff]   ;;  %v1328_v22 = vld [vmem:[%s1497_s11 + $0x28] sm:$0xff]  }
  0x31   : > { %1203 = vmatpush3.bf16.msra.mxu0 %v1324_v18  ;;  %1274 = vmatpush3.bf16.msra.mxu1 %v1324_v18  ;;  %v1329_v23 = vld [vmem:[%s1497_s11 + $0x60] sm:$0xff]   ;;  %v1331_v25 = vld [vmem:[%s1497_s11 + $0x58] sm:$0xff]   ;;  %v1333_v27 = vld [vmem:[%s1497_s11 + $0x50] sm:$0xff]  }
  0x32   : > { %1204 = vmatprep.subr.bf16.mxu0 %v1325_v19  ;;  %1267 = vmatprep.subr.bf16.mxu1 %v1325_v19  ;;  %v1330_v24 = vld [vmem:[%s1497_s11 + $0x20] sm:$0xff]   ;;  %v1332_v26 = vld [vmem:[%s1497_s11 + $0x18] sm:$0xff]   ;;  %v1334_v30 = vld [vmem:[%s1497_s11 + $0x10] sm:$0xff]  }
  0x33   : > { %v1341_v28 = vld [vmem:[%s1499_s12 + $0x4] ss:$8 sps:$4 sm:$0xff]   ;;  %v1339_v35 = vld [vmem:[%s1499_s12] ss:$8 sps:$4 sm:$0xff]   ;;  %v1345_v37 = vld [vmem:[%s1499_s12 + $0x14] ss:$8 sps:$4 sm:$0xff]  }
  0x34   : > { %v1344_v29 = vld [vmem:[%s1499_s12 + $0x44] ss:$8 sps:$4 sm:$0xff]   ;;  %651 = vmatprep.mubr.bf16.mxu0 %v1341_v28  ;;  %v1342_v36 = vld [vmem:[%s1499_s12 + $0x40] ss:$8 sps:$4 sm:$0xff]   ;;  %v1347_v38 = vld [vmem:[%s1499_s12 + $0x54] ss:$8 sps:$4 sm:$0xff]  }
  0x35   : > { %1205 = vmatpush3.bf16.msra.mxu0 %v1326_v20  ;;  %1275 = vmatpush3.bf16.msra.mxu1 %v1326_v20  ;;  %v1335_v31 = vld [vmem:[%s1497_s11 + $0x48] sm:$0xff]   ;;  %v1337_v33 = vld [vmem:[%s1497_s11 + $0x40] sm:$0xff]   ;;  %v1349_v39 = vld [vmem:[%s1499_s12 + $0x10] ss:$8 sps:$4 sm:$0xff]  }
  0x36   : > { %1206 = vmatprep.subr.bf16.mxu0 %v1327_v21  ;;  %1268 = vmatprep.subr.bf16.mxu1 %v1327_v21  ;;  %v1336_v32 = vld [vmem:[%s1497_s11 + $0x8] sm:$0xff]   ;;  %v1338_v34 = vld [vmem:[%s1497_s11] sm:$0xff]   ;;  %v1350_v40 = vld [vmem:[%s1499_s12 + $0x50] ss:$8 sps:$4 sm:$0xff]  }
  0x37   : > { %683 = vmatprep.mubr.bf16.mxu1 %v1344_v29  ;;  %v1351_v41 = vld [vmem:[%s1499_s12 + $0x24] ss:$8 sps:$4 sm:$0xff]   ;;  %v1355_v43 = vld [vmem:[%s1499_s12 + $0x20] ss:$8 sps:$4 sm:$0xff]   ;;  %v1357_v45 = vld [vmem:[%s1499_s12 + $0x34] ss:$8 sps:$4 sm:$0xff]  }
  0x38   : > { %v1353_v42 = vld [vmem:[%s1499_s12 + $0x64] ss:$8 sps:$4 sm:$0xff]   ;;  %v1356_v44 = vld [vmem:[%s1499_s12 + $0x60] ss:$8 sps:$4 sm:$0xff]   ;;  %v1359_v46 = vld [vmem:[%s1499_s12 + $0x74] ss:$8 sps:$4 sm:$0xff]  }
  0x39   : > { %1207 = vmatpush3.bf16.msra.mxu0 %v1328_v22  ;;  %1276 = vmatpush3.bf16.msra.mxu1 %v1328_v22  ;;  %v1361_v47 = vld [vmem:[%s1499_s12 + $0x30] ss:$8 sps:$4 sm:$0xff]   ;;  %v387_v53 = vld [vmem:[#allocation2 + $0x40] sm:$0xff] }
  0x3a   : > { %1208 = vmatprep.subr.bf16.mxu0 %v1329_v23  ;;  %1269 = vmatprep.subr.bf16.mxu1 %v1329_v23  ;;  %v1362_v48 = vld [vmem:[%s1499_s12 + $0x70] ss:$8 sps:$4 sm:$0xff]   ;;  %v380_v61 = vld [vmem:[#allocation2] sm:$0xff] }
  0x3b   : > { %v379_v51 = vld [vmem:[#allocation2 + $0x30] sm:$0xff]  ;;  %v388_v63 = vld [vmem:[#allocation2 + $0x20] sm:$0xff]  ;;  %v381_v7 = vld [vmem:[#allocation2 + $0x58] sm:$0xff] }
  0x3c   : > { %v389_v9 = vld [vmem:[#allocation2 + $0x10] sm:$0xff]  ;;  %v382_v17 = vld [vmem:[#allocation2 + $0x18] sm:$0xff]  ;;  %v391_v29 = vld [vmem:[#allocation2 + $0x60] sm:$0xff] }
  0x3d   : > { %1209 = vmatpush3.bf16.msra.mxu0 %v1330_v24  ;;  %1277 = vmatpush3.bf16.msra.mxu1 %v1330_v24  ;;  %v390_v19 = vld [vmem:[#allocation2 + $0x38] sm:$0xff] }
  0x3e   : > { %1210 = vmatprep.subr.bf16.mxu0 %v1331_v25  ;;  %1270 = vmatprep.subr.bf16.mxu1 %v1331_v25 }
  0x41   : > { %1211 = vmatpush3.bf16.msra.mxu0 %v1332_v26  ;;  %1278 = vmatpush3.bf16.msra.mxu1 %v1332_v26 }
  0x42   : > { %1212 = vmatprep.subr.bf16.mxu0 %v1333_v27  ;;  %1271 = vmatprep.subr.bf16.mxu1 %v1333_v27  ;;  %v383_v27 = vld [vmem:[#allocation2 + $0x50] sm:$0xff] }
  0x45   : > { %1213 = vmatpush3.bf16.msra.mxu0 %v1334_v30  ;;  %1279 = vmatpush3.bf16.msra.mxu1 %v1334_v30 }
  0x46   : > { %1214 = vmatprep.subr.bf16.mxu0 %v1335_v31  ;;  %1272 = vmatprep.subr.bf16.mxu1 %v1335_v31 }
  0x49   : > { %1215 = vmatpush3.bf16.msra.mxu0 %v1336_v32  ;;  %1280 = vmatpush3.bf16.msra.mxu1 %v1336_v32 }
  0x4a   : > { %1216 = vmatprep.subr.bf16.mxu0 %v1337_v33  ;;  %1273 = vmatprep.subr.bf16.mxu1 %v1337_v33 }
  0x4d   : > { %1217 = vmatpush3.bf16.msra.mxu0 %v1338_v34  ;;  %1281 = vmatpush3.bf16.msra.mxu1 %v1338_v34 }
  0x50   : > { %652 = vmatmul.mubr.bf16.vlgmr.msra.gmra.mxu0 %v1339_v35  ;;  %684 = vmatmul.mubr.bf16.vlgmr.msra.gmra.mxu1 %v1342_v36 }
  0x51   : > { %659 = vmatprep.mubr.bf16.mxu0 %v1345_v37  ;;  %691 = vmatprep.mubr.bf16.mxu1 %v1347_v38  ;;  %v384_v37 = vld [vmem:[#allocation2 + $0x68] sm:$0xff] }
  0x58   : > { %660 = vmatmul.mubr.bf16.gmra.mxu0 %v1349_v39  ;;  %692 = vmatmul.mubr.bf16.gmra.mxu1 %v1350_v40  ;;  %v392_v39 = vld [vmem:[#allocation2 + $0x70] sm:$0xff] }
  0x59   : > { %667 = vmatprep.mubr.bf16.mxu0 %v1351_v41  ;;  %699 = vmatprep.mubr.bf16.mxu1 %v1353_v42 }
  0x60   : > { %668 = vmatmul.mubr.bf16.gmra.mxu0 %v1355_v43  ;;  %700 = vmatmul.mubr.bf16.gmra.mxu1 %v1356_v44 }
  0x61   : > { %675 = vmatprep.mubr.bf16.mxu0 %v1357_v45  ;;  %707 = vmatprep.mubr.bf16.mxu1 %v1359_v46 }
  0x68   : > { %676 = vmatmul.mubr.bf16.gmra.mxu0 %v1361_v47  ;;  %708 = vmatmul.mubr.bf16.gmra.mxu1 %v1362_v48  ;;  %v385_v47 = vld [vmem:[#allocation2 + $0x8] sm:$0xff] }
 0x110   : > { %v1218_v49 = vpop.f32.mrf.mxu0  ;;  %v1242_v50 = vpop.f32.mrf.mxu1 }
 0x112   : > { %v1219_v52 = vpop.f32.mrf.mxu0  ;;  %v1243_v54 = vpop.f32.mrf.mxu1 }
 0x113   : > { %v1220_v55 = vadd.f32 %v1219_v52, %v1218_v49  ;;  %v1244_v56 = vadd.f32 %v1243_v54, %v1242_v50  ;;  %v393_v49 = vld [vmem:[#allocation2 + $0x78] sm:$0xff] }
 0x114   : > { %v1221_v57 = vpop.f32.mrf.mxu0  ;;  %v1245_v58 = vpop.f32.mrf.mxu1 }
 0x115   : > { %v716_v59 = vadd.f32 %v1220_v55, %v379_v51  ;;  %v724_v60 = vadd.f32 %v1244_v56, %v387_v53 }
 0x116   : > { %v1222_v62 = vpop.f32.mrf.mxu0  ;;  %v1246_v0 = vpop.f32.mrf.mxu1 }
 0x117   : > { %732 = vst [vmem:[#allocation2 + $0x30] sm:$0xff] %v716_v59  ;;  %740 = vst [vmem:[#allocation2 + $0x40] sm:$0xff] %v724_v60  ;;  %v1223_v1 = vadd.f32 %v1222_v62, %v1221_v57  ;;  %v1247_v2 = vadd.f32 %v1246_v0, %v1245_v58  ;;  %v386_v57 = vld [vmem:[#allocation2 + $0x48] sm:$0xff] }
 0x118   : > { %v1224_v3 = vpop.f32.mrf.mxu0  ;;  %v1248_v4 = vpop.f32.mrf.mxu1  ;;  %v394_v59 = vld [vmem:[#allocation2 + $0x28] sm:$0xff] }
 0x119   : > { %v717_v5 = vadd.f32 %v1223_v1, %v380_v61  ;;  %v725_v6 = vadd.f32 %v1247_v2, %v388_v63 }
 0x11a   : > { %v1225_v8 = vpop.f32.mrf.mxu0  ;;  %v1249_v10 = vpop.f32.mrf.mxu1 }
 0x11b   : > { %733 = vst [vmem:[#allocation2] sm:$0xff] %v717_v5  ;;  %741 = vst [vmem:[#allocation2 + $0x20] sm:$0xff] %v725_v6  ;;  %v1226_v11 = vadd.f32 %v1225_v8, %v1224_v3  ;;  %v1250_v12 = vadd.f32 %v1249_v10, %v1248_v4 }
 0x11c   : > { %v1227_v13 = vpop.f32.mrf.mxu0  ;;  %v1251_v14 = vpop.f32.mrf.mxu1 }
 0x11d   : > { %v718_v15 = vadd.f32 %v1226_v11, %v381_v7  ;;  %v726_v16 = vadd.f32 %v1250_v12, %v389_v9 }
 0x11e   : > { %v1228_v18 = vpop.f32.mrf.mxu0  ;;  %v1252_v20 = vpop.f32.mrf.mxu1 }
 0x11f   : > { %734 = vst [vmem:[#allocation2 + $0x58] sm:$0xff] %v718_v15  ;;  %742 = vst [vmem:[#allocation2 + $0x10] sm:$0xff] %v726_v16  ;;  %v1229_v21 = vadd.f32 %v1228_v18, %v1227_v13  ;;  %v1253_v22 = vadd.f32 %v1252_v20, %v1251_v14 }
 0x120   : > { %v1230_v23 = vpop.f32.mrf.mxu0  ;;  %v1254_v24 = vpop.f32.mrf.mxu1 }
 0x121   : > { %v719_v25 = vadd.f32 %v1229_v21, %v382_v17  ;;  %v727_v26 = vadd.f32 %v1253_v22, %v390_v19 }
 0x122   : > { %v1231_v28 = vpop.f32.mrf.mxu0  ;;  %v1255_v30 = vpop.f32.mrf.mxu1 }
 0x123   : > { %735 = vst [vmem:[#allocation2 + $0x18] sm:$0xff] %v719_v25  ;;  %743 = vst [vmem:[#allocation2 + $0x38] sm:$0xff] %v727_v26  ;;  %v1232_v31 = vadd.f32 %v1231_v28, %v1230_v23  ;;  %v1256_v32 = vadd.f32 %v1255_v30, %v1254_v24 }
 0x124   : > { %v1233_v33 = vpop.f32.mrf.mxu0  ;;  %v1257_v34 = vpop.f32.mrf.mxu1 }
 0x125   : > { %v720_v35 = vadd.f32 %v1232_v31, %v383_v27  ;;  %v728_v36 = vadd.f32 %v1256_v32, %v391_v29 }
 0x126   : > { %v1234_v38 = vpop.f32.mrf.mxu0  ;;  %v1258_v40 = vpop.f32.mrf.mxu1 }
 0x127   : > { %736 = vst [vmem:[#allocation2 + $0x50] sm:$0xff] %v720_v35  ;;  %744 = vst [vmem:[#allocation2 + $0x60] sm:$0xff] %v728_v36  ;;  %v1235_v41 = vadd.f32 %v1234_v38, %v1233_v33  ;;  %v1259_v42 = vadd.f32 %v1258_v40, %v1257_v34 }
 0x128   : > { %v1236_v43 = vpop.f32.mrf.mxu0  ;;  %v1260_v44 = vpop.f32.mrf.mxu1 }
 0x129   : > { %v721_v45 = vadd.f32 %v1235_v41, %v384_v37  ;;  %v729_v46 = vadd.f32 %v1259_v42, %v392_v39 }
 0x12a   : > { %v1237_v48 = vpop.f32.mrf.mxu0  ;;  %v1261_v50 = vpop.f32.mrf.mxu1 }
 0x12b   : > { %737 = vst [vmem:[#allocation2 + $0x68] sm:$0xff] %v721_v45  ;;  %745 = vst [vmem:[#allocation2 + $0x70] sm:$0xff] %v729_v46  ;;  %v1238_v51 = vadd.f32 %v1237_v48, %v1236_v43  ;;  %v1262_v52 = vadd.f32 %v1261_v50, %v1260_v44 }
 0x12c   : > { %v1239_v53 = vpop.f32.mrf.mxu0  ;;  %v1263_v54 = vpop.f32.mrf.mxu1 }
 0x12d   : > { %v722_v55 = vadd.f32 %v1238_v51, %v385_v47  ;;  %v730_v56 = vadd.f32 %v1262_v52, %v393_v49 }
 0x12e   : > { %v1240_v58 = vpop.f32.mrf.mxu0  ;;  %v1264_v60 = vpop.f32.mrf.mxu1 }
 0x12f   : > { %738 = vst [vmem:[#allocation2 + $0x8] sm:$0xff] %v722_v55  ;;  %746 = vst [vmem:[#allocation2 + $0x78] sm:$0xff] %v730_v56  ;;  %v1241_v61 = vadd.f32 %v1240_v58, %v1239_v53  ;;  %v1265_v62 = vadd.f32 %v1264_v60, %v1263_v54  ;;  %751 = sbr.rel (%p1077_p11) target bundleno = 334 (0x14e), region = 82 }
 0x131   : > { %v723_v63 = vadd.f32 %v1241_v61, %v386_v57  ;;  %v731_v0 = vadd.f32 %v1265_v62, %v394_v59 }
 0x133   : > { %739 = vst [vmem:[#allocation2 + $0x48] sm:$0xff] %v723_v63  ;;  %747 = vst [vmem:[#allocation2 + $0x28] sm:$0xff] %v731_v0 }
 0x134   : > { %v752_v1 = vld [vmem:[#allocation2 + $0x30] sm:$0xff]  ;;  %v753_v2 = vld [vmem:[#allocation2] sm:$0xff]  ;;  %v754_v7 = vld [vmem:[#allocation2 + $0x58] sm:$0xff] }
 0x135   : > { %v1538_v3 = vld [vmem:[%s1621_s2] ss:$0 sm:$0xff]  ;;  %v755_v8 = vld [vmem:[#allocation2 + $0x18] sm:$0xff]  ;;  %v1188_v13 = vld [vmem:[%s1622_s3 + $0x8] sm:$0xff]  }
 0x136   : > { %v775_v4 = vadd.f32 %v1538_v3, %v752_v1  ;;  %v776_v5 = vadd.f32 %v1538_v3, %v753_v2  ;;  %v1117_v6 = vld [vmem:[%s1622_s3] sm:$0xff]   ;;  %v777_v11 = vadd.f32 %v1538_v3, %v754_v7  ;;  %v778_v12 = vadd.f32 %v1538_v3, %v755_v8  ;;  %v756_v14 = vld [vmem:[#allocation2 + $0x50] sm:$0xff]  ;;  %v757_v15 = vld [vmem:[#allocation2 + $0x68] sm:$0xff] }
 0x137   : > { %v1118_v9 = vunpack.c.l.bf16 %v1117_v6  ;;  %v1119_v10 = vunpack.c.h.bf16 %v1117_v6  ;;  %v1122_v16 = vunpack.c.l.bf16 %v1188_v13  ;;  %v1123_v17 = vunpack.c.h.bf16 %v1188_v13  ;;  %v1189_v20 = vld [vmem:[%s1622_s3 + $0x10] sm:$0xff]   ;;  %v758_v21 = vld [vmem:[#allocation2 + $0x8] sm:$0xff]  ;;  %v1190_v27 = vld [vmem:[%s1622_s3 + $0x18] sm:$0xff]  }
 0x138   : > { %v779_v18 = vadd.f32 %v1538_v3, %v756_v14  ;;  %v780_v19 = vadd.f32 %v1538_v3, %v757_v15  ;;  %v1126_v25 = vunpack.c.l.bf16 %v1189_v20  ;;  %v1127_v26 = vunpack.c.h.bf16 %v1189_v20  ;;  %v760_v32 = vld [vmem:[#allocation2 + $0x40] sm:$0xff]  ;;  %v762_v43 = vld [vmem:[#allocation2 + $0x10] sm:$0xff]  ;;  %v763_v48 = vld [vmem:[#allocation2 + $0x38] sm:$0xff] }
 0x139   : > { %v823_v23 = vadd.f32 %v1118_v9, %v775_v4  ;;  %v824_v24 = vadd.f32 %v1119_v10, %v776_v5  ;;  %v825_v28 = vadd.f32 %v1122_v16, %v777_v11  ;;  %v826_v29 = vadd.f32 %v1123_v17, %v778_v12  ;;  %v761_v37 = vld [vmem:[#allocation2 + $0x20] sm:$0xff]  ;;  %v1192_v49 = vld [vmem:[%s1622_s3 + $0x28] sm:$0xff]   ;;  %v765_v59 = vld [vmem:[#allocation2 + $0x70] sm:$0xff] }
 0x13a   : > { %v759_v22 = vld [vmem:[#allocation2 + $0x48] sm:$0xff]  ;;  %v781_v30 = vadd.f32 %v1538_v3, %v758_v21  ;;  %v827_v35 = vadd.f32 %v1126_v25, %v779_v18  ;;  %v828_v36 = vadd.f32 %v1127_v26, %v780_v19  ;;  %v1130_v40 = vunpack.c.l.bf16 %v1190_v27  ;;  %v1191_v42 = vld [vmem:[%s1622_s3 + $0x20] sm:$0xff]   ;;  %v1193_v60 = vld [vmem:[%s1622_s3 + $0x30] sm:$0xff]  }
 0x13b   : > { %v782_v31 = vadd.f32 %v1538_v3, %v759_v22  ;;  %v839_v33 = vmax.f32 %v823_v23, 0.0  ;;  %v840_v34 = vmax.f32 %v824_v24, 0.0  ;;  %v841_v38 = vmax.f32 %v825_v28, 0.0  ;;  %v764_v54 = vld [vmem:[#allocation2 + $0x60] sm:$0xff]  ;;  %v766_v6 = vld [vmem:[#allocation2 + $0x78] sm:$0xff]  ;;  %v767_v7 = vld [vmem:[#allocation2 + $0x28] sm:$0xff] }
 0x13c   : > { %v842_v39 = vmax.f32 %v826_v29, 0.0  ;;  %v1131_v41 = vunpack.c.h.bf16 %v1190_v27  ;;  %v843_v45 = vmax.f32 %v827_v35, 0.0  ;;  %v844_v46 = vmax.f32 %v828_v36, 0.0  ;;  %v1194_v12 = vld [vmem:[%s1622_s3 + $0x38] sm:$0xff]  }
 0x13d   : > { %v1151_v44 = vpack.c.bf16 %v840_v34, %v839_v33  ;;  %v783_v47 = vadd.f32 %v1538_v3, %v760_v32  ;;  %v829_v51 = vadd.f32 %v1130_v40, %v781_v30  ;;  %v784_v53 = vadd.f32 %v1538_v3, %v761_v37 }
 0x13e   : > { %v1156_v50 = vpack.c.bf16 %v842_v39, %v841_v38  ;;  %v830_v52 = vadd.f32 %v1131_v41, %v782_v31  ;;  %v1161_v55 = vpack.c.bf16 %v844_v46, %v843_v45  ;;  %v1134_v56 = vunpack.c.l.bf16 %v1191_v42 }
 0x13f   : > { %1152 = vst [vmem:[%s1623_s4] sm:$0xff] %v1151_v44   ;;  %v1135_v57 = vunpack.c.h.bf16 %v1191_v42  ;;  %v785_v58 = vadd.f32 %v1538_v3, %v762_v43  ;;  %v845_v61 = vmax.f32 %v829_v51, 0.0  ;;  %v786_v63 = vadd.f32 %v1538_v3, %v763_v48 }
 0x140   : > { %1195 = vst [vmem:[%s1623_s4 + $0x8] sm:$0xff] %v1156_v50   ;;  %v846_v62 = vmax.f32 %v830_v52, 0.0  ;;  %v1138_v0 = vunpack.c.l.bf16 %v1192_v49  ;;  %1196 = vst [vmem:[%s1623_s4 + $0x10] sm:$0xff] %v1161_v55   ;;  %v831_v1 = vadd.f32 %v1134_v56, %v783_v47  ;;  %v1139_v4 = vunpack.c.h.bf16 %v1192_v49 }
 0x141   : > { %v832_v2 = vadd.f32 %v1135_v57, %v784_v53  ;;  %v787_v5 = vadd.f32 %v1538_v3, %v764_v54  ;;  %v788_v10 = vadd.f32 %v1538_v3, %v765_v59  ;;  %v1142_v11 = vunpack.c.l.bf16 %v1193_v60 }
 0x142   : > { %v1166_v8 = vpack.c.bf16 %v846_v62, %v845_v61  ;;  %v833_v9 = vadd.f32 %v1138_v0, %v785_v58  ;;  %v847_v13 = vmax.f32 %v831_v1, 0.0  ;;  %v834_v15 = vadd.f32 %v1139_v4, %v786_v63 }
 0x143   : > { %v848_v14 = vmax.f32 %v832_v2, 0.0  ;;  %v1143_v16 = vunpack.c.h.bf16 %v1193_v60  ;;  %v835_v18 = vadd.f32 %v1142_v11, %v787_v5  ;;  %v789_v19 = vadd.f32 %v1538_v3, %v766_v6 }
 0x144   : > { %1197 = vst [vmem:[%s1623_s4 + $0x18] sm:$0xff] %v1166_v8   ;;  %v849_v17 = vmax.f32 %v833_v9, 0.0  ;;  %v790_v20 = vadd.f32 %v1538_v3, %v767_v7  ;;  %v850_v22 = vmax.f32 %v834_v15, 0.0  ;;  %v1146_v24 = vunpack.c.l.bf16 %v1194_v12 }
 0x145   : > { %v1171_v21 = vpack.c.bf16 %v848_v14, %v847_v13  ;;  %v836_v23 = vadd.f32 %v1143_v16, %v788_v10  ;;  %v851_v25 = vmax.f32 %v835_v18, 0.0  ;;  %v1147_v26 = vunpack.c.h.bf16 %v1194_v12 }
 0x146   : > { %v1176_v27 = vpack.c.bf16 %v850_v22, %v849_v17  ;;  %v837_v29 = vadd.f32 %v1146_v24, %v789_v19 }
 0x147   : > { %1198 = vst [vmem:[%s1623_s4 + $0x20] sm:$0xff] %v1171_v21   ;;  %v852_v28 = vmax.f32 %v836_v23, 0.0  ;;  %v838_v30 = vadd.f32 %v1147_v26, %v790_v20 }
 0x148   : > { %1199 = vst [vmem:[%s1623_s4 + $0x28] sm:$0xff] %v1176_v27   ;;  %v853_v3 = vmax.f32 %v837_v29, 0.0 }
 0x149   : > { %v1181_v31 = vpack.c.bf16 %v852_v28, %v851_v25  ;;  %v854_v32 = vmax.f32 %v838_v30, 0.0 }
 0x14b   : > { %1200 = vst [vmem:[%s1623_s4 + $0x30] sm:$0xff] %v1181_v31   ;;  %v1186_v33 = vpack.c.bf16 %v854_v32, %v853_v3 }
 0x14d   : > { %1201 = vst [vmem:[%s1623_s4 + $0x38] sm:$0xff] %v1186_v33  }
 0x14e PF: > { %s14_s19 = sadd.s32 1, %s1401_s19   ;;  %s1624_s15 = smov %s1389_s16 }
 0x14f   : > { %p11_p12 = scmp.ge.s32.totalorder %s14_s19, 7   ;;  %s1625_s16 = smov %s1464_s23 }
 0x150   : > { %s1626_s17 = smov %s1397_s18  ;;  %s1627_s18 = smov %s1629_s20 }
 0x151   :  { %13 = sbr.rel (!%p11_p12) target bundleno = 3 (0x3), region = 123 }

// kernel: resnet18_forward.29
= control target key start
LH: loop header
LB: loop body
LE: loop exit
PB: predicated region body
PF: predicated region fallthrough
CT: control target
= control target key end

     0   :  { %s1272_s12 = smov 0   ;;  %s1274_s13 = smov 0   ;;  %s1420_s0 = inlined_call_operand.vmem [shape: bf16[128,1280], index: 0, kind: input, shape index: {}]   ;;  %s1421_s1 = inlined_call_operand.vmem [shape: bf16[1280,128], index: 1, kind: input, shape index: {}]   ;;  %s1422_s2 = inlined_call_operand.vmem [shape: f32[1,128], index: 2, kind: input, shape index: {}]   ;;  %s1423_s3 = inlined_call_operand.vmem [shape: bf16[128,128], index: 3, kind: output, shape index: {}]  }
   0x1   :  { %s1276_s14 = smov 0   ;;  %s1278_s15 = smov 0  }
   0x2   :  { %s1280_s16 = smov 0  }
   0x3 LB: > { %s22_s17 = sadd.s32 1, %s1245_s15  ;;  %p41_p1 = scmp.ne.s32.totalorder %s1237_s13, %s1233_s12  ;;  %s1249_s16 = sphi %s1280_s16, %s13_s16   ;;  %s1245_s15 = sphi %s1278_s15, %s1427_s15   ;;  %s1241_s14 = sphi %s1276_s14, %s1426_s14   ;;  %s1237_s13 = sphi %s1274_s13, %s1425_s13   ;;  %s1233_s12 = sphi %s1272_s12, %s1424_s12  }
   0x4   : > { %p23_p0 = scmp.ge.s32.totalorder %s22_s17, 5  ;;  %p42_p2 = scmp.eq.s32.totalorder %s1249_s16, 0 }
   0x5   : > { %s34_s19 = sadd.s32 1, %s1237_s13  ;;  %p923_p5 = scmp.ge.s32.totalorder %s1249_s16, 5 }
   0x6   : > { %s1429_s17 = smov (%p23_p0, %s22_s17), 0  ;;  %p43_p3 = por %p42_p2, %p41_p1 }
   0x7   : > { %s30_s18 = ssub.s32 %s1245_s15, %s1429_s17  ;;  %143 = sbr.rel (%p923_p5) target bundleno = 24 (0x18), region = 20 }
   0x8   : > { %p32_p4 = scmp.eq.s32.totalorder %s30_s18, 0 }
   0xa   : > { %s1307_s20 = scalar_select %p32_p4, %s1237_s13, %s34_s19  }
   0xc   : > { %146 = sbr.rel (!%p43_p3) target bundleno = 24 (0x18), region = 24  ;;  %s148_s21 = sand.u32 (%p43_p3), 1, %s1237_s13  }
   0xd   : > { %s986_s22 = sshll.u32 (%p43_p3), %s1245_s15, 3  ;;  %s924_s23 = sshll.u32 (%p43_p3), %s148_s21, 7 }
   0xe   : > { %s1315_s26 = scalar_lea.vmem (%p43_p3), %s1420_s0, %s986_s22  ;;  %s150_s27 = scalar_lea.vmem (%p43_p3), [#allocation3], %s924_s23 }
   0xf   : > { %v215_v0 = vld [vmem:[%s1315_s26] sm:$0xff] (%p43_p3)  ;;  %v217_v1 = vld [vmem:[%s1315_s26 + $0x28] sm:$0xff] (%p43_p3)  ;;  %v219_v2 = vld [vmem:[%s1315_s26 + $0x50] sm:$0xff] (%p43_p3) }
  0x10   : > { %216 = vst [vmem:[%s150_s27] sm:$0xff] (%p43_p3), %v215_v0  ;;  %218 = vst [vmem:[%s150_s27 + $0x8] sm:$0xff] (%p43_p3), %v217_v1  ;;  %v221_v3 = vld [vmem:[%s1315_s26 + $0x78] sm:$0xff] (%p43_p3)  ;;  %v223_v4 = vld [vmem:[%s1315_s26 + $0xa0] sm:$0xff] (%p43_p3) }
  0x11   : > { %220 = vst [vmem:[%s150_s27 + $0x10] sm:$0xff] %v219_v2  ;;  %v225_v5 = vld [vmem:[%s1315_s26 + $0xc8] sm:$0xff]  ;;  %222 = vst [vmem:[%s150_s27 + $0x18] sm:$0xff] %v221_v3  ;;  %v227_v6 = vld [vmem:[%s1315_s26 + $0xf0] sm:$0xff] }
  0x12   : > { %224 = vst [vmem:[%s150_s27 + $0x20] sm:$0xff] %v223_v4  ;;  %226 = vst [vmem:[%s150_s27 + $0x28] sm:$0xff] %v225_v5  ;;  %v229_v7 = vld [vmem:[%s1315_s26 + $0x118] sm:$0xff]  ;;  %v231_v8 = vld [vmem:[%s1315_s26 + $0x140] sm:$0xff] }
  0x13   : > { %228 = vst [vmem:[%s150_s27 + $0x30] sm:$0xff] %v227_v6  ;;  %230 = vst [vmem:[%s150_s27 + $0x38] sm:$0xff] %v229_v7  ;;  %v233_v9 = vld [vmem:[%s1315_s26 + $0x168] sm:$0xff]  ;;  %v235_v10 = vld [vmem:[%s1315_s26 + $0x190] sm:$0xff] }
  0x14   : > { %232 = vst [vmem:[%s150_s27 + $0x40] sm:$0xff] %v231_v8  ;;  %v237_v11 = vld [vmem:[%s1315_s26 + $0x1b8] sm:$0xff]  ;;  %234 = vst [vmem:[%s150_s27 + $0x48] sm:$0xff] %v233_v9  ;;  %v239_v12 = vld [vmem:[%s1315_s26 + $0x1e0] sm:$0xff] }
  0x15   : > { %236 = vst [vmem:[%s150_s27 + $0x50] sm:$0xff] %v235_v10  ;;  %238 = vst [vmem:[%s150_s27 + $0x58] sm:$0xff] %v237_v11  ;;  %v241_v13 = vld [vmem:[%s1315_s26 + $0x208] sm:$0xff]  ;;  %v243_v14 = vld [vmem:[%s1315_s26 + $0x230] sm:$0xff] }
  0x16   : > { %240 = vst [vmem:[%s150_s27 + $0x60] sm:$0xff] %v239_v12  ;;  %242 = vst [vmem:[%s150_s27 + $0x68] sm:$0xff] %v241_v13  ;;  %v245_v15 = vld [vmem:[%s1315_s26 + $0x258] sm:$0xff] }
  0x17   : > { %244 = vst [vmem:[%s150_s27 + $0x70] sm:$0xff] %v243_v14  ;;  %246 = vst [vmem:[%s150_s27 + $0x78] sm:$0xff] %v245_v15 }
  0x18 PF: > { %p927_p6 = scmp.ge.s32.totalorder %s1249_s16, 1  ;;  %p260_p7 = scmp.lt.s32.totalorder %s1249_s16, 6 }
  0x1a   : > { %p261_p8 = pnand %p927_p6, %p260_p7 }
  0x1b   : > { %s267_s28 = sand.u32 (!%p261_p8), 1, %s1233_s12   ;;  %s929_s29 = sshll.u32 (!%p261_p8), %s1241_s14, 5 }
  0x1c   : > { %264 = sbr.rel (%p261_p8) target bundleno = 324 (0x144), region = 66  ;;  %s928_s30 = sshll.u32 (!%p261_p8), %s267_s28, 7 }
  0x1d   : > { %p298_p9 = scmp.lt.s32.totalorder (!%p261_p8), %s929_s29, 159  ;;  %s1342_s8 = scalar_lea.vmem (!%p261_p8), [#allocation3], %s928_s30 }
  0x1e   : > { %p931_p10 = scmp.ne.s32.totalorder (!%p261_p8), %s1241_s14, 0 }
  0x21   : > { %s1431_s29 = smov (!%p298_p9, %s929_s29), 159  ;;  %313 = sbr.rel (%p931_p10) target bundleno = 47 (0x2f), region = 74 }
  0x22   : > { %s930_s4 = sshll.u32 %s1431_s29, 2 }
  0x23   : > { %s1340_s7 = scalar_lea.vmem %s1421_s1, %s930_s4 }
  0x26   : > { %v1251_v16 = vmov 0.0  }
  0x27   : > { %314 = vst [vmem:[#allocation2 + $0x30] sm:$0xff] %v1251_v16  ;;  %315 = vst [vmem:[#allocation2] sm:$0xff] %v1251_v16 }
  0x28   : > { %316 = vst [vmem:[#allocation2 + $0x58] sm:$0xff] %v1251_v16  ;;  %317 = vst [vmem:[#allocation2 + $0x18] sm:$0xff] %v1251_v16 }
  0x29   : > { %318 = vst [vmem:[#allocation2 + $0x50] sm:$0xff] %v1251_v16  ;;  %319 = vst [vmem:[#allocation2 + $0x68] sm:$0xff] %v1251_v16 }
  0x2a   : > { %320 = vst [vmem:[#allocation2 + $0x8] sm:$0xff] %v1251_v16  ;;  %321 = vst [vmem:[#allocation2 + $0x48] sm:$0xff] %v1251_v16 }
  0x2b   : > { %322 = vst [vmem:[#allocation2 + $0x40] sm:$0xff] %v1251_v16  ;;  %323 = vst [vmem:[#allocation2 + $0x20] sm:$0xff] %v1251_v16 }
  0x2c   : > { %324 = vst [vmem:[#allocation2 + $0x10] sm:$0xff] %v1251_v16  ;;  %325 = vst [vmem:[#allocation2 + $0x38] sm:$0xff] %v1251_v16 }
  0x2d   : > { %326 = vst [vmem:[#allocation2 + $0x60] sm:$0xff] %v1251_v16  ;;  %327 = vst [vmem:[#allocation2 + $0x70] sm:$0xff] %v1251_v16 }
  0x2e   : > { %328 = vst [vmem:[#allocation2 + $0x78] sm:$0xff] %v1251_v16  ;;  %329 = vst [vmem:[#allocation2 + $0x28] sm:$0xff] %v1251_v16 }
  0x2f PF: > { %v1171_v17 = vld [vmem:[%s1340_s7 + $0x78] sm:$0xff]   ;;  %v1173_v19 = vld [vmem:[%s1340_s7 + $0x70] sm:$0xff]   ;;  %v1175_v21 = vld [vmem:[%s1340_s7 + $0x68] sm:$0xff]   ;;  %p964_p11 = scmp.ne.s32.totalorder %s1241_s14, 4 }
  0x30   : > { %v1172_v18 = vld [vmem:[%s1340_s7 + $0x38] sm:$0xff]   ;;  %1050 = vmatprep.subr.bf16.mxu0 %v1171_v17  ;;  %1114 = vmatprep.subr.bf16.mxu1 %v1171_v17  ;;  %v1174_v20 = vld [vmem:[%s1340_s7 + $0x30] sm:$0xff]   ;;  %v1176_v22 = vld [vmem:[%s1340_s7 + $0x28] sm:$0xff]  }
  0x31   : > { %1051 = vmatpush3.bf16.msra.mxu0 %v1172_v18  ;;  %1122 = vmatpush3.bf16.msra.mxu1 %v1172_v18  ;;  %v1177_v23 = vld [vmem:[%s1340_s7 + $0x60] sm:$0xff]   ;;  %v1179_v25 = vld [vmem:[%s1340_s7 + $0x58] sm:$0xff]   ;;  %v1181_v27 = vld [vmem:[%s1340_s7 + $0x50] sm:$0xff]  }
  0x32   : > { %1052 = vmatprep.subr.bf16.mxu0 %v1173_v19  ;;  %1115 = vmatprep.subr.bf16.mxu1 %v1173_v19  ;;  %v1178_v24 = vld [vmem:[%s1340_s7 + $0x20] sm:$0xff]   ;;  %v1180_v26 = vld [vmem:[%s1340_s7 + $0x18] sm:$0xff]   ;;  %v1182_v30 = vld [vmem:[%s1340_s7 + $0x10] sm:$0xff]  }
  0x33   : > { %v1189_v28 = vld [vmem:[%s1342_s8 + $0x4] ss:$8 sps:$4 sm:$0xff]   ;;  %v1187_v35 = vld [vmem:[%s1342_s8] ss:$8 sps:$4 sm:$0xff]   ;;  %v1193_v37 = vld [vmem:[%s1342_s8 + $0x14] ss:$8 sps:$4 sm:$0xff]  }
  0x34   : > { %v1192_v29 = vld [vmem:[%s1342_s8 + $0x44] ss:$8 sps:$4 sm:$0xff]   ;;  %602 = vmatprep.mubr.bf16.mxu0 %v1189_v28  ;;  %v1190_v36 = vld [vmem:[%s1342_s8 + $0x40] ss:$8 sps:$4 sm:$0xff]   ;;  %v1195_v38 = vld [vmem:[%s1342_s8 + $0x54] ss:$8 sps:$4 sm:$0xff]  }
  0x35   : > { %1053 = vmatpush3.bf16.msra.mxu0 %v1174_v20  ;;  %1123 = vmatpush3.bf16.msra.mxu1 %v1174_v20  ;;  %v1183_v31 = vld [vmem:[%s1340_s7 + $0x48] sm:$0xff]   ;;  %v1185_v33 = vld [vmem:[%s1340_s7 + $0x40] sm:$0xff]   ;;  %v1197_v39 = vld [vmem:[%s1342_s8 + $0x10] ss:$8 sps:$4 sm:$0xff]  }
  0x36   : > { %1054 = vmatprep.subr.bf16.mxu0 %v1175_v21  ;;  %1116 = vmatprep.subr.bf16.mxu1 %v1175_v21  ;;  %v1184_v32 = vld [vmem:[%s1340_s7 + $0x8] sm:$0xff]   ;;  %v1186_v34 = vld [vmem:[%s1340_s7] sm:$0xff]   ;;  %v1198_v40 = vld [vmem:[%s1342_s8 + $0x50] ss:$8 sps:$4 sm:$0xff]  }
  0x37   : > { %634 = vmatprep.mubr.bf16.mxu1 %v1192_v29  ;;  %v1199_v41 = vld [vmem:[%s1342_s8 + $0x24] ss:$8 sps:$4 sm:$0xff]   ;;  %v1203_v43 = vld [vmem:[%s1342_s8 + $0x20] ss:$8 sps:$4 sm:$0xff]   ;;  %v1205_v45 = vld [vmem:[%s1342_s8 + $0x34] ss:$8 sps:$4 sm:$0xff]  }
  0x38   : > { %v1201_v42 = vld [vmem:[%s1342_s8 + $0x64] ss:$8 sps:$4 sm:$0xff]   ;;  %v1204_v44 = vld [vmem:[%s1342_s8 + $0x60] ss:$8 sps:$4 sm:$0xff]   ;;  %v1207_v46 = vld [vmem:[%s1342_s8 + $0x74] ss:$8 sps:$4 sm:$0xff]  }
  0x39   : > { %1055 = vmatpush3.bf16.msra.mxu0 %v1176_v22  ;;  %1124 = vmatpush3.bf16.msra.mxu1 %v1176_v22  ;;  %v1209_v47 = vld [vmem:[%s1342_s8 + $0x30] ss:$8 sps:$4 sm:$0xff]   ;;  %v338_v53 = vld [vmem:[#allocation2 + $0x40] sm:$0xff] }
  0x3a   : > { %1056 = vmatprep.subr.bf16.mxu0 %v1177_v23  ;;  %1117 = vmatprep.subr.bf16.mxu1 %v1177_v23  ;;  %v1210_v48 = vld [vmem:[%s1342_s8 + $0x70] ss:$8 sps:$4 sm:$0xff]   ;;  %v331_v61 = vld [vmem:[#allocation2] sm:$0xff] }
  0x3b   : > { %v330_v51 = vld [vmem:[#allocation2 + $0x30] sm:$0xff]  ;;  %v339_v63 = vld [vmem:[#allocation2 + $0x20] sm:$0xff]  ;;  %v332_v7 = vld [vmem:[#allocation2 + $0x58] sm:$0xff] }
  0x3c   : > { %v340_v9 = vld [vmem:[#allocation2 + $0x10] sm:$0xff]  ;;  %v333_v17 = vld [vmem:[#allocation2 + $0x18] sm:$0xff]  ;;  %v342_v29 = vld [vmem:[#allocation2 + $0x60] sm:$0xff] }
  0x3d   : > { %1057 = vmatpush3.bf16.msra.mxu0 %v1178_v24  ;;  %1125 = vmatpush3.bf16.msra.mxu1 %v1178_v24  ;;  %v341_v19 = vld [vmem:[#allocation2 + $0x38] sm:$0xff] }
  0x3e   : > { %1058 = vmatprep.subr.bf16.mxu0 %v1179_v25  ;;  %1118 = vmatprep.subr.bf16.mxu1 %v1179_v25 }
  0x41   : > { %1059 = vmatpush3.bf16.msra.mxu0 %v1180_v26  ;;  %1126 = vmatpush3.bf16.msra.mxu1 %v1180_v26 }
  0x42   : > { %1060 = vmatprep.subr.bf16.mxu0 %v1181_v27  ;;  %1119 = vmatprep.subr.bf16.mxu1 %v1181_v27  ;;  %v334_v27 = vld [vmem:[#allocation2 + $0x50] sm:$0xff] }
  0x45   : > { %1061 = vmatpush3.bf16.msra.mxu0 %v1182_v30  ;;  %1127 = vmatpush3.bf16.msra.mxu1 %v1182_v30 }
  0x46   : > { %1062 = vmatprep.subr.bf16.mxu0 %v1183_v31  ;;  %1120 = vmatprep.subr.bf16.mxu1 %v1183_v31 }
  0x49   : > { %1063 = vmatpush3.bf16.msra.mxu0 %v1184_v32  ;;  %1128 = vmatpush3.bf16.msra.mxu1 %v1184_v32 }
  0x4a   : > { %1064 = vmatprep.subr.bf16.mxu0 %v1185_v33  ;;  %1121 = vmatprep.subr.bf16.mxu1 %v1185_v33 }
  0x4d   : > { %1065 = vmatpush3.bf16.msra.mxu0 %v1186_v34  ;;  %1129 = vmatpush3.bf16.msra.mxu1 %v1186_v34 }
  0x50   : > { %603 = vmatmul.mubr.bf16.vlgmr.msra.gmra.mxu0 %v1187_v35  ;;  %635 = vmatmul.mubr.bf16.vlgmr.msra.gmra.mxu1 %v1190_v36 }
  0x51   : > { %610 = vmatprep.mubr.bf16.mxu0 %v1193_v37  ;;  %642 = vmatprep.mubr.bf16.mxu1 %v1195_v38  ;;  %v335_v37 = vld [vmem:[#allocation2 + $0x68] sm:$0xff] }
  0x58   : > { %611 = vmatmul.mubr.bf16.gmra.mxu0 %v1197_v39  ;;  %643 = vmatmul.mubr.bf16.gmra.mxu1 %v1198_v40  ;;  %v343_v39 = vld [vmem:[#allocation2 + $0x70] sm:$0xff] }
  0x59   : > { %618 = vmatprep.mubr.bf16.mxu0 %v1199_v41  ;;  %650 = vmatprep.mubr.bf16.mxu1 %v1201_v42 }
  0x60   : > { %619 = vmatmul.mubr.bf16.gmra.mxu0 %v1203_v43  ;;  %651 = vmatmul.mubr.bf16.gmra.mxu1 %v1204_v44 }
  0x61   : > { %626 = vmatprep.mubr.bf16.mxu0 %v1205_v45  ;;  %658 = vmatprep.mubr.bf16.mxu1 %v1207_v46 }
  0x68   : > { %627 = vmatmul.mubr.bf16.gmra.mxu0 %v1209_v47  ;;  %659 = vmatmul.mubr.bf16.gmra.mxu1 %v1210_v48  ;;  %v336_v47 = vld [vmem:[#allocation2 + $0x8] sm:$0xff] }
 0x110   : > { %v1066_v49 = vpop.f32.mrf.mxu0  ;;  %v1090_v50 = vpop.f32.mrf.mxu1 }
 0x112   : > { %v1067_v52 = vpop.f32.mrf.mxu0  ;;  %v1091_v54 = vpop.f32.mrf.mxu1 }
 0x113   : > { %v1068_v55 = vadd.f32 %v1067_v52, %v1066_v49  ;;  %v1092_v56 = vadd.f32 %v1091_v54, %v1090_v50  ;;  %v344_v49 = vld [vmem:[#allocation2 + $0x78] sm:$0xff] }
 0x114   : > { %v1069_v57 = vpop.f32.mrf.mxu0  ;;  %v1093_v58 = vpop.f32.mrf.mxu1 }
 0x115   : > { %v667_v59 = vadd.f32 %v1068_v55, %v330_v51  ;;  %v675_v60 = vadd.f32 %v1092_v56, %v338_v53 }
 0x116   : > { %v1070_v62 = vpop.f32.mrf.mxu0  ;;  %v1094_v0 = vpop.f32.mrf.mxu1 }
 0x117   : > { %683 = vst [vmem:[#allocation2 + $0x30] sm:$0xff] %v667_v59  ;;  %691 = vst [vmem:[#allocation2 + $0x40] sm:$0xff] %v675_v60  ;;  %v1071_v1 = vadd.f32 %v1070_v62, %v1069_v57  ;;  %v1095_v2 = vadd.f32 %v1094_v0, %v1093_v58  ;;  %v337_v57 = vld [vmem:[#allocation2 + $0x48] sm:$0xff] }
 0x118   : > { %v1072_v3 = vpop.f32.mrf.mxu0  ;;  %v1096_v4 = vpop.f32.mrf.mxu1  ;;  %v345_v59 = vld [vmem:[#allocation2 + $0x28] sm:$0xff] }
 0x119   : > { %v668_v5 = vadd.f32 %v1071_v1, %v331_v61  ;;  %v676_v6 = vadd.f32 %v1095_v2, %v339_v63 }
 0x11a   : > { %v1073_v8 = vpop.f32.mrf.mxu0  ;;  %v1097_v10 = vpop.f32.mrf.mxu1 }
 0x11b   : > { %684 = vst [vmem:[#allocation2] sm:$0xff] %v668_v5  ;;  %692 = vst [vmem:[#allocation2 + $0x20] sm:$0xff] %v676_v6  ;;  %v1074_v11 = vadd.f32 %v1073_v8, %v1072_v3  ;;  %v1098_v12 = vadd.f32 %v1097_v10, %v1096_v4 }
 0x11c   : > { %v1075_v13 = vpop.f32.mrf.mxu0  ;;  %v1099_v14 = vpop.f32.mrf.mxu1 }
 0x11d   : > { %v669_v15 = vadd.f32 %v1074_v11, %v332_v7  ;;  %v677_v16 = vadd.f32 %v1098_v12, %v340_v9 }
 0x11e   : > { %v1076_v18 = vpop.f32.mrf.mxu0  ;;  %v1100_v20 = vpop.f32.mrf.mxu1 }
 0x11f   : > { %685 = vst [vmem:[#allocation2 + $0x58] sm:$0xff] %v669_v15  ;;  %693 = vst [vmem:[#allocation2 + $0x10] sm:$0xff] %v677_v16  ;;  %v1077_v21 = vadd.f32 %v1076_v18, %v1075_v13  ;;  %v1101_v22 = vadd.f32 %v1100_v20, %v1099_v14 }
 0x120   : > { %v1078_v23 = vpop.f32.mrf.mxu0  ;;  %v1102_v24 = vpop.f32.mrf.mxu1 }
 0x121   : > { %v670_v25 = vadd.f32 %v1077_v21, %v333_v17  ;;  %v678_v26 = vadd.f32 %v1101_v22, %v341_v19 }
 0x122   : > { %v1079_v28 = vpop.f32.mrf.mxu0  ;;  %v1103_v30 = vpop.f32.mrf.mxu1 }
 0x123   : > { %686 = vst [vmem:[#allocation2 + $0x18] sm:$0xff] %v670_v25  ;;  %694 = vst [vmem:[#allocation2 + $0x38] sm:$0xff] %v678_v26  ;;  %v1080_v31 = vadd.f32 %v1079_v28, %v1078_v23  ;;  %v1104_v32 = vadd.f32 %v1103_v30, %v1102_v24 }
 0x124   : > { %v1081_v33 = vpop.f32.mrf.mxu0  ;;  %v1105_v34 = vpop.f32.mrf.mxu1 }
 0x125   : > { %v671_v35 = vadd.f32 %v1080_v31, %v334_v27  ;;  %v679_v36 = vadd.f32 %v1104_v32, %v342_v29 }
 0x126   : > { %v1082_v38 = vpop.f32.mrf.mxu0  ;;  %v1106_v40 = vpop.f32.mrf.mxu1 }
 0x127   : > { %687 = vst [vmem:[#allocation2 + $0x50] sm:$0xff] %v671_v35  ;;  %695 = vst [vmem:[#allocation2 + $0x60] sm:$0xff] %v679_v36  ;;  %v1083_v41 = vadd.f32 %v1082_v38, %v1081_v33  ;;  %v1107_v42 = vadd.f32 %v1106_v40, %v1105_v34 }
 0x128   : > { %v1084_v43 = vpop.f32.mrf.mxu0  ;;  %v1108_v44 = vpop.f32.mrf.mxu1 }
 0x129   : > { %v672_v45 = vadd.f32 %v1083_v41, %v335_v37  ;;  %v680_v46 = vadd.f32 %v1107_v42, %v343_v39 }
 0x12a   : > { %v1085_v48 = vpop.f32.mrf.mxu0  ;;  %v1109_v50 = vpop.f32.mrf.mxu1 }
 0x12b   : > { %688 = vst [vmem:[#allocation2 + $0x68] sm:$0xff] %v672_v45  ;;  %696 = vst [vmem:[#allocation2 + $0x70] sm:$0xff] %v680_v46  ;;  %v1086_v51 = vadd.f32 %v1085_v48, %v1084_v43  ;;  %v1110_v52 = vadd.f32 %v1109_v50, %v1108_v44 }
 0x12c   : > { %v1087_v53 = vpop.f32.mrf.mxu0  ;;  %v1111_v54 = vpop.f32.mrf.mxu1 }
 0x12d   : > { %v673_v55 = vadd.f32 %v1086_v51, %v336_v47  ;;  %v681_v56 = vadd.f32 %v1110_v52, %v344_v49 }
 0x12e   : > { %v1088_v58 = vpop.f32.mrf.mxu0  ;;  %v1112_v60 = vpop.f32.mrf.mxu1 }
 0x12f   : > { %689 = vst [vmem:[#allocation2 + $0x8] sm:$0xff] %v673_v55  ;;  %697 = vst [vmem:[#allocation2 + $0x78] sm:$0xff] %v681_v56  ;;  %v1089_v61 = vadd.f32 %v1088_v58, %v1087_v53  ;;  %v1113_v62 = vadd.f32 %v1112_v60, %v1111_v54  ;;  %702 = sbr.rel (%p964_p11) target bundleno = 324 (0x144), region = 78 }
 0x131   : > { %v674_v63 = vadd.f32 %v1089_v61, %v337_v57  ;;  %v682_v0 = vadd.f32 %v1113_v62, %v345_v59 }
 0x133   : > { %690 = vst [vmem:[#allocation2 + $0x48] sm:$0xff] %v674_v63  ;;  %698 = vst [vmem:[#allocation2 + $0x28] sm:$0xff] %v682_v0 }
 0x134   : > { %v703_v1 = vld [vmem:[#allocation2 + $0x30] sm:$0xff]  ;;  %v704_v2 = vld [vmem:[#allocation2] sm:$0xff]  ;;  %v705_v6 = vld [vmem:[#allocation2 + $0x58] sm:$0xff] }
 0x135   : > { %v965_v3 = vld [vmem:[%s1422_s2] ss:$0 sm:$0xff]  ;;  %v706_v7 = vld [vmem:[#allocation2 + $0x18] sm:$0xff]  ;;  %v707_v8 = vld [vmem:[#allocation2 + $0x50] sm:$0xff] }
 0x136   : > { %v726_v4 = vadd.f32 %v965_v3, %v703_v1  ;;  %v727_v5 = vadd.f32 %v965_v3, %v704_v2  ;;  %v728_v9 = vadd.f32 %v965_v3, %v705_v6  ;;  %v729_v10 = vadd.f32 %v965_v3, %v706_v7  ;;  %v708_v11 = vld [vmem:[#allocation2 + $0x68] sm:$0xff]  ;;  %v711_v19 = vld [vmem:[#allocation2 + $0x40] sm:$0xff]  ;;  %v713_v21 = vld [vmem:[#allocation2 + $0x10] sm:$0xff] }
 0x137   : > { %v730_v12 = vadd.f32 %v965_v3, %v707_v8  ;;  %v709_v13 = vld [vmem:[#allocation2 + $0x8] sm:$0xff]  ;;  %v731_v17 = vadd.f32 %v965_v3, %v708_v11  ;;  %v712_v20 = vld [vmem:[#allocation2 + $0x20] sm:$0xff]  ;;  %v714_v26 = vld [vmem:[#allocation2 + $0x38] sm:$0xff]  ;;  %v734_v31 = vadd.f32 %v965_v3, %v711_v19  ;;  %v736_v36 = vadd.f32 %v965_v3, %v713_v21 }
 0x138   : > { %v742_v15 = vmax.f32 %v726_v4, 0.0  ;;  %v743_v16 = vmax.f32 %v727_v5, 0.0  ;;  %v732_v18 = vadd.f32 %v965_v3, %v709_v13  ;;  %v744_v22 = vmax.f32 %v728_v9, 0.0  ;;  %v715_v27 = vld [vmem:[#allocation2 + $0x60] sm:$0xff]  ;;  %v716_v32 = vld [vmem:[#allocation2 + $0x70] sm:$0xff]  ;;  %v717_v37 = vld [vmem:[#allocation2 + $0x78] sm:$0xff] }
 0x139   : > { %v745_v23 = vmax.f32 %v729_v10, 0.0  ;;  %v746_v24 = vmax.f32 %v730_v12, 0.0  ;;  %v747_v29 = vmax.f32 %v731_v17, 0.0  ;;  %v735_v35 = vadd.f32 %v965_v3, %v712_v20 }
 0x13a   : > { %v710_v14 = vld [vmem:[#allocation2 + $0x48] sm:$0xff]  ;;  %v1006_v28 = vpack.c.bf16 %v743_v16, %v742_v15  ;;  %v748_v30 = vmax.f32 %v732_v18, 0.0  ;;  %v750_v40 = vmax.f32 %v734_v31, 0.0  ;;  %v737_v41 = vadd.f32 %v965_v3, %v714_v26 }
 0x13b   : > { %v733_v25 = vadd.f32 %v965_v3, %v710_v14  ;;  %v1011_v33 = vpack.c.bf16 %v745_v23, %v744_v22  ;;  %v718_v38 = vld [vmem:[#allocation2 + $0x28] sm:$0xff]  ;;  %v1016_v39 = vpack.c.bf16 %v747_v29, %v746_v24  ;;  %v738_v42 = vadd.f32 %v965_v3, %v715_v27 }
 0x13c   : > { %1007 = vst [vmem:[%s1423_s3] sm:$0xff] %v1006_v28   ;;  %v751_v44 = vmax.f32 %v735_v35, 0.0  ;;  %v752_v45 = vmax.f32 %v736_v36, 0.0  ;;  %v739_v46 = vadd.f32 %v965_v3, %v716_v32  ;;  %v753_v47 = vmax.f32 %v737_v41, 0.0 }
 0x13d   : > { %v749_v34 = vmax.f32 %v733_v25, 0.0  ;;  %1043 = vst [vmem:[%s1423_s3 + $0x8] sm:$0xff] %v1011_v33   ;;  %1044 = vst [vmem:[%s1423_s3 + $0x10] sm:$0xff] %v1016_v39   ;;  %v754_v48 = vmax.f32 %v738_v42, 0.0  ;;  %v740_v49 = vadd.f32 %v965_v3, %v717_v37  ;;  %v741_v50 = vadd.f32 %v965_v3, %v718_v38 }
 0x13e   : > { %v1026_v51 = vpack.c.bf16 %v751_v44, %v750_v40  ;;  %v755_v52 = vmax.f32 %v739_v46, 0.0  ;;  %v1031_v53 = vpack.c.bf16 %v753_v47, %v752_v45 }
 0x13f   : > { %v1021_v43 = vpack.c.bf16 %v749_v34, %v748_v30  ;;  %v756_v54 = vmax.f32 %v740_v49, 0.0  ;;  %v757_v55 = vmax.f32 %v741_v50, 0.0 }
 0x140   : > { %1046 = vst [vmem:[%s1423_s3 + $0x20] sm:$0xff] %v1026_v51   ;;  %v1036_v56 = vpack.c.bf16 %v755_v52, %v754_v48  ;;  %1047 = vst [vmem:[%s1423_s3 + $0x28] sm:$0xff] %v1031_v53  }
 0x141   : > { %1045 = vst [vmem:[%s1423_s3 + $0x18] sm:$0xff] %v1021_v43   ;;  %v1041_v57 = vpack.c.bf16 %v757_v55, %v756_v54 }
 0x142   : > { %1048 = vst [vmem:[%s1423_s3 + $0x30] sm:$0xff] %v1036_v56  }
 0x143   : > { %1049 = vst [vmem:[%s1423_s3 + $0x38] sm:$0xff] %v1041_v57  }
 0x144 PF: > { %s13_s16 = sadd.s32 1, %s1249_s16   ;;  %s1424_s12 = smov %s1237_s13 }
 0x145   : > { %p10_p12 = scmp.ge.s32.totalorder %s13_s16, 7   ;;  %s1425_s13 = smov %s1307_s20 }
 0x146   : > { %s1426_s14 = smov %s1245_s15  ;;  %s1427_s15 = smov %s1429_s17 }
 0x147   :  { %12 = sbr.rel (!%p10_p12) target bundleno = 3 (0x3), region = 116 }

// kernel: resnet18_forward.31
= control target key start
LH: loop header
LB: loop body
LE: loop exit
PB: predicated region body
PF: predicated region fallthrough
CT: control target
= control target key end

     0   :  { %s975_s12 = smov 0   ;;  %s977_s13 = smov 0   ;;  %s1097_s0 = inlined_call_operand.vmem [shape: bf16[32,1280], index: 0, kind: input, shape index: {}]   ;;  %s1098_s1 = inlined_call_operand.vmem [shape: bf16[1280,256], index: 1, kind: input, shape index: {}]   ;;  %s1099_s2 = inlined_call_operand.vmem [shape: f32[1,256], index: 2, kind: input, shape index: {}]   ;;  %s1100_s3 = inlined_call_operand.vmem [shape: bf16[32,256], index: 3, kind: output, shape index: {}]  }
   0x1   :  { %s979_s14 = smov 0   ;;  %s981_s15 = smov 0  }
   0x2   :  { %s983_s16 = smov 0  }
   0x3 LB: > { %s22_s17 = sadd.s32 1, %s948_s15  ;;  %p41_p1 = scmp.ne.s32.totalorder %s940_s13, %s936_s12  ;;  %s952_s16 = sphi %s983_s16, %s13_s16   ;;  %s948_s15 = sphi %s981_s15, %s1104_s15   ;;  %s944_s14 = sphi %s979_s14, %s1103_s14   ;;  %s940_s13 = sphi %s977_s13, %s1102_s13   ;;  %s936_s12 = sphi %s975_s12, %s1101_s12  }
   0x4   : > { %p23_p0 = scmp.ge.s32.totalorder %s22_s17, 5  ;;  %p42_p2 = scmp.eq.s32.totalorder %s952_s16, 0 }
   0x5   : > { %s34_s19 = sadd.s32 1, %s940_s13  ;;  %p726_p5 = scmp.ge.s32.totalorder %s952_s16, 5 }
   0x6   : > { %s1106_s17 = smov (%p23_p0, %s22_s17), 0  ;;  %p43_p3 = por %p42_p2, %p41_p1 }
   0x7   : > { %s30_s18 = ssub.s32 %s948_s15, %s1106_s17  ;;  %143 = sbr.rel (%p726_p5) target bundleno = 18 (0x12), region = 20 }
   0x8   : > { %p32_p4 = scmp.eq.s32.totalorder %s30_s18, 0 }
   0xa   : > { %s1010_s20 = scalar_select %p32_p4, %s940_s13, %s34_s19  }
   0xc   : > { %146 = sbr.rel (!%p43_p3) target bundleno = 18 (0x12), region = 24  ;;  %s148_s21 = sand.u32 (%p43_p3), 1, %s940_s13  }
   0xd   : > { %s781_s22 = sshll.u32 (%p43_p3), %s948_s15, 3  ;;  %s727_s23 = sshll.u32 (%p43_p3), %s148_s21, 5 }
   0xe   : > { %s156_s26 = scalar_lea.vmem (%p43_p3), %s1097_s0, %s781_s22  ;;  %s150_s27 = scalar_lea.vmem (%p43_p3), [#allocation3], %s727_s23 }
   0xf   : > { %v191_v0 = vld [vmem:[%s156_s26] sm:$0xff] (%p43_p3)  ;;  %v193_v1 = vld [vmem:[%s156_s26 + $0x28] sm:$0xff] (%p43_p3)  ;;  %v195_v2 = vld [vmem:[%s156_s26 + $0x50] sm:$0xff] (%p43_p3) }
  0x10   : > { %192 = vst [vmem:[%s150_s27] sm:$0xff] (%p43_p3), %v191_v0  ;;  %194 = vst [vmem:[%s150_s27 + $0x8] sm:$0xff] (%p43_p3), %v193_v1  ;;  %v197_v3 = vld [vmem:[%s156_s26 + $0x78] sm:$0xff] (%p43_p3) }
  0x11   : > { %196 = vst [vmem:[%s150_s27 + $0x10] sm:$0xff] %v195_v2  ;;  %198 = vst [vmem:[%s150_s27 + $0x18] sm:$0xff] %v197_v3 }
  0x12 PF: > { %p730_p6 = scmp.ge.s32.totalorder %s952_s16, 1  ;;  %p213_p7 = scmp.lt.s32.totalorder %s952_s16, 6 }
  0x14   : > { %p214_p8 = pnand %p730_p6, %p213_p7 }
  0x15   : > { %s220_s28 = sand.u32 (!%p214_p8), 1, %s936_s12   ;;  %s732_s29 = sshll.u32 (!%p214_p8), %s944_s14, 5 }
  0x16   : > { %217 = sbr.rel (%p214_p8) target bundleno = 320 (0x140), region = 66  ;;  %s731_s30 = sshll.u32 (!%p214_p8), %s220_s28, 5 }
  0x17   : > { %p253_p9 = scmp.lt.s32.totalorder (!%p214_p8), %s732_s29, 159  ;;  %s1027_s8 = scalar_lea.vmem (!%p214_p8), [#allocation3], %s731_s30 }
  0x18   : > { %p735_p10 = scmp.ne.s32.totalorder (!%p214_p8), %s944_s14, 0 }
  0x1b   : > { %s1108_s29 = smov (!%p253_p9, %s732_s29), 159  ;;  %269 = sbr.rel (%p735_p10) target bundleno = 37 (0x25), region = 74 }
  0x1c   : > { %s782_s4 = sshll.u32 %s1108_s29, 3 }
  0x1d   : > { %s1025_s7 = scalar_lea.vmem %s1098_s1, %s782_s4 }
  0x20   : > { %v954_v4 = vmov 0.0  }
  0x21   : > { %270 = vst [vmem:[#allocation2 + $0x30] sm:$0xff] %v954_v4  ;;  %271 = vst [vmem:[#allocation2] sm:$0xff] %v954_v4 }
  0x22   : > { %272 = vst [vmem:[#allocation2 + $0x18] sm:$0xff] %v954_v4  ;;  %273 = vst [vmem:[#allocation2 + $0x10] sm:$0xff] %v954_v4 }
  0x23   : > { %274 = vst [vmem:[#allocation2 + $0x8] sm:$0xff] %v954_v4  ;;  %275 = vst [vmem:[#allocation2 + $0x20] sm:$0xff] %v954_v4 }
  0x24   : > { %276 = vst [vmem:[#allocation2 + $0x28] sm:$0xff] %v954_v4  ;;  %277 = vst [vmem:[#allocation2 + $0x38] sm:$0xff] %v954_v4 }
  0x25 PF: > { %v860_v5 = vld [vmem:[%s1025_s7 + $0x74] ss:$8 sps:$4 sm:$0xff]   ;;  %v862_v6 = vld [vmem:[%s1025_s7 + $0x70] ss:$8 sps:$4 sm:$0xff]   ;;  %v863_v7 = vld [vmem:[%s1025_s7 + $0x64] ss:$8 sps:$4 sm:$0xff]  }
  0x26   : > { %502 = vmatprep.subr.bf16.mxu0 %v860_v5  ;;  %787 = vmatprep.subr.bf16.mxu1 %v860_v5  ;;  %v865_v8 = vld [vmem:[%s1025_s7 + $0x60] ss:$8 sps:$4 sm:$0xff]   ;;  %v866_v9 = vld [vmem:[%s1025_s7 + $0x54] ss:$8 sps:$4 sm:$0xff]   ;;  %v868_v10 = vld [vmem:[%s1025_s7 + $0x50] ss:$8 sps:$4 sm:$0xff]  }
  0x27   : > { %503 = vmatpush1.bf16.msra.mxu0 %v862_v6  ;;  %803 = vmatpush1.bf16.msra.mxu1 %v862_v6  ;;  %v869_v11 = vld [vmem:[%s1025_s7 + $0x44] ss:$8 sps:$4 sm:$0xff]   ;;  %v871_v12 = vld [vmem:[%s1025_s7 + $0x40] ss:$8 sps:$4 sm:$0xff]   ;;  %v872_v13 = vld [vmem:[%s1025_s7 + $0x34] ss:$8 sps:$4 sm:$0xff]  }
  0x28   : > { %504 = vmatprep.subr.bf16.mxu0 %v863_v7  ;;  %788 = vmatprep.subr.bf16.mxu1 %v863_v7  ;;  %v874_v14 = vld [vmem:[%s1025_s7 + $0x30] ss:$8 sps:$4 sm:$0xff]   ;;  %v875_v15 = vld [vmem:[%s1025_s7 + $0x24] ss:$8 sps:$4 sm:$0xff]   ;;  %v877_v16 = vld [vmem:[%s1025_s7 + $0x20] ss:$8 sps:$4 sm:$0xff]  }
  0x29   : > { %v878_v17 = vld [vmem:[%s1025_s7 + $0x14] ss:$8 sps:$4 sm:$0xff]   ;;  %v910_v18 = vld [vmem:[%s1027_s8 + $0x4] ss:$8 sps:$4 sm:$0xff]   ;;  %v880_v19 = vld [vmem:[%s1025_s7 + $0x10] ss:$8 sps:$4 sm:$0xff]  }
  0x2a   : > { %v913_v20 = vld [vmem:[%s1027_s8 + $0x14] ss:$8 sps:$4 sm:$0xff]   ;;  %v881_v21 = vld [vmem:[%s1025_s7 + $0x4] ss:$8 sps:$4 sm:$0xff]   ;;  %534 = vmatprep.mubr.bf16.mxu0 %v910_v18  ;;  %v883_v22 = vld [vmem:[%s1025_s7] ss:$8 sps:$4 sm:$0xff]  }
  0x2b   : > { %505 = vmatpush1.bf16.msra.mxu0 %v865_v8  ;;  %804 = vmatpush1.bf16.msra.mxu1 %v865_v8  ;;  %v884_v23 = vld [vmem:[%s1025_s7 + $0xf4] ss:$8 sps:$4 sm:$0xff]   ;;  %v886_v24 = vld [vmem:[%s1025_s7 + $0xf0] ss:$8 sps:$4 sm:$0xff]   ;;  %v887_v25 = vld [vmem:[%s1025_s7 + $0xe4] ss:$8 sps:$4 sm:$0xff]  }
  0x2c   : > { %506 = vmatprep.subr.bf16.mxu0 %v866_v9  ;;  %789 = vmatprep.subr.bf16.mxu1 %v866_v9  ;;  %v889_v26 = vld [vmem:[%s1025_s7 + $0xe0] ss:$8 sps:$4 sm:$0xff]   ;;  %v890_v27 = vld [vmem:[%s1025_s7 + $0xd4] ss:$8 sps:$4 sm:$0xff]   ;;  %v892_v28 = vld [vmem:[%s1025_s7 + $0xd0] ss:$8 sps:$4 sm:$0xff]  }
  0x2d   : > { %544 = vmatprep.mubr.bf16.mxu1 %v913_v20  ;;  %v893_v29 = vld [vmem:[%s1025_s7 + $0xc4] ss:$8 sps:$4 sm:$0xff]   ;;  %v895_v30 = vld [vmem:[%s1025_s7 + $0xc0] ss:$8 sps:$4 sm:$0xff]   ;;  %v896_v31 = vld [vmem:[%s1025_s7 + $0xb4] ss:$8 sps:$4 sm:$0xff]  }
  0x2e   : > { %v898_v32 = vld [vmem:[%s1025_s7 + $0xb0] ss:$8 sps:$4 sm:$0xff]   ;;  %v899_v33 = vld [vmem:[%s1025_s7 + $0xa4] ss:$8 sps:$4 sm:$0xff]   ;;  %v901_v34 = vld [vmem:[%s1025_s7 + $0xa0] ss:$8 sps:$4 sm:$0xff]  }
  0x2f   : > { %507 = vmatpush1.bf16.msra.mxu0 %v868_v10  ;;  %805 = vmatpush1.bf16.msra.mxu1 %v868_v10  ;;  %v902_v35 = vld [vmem:[%s1025_s7 + $0x94] ss:$8 sps:$4 sm:$0xff]   ;;  %v904_v36 = vld [vmem:[%s1025_s7 + $0x90] ss:$8 sps:$4 sm:$0xff]   ;;  %v905_v37 = vld [vmem:[%s1025_s7 + $0x84] ss:$8 sps:$4 sm:$0xff]  }
  0x30   : > { %508 = vmatprep.subr.bf16.mxu0 %v869_v11  ;;  %790 = vmatprep.subr.bf16.mxu1 %v869_v11  ;;  %v907_v38 = vld [vmem:[%s1025_s7 + $0x80] ss:$8 sps:$4 sm:$0xff]   ;;  %v911_v40 = vld [vmem:[%s1027_s8 + $0x10] ss:$8 sps:$4 sm:$0xff]   ;;  %p772_p11 = scmp.ne.s32.totalorder %s944_s14, 4 }
  0x31   : > { %v908_v39 = vld [vmem:[%s1027_s8] ss:$8 sps:$4 sm:$0xff]   ;;  %v278_v41 = vld [vmem:[#allocation2 + $0x30] sm:$0xff]  ;;  %v280_v51 = vld [vmem:[#allocation2 + $0x18] sm:$0xff] }
  0x32   : > { %v282_v42 = vld [vmem:[#allocation2 + $0x8] sm:$0xff]  ;;  %v279_v45 = vld [vmem:[#allocation2] sm:$0xff]  ;;  %v281_v57 = vld [vmem:[#allocation2 + $0x10] sm:$0xff] }
  0x33   : > { %509 = vmatpush1.bf16.msra.mxu0 %v871_v12  ;;  %806 = vmatpush1.bf16.msra.mxu1 %v871_v12  ;;  %v283_v46 = vld [vmem:[#allocation2 + $0x20] sm:$0xff]  ;;  %v284_v52 = vld [vmem:[#allocation2 + $0x28] sm:$0xff]  ;;  %v285_v58 = vld [vmem:[#allocation2 + $0x38] sm:$0xff] }
  0x34   : > { %510 = vmatprep.subr.bf16.mxu0 %v872_v13  ;;  %791 = vmatprep.subr.bf16.mxu1 %v872_v13 }
  0x37   : > { %511 = vmatpush1.bf16.msra.mxu0 %v874_v14  ;;  %807 = vmatpush1.bf16.msra.mxu1 %v874_v14 }
  0x38   : > { %512 = vmatprep.subr.bf16.mxu0 %v875_v15  ;;  %792 = vmatprep.subr.bf16.mxu1 %v875_v15 }
  0x3b   : > { %513 = vmatpush1.bf16.msra.mxu0 %v877_v16  ;;  %808 = vmatpush1.bf16.msra.mxu1 %v877_v16 }
  0x3c   : > { %514 = vmatprep.subr.bf16.mxu0 %v878_v17  ;;  %793 = vmatprep.subr.bf16.mxu1 %v878_v17 }
  0x3f   : > { %515 = vmatpush1.bf16.msra.mxu0 %v880_v19  ;;  %809 = vmatpush1.bf16.msra.mxu1 %v880_v19 }
  0x40   : > { %516 = vmatprep.subr.bf16.mxu0 %v881_v21  ;;  %794 = vmatprep.subr.bf16.mxu1 %v881_v21 }
  0x43   : > { %517 = vmatpush1.bf16.msra.mxu0 %v883_v22  ;;  %810 = vmatpush1.bf16.msra.mxu1 %v883_v22 }
  0x44   : > { %518 = vmatprep.subr.bf16.mxu0 %v884_v23  ;;  %795 = vmatprep.subr.bf16.mxu1 %v884_v23 }
  0x47   : > { %519 = vmatpush2.bf16.msra.mxu0 %v886_v24  ;;  %811 = vmatpush2.bf16.msra.mxu1 %v886_v24 }
  0x48   : > { %520 = vmatprep.subr.bf16.mxu0 %v887_v25  ;;  %796 = vmatprep.subr.bf16.mxu1 %v887_v25 }
  0x4b   : > { %521 = vmatpush2.bf16.msra.mxu0 %v889_v26  ;;  %812 = vmatpush2.bf16.msra.mxu1 %v889_v26 }
  0x4c   : > { %522 = vmatprep.subr.bf16.mxu0 %v890_v27  ;;  %797 = vmatprep.subr.bf16.mxu1 %v890_v27 }
  0x4f   : > { %523 = vmatpush2.bf16.msra.mxu0 %v892_v28  ;;  %813 = vmatpush2.bf16.msra.mxu1 %v892_v28 }
  0x50   : > { %524 = vmatprep.subr.bf16.mxu0 %v893_v29  ;;  %798 = vmatprep.subr.bf16.mxu1 %v893_v29 }
  0x53   : > { %525 = vmatpush2.bf16.msra.mxu0 %v895_v30  ;;  %814 = vmatpush2.bf16.msra.mxu1 %v895_v30 }
  0x54   : > { %526 = vmatprep.subr.bf16.mxu0 %v896_v31  ;;  %799 = vmatprep.subr.bf16.mxu1 %v896_v31 }
  0x57   : > { %527 = vmatpush2.bf16.msra.mxu0 %v898_v32  ;;  %815 = vmatpush2.bf16.msra.mxu1 %v898_v32 }
  0x58   : > { %528 = vmatprep.subr.bf16.mxu0 %v899_v33  ;;  %800 = vmatprep.subr.bf16.mxu1 %v899_v33 }
  0x5b   : > { %529 = vmatpush2.bf16.msra.mxu0 %v901_v34  ;;  %816 = vmatpush2.bf16.msra.mxu1 %v901_v34 }
  0x5c   : > { %530 = vmatprep.subr.bf16.mxu0 %v902_v35  ;;  %801 = vmatprep.subr.bf16.mxu1 %v902_v35 }
  0x5f   : > { %531 = vmatpush2.bf16.msra.mxu0 %v904_v36  ;;  %817 = vmatpush2.bf16.msra.mxu1 %v904_v36 }
  0x60   : > { %532 = vmatprep.subr.bf16.mxu0 %v905_v37  ;;  %802 = vmatprep.subr.bf16.mxu1 %v905_v37 }
  0x63   : > { %533 = vmatpush2.bf16.msra.mxu0 %v907_v38  ;;  %818 = vmatpush2.bf16.msra.mxu1 %v907_v38 }
  0x66   : > { %535 = vmatmul.mubr.bf16.vlgmr.msra.gmra.mxu0 %v908_v39  ;;  %545 = vmatmul.mubr.bf16.vlgmr.msra.gmra.mxu1 %v911_v40 }
 0x126   : > { %v536_v43 = vpop.f32.mrf.mxu0  ;;  %v546_v44 = vpop.f32.mrf.mxu1 }
 0x127   : > { %v555_v47 = vadd.f32 %v536_v43, %v278_v41  ;;  %v559_v48 = vadd.f32 %v546_v44, %v282_v42 }
 0x128   : > { %v538_v49 = vpop.f32.mrf.mxu0  ;;  %v548_v50 = vpop.f32.mrf.mxu1 }
 0x129   : > { %563 = vst [vmem:[#allocation2 + $0x30] sm:$0xff] %v555_v47  ;;  %567 = vst [vmem:[#allocation2 + $0x8] sm:$0xff] %v559_v48  ;;  %v556_v53 = vadd.f32 %v538_v49, %v279_v45  ;;  %v560_v54 = vadd.f32 %v548_v50, %v283_v46 }
 0x12a   : > { %v540_v55 = vpop.f32.mrf.mxu0  ;;  %v550_v56 = vpop.f32.mrf.mxu1 }
 0x12b   : > { %564 = vst [vmem:[#allocation2] sm:$0xff] %v556_v53  ;;  %568 = vst [vmem:[#allocation2 + $0x20] sm:$0xff] %v560_v54  ;;  %v557_v59 = vadd.f32 %v540_v55, %v280_v51  ;;  %v561_v60 = vadd.f32 %v550_v56, %v284_v52  ;;  %574 = sbr.rel (%p772_p11) target bundleno = 320 (0x140), region = 78 }
 0x12c   : > { %v542_v61 = vpop.f32.mrf.mxu0  ;;  %v552_v62 = vpop.f32.mrf.mxu1 }
 0x12d   : > { %565 = vst [vmem:[#allocation2 + $0x18] sm:$0xff] %v557_v59  ;;  %569 = vst [vmem:[#allocation2 + $0x28] sm:$0xff] %v561_v60  ;;  %v558_v63 = vadd.f32 %v542_v61, %v281_v57  ;;  %v562_v0 = vadd.f32 %v552_v62, %v285_v58 }
 0x12f   : > { %566 = vst [vmem:[#allocation2 + $0x10] sm:$0xff] %v558_v63  ;;  %570 = vst [vmem:[#allocation2 + $0x38] sm:$0xff] %v562_v0 }
 0x130   : > { %v585_v1 = vlaneseq  ;;  %v583_v3 = vld [vmem:[%s1099_s2] sm:$0x3]  ;;  %v575_v4 = vld [vmem:[#allocation2 + $0x30] sm:$0xff]  ;;  %v579_v10 = vld [vmem:[#allocation2 + $0x8] sm:$0xff] }
 0x132   : > { %v586_v2 = vshrl.u32 %v585_v1, 7  ;;  %v576_v5 = vld [vmem:[#allocation2] sm:$0xff] }
 0x133   : > { %v580_v13 = vld [vmem:[#allocation2 + $0x20] sm:$0xff] }
 0x134   : > { %v587_v6 = vsub.s32 0, %v586_v2  ;;  %v591_v7 = vsub.s32 1, %v586_v2  ;;  %v577_v8 = vld [vmem:[#allocation2 + $0x18] sm:$0xff]  ;;  %v581_v14 = vld [vmem:[#allocation2 + $0x28] sm:$0xff] }
 0x136   : > { %v578_v9 = vld [vmem:[#allocation2 + $0x10] sm:$0xff]  ;;  %v588_v11 = vrot.slane %v583_v3, %v587_v6  ;;  %v592_v12 = vrot.slane %v583_v3, %v591_v7  ;;  %v582_v15 = vld [vmem:[#allocation2 + $0x38] sm:$0xff] }
 0x138   : > { %v595_v16 = vadd.f32 %v588_v11, %v575_v4  ;;  %v596_v17 = vadd.f32 %v592_v12, %v576_v5  ;;  %v597_v18 = vadd.f32 %v588_v11, %v577_v8  ;;  %v598_v19 = vadd.f32 %v592_v12, %v578_v9 }
 0x139   : > { %v599_v20 = vadd.f32 %v588_v11, %v579_v10  ;;  %v600_v21 = vadd.f32 %v592_v12, %v580_v13  ;;  %v601_v22 = vadd.f32 %v588_v11, %v581_v14  ;;  %v602_v23 = vadd.f32 %v592_v12, %v582_v15 }
 0x13a   : > { %v603_v24 = vmax.f32 %v595_v16, 0.0  ;;  %v604_v25 = vmax.f32 %v596_v17, 0.0  ;;  %v605_v26 = vmax.f32 %v597_v18, 0.0  ;;  %v606_v27 = vmax.f32 %v598_v19, 0.0 }
 0x13b   : > { %v607_v28 = vmax.f32 %v599_v20, 0.0  ;;  %v608_v29 = vmax.f32 %v600_v21, 0.0  ;;  %v609_v30 = vmax.f32 %v601_v22, 0.0  ;;  %v610_v31 = vmax.f32 %v602_v23, 0.0 }
 0x13c   : > { %v783_v32 = vpack.c.bf16 %v604_v25, %v603_v24  ;;  %v784_v33 = vpack.c.bf16 %v606_v27, %v605_v26 }
 0x13d   : > { %v785_v34 = vpack.c.bf16 %v608_v29, %v607_v28  ;;  %v786_v35 = vpack.c.bf16 %v610_v31, %v609_v30 }
 0x13e   : > { %635 = vst [vmem:[%s1100_s3] sm:$0xff] %v783_v32  ;;  %636 = vst [vmem:[%s1100_s3 + $0x8] sm:$0xff] %v784_v33 }
 0x13f   : > { %637 = vst [vmem:[%s1100_s3 + $0x10] sm:$0xff] %v785_v34  ;;  %638 = vst [vmem:[%s1100_s3 + $0x18] sm:$0xff] %v786_v35 }
 0x140 PF: > { %s13_s16 = sadd.s32 1, %s952_s16   ;;  %s1101_s12 = smov %s940_s13 }
 0x141   : > { %p10_p12 = scmp.ge.s32.totalorder %s13_s16, 7   ;;  %s1102_s13 = smov %s1010_s20 }
 0x142   : > { %s1103_s14 = smov %s948_s15  ;;  %s1104_s15 = smov %s1106_s17 }
 0x143   :  { %12 = sbr.rel (!%p10_p12) target bundleno = 3 (0x3), region = 116 }

// kernel: resnet18_forward.32
= control target key start
LH: loop header
LB: loop body
LE: loop exit
PB: predicated region body
PF: predicated region fallthrough
CT: control target
= control target key end

     0   :  { %v348_v1 = vmov 0   ;;  %v229_v19 = vlaneseq  ;;  %s438_s1 = inlined_call_operand.vmem [shape: bf16[128,256], index: 1, kind: input, shape index: {}]   ;;  %s439_s0 = inlined_call_operand.vmem [shape: bf16[32,128], index: 0, kind: input, shape index: {}]   ;;  %s440_s2 = inlined_call_operand.vmem [shape: f32[1,256], index: 2, kind: input, shape index: {}]   ;;  %s441_s3 = inlined_call_operand.vmem [shape: bf16[32,256], index: 3, kind: output, shape index: {}]  }
   0x1   :  { %v322_v0 = vld [vmem:[%s438_s1 + $0x74] ss:$8 sps:$4 sm:$0xff]   ;;  %179 = vmatprep.mubr.bf16.mxu0 %v348_v1  ;;  %189 = vmatprep.mubr.bf16.mxu1 %v348_v1  ;;  %v324_v2 = vld [vmem:[%s438_s1 + $0x70] ss:$8 sps:$4 sm:$0xff]   ;;  %v325_v3 = vld [vmem:[%s438_s1 + $0x64] ss:$8 sps:$4 sm:$0xff]  }
   0x2   :  { %147 = vmatprep.subr.bf16.mxu0 %v322_v0  ;;  %305 = vmatprep.subr.bf16.mxu1 %v322_v0  ;;  %v327_v4 = vld [vmem:[%s438_s1 + $0x60] ss:$8 sps:$4 sm:$0xff]   ;;  %v328_v5 = vld [vmem:[%s438_s1 + $0x54] ss:$8 sps:$4 sm:$0xff]   ;;  %v330_v6 = vld [vmem:[%s438_s1 + $0x50] ss:$8 sps:$4 sm:$0xff]  }
   0x3   :  { %148 = vmatpush1.bf16.msra.mxu0 %v324_v2  ;;  %313 = vmatpush1.bf16.msra.mxu1 %v324_v2  ;;  %v331_v7 = vld [vmem:[%s438_s1 + $0x44] ss:$8 sps:$4 sm:$0xff]   ;;  %v333_v8 = vld [vmem:[%s438_s1 + $0x40] ss:$8 sps:$4 sm:$0xff]   ;;  %v334_v9 = vld [vmem:[%s438_s1 + $0x34] ss:$8 sps:$4 sm:$0xff]  }
   0x4   :  { %149 = vmatprep.subr.bf16.mxu0 %v325_v3  ;;  %306 = vmatprep.subr.bf16.mxu1 %v325_v3  ;;  %v336_v10 = vld [vmem:[%s438_s1 + $0x30] ss:$8 sps:$4 sm:$0xff]   ;;  %v337_v11 = vld [vmem:[%s438_s1 + $0x24] ss:$8 sps:$4 sm:$0xff]   ;;  %v339_v12 = vld [vmem:[%s438_s1 + $0x20] ss:$8 sps:$4 sm:$0xff]  }
   0x5   :  { %v340_v13 = vld [vmem:[%s438_s1 + $0x14] ss:$8 sps:$4 sm:$0xff]   ;;  %v342_v14 = vld [vmem:[%s438_s1 + $0x10] ss:$8 sps:$4 sm:$0xff]   ;;  %v343_v15 = vld [vmem:[%s438_s1 + $0x4] ss:$8 sps:$4 sm:$0xff]  }
   0x6   :  { %v345_v16 = vld [vmem:[%s438_s1] ss:$8 sps:$4 sm:$0xff]   ;;  %v230_v20 = vshrl.u32 %v229_v19, 7 }
   0x7   :  { %150 = vmatpush1.bf16.msra.mxu0 %v327_v4  ;;  %314 = vmatpush1.bf16.msra.mxu1 %v327_v4  ;;  %v346_v17 = vld [vmem:[%s439_s0] sm:$0xff]   ;;  %v347_v18 = vld [vmem:[%s439_s0 + $0x8] sm:$0xff]  }
   0x8   :  { %151 = vmatprep.subr.bf16.mxu0 %v328_v5  ;;  %307 = vmatprep.subr.bf16.mxu1 %v328_v5  ;;  %v231_v21 = vsub.s32 0, %v230_v20  ;;  %v235_v22 = vsub.s32 1, %v230_v20  ;;  %v227_v23 = vld [vmem:[%s440_s2] sm:$0x3] }
   0xa   :  { %v232_v24 = vrot.slane %v227_v23, %v231_v21  ;;  %v236_v25 = vrot.slane %v227_v23, %v235_v22 }
   0xb   :  { %152 = vmatpush1.bf16.msra.mxu0 %v330_v6  ;;  %315 = vmatpush1.bf16.msra.mxu1 %v330_v6 }
   0xc   :  { %153 = vmatprep.subr.bf16.mxu0 %v331_v7  ;;  %308 = vmatprep.subr.bf16.mxu1 %v331_v7 }
   0xf   :  { %154 = vmatpush1.bf16.msra.mxu0 %v333_v8  ;;  %316 = vmatpush1.bf16.msra.mxu1 %v333_v8 }
  0x10   :  { %155 = vmatprep.subr.bf16.mxu0 %v334_v9  ;;  %309 = vmatprep.subr.bf16.mxu1 %v334_v9 }
  0x13   :  { %156 = vmatpush1.bf16.msra.mxu0 %v336_v10  ;;  %317 = vmatpush1.bf16.msra.mxu1 %v336_v10 }
  0x14   :  { %157 = vmatprep.subr.bf16.mxu0 %v337_v11  ;;  %310 = vmatprep.subr.bf16.mxu1 %v337_v11 }
  0x17   :  { %158 = vmatpush1.bf16.msra.mxu0 %v339_v12  ;;  %318 = vmatpush1.bf16.msra.mxu1 %v339_v12 }
  0x18   :  { %159 = vmatprep.subr.bf16.mxu0 %v340_v13  ;;  %311 = vmatprep.subr.bf16.mxu1 %v340_v13 }
  0x1b   :  { %160 = vmatpush1.bf16.msra.mxu0 %v342_v14  ;;  %319 = vmatpush1.bf16.msra.mxu1 %v342_v14 }
  0x1c   :  { %161 = vmatprep.subr.bf16.mxu0 %v343_v15  ;;  %312 = vmatprep.subr.bf16.mxu1 %v343_v15 }
  0x1f   :  { %162 = vmatpush1.bf16.msra.mxu0 %v345_v16  ;;  %320 = vmatpush1.bf16.msra.mxu1 %v345_v16 }
  0x22   :  { %180 = vmatmul.mubr.bf16.vlgmr.msra.gmra.mxu0 %v346_v17  ;;  %190 = vmatmul.mubr.bf16.vlgmr.msra.gmra.mxu1 %v347_v18 }
  0xe2   :  { %v181_v26 = vpop.f32.mrf.mxu0  ;;  %v191_v27 = vpop.f32.mrf.mxu1 }
  0xe3   :  { %v239_v30 = vadd.f32 %v232_v24, %v181_v26  ;;  %v243_v31 = vadd.f32 %v232_v24, %v191_v27 }
  0xe4   :  { %v183_v28 = vpop.f32.mrf.mxu0  ;;  %v193_v29 = vpop.f32.mrf.mxu1 }
  0xe5   :  { %v240_v32 = vadd.f32 %v236_v25, %v183_v28  ;;  %v244_v33 = vadd.f32 %v236_v25, %v193_v29 }
  0xe6   :  { %v185_v34 = vpop.f32.mrf.mxu0  ;;  %v195_v35 = vpop.f32.mrf.mxu1 }
  0xe7   :  { %v301_v36 = vpack.c.bf16 %v240_v32, %v239_v30  ;;  %v303_v37 = vpack.c.bf16 %v244_v33, %v243_v31  ;;  %v241_v40 = vadd.f32 %v232_v24, %v185_v34  ;;  %v245_v41 = vadd.f32 %v232_v24, %v195_v35 }
  0xe8   :  { %v187_v38 = vpop.f32.mrf.mxu0  ;;  %v197_v39 = vpop.f32.mrf.mxu1 }
  0xe9   :  { %271 = vst [vmem:[%s441_s3] sm:$0xff] %v301_v36  ;;  %273 = vst [vmem:[%s441_s3 + $0x10] sm:$0xff] %v303_v37  ;;  %v242_v42 = vadd.f32 %v236_v25, %v187_v38  ;;  %v246_v43 = vadd.f32 %v236_v25, %v197_v39 }
  0xeb   :  { %v302_v44 = vpack.c.bf16 %v242_v42, %v241_v40  ;;  %v304_v45 = vpack.c.bf16 %v246_v43, %v245_v41 }
  0xed   :  { %272 = vst [vmem:[%s441_s3 + $0x8] sm:$0xff] %v302_v44  ;;  %274 = vst [vmem:[%s441_s3 + $0x18] sm:$0xff] %v304_v45 }

// kernel: resnet18_forward.33
= control target key start
LH: loop header
LB: loop body
LE: loop exit
PB: predicated region body
PF: predicated region fallthrough
CT: control target
= control target key end

     0   :  { %s1068_s15 = smov 0   ;;  %s1070_s16 = smov 0   ;;  %s1202_s0 = inlined_call_operand.vmem [shape: bf16[32,2304], index: 0, kind: input, shape index: {}]   ;;  %s1203_s1 = inlined_call_operand.vmem [shape: bf16[2304,256], index: 1, kind: input, shape index: {}]   ;;  %s1204_s2 = inlined_call_operand.vmem [shape: f32[1,256], index: 2, kind: input, shape index: {}]   ;;  %s1205_s3 = inlined_call_operand.vmem [shape: bf16[32,256], index: 3, kind: input, shape index: {}]   ;;  %s1206_s4 = inlined_call_operand.vmem [shape: bf16[32,256], index: 4, kind: output, shape index: {}]  }
   0x1   :  { %s1072_s17 = smov 0   ;;  %s1074_s18 = smov 0  }
   0x2   :  { %s1076_s19 = smov 0  }
   0x3 LB: > { %s23_s20 = sadd.s32 1, %s1036_s18  ;;  %p42_p1 = scmp.ne.s32.totalorder %s1028_s16, %s1024_s15  ;;  %s1040_s19 = sphi %s1076_s19, %s14_s19   ;;  %s1036_s18 = sphi %s1074_s18, %s1210_s18   ;;  %s1032_s17 = sphi %s1072_s17, %s1209_s17   ;;  %s1028_s16 = sphi %s1070_s16, %s1208_s16   ;;  %s1024_s15 = sphi %s1068_s15, %s1207_s15  }
   0x4   : > { %p24_p0 = scmp.ge.s32.totalorder %s23_s20, 9  ;;  %p43_p2 = scmp.eq.s32.totalorder %s1040_s19, 0 }
   0x5   : > { %s35_s22 = sadd.s32 1, %s1028_s16  ;;  %p814_p5 = scmp.ge.s32.totalorder %s1040_s19, 9 }
   0x6   : > { %s1212_s20 = smov (%p24_p0, %s23_s20), 0  ;;  %p44_p3 = por %p43_p2, %p42_p1 }
   0x7   : > { %s31_s21 = ssub.s32 %s1036_s18, %s1212_s20  ;;  %180 = sbr.rel (%p814_p5) target bundleno = 18 (0x12), region = 24 }
   0x8   : > { %p33_p4 = scmp.eq.s32.totalorder %s31_s21, 0 }
   0xa   : > { %s1103_s23 = scalar_select %p33_p4, %s1028_s16, %s35_s22  }
   0xc   : > { %183 = sbr.rel (!%p44_p3) target bundleno = 18 (0x12), region = 28  ;;  %s185_s24 = sand.u32 (%p44_p3), 1, %s1028_s16  }
   0xd   : > { %s869_s25 = sshll.u32 (%p44_p3), %s1036_s18, 3  ;;  %s815_s26 = sshll.u32 (%p44_p3), %s185_s24, 5 }
   0xe   : > { %s193_s29 = scalar_lea.vmem (%p44_p3), %s1202_s0, %s869_s25  ;;  %s187_s30 = scalar_lea.vmem (%p44_p3), [#allocation3], %s815_s26 }
   0xf   : > { %v228_v0 = vld [vmem:[%s193_s29] sm:$0xff] (%p44_p3)  ;;  %v230_v1 = vld [vmem:[%s193_s29 + $0x48] sm:$0xff] (%p44_p3)  ;;  %v232_v2 = vld [vmem:[%s193_s29 + $0x90] sm:$0xff] (%p44_p3) }
  0x10   : > { %229 = vst [vmem:[%s187_s30] sm:$0xff] (%p44_p3), %v228_v0  ;;  %231 = vst [vmem:[%s187_s30 + $0x8] sm:$0xff] (%p44_p3), %v230_v1  ;;  %v234_v3 = vld [vmem:[%s193_s29 + $0xd8] sm:$0xff] (%p44_p3) }
  0x11   : > { %233 = vst [vmem:[%s187_s30 + $0x10] sm:$0xff] %v232_v2  ;;  %235 = vst [vmem:[%s187_s30 + $0x18] sm:$0xff] %v234_v3 }
  0x12 PF: > { %p818_p6 = scmp.ge.s32.totalorder %s1040_s19, 1  ;;  %p250_p7 = scmp.lt.s32.totalorder %s1040_s19, 10 }
  0x14   : > { %p251_p8 = pnand %p818_p6, %p250_p7 }
  0x15   : > { %s257_s5 = sand.u32 (!%p251_p8), 1, %s1024_s15   ;;  %s820_s6 = sshll.u32 (!%p251_p8), %s1032_s17, 5 }
  0x16   : > { %254 = sbr.rel (%p251_p8) target bundleno = 322 (0x142), region = 70  ;;  %s819_s7 = sshll.u32 (!%p251_p8), %s257_s5, 5 }
  0x17   : > { %p298_p9 = scmp.lt.s32.totalorder (!%p251_p8), %s820_s6, 287  ;;  %s1120_s12 = scalar_lea.vmem (!%p251_p8), [#allocation3], %s819_s7 }
  0x18   : > { %p823_p10 = scmp.ne.s32.totalorder (!%p251_p8), %s1032_s17, 0 }
  0x1b   : > { %s1214_s6 = smov (!%p298_p9, %s820_s6), 287  ;;  %321 = sbr.rel (%p823_p10) target bundleno = 37 (0x25), region = 78 }
  0x1c   : > { %s870_s8 = sshll.u32 %s1214_s6, 3 }
  0x1d   : > { %s1118_s11 = scalar_lea.vmem %s1203_s1, %s870_s8 }
  0x20   : > { %v1042_v4 = vmov 0.0  }
  0x21   : > { %322 = vst [vmem:[#allocation2 + $0x30] sm:$0xff] %v1042_v4  ;;  %323 = vst [vmem:[#allocation2] sm:$0xff] %v1042_v4 }
  0x22   : > { %324 = vst [vmem:[#allocation2 + $0x18] sm:$0xff] %v1042_v4  ;;  %325 = vst [vmem:[#allocation2 + $0x10] sm:$0xff] %v1042_v4 }
  0x23   : > { %326 = vst [vmem:[#allocation2 + $0x8] sm:$0xff] %v1042_v4  ;;  %327 = vst [vmem:[#allocation2 + $0x20] sm:$0xff] %v1042_v4 }
  0x24   : > { %328 = vst [vmem:[#allocation2 + $0x28] sm:$0xff] %v1042_v4  ;;  %329 = vst [vmem:[#allocation2 + $0x38] sm:$0xff] %v1042_v4 }
  0x25 PF: > { %v948_v5 = vld [vmem:[%s1118_s11 + $0x74] ss:$8 sps:$4 sm:$0xff]   ;;  %v950_v6 = vld [vmem:[%s1118_s11 + $0x70] ss:$8 sps:$4 sm:$0xff]   ;;  %v951_v7 = vld [vmem:[%s1118_s11 + $0x64] ss:$8 sps:$4 sm:$0xff]  }
  0x26   : > { %554 = vmatprep.subr.bf16.mxu0 %v948_v5  ;;  %875 = vmatprep.subr.bf16.mxu1 %v948_v5  ;;  %v953_v8 = vld [vmem:[%s1118_s11 + $0x60] ss:$8 sps:$4 sm:$0xff]   ;;  %v954_v9 = vld [vmem:[%s1118_s11 + $0x54] ss:$8 sps:$4 sm:$0xff]   ;;  %v956_v10 = vld [vmem:[%s1118_s11 + $0x50] ss:$8 sps:$4 sm:$0xff]  }
  0x27   : > { %555 = vmatpush1.bf16.msra.mxu0 %v950_v6  ;;  %891 = vmatpush1.bf16.msra.mxu1 %v950_v6  ;;  %v957_v11 = vld [vmem:[%s1118_s11 + $0x44] ss:$8 sps:$4 sm:$0xff]   ;;  %v959_v12 = vld [vmem:[%s1118_s11 + $0x40] ss:$8 sps:$4 sm:$0xff]   ;;  %v960_v13 = vld [vmem:[%s1118_s11 + $0x34] ss:$8 sps:$4 sm:$0xff]  }
  0x28   : > { %556 = vmatprep.subr.bf16.mxu0 %v951_v7  ;;  %876 = vmatprep.subr.bf16.mxu1 %v951_v7  ;;  %v962_v14 = vld [vmem:[%s1118_s11 + $0x30] ss:$8 sps:$4 sm:$0xff]   ;;  %v963_v15 = vld [vmem:[%s1118_s11 + $0x24] ss:$8 sps:$4 sm:$0xff]   ;;  %v965_v16 = vld [vmem:[%s1118_s11 + $0x20] ss:$8 sps:$4 sm:$0xff]  }
  0x29   : > { %v966_v17 = vld [vmem:[%s1118_s11 + $0x14] ss:$8 sps:$4 sm:$0xff]   ;;  %v998_v18 = vld [vmem:[%s1120_s12 + $0x4] ss:$8 sps:$4 sm:$0xff]   ;;  %v968_v19 = vld [vmem:[%s1118_s11 + $0x10] ss:$8 sps:$4 sm:$0xff]  }
  0x2a   : > { %v1001_v20 = vld [vmem:[%s1120_s12 + $0x14] ss:$8 sps:$4 sm:$0xff]   ;;  %v969_v21 = vld [vmem:[%s1118_s11 + $0x4] ss:$8 sps:$4 sm:$0xff]   ;;  %586 = vmatprep.mubr.bf16.mxu0 %v998_v18  ;;  %v971_v22 = vld [vmem:[%s1118_s11] ss:$8 sps:$4 sm:$0xff]  }
  0x2b   : > { %557 = vmatpush1.bf16.msra.mxu0 %v953_v8  ;;  %892 = vmatpush1.bf16.msra.mxu1 %v953_v8  ;;  %v972_v23 = vld [vmem:[%s1118_s11 + $0xf4] ss:$8 sps:$4 sm:$0xff]   ;;  %v974_v24 = vld [vmem:[%s1118_s11 + $0xf0] ss:$8 sps:$4 sm:$0xff]   ;;  %v975_v25 = vld [vmem:[%s1118_s11 + $0xe4] ss:$8 sps:$4 sm:$0xff]  }
  0x2c   : > { %558 = vmatprep.subr.bf16.mxu0 %v954_v9  ;;  %877 = vmatprep.subr.bf16.mxu1 %v954_v9  ;;  %v977_v26 = vld [vmem:[%s1118_s11 + $0xe0] ss:$8 sps:$4 sm:$0xff]   ;;  %v978_v27 = vld [vmem:[%s1118_s11 + $0xd4] ss:$8 sps:$4 sm:$0xff]   ;;  %v980_v28 = vld [vmem:[%s1118_s11 + $0xd0] ss:$8 sps:$4 sm:$0xff]  }
  0x2d   : > { %596 = vmatprep.mubr.bf16.mxu1 %v1001_v20  ;;  %v981_v29 = vld [vmem:[%s1118_s11 + $0xc4] ss:$8 sps:$4 sm:$0xff]   ;;  %v983_v30 = vld [vmem:[%s1118_s11 + $0xc0] ss:$8 sps:$4 sm:$0xff]   ;;  %v984_v31 = vld [vmem:[%s1118_s11 + $0xb4] ss:$8 sps:$4 sm:$0xff]  }
  0x2e   : > { %v986_v32 = vld [vmem:[%s1118_s11 + $0xb0] ss:$8 sps:$4 sm:$0xff]   ;;  %v987_v33 = vld [vmem:[%s1118_s11 + $0xa4] ss:$8 sps:$4 sm:$0xff]   ;;  %v989_v34 = vld [vmem:[%s1118_s11 + $0xa0] ss:$8 sps:$4 sm:$0xff]  }
  0x2f   : > { %559 = vmatpush1.bf16.msra.mxu0 %v956_v10  ;;  %893 = vmatpush1.bf16.msra.mxu1 %v956_v10  ;;  %v990_v35 = vld [vmem:[%s1118_s11 + $0x94] ss:$8 sps:$4 sm:$0xff]   ;;  %v992_v36 = vld [vmem:[%s1118_s11 + $0x90] ss:$8 sps:$4 sm:$0xff]   ;;  %v993_v37 = vld [vmem:[%s1118_s11 + $0x84] ss:$8 sps:$4 sm:$0xff]  }
  0x30   : > { %560 = vmatprep.subr.bf16.mxu0 %v957_v11  ;;  %878 = vmatprep.subr.bf16.mxu1 %v957_v11  ;;  %v995_v38 = vld [vmem:[%s1118_s11 + $0x80] ss:$8 sps:$4 sm:$0xff]   ;;  %v999_v40 = vld [vmem:[%s1120_s12 + $0x10] ss:$8 sps:$4 sm:$0xff]   ;;  %p860_p11 = scmp.ne.s32.totalorder %s1032_s17, 8 }
  0x31   : > { %v996_v39 = vld [vmem:[%s1120_s12] ss:$8 sps:$4 sm:$0xff]   ;;  %v330_v41 = vld [vmem:[#allocation2 + $0x30] sm:$0xff]  ;;  %v332_v51 = vld [vmem:[#allocation2 + $0x18] sm:$0xff] }
  0x32   : > { %v334_v42 = vld [vmem:[#allocation2 + $0x8] sm:$0xff]  ;;  %v331_v45 = vld [vmem:[#allocation2] sm:$0xff]  ;;  %v333_v57 = vld [vmem:[#allocation2 + $0x10] sm:$0xff] }
  0x33   : > { %561 = vmatpush1.bf16.msra.mxu0 %v959_v12  ;;  %894 = vmatpush1.bf16.msra.mxu1 %v959_v12  ;;  %v335_v46 = vld [vmem:[#allocation2 + $0x20] sm:$0xff]  ;;  %v336_v52 = vld [vmem:[#allocation2 + $0x28] sm:$0xff]  ;;  %v337_v58 = vld [vmem:[#allocation2 + $0x38] sm:$0xff] }
  0x34   : > { %562 = vmatprep.subr.bf16.mxu0 %v960_v13  ;;  %879 = vmatprep.subr.bf16.mxu1 %v960_v13 }
  0x37   : > { %563 = vmatpush1.bf16.msra.mxu0 %v962_v14  ;;  %895 = vmatpush1.bf16.msra.mxu1 %v962_v14 }
  0x38   : > { %564 = vmatprep.subr.bf16.mxu0 %v963_v15  ;;  %880 = vmatprep.subr.bf16.mxu1 %v963_v15 }
  0x3b   : > { %565 = vmatpush1.bf16.msra.mxu0 %v965_v16  ;;  %896 = vmatpush1.bf16.msra.mxu1 %v965_v16 }
  0x3c   : > { %566 = vmatprep.subr.bf16.mxu0 %v966_v17  ;;  %881 = vmatprep.subr.bf16.mxu1 %v966_v17 }
  0x3f   : > { %567 = vmatpush1.bf16.msra.mxu0 %v968_v19  ;;  %897 = vmatpush1.bf16.msra.mxu1 %v968_v19 }
  0x40   : > { %568 = vmatprep.subr.bf16.mxu0 %v969_v21  ;;  %882 = vmatprep.subr.bf16.mxu1 %v969_v21 }
  0x43   : > { %569 = vmatpush1.bf16.msra.mxu0 %v971_v22  ;;  %898 = vmatpush1.bf16.msra.mxu1 %v971_v22 }
  0x44   : > { %570 = vmatprep.subr.bf16.mxu0 %v972_v23  ;;  %883 = vmatprep.subr.bf16.mxu1 %v972_v23 }
  0x47   : > { %571 = vmatpush2.bf16.msra.mxu0 %v974_v24  ;;  %899 = vmatpush2.bf16.msra.mxu1 %v974_v24 }
  0x48   : > { %572 = vmatprep.subr.bf16.mxu0 %v975_v25  ;;  %884 = vmatprep.subr.bf16.mxu1 %v975_v25 }
  0x4b   : > { %573 = vmatpush2.bf16.msra.mxu0 %v977_v26  ;;  %900 = vmatpush2.bf16.msra.mxu1 %v977_v26 }
  0x4c   : > { %574 = vmatprep.subr.bf16.mxu0 %v978_v27  ;;  %885 = vmatprep.subr.bf16.mxu1 %v978_v27 }
  0x4f   : > { %575 = vmatpush2.bf16.msra.mxu0 %v980_v28  ;;  %901 = vmatpush2.bf16.msra.mxu1 %v980_v28 }
  0x50   : > { %576 = vmatprep.subr.bf16.mxu0 %v981_v29  ;;  %886 = vmatprep.subr.bf16.mxu1 %v981_v29 }
  0x53   : > { %577 = vmatpush2.bf16.msra.mxu0 %v983_v30  ;;  %902 = vmatpush2.bf16.msra.mxu1 %v983_v30 }
  0x54   : > { %578 = vmatprep.subr.bf16.mxu0 %v984_v31  ;;  %887 = vmatprep.subr.bf16.mxu1 %v984_v31 }
  0x57   : > { %579 = vmatpush2.bf16.msra.mxu0 %v986_v32  ;;  %903 = vmatpush2.bf16.msra.mxu1 %v986_v32 }
  0x58   : > { %580 = vmatprep.subr.bf16.mxu0 %v987_v33  ;;  %888 = vmatprep.subr.bf16.mxu1 %v987_v33 }
  0x5b   : > { %581 = vmatpush2.bf16.msra.mxu0 %v989_v34  ;;  %904 = vmatpush2.bf16.msra.mxu1 %v989_v34 }
  0x5c   : > { %582 = vmatprep.subr.bf16.mxu0 %v990_v35  ;;  %889 = vmatprep.subr.bf16.mxu1 %v990_v35 }
  0x5f   : > { %583 = vmatpush2.bf16.msra.mxu0 %v992_v36  ;;  %905 = vmatpush2.bf16.msra.mxu1 %v992_v36 }
  0x60   : > { %584 = vmatprep.subr.bf16.mxu0 %v993_v37  ;;  %890 = vmatprep.subr.bf16.mxu1 %v993_v37 }
  0x63   : > { %585 = vmatpush2.bf16.msra.mxu0 %v995_v38  ;;  %906 = vmatpush2.bf16.msra.mxu1 %v995_v38 }
  0x66   : > { %587 = vmatmul.mubr.bf16.vlgmr.msra.gmra.mxu0 %v996_v39  ;;  %597 = vmatmul.mubr.bf16.vlgmr.msra.gmra.mxu1 %v999_v40 }
 0x126   : > { %v588_v43 = vpop.f32.mrf.mxu0  ;;  %v598_v44 = vpop.f32.mrf.mxu1 }
 0x127   : > { %v607_v47 = vadd.f32 %v588_v43, %v330_v41  ;;  %v611_v48 = vadd.f32 %v598_v44, %v334_v42 }
 0x128   : > { %v590_v49 = vpop.f32.mrf.mxu0  ;;  %v600_v50 = vpop.f32.mrf.mxu1 }
 0x129   : > { %615 = vst [vmem:[#allocation2 + $0x30] sm:$0xff] %v607_v47  ;;  %619 = vst [vmem:[#allocation2 + $0x8] sm:$0xff] %v611_v48  ;;  %v608_v53 = vadd.f32 %v590_v49, %v331_v45  ;;  %v612_v54 = vadd.f32 %v600_v50, %v335_v46 }
 0x12a   : > { %v592_v55 = vpop.f32.mrf.mxu0  ;;  %v602_v56 = vpop.f32.mrf.mxu1 }
 0x12b   : > { %616 = vst [vmem:[#allocation2] sm:$0xff] %v608_v53  ;;  %620 = vst [vmem:[#allocation2 + $0x20] sm:$0xff] %v612_v54  ;;  %v609_v59 = vadd.f32 %v592_v55, %v332_v51  ;;  %v613_v60 = vadd.f32 %v602_v56, %v336_v52  ;;  %626 = sbr.rel (%p860_p11) target bundleno = 322 (0x142), region = 82 }
 0x12c   : > { %v594_v61 = vpop.f32.mrf.mxu0  ;;  %v604_v62 = vpop.f32.mrf.mxu1 }
 0x12d   : > { %617 = vst [vmem:[#allocation2 + $0x18] sm:$0xff] %v609_v59  ;;  %621 = vst [vmem:[#allocation2 + $0x28] sm:$0xff] %v613_v60  ;;  %v610_v63 = vadd.f32 %v594_v61, %v333_v57  ;;  %v614_v0 = vadd.f32 %v604_v62, %v337_v58 }
 0x12f   : > { %618 = vst [vmem:[#allocation2 + $0x10] sm:$0xff] %v610_v63  ;;  %622 = vst [vmem:[#allocation2 + $0x38] sm:$0xff] %v614_v0 }
 0x130   : > { %v637_v1 = vlaneseq  ;;  %v655_v3 = vld [vmem:[%s1205_s3] sm:$0xff]  ;;  %v627_v4 = vld [vmem:[#allocation2 + $0x30] sm:$0xff]  ;;  %v656_v6 = vld [vmem:[%s1205_s3 + $0x8] sm:$0xff] }
 0x131   : > { %v635_v5 = vld [vmem:[%s1204_s2] sm:$0x3]  ;;  %v657_v10 = vld [vmem:[%s1205_s3 + $0x10] sm:$0xff]  ;;  %v658_v11 = vld [vmem:[%s1205_s3 + $0x18] sm:$0xff]  ;;  %v659_v12 = vunpack.c.l.bf16 %v655_v3  ;;  %v660_v13 = vunpack.c.h.bf16 %v655_v3  ;;  %v661_v19 = vunpack.c.l.bf16 %v656_v6  ;;  %v662_v20 = vunpack.c.h.bf16 %v656_v6 }
 0x132   : > { %v638_v2 = vshrl.u32 %v637_v1, 7  ;;  %v628_v7 = vld [vmem:[#allocation2] sm:$0xff]  ;;  %v631_v16 = vld [vmem:[#allocation2 + $0x8] sm:$0xff]  ;;  %v663_v24 = vunpack.c.l.bf16 %v657_v10  ;;  %v664_v25 = vunpack.c.h.bf16 %v657_v10  ;;  %v665_v26 = vunpack.c.l.bf16 %v658_v11 }
 0x133   : > { %v632_v21 = vld [vmem:[#allocation2 + $0x20] sm:$0xff]  ;;  %v666_v27 = vunpack.c.h.bf16 %v658_v11 }
 0x134   : > { %v639_v8 = vsub.s32 0, %v638_v2  ;;  %v643_v9 = vsub.s32 1, %v638_v2  ;;  %v629_v14 = vld [vmem:[#allocation2 + $0x18] sm:$0xff]  ;;  %v633_v22 = vld [vmem:[#allocation2 + $0x28] sm:$0xff] }
 0x136   : > { %v630_v15 = vld [vmem:[#allocation2 + $0x10] sm:$0xff]  ;;  %v640_v17 = vrot.slane %v635_v5, %v639_v8  ;;  %v644_v18 = vrot.slane %v635_v5, %v643_v9  ;;  %v634_v23 = vld [vmem:[#allocation2 + $0x38] sm:$0xff] }
 0x138   : > { %v647_v28 = vadd.f32 %v640_v17, %v627_v4  ;;  %v648_v29 = vadd.f32 %v644_v18, %v628_v7  ;;  %v649_v30 = vadd.f32 %v640_v17, %v629_v14  ;;  %v650_v31 = vadd.f32 %v644_v18, %v630_v15 }
 0x139   : > { %v651_v32 = vadd.f32 %v640_v17, %v631_v16  ;;  %v652_v33 = vadd.f32 %v644_v18, %v632_v21  ;;  %v653_v34 = vadd.f32 %v640_v17, %v633_v22  ;;  %v654_v35 = vadd.f32 %v644_v18, %v634_v23 }
 0x13a   : > { %v667_v36 = vadd.f32 %v659_v12, %v647_v28  ;;  %v668_v37 = vadd.f32 %v660_v13, %v648_v29  ;;  %v669_v38 = vadd.f32 %v661_v19, %v649_v30  ;;  %v670_v39 = vadd.f32 %v662_v20, %v650_v31 }
 0x13b   : > { %v671_v40 = vadd.f32 %v663_v24, %v651_v32  ;;  %v672_v41 = vadd.f32 %v664_v25, %v652_v33  ;;  %v673_v42 = vadd.f32 %v665_v26, %v653_v34  ;;  %v674_v43 = vadd.f32 %v666_v27, %v654_v35 }
 0x13c   : > { %v675_v44 = vmax.f32 %v667_v36, 0.0  ;;  %v676_v45 = vmax.f32 %v668_v37, 0.0  ;;  %v677_v46 = vmax.f32 %v669_v38, 0.0  ;;  %v678_v47 = vmax.f32 %v670_v39, 0.0 }
 0x13d   : > { %v679_v48 = vmax.f32 %v671_v40, 0.0  ;;  %v680_v49 = vmax.f32 %v672_v41, 0.0  ;;  %v681_v50 = vmax.f32 %v673_v42, 0.0  ;;  %v682_v51 = vmax.f32 %v674_v43, 0.0 }
 0x13e   : > { %v871_v52 = vpack.c.bf16 %v676_v45, %v675_v44  ;;  %v872_v53 = vpack.c.bf16 %v678_v47, %v677_v46 }
 0x13f   : > { %v873_v54 = vpack.c.bf16 %v680_v49, %v679_v48  ;;  %v874_v55 = vpack.c.bf16 %v682_v51, %v681_v50 }
 0x140   : > { %707 = vst [vmem:[%s1206_s4] sm:$0xff] %v871_v52  ;;  %708 = vst [vmem:[%s1206_s4 + $0x8] sm:$0xff] %v872_v53 }
 0x141   : > { %709 = vst [vmem:[%s1206_s4 + $0x10] sm:$0xff] %v873_v54  ;;  %710 = vst [vmem:[%s1206_s4 + $0x18] sm:$0xff] %v874_v55 }
 0x142 PF: > { %s14_s19 = sadd.s32 1, %s1040_s19   ;;  %s1207_s15 = smov %s1028_s16 }
 0x143   : > { %p11_p12 = scmp.ge.s32.totalorder %s14_s19, 11   ;;  %s1208_s16 = smov %s1103_s23 }
 0x144   : > { %s1209_s17 = smov %s1036_s18  ;;  %s1210_s18 = smov %s1212_s20 }
 0x145   :  { %13 = sbr.rel (!%p11_p12) target bundleno = 3 (0x3), region = 123 }

// kernel: resnet18_forward.34
= control target key start
LH: loop header
LB: loop body
LE: loop exit
PB: predicated region body
PF: predicated region fallthrough
CT: control target
= control target key end

     0   :  { %s975_s12 = smov 0   ;;  %s977_s13 = smov 0   ;;  %s1097_s0 = inlined_call_operand.vmem [shape: bf16[32,2304], index: 0, kind: input, shape index: {}]   ;;  %s1098_s1 = inlined_call_operand.vmem [shape: bf16[2304,256], index: 1, kind: input, shape index: {}]   ;;  %s1099_s2 = inlined_call_operand.vmem [shape: f32[1,256], index: 2, kind: input, shape index: {}]   ;;  %s1100_s3 = inlined_call_operand.vmem [shape: bf16[32,256], index: 3, kind: output, shape index: {}]  }
   0x1   :  { %s979_s14 = smov 0   ;;  %s981_s15 = smov 0  }
   0x2   :  { %s983_s16 = smov 0  }
   0x3 LB: > { %s22_s17 = sadd.s32 1, %s948_s15  ;;  %p41_p1 = scmp.ne.s32.totalorder %s940_s13, %s936_s12  ;;  %s952_s16 = sphi %s983_s16, %s13_s16   ;;  %s948_s15 = sphi %s981_s15, %s1104_s15   ;;  %s944_s14 = sphi %s979_s14, %s1103_s14   ;;  %s940_s13 = sphi %s977_s13, %s1102_s13   ;;  %s936_s12 = sphi %s975_s12, %s1101_s12  }
   0x4   : > { %p23_p0 = scmp.ge.s32.totalorder %s22_s17, 9  ;;  %p42_p2 = scmp.eq.s32.totalorder %s952_s16, 0 }
   0x5   : > { %s34_s19 = sadd.s32 1, %s940_s13  ;;  %p726_p5 = scmp.ge.s32.totalorder %s952_s16, 9 }
   0x6   : > { %s1106_s17 = smov (%p23_p0, %s22_s17), 0  ;;  %p43_p3 = por %p42_p2, %p41_p1 }
   0x7   : > { %s30_s18 = ssub.s32 %s948_s15, %s1106_s17  ;;  %143 = sbr.rel (%p726_p5) target bundleno = 18 (0x12), region = 20 }
   0x8   : > { %p32_p4 = scmp.eq.s32.totalorder %s30_s18, 0 }
   0xa   : > { %s1010_s20 = scalar_select %p32_p4, %s940_s13, %s34_s19  }
   0xc   : > { %146 = sbr.rel (!%p43_p3) target bundleno = 18 (0x12), region = 24  ;;  %s148_s21 = sand.u32 (%p43_p3), 1, %s940_s13  }
   0xd   : > { %s781_s22 = sshll.u32 (%p43_p3), %s948_s15, 3  ;;  %s727_s23 = sshll.u32 (%p43_p3), %s148_s21, 5 }
   0xe   : > { %s156_s26 = scalar_lea.vmem (%p43_p3), %s1097_s0, %s781_s22  ;;  %s150_s27 = scalar_lea.vmem (%p43_p3), [#allocation3], %s727_s23 }
   0xf   : > { %v191_v0 = vld [vmem:[%s156_s26] sm:$0xff] (%p43_p3)  ;;  %v193_v1 = vld [vmem:[%s156_s26 + $0x48] sm:$0xff] (%p43_p3)  ;;  %v195_v2 = vld [vmem:[%s156_s26 + $0x90] sm:$0xff] (%p43_p3) }
  0x10   : > { %192 = vst [vmem:[%s150_s27] sm:$0xff] (%p43_p3), %v191_v0  ;;  %194 = vst [vmem:[%s150_s27 + $0x8] sm:$0xff] (%p43_p3), %v193_v1  ;;  %v197_v3 = vld [vmem:[%s156_s26 + $0xd8] sm:$0xff] (%p43_p3) }
  0x11   : > { %196 = vst [vmem:[%s150_s27 + $0x10] sm:$0xff] %v195_v2  ;;  %198 = vst [vmem:[%s150_s27 + $0x18] sm:$0xff] %v197_v3 }
  0x12 PF: > { %p730_p6 = scmp.ge.s32.totalorder %s952_s16, 1  ;;  %p213_p7 = scmp.lt.s32.totalorder %s952_s16, 10 }
  0x14   : > { %p214_p8 = pnand %p730_p6, %p213_p7 }
  0x15   : > { %s220_s28 = sand.u32 (!%p214_p8), 1, %s936_s12   ;;  %s732_s29 = sshll.u32 (!%p214_p8), %s944_s14, 5 }
  0x16   : > { %217 = sbr.rel (%p214_p8) target bundleno = 320 (0x140), region = 66  ;;  %s731_s30 = sshll.u32 (!%p214_p8), %s220_s28, 5 }
  0x17   : > { %p253_p9 = scmp.lt.s32.totalorder (!%p214_p8), %s732_s29, 287  ;;  %s1027_s8 = scalar_lea.vmem (!%p214_p8), [#allocation3], %s731_s30 }
  0x18   : > { %p735_p10 = scmp.ne.s32.totalorder (!%p214_p8), %s944_s14, 0 }
  0x1b   : > { %s1108_s29 = smov (!%p253_p9, %s732_s29), 287  ;;  %269 = sbr.rel (%p735_p10) target bundleno = 37 (0x25), region = 74 }
  0x1c   : > { %s782_s4 = sshll.u32 %s1108_s29, 3 }
  0x1d   : > { %s1025_s7 = scalar_lea.vmem %s1098_s1, %s782_s4 }
  0x20   : > { %v954_v4 = vmov 0.0  }
  0x21   : > { %270 = vst [vmem:[#allocation2 + $0x30] sm:$0xff] %v954_v4  ;;  %271 = vst [vmem:[#allocation2] sm:$0xff] %v954_v4 }
  0x22   : > { %272 = vst [vmem:[#allocation2 + $0x18] sm:$0xff] %v954_v4  ;;  %273 = vst [vmem:[#allocation2 + $0x10] sm:$0xff] %v954_v4 }
  0x23   : > { %274 = vst [vmem:[#allocation2 + $0x8] sm:$0xff] %v954_v4  ;;  %275 = vst [vmem:[#allocation2 + $0x20] sm:$0xff] %v954_v4 }
  0x24   : > { %276 = vst [vmem:[#allocation2 + $0x28] sm:$0xff] %v954_v4  ;;  %277 = vst [vmem:[#allocation2 + $0x38] sm:$0xff] %v954_v4 }
  0x25 PF: > { %v860_v5 = vld [vmem:[%s1025_s7 + $0x74] ss:$8 sps:$4 sm:$0xff]   ;;  %v862_v6 = vld [vmem:[%s1025_s7 + $0x70] ss:$8 sps:$4 sm:$0xff]   ;;  %v863_v7 = vld [vmem:[%s1025_s7 + $0x64] ss:$8 sps:$4 sm:$0xff]  }
  0x26   : > { %502 = vmatprep.subr.bf16.mxu0 %v860_v5  ;;  %787 = vmatprep.subr.bf16.mxu1 %v860_v5  ;;  %v865_v8 = vld [vmem:[%s1025_s7 + $0x60] ss:$8 sps:$4 sm:$0xff]   ;;  %v866_v9 = vld [vmem:[%s1025_s7 + $0x54] ss:$8 sps:$4 sm:$0xff]   ;;  %v868_v10 = vld [vmem:[%s1025_s7 + $0x50] ss:$8 sps:$4 sm:$0xff]  }
  0x27   : > { %503 = vmatpush1.bf16.msra.mxu0 %v862_v6  ;;  %803 = vmatpush1.bf16.msra.mxu1 %v862_v6  ;;  %v869_v11 = vld [vmem:[%s1025_s7 + $0x44] ss:$8 sps:$4 sm:$0xff]   ;;  %v871_v12 = vld [vmem:[%s1025_s7 + $0x40] ss:$8 sps:$4 sm:$0xff]   ;;  %v872_v13 = vld [vmem:[%s1025_s7 + $0x34] ss:$8 sps:$4 sm:$0xff]  }
  0x28   : > { %504 = vmatprep.subr.bf16.mxu0 %v863_v7  ;;  %788 = vmatprep.subr.bf16.mxu1 %v863_v7  ;;  %v874_v14 = vld [vmem:[%s1025_s7 + $0x30] ss:$8 sps:$4 sm:$0xff]   ;;  %v875_v15 = vld [vmem:[%s1025_s7 + $0x24] ss:$8 sps:$4 sm:$0xff]   ;;  %v877_v16 = vld [vmem:[%s1025_s7 + $0x20] ss:$8 sps:$4 sm:$0xff]  }
  0x29   : > { %v878_v17 = vld [vmem:[%s1025_s7 + $0x14] ss:$8 sps:$4 sm:$0xff]   ;;  %v910_v18 = vld [vmem:[%s1027_s8 + $0x4] ss:$8 sps:$4 sm:$0xff]   ;;  %v880_v19 = vld [vmem:[%s1025_s7 + $0x10] ss:$8 sps:$4 sm:$0xff]  }
  0x2a   : > { %v913_v20 = vld [vmem:[%s1027_s8 + $0x14] ss:$8 sps:$4 sm:$0xff]   ;;  %v881_v21 = vld [vmem:[%s1025_s7 + $0x4] ss:$8 sps:$4 sm:$0xff]   ;;  %534 = vmatprep.mubr.bf16.mxu0 %v910_v18  ;;  %v883_v22 = vld [vmem:[%s1025_s7] ss:$8 sps:$4 sm:$0xff]  }
  0x2b   : > { %505 = vmatpush1.bf16.msra.mxu0 %v865_v8  ;;  %804 = vmatpush1.bf16.msra.mxu1 %v865_v8  ;;  %v884_v23 = vld [vmem:[%s1025_s7 + $0xf4] ss:$8 sps:$4 sm:$0xff]   ;;  %v886_v24 = vld [vmem:[%s1025_s7 + $0xf0] ss:$8 sps:$4 sm:$0xff]   ;;  %v887_v25 = vld [vmem:[%s1025_s7 + $0xe4] ss:$8 sps:$4 sm:$0xff]  }
  0x2c   : > { %506 = vmatprep.subr.bf16.mxu0 %v866_v9  ;;  %789 = vmatprep.subr.bf16.mxu1 %v866_v9  ;;  %v889_v26 = vld [vmem:[%s1025_s7 + $0xe0] ss:$8 sps:$4 sm:$0xff]   ;;  %v890_v27 = vld [vmem:[%s1025_s7 + $0xd4] ss:$8 sps:$4 sm:$0xff]   ;;  %v892_v28 = vld [vmem:[%s1025_s7 + $0xd0] ss:$8 sps:$4 sm:$0xff]  }
  0x2d   : > { %544 = vmatprep.mubr.bf16.mxu1 %v913_v20  ;;  %v893_v29 = vld [vmem:[%s1025_s7 + $0xc4] ss:$8 sps:$4 sm:$0xff]   ;;  %v895_v30 = vld [vmem:[%s1025_s7 + $0xc0] ss:$8 sps:$4 sm:$0xff]   ;;  %v896_v31 = vld [vmem:[%s1025_s7 + $0xb4] ss:$8 sps:$4 sm:$0xff]  }
  0x2e   : > { %v898_v32 = vld [vmem:[%s1025_s7 + $0xb0] ss:$8 sps:$4 sm:$0xff]   ;;  %v899_v33 = vld [vmem:[%s1025_s7 + $0xa4] ss:$8 sps:$4 sm:$0xff]   ;;  %v901_v34 = vld [vmem:[%s1025_s7 + $0xa0] ss:$8 sps:$4 sm:$0xff]  }
  0x2f   : > { %507 = vmatpush1.bf16.msra.mxu0 %v868_v10  ;;  %805 = vmatpush1.bf16.msra.mxu1 %v868_v10  ;;  %v902_v35 = vld [vmem:[%s1025_s7 + $0x94] ss:$8 sps:$4 sm:$0xff]   ;;  %v904_v36 = vld [vmem:[%s1025_s7 + $0x90] ss:$8 sps:$4 sm:$0xff]   ;;  %v905_v37 = vld [vmem:[%s1025_s7 + $0x84] ss:$8 sps:$4 sm:$0xff]  }
  0x30   : > { %508 = vmatprep.subr.bf16.mxu0 %v869_v11  ;;  %790 = vmatprep.subr.bf16.mxu1 %v869_v11  ;;  %v907_v38 = vld [vmem:[%s1025_s7 + $0x80] ss:$8 sps:$4 sm:$0xff]   ;;  %v911_v40 = vld [vmem:[%s1027_s8 + $0x10] ss:$8 sps:$4 sm:$0xff]   ;;  %p772_p11 = scmp.ne.s32.totalorder %s944_s14, 8 }
  0x31   : > { %v908_v39 = vld [vmem:[%s1027_s8] ss:$8 sps:$4 sm:$0xff]   ;;  %v278_v41 = vld [vmem:[#allocation2 + $0x30] sm:$0xff]  ;;  %v280_v51 = vld [vmem:[#allocation2 + $0x18] sm:$0xff] }
  0x32   : > { %v282_v42 = vld [vmem:[#allocation2 + $0x8] sm:$0xff]  ;;  %v279_v45 = vld [vmem:[#allocation2] sm:$0xff]  ;;  %v281_v57 = vld [vmem:[#allocation2 + $0x10] sm:$0xff] }
  0x33   : > { %509 = vmatpush1.bf16.msra.mxu0 %v871_v12  ;;  %806 = vmatpush1.bf16.msra.mxu1 %v871_v12  ;;  %v283_v46 = vld [vmem:[#allocation2 + $0x20] sm:$0xff]  ;;  %v284_v52 = vld [vmem:[#allocation2 + $0x28] sm:$0xff]  ;;  %v285_v58 = vld [vmem:[#allocation2 + $0x38] sm:$0xff] }
  0x34   : > { %510 = vmatprep.subr.bf16.mxu0 %v872_v13  ;;  %791 = vmatprep.subr.bf16.mxu1 %v872_v13 }
  0x37   : > { %511 = vmatpush1.bf16.msra.mxu0 %v874_v14  ;;  %807 = vmatpush1.bf16.msra.mxu1 %v874_v14 }
  0x38   : > { %512 = vmatprep.subr.bf16.mxu0 %v875_v15  ;;  %792 = vmatprep.subr.bf16.mxu1 %v875_v15 }
  0x3b   : > { %513 = vmatpush1.bf16.msra.mxu0 %v877_v16  ;;  %808 = vmatpush1.bf16.msra.mxu1 %v877_v16 }
  0x3c   : > { %514 = vmatprep.subr.bf16.mxu0 %v878_v17  ;;  %793 = vmatprep.subr.bf16.mxu1 %v878_v17 }
  0x3f   : > { %515 = vmatpush1.bf16.msra.mxu0 %v880_v19  ;;  %809 = vmatpush1.bf16.msra.mxu1 %v880_v19 }
  0x40   : > { %516 = vmatprep.subr.bf16.mxu0 %v881_v21  ;;  %794 = vmatprep.subr.bf16.mxu1 %v881_v21 }
  0x43   : > { %517 = vmatpush1.bf16.msra.mxu0 %v883_v22  ;;  %810 = vmatpush1.bf16.msra.mxu1 %v883_v22 }
  0x44   : > { %518 = vmatprep.subr.bf16.mxu0 %v884_v23  ;;  %795 = vmatprep.subr.bf16.mxu1 %v884_v23 }
  0x47   : > { %519 = vmatpush2.bf16.msra.mxu0 %v886_v24  ;;  %811 = vmatpush2.bf16.msra.mxu1 %v886_v24 }
  0x48   : > { %520 = vmatprep.subr.bf16.mxu0 %v887_v25  ;;  %796 = vmatprep.subr.bf16.mxu1 %v887_v25 }
  0x4b   : > { %521 = vmatpush2.bf16.msra.mxu0 %v889_v26  ;;  %812 = vmatpush2.bf16.msra.mxu1 %v889_v26 }
  0x4c   : > { %522 = vmatprep.subr.bf16.mxu0 %v890_v27  ;;  %797 = vmatprep.subr.bf16.mxu1 %v890_v27 }
  0x4f   : > { %523 = vmatpush2.bf16.msra.mxu0 %v892_v28  ;;  %813 = vmatpush2.bf16.msra.mxu1 %v892_v28 }
  0x50   : > { %524 = vmatprep.subr.bf16.mxu0 %v893_v29  ;;  %798 = vmatprep.subr.bf16.mxu1 %v893_v29 }
  0x53   : > { %525 = vmatpush2.bf16.msra.mxu0 %v895_v30  ;;  %814 = vmatpush2.bf16.msra.mxu1 %v895_v30 }
  0x54   : > { %526 = vmatprep.subr.bf16.mxu0 %v896_v31  ;;  %799 = vmatprep.subr.bf16.mxu1 %v896_v31 }
  0x57   : > { %527 = vmatpush2.bf16.msra.mxu0 %v898_v32  ;;  %815 = vmatpush2.bf16.msra.mxu1 %v898_v32 }
  0x58   : > { %528 = vmatprep.subr.bf16.mxu0 %v899_v33  ;;  %800 = vmatprep.subr.bf16.mxu1 %v899_v33 }
  0x5b   : > { %529 = vmatpush2.bf16.msra.mxu0 %v901_v34  ;;  %816 = vmatpush2.bf16.msra.mxu1 %v901_v34 }
  0x5c   : > { %530 = vmatprep.subr.bf16.mxu0 %v902_v35  ;;  %801 = vmatprep.subr.bf16.mxu1 %v902_v35 }
  0x5f   : > { %531 = vmatpush2.bf16.msra.mxu0 %v904_v36  ;;  %817 = vmatpush2.bf16.msra.mxu1 %v904_v36 }
  0x60   : > { %532 = vmatprep.subr.bf16.mxu0 %v905_v37  ;;  %802 = vmatprep.subr.bf16.mxu1 %v905_v37 }
  0x63   : > { %533 = vmatpush2.bf16.msra.mxu0 %v907_v38  ;;  %818 = vmatpush2.bf16.msra.mxu1 %v907_v38 }
  0x66   : > { %535 = vmatmul.mubr.bf16.vlgmr.msra.gmra.mxu0 %v908_v39  ;;  %545 = vmatmul.mubr.bf16.vlgmr.msra.gmra.mxu1 %v911_v40 }
 0x126   : > { %v536_v43 = vpop.f32.mrf.mxu0  ;;  %v546_v44 = vpop.f32.mrf.mxu1 }
 0x127   : > { %v555_v47 = vadd.f32 %v536_v43, %v278_v41  ;;  %v559_v48 = vadd.f32 %v546_v44, %v282_v42 }
 0x128   : > { %v538_v49 = vpop.f32.mrf.mxu0  ;;  %v548_v50 = vpop.f32.mrf.mxu1 }
 0x129   : > { %563 = vst [vmem:[#allocation2 + $0x30] sm:$0xff] %v555_v47  ;;  %567 = vst [vmem:[#allocation2 + $0x8] sm:$0xff] %v559_v48  ;;  %v556_v53 = vadd.f32 %v538_v49, %v279_v45  ;;  %v560_v54 = vadd.f32 %v548_v50, %v283_v46 }
 0x12a   : > { %v540_v55 = vpop.f32.mrf.mxu0  ;;  %v550_v56 = vpop.f32.mrf.mxu1 }
 0x12b   : > { %564 = vst [vmem:[#allocation2] sm:$0xff] %v556_v53  ;;  %568 = vst [vmem:[#allocation2 + $0x20] sm:$0xff] %v560_v54  ;;  %v557_v59 = vadd.f32 %v540_v55, %v280_v51  ;;  %v561_v60 = vadd.f32 %v550_v56, %v284_v52  ;;  %574 = sbr.rel (%p772_p11) target bundleno = 320 (0x140), region = 78 }
 0x12c   : > { %v542_v61 = vpop.f32.mrf.mxu0  ;;  %v552_v62 = vpop.f32.mrf.mxu1 }
 0x12d   : > { %565 = vst [vmem:[#allocation2 + $0x18] sm:$0xff] %v557_v59  ;;  %569 = vst [vmem:[#allocation2 + $0x28] sm:$0xff] %v561_v60  ;;  %v558_v63 = vadd.f32 %v542_v61, %v281_v57  ;;  %v562_v0 = vadd.f32 %v552_v62, %v285_v58 }
 0x12f   : > { %566 = vst [vmem:[#allocation2 + $0x10] sm:$0xff] %v558_v63  ;;  %570 = vst [vmem:[#allocation2 + $0x38] sm:$0xff] %v562_v0 }
 0x130   : > { %v585_v1 = vlaneseq  ;;  %v583_v3 = vld [vmem:[%s1099_s2] sm:$0x3]  ;;  %v575_v4 = vld [vmem:[#allocation2 + $0x30] sm:$0xff]  ;;  %v579_v10 = vld [vmem:[#allocation2 + $0x8] sm:$0xff] }
 0x132   : > { %v586_v2 = vshrl.u32 %v585_v1, 7  ;;  %v576_v5 = vld [vmem:[#allocation2] sm:$0xff] }
 0x133   : > { %v580_v13 = vld [vmem:[#allocation2 + $0x20] sm:$0xff] }
 0x134   : > { %v587_v6 = vsub.s32 0, %v586_v2  ;;  %v591_v7 = vsub.s32 1, %v586_v2  ;;  %v577_v8 = vld [vmem:[#allocation2 + $0x18] sm:$0xff]  ;;  %v581_v14 = vld [vmem:[#allocation2 + $0x28] sm:$0xff] }
 0x136   : > { %v578_v9 = vld [vmem:[#allocation2 + $0x10] sm:$0xff]  ;;  %v588_v11 = vrot.slane %v583_v3, %v587_v6  ;;  %v592_v12 = vrot.slane %v583_v3, %v591_v7  ;;  %v582_v15 = vld [vmem:[#allocation2 + $0x38] sm:$0xff] }
 0x138   : > { %v595_v16 = vadd.f32 %v588_v11, %v575_v4  ;;  %v596_v17 = vadd.f32 %v592_v12, %v576_v5  ;;  %v597_v18 = vadd.f32 %v588_v11, %v577_v8  ;;  %v598_v19 = vadd.f32 %v592_v12, %v578_v9 }
 0x139   : > { %v599_v20 = vadd.f32 %v588_v11, %v579_v10  ;;  %v600_v21 = vadd.f32 %v592_v12, %v580_v13  ;;  %v601_v22 = vadd.f32 %v588_v11, %v581_v14  ;;  %v602_v23 = vadd.f32 %v592_v12, %v582_v15 }
 0x13a   : > { %v603_v24 = vmax.f32 %v595_v16, 0.0  ;;  %v604_v25 = vmax.f32 %v596_v17, 0.0  ;;  %v605_v26 = vmax.f32 %v597_v18, 0.0  ;;  %v606_v27 = vmax.f32 %v598_v19, 0.0 }
 0x13b   : > { %v607_v28 = vmax.f32 %v599_v20, 0.0  ;;  %v608_v29 = vmax.f32 %v600_v21, 0.0  ;;  %v609_v30 = vmax.f32 %v601_v22, 0.0  ;;  %v610_v31 = vmax.f32 %v602_v23, 0.0 }
 0x13c   : > { %v783_v32 = vpack.c.bf16 %v604_v25, %v603_v24  ;;  %v784_v33 = vpack.c.bf16 %v606_v27, %v605_v26 }
 0x13d   : > { %v785_v34 = vpack.c.bf16 %v608_v29, %v607_v28  ;;  %v786_v35 = vpack.c.bf16 %v610_v31, %v609_v30 }
 0x13e   : > { %635 = vst [vmem:[%s1100_s3] sm:$0xff] %v783_v32  ;;  %636 = vst [vmem:[%s1100_s3 + $0x8] sm:$0xff] %v784_v33 }
 0x13f   : > { %637 = vst [vmem:[%s1100_s3 + $0x10] sm:$0xff] %v785_v34  ;;  %638 = vst [vmem:[%s1100_s3 + $0x18] sm:$0xff] %v786_v35 }
 0x140 PF: > { %s13_s16 = sadd.s32 1, %s952_s16   ;;  %s1101_s12 = smov %s940_s13 }
 0x141   : > { %p10_p12 = scmp.ge.s32.totalorder %s13_s16, 11   ;;  %s1102_s13 = smov %s1010_s20 }
 0x142   : > { %s1103_s14 = smov %s948_s15  ;;  %s1104_s15 = smov %s1106_s17 }
 0x143   :  { %12 = sbr.rel (!%p10_p12) target bundleno = 3 (0x3), region = 116 }

// kernel: resnet18_forward.36
= control target key start
LH: loop header
LB: loop body
LE: loop exit
PB: predicated region body
PF: predicated region fallthrough
CT: control target
= control target key end

     0   :  { %s1106_s12 = smov 0   ;;  %s1108_s13 = smov 0   ;;  %s1223_s0 = inlined_call_operand.vmem [shape: bf16[8,2304], index: 0, kind: input, shape index: {}]   ;;  %s1224_s1 = inlined_call_operand.vmem [shape: bf16[2304,512], index: 1, kind: input, shape index: {}]   ;;  %s1225_s2 = inlined_call_operand.vmem [shape: f32[1,512], index: 2, kind: input, shape index: {}]   ;;  %s1226_s3 = inlined_call_operand.vmem [shape: bf16[8,512], index: 3, kind: output, shape index: {}]  }
   0x1   :  { %s1110_s14 = smov 0  }
   0x2 LB: > { %s22_s15 = sadd.s32 1, %s1079_s13  ;;  %p856_p0 = scmp.ge.s32.totalorder %s1083_s14, 1  ;;  %s1083_s14 = sphi %s1110_s14, %s13_s14   ;;  %s1079_s13 = sphi %s1108_s13, %s1228_s13   ;;  %s1075_s12 = sphi %s1106_s12, %s1227_s12  }
   0x3   : > { %p23_p1 = scmp.ge.s32.totalorder %s22_s15, 9  ;;  %p168_p2 = scmp.lt.s32.totalorder %s1083_s14, 10 }
   0x5   : > { %s1230_s15 = smov (%p23_p1, %s22_s15), 0  ;;  %p169_p3 = pnand %p856_p0, %p168_p2 }
   0x6   : > { %s857_s16 = sshll.u32 (!%p169_p3), %s1075_s12, 1  ;;  %s859_s17 = sshll.u32 (!%p169_p3), %s1075_s12, 5 }
   0x7   : > { %172 = sbr.rel (%p169_p3) target bundleno = 302 (0x12e), region = 32  ;;  %p205_p4 = scmp.lt.s32.totalorder (!%p169_p3), %s857_s16, 17 }
   0x8   : > { %p213_p5 = scmp.lt.s32.totalorder (!%p169_p3), %s859_s17, 287  ;;  %p862_p6 = scmp.ne.s32.totalorder (!%p169_p3), %s1075_s12, 0 }
   0xc   : > { %s1232_s16 = smov (!%p205_p4, %s857_s16), 17  ;;  %s1234_s17 = smov (!%p213_p5, %s859_s17), 287 }
   0xd   : > { %s858_s18 = sshll.u32 %s1232_s16, 2  ;;  %s935_s22 = sshll.u32 %s1234_s17, 4 }
   0xe   : > { %s1131_s21 = scalar_lea.vmem %s1223_s0, %s858_s18  ;;  %s1136_s25 = scalar_lea.vmem %s1224_s1, %s935_s22 }
   0xf   : > { %227 = sbr.rel (%p862_p6) target bundleno = 23 (0x17), region = 36 }
  0x14   : > { %v1085_v0 = vmov 0.0  }
  0x15   : > { %228 = vst [vmem:[#allocation2 + $0x10] sm:$0xff] %v1085_v0  ;;  %229 = vst [vmem:[#allocation2] sm:$0xff] %v1085_v0 }
  0x16   : > { %230 = vst [vmem:[#allocation2 + $0x18] sm:$0xff] %v1085_v0  ;;  %231 = vst [vmem:[#allocation2 + $0x8] sm:$0xff] %v1085_v0 }
  0x17 PF: > { %v963_v1 = vld [vmem:[%s1136_s25 + $0xe4] ss:$16 sps:$4 sm:$0xff]   ;;  %v965_v2 = vld [vmem:[%s1136_s25 + $0xec] ss:$16 sps:$4 sm:$0xff]   ;;  %v967_v3 = vld [vmem:[%s1136_s25 + $0xe0] ss:$16 sps:$4 sm:$0xff]  }
  0x18   : > { %628 = vmatprep.subr.bf16.mxu0 %v963_v1  ;;  %v968_v4 = vld [vmem:[%s1136_s25 + $0xe8] ss:$16 sps:$4 sm:$0xff]   ;;  %669 = vmatprep.subr.bf16.mxu1 %v965_v2  ;;  %v969_v5 = vld [vmem:[%s1136_s25 + $0xc4] ss:$16 sps:$4 sm:$0xff]   ;;  %v971_v6 = vld [vmem:[%s1136_s25 + $0xcc] ss:$16 sps:$4 sm:$0xff]  }
  0x19   : > { %629 = vmatpush1.bf16.msra.mxu0 %v967_v3  ;;  %670 = vmatpush1.bf16.msra.mxu1 %v968_v4  ;;  %v973_v7 = vld [vmem:[%s1136_s25 + $0xc0] ss:$16 sps:$4 sm:$0xff]   ;;  %v974_v8 = vld [vmem:[%s1136_s25 + $0xc8] ss:$16 sps:$4 sm:$0xff]   ;;  %v975_v9 = vld [vmem:[%s1136_s25 + $0xa4] ss:$16 sps:$4 sm:$0xff]  }
  0x1a   : > { %630 = vmatprep.subr.bf16.mxu0 %v969_v5  ;;  %671 = vmatprep.subr.bf16.mxu1 %v971_v6  ;;  %v977_v10 = vld [vmem:[%s1136_s25 + $0xac] ss:$16 sps:$4 sm:$0xff]   ;;  %v979_v11 = vld [vmem:[%s1136_s25 + $0xa0] ss:$16 sps:$4 sm:$0xff]   ;;  %v980_v12 = vld [vmem:[%s1136_s25 + $0xa8] ss:$16 sps:$4 sm:$0xff]  }
  0x1b   : > { %v981_v13 = vld [vmem:[%s1136_s25 + $0x84] ss:$16 sps:$4 sm:$0xff]   ;;  %v983_v14 = vld [vmem:[%s1136_s25 + $0x8c] ss:$16 sps:$4 sm:$0xff]   ;;  %v985_v15 = vld [vmem:[%s1136_s25 + $0x80] ss:$16 sps:$4 sm:$0xff]  }
  0x1c   : > { %v986_v16 = vld [vmem:[%s1136_s25 + $0x88] ss:$16 sps:$4 sm:$0xff]   ;;  %v987_v17 = vld [vmem:[%s1136_s25 + $0x64] ss:$16 sps:$4 sm:$0xff]   ;;  %v989_v18 = vld [vmem:[%s1136_s25 + $0x6c] ss:$16 sps:$4 sm:$0xff]  }
  0x1d   : > { %631 = vmatpush1.bf16.msra.mxu0 %v973_v7  ;;  %672 = vmatpush1.bf16.msra.mxu1 %v974_v8  ;;  %v991_v19 = vld [vmem:[%s1136_s25 + $0x60] ss:$16 sps:$4 sm:$0xff]   ;;  %v992_v20 = vld [vmem:[%s1136_s25 + $0x68] ss:$16 sps:$4 sm:$0xff]   ;;  %v993_v21 = vld [vmem:[%s1136_s25 + $0x44] ss:$16 sps:$4 sm:$0xff]  }
  0x1e   : > { %632 = vmatprep.subr.bf16.mxu0 %v975_v9  ;;  %673 = vmatprep.subr.bf16.mxu1 %v977_v10  ;;  %v995_v22 = vld [vmem:[%s1136_s25 + $0x4c] ss:$16 sps:$4 sm:$0xff]   ;;  %v997_v23 = vld [vmem:[%s1136_s25 + $0x40] ss:$16 sps:$4 sm:$0xff]   ;;  %v998_v24 = vld [vmem:[%s1136_s25 + $0x48] ss:$16 sps:$4 sm:$0xff]  }
  0x1f   : > { %v999_v25 = vld [vmem:[%s1136_s25 + $0x24] ss:$16 sps:$4 sm:$0xff]   ;;  %v1001_v26 = vld [vmem:[%s1136_s25 + $0x2c] ss:$16 sps:$4 sm:$0xff]   ;;  %v1003_v27 = vld [vmem:[%s1136_s25 + $0x20] ss:$16 sps:$4 sm:$0xff]  }
  0x20   : > { %v1004_v28 = vld [vmem:[%s1136_s25 + $0x28] ss:$16 sps:$4 sm:$0xff]   ;;  %v1005_v29 = vld [vmem:[%s1136_s25 + $0x4] ss:$16 sps:$4 sm:$0xff]   ;;  %v1007_v30 = vld [vmem:[%s1136_s25 + $0xc] ss:$16 sps:$4 sm:$0xff]  }
  0x21   : > { %633 = vmatpush1.bf16.msra.mxu0 %v979_v11  ;;  %674 = vmatpush1.bf16.msra.mxu1 %v980_v12  ;;  %v1009_v31 = vld [vmem:[%s1136_s25] ss:$16 sps:$4 sm:$0xff]   ;;  %v1010_v32 = vld [vmem:[%s1136_s25 + $0x8] ss:$16 sps:$4 sm:$0xff]   ;;  %v1011_v33 = vld [vmem:[%s1136_s25 + $0x1e4] ss:$16 sps:$4 sm:$0xff]  }
  0x22   : > { %634 = vmatprep.subr.bf16.mxu0 %v981_v13  ;;  %675 = vmatprep.subr.bf16.mxu1 %v983_v14  ;;  %v1013_v34 = vld [vmem:[%s1136_s25 + $0x1ec] ss:$16 sps:$4 sm:$0xff]   ;;  %v1015_v35 = vld [vmem:[%s1136_s25 + $0x1e0] ss:$16 sps:$4 sm:$0xff]   ;;  %v1016_v36 = vld [vmem:[%s1136_s25 + $0x1e8] ss:$16 sps:$4 sm:$0xff]  }
  0x23   : > { %v1017_v37 = vld [vmem:[%s1136_s25 + $0x1c4] ss:$16 sps:$4 sm:$0xff]   ;;  %v1019_v38 = vld [vmem:[%s1136_s25 + $0x1cc] ss:$16 sps:$4 sm:$0xff]   ;;  %v1021_v39 = vld [vmem:[%s1136_s25 + $0x1c0] ss:$16 sps:$4 sm:$0xff]  }
  0x24   : > { %v1022_v40 = vld [vmem:[%s1136_s25 + $0x1c8] ss:$16 sps:$4 sm:$0xff]   ;;  %v1023_v41 = vld [vmem:[%s1136_s25 + $0x1a4] ss:$16 sps:$4 sm:$0xff]   ;;  %v1025_v42 = vld [vmem:[%s1136_s25 + $0x1ac] ss:$16 sps:$4 sm:$0xff]  }
  0x25   : > { %635 = vmatpush1.bf16.msra.mxu0 %v985_v15  ;;  %676 = vmatpush1.bf16.msra.mxu1 %v986_v16  ;;  %v1027_v43 = vld [vmem:[%s1136_s25 + $0x1a0] ss:$16 sps:$4 sm:$0xff]   ;;  %v1028_v44 = vld [vmem:[%s1136_s25 + $0x1a8] ss:$16 sps:$4 sm:$0xff]   ;;  %v1029_v45 = vld [vmem:[%s1136_s25 + $0x184] ss:$16 sps:$4 sm:$0xff]  }
  0x26   : > { %636 = vmatprep.subr.bf16.mxu0 %v987_v17  ;;  %677 = vmatprep.subr.bf16.mxu1 %v989_v18  ;;  %v1031_v46 = vld [vmem:[%s1136_s25 + $0x18c] ss:$16 sps:$4 sm:$0xff]   ;;  %v236_v47 = vld [vmem:[%s1131_s21] sm:$0xff]  ;;  %v1034_v50 = vld [vmem:[%s1136_s25 + $0x188] ss:$16 sps:$4 sm:$0xff]   ;;  %p929_p7 = scmp.ne.s32.totalorder %s1075_s12, 8 }
  0x27   : > { %v864_v48 = vcombine.high %v236_v47, %v236_v47  ;;  %v1033_v49 = vld [vmem:[%s1136_s25 + $0x180] ss:$16 sps:$4 sm:$0xff]   ;;  %v1035_v51 = vld [vmem:[%s1136_s25 + $0x164] ss:$16 sps:$4 sm:$0xff]   ;;  %v1037_v52 = vld [vmem:[%s1136_s25 + $0x16c] ss:$16 sps:$4 sm:$0xff]   ;;  %v863_v3 = vcombine.low %v236_v47, %v236_v47 }
  0x28   : > { %v1039_v53 = vld [vmem:[%s1136_s25 + $0x160] ss:$16 sps:$4 sm:$0xff]   ;;  %v1040_v54 = vld [vmem:[%s1136_s25 + $0x168] ss:$16 sps:$4 sm:$0xff]   ;;  %v1041_v55 = vld [vmem:[%s1136_s25 + $0x144] ss:$16 sps:$4 sm:$0xff]  }
  0x29   : > { %637 = vmatpush1.bf16.msra.mxu0 %v991_v19  ;;  %678 = vmatpush1.bf16.msra.mxu1 %v992_v20  ;;  %v1043_v56 = vld [vmem:[%s1136_s25 + $0x14c] ss:$16 sps:$4 sm:$0xff]   ;;  %v1045_v57 = vld [vmem:[%s1136_s25 + $0x140] ss:$16 sps:$4 sm:$0xff]   ;;  %v1046_v58 = vld [vmem:[%s1136_s25 + $0x148] ss:$16 sps:$4 sm:$0xff]  }
  0x2a   : > { %638 = vmatprep.subr.bf16.mxu0 %v993_v21  ;;  %679 = vmatprep.subr.bf16.mxu1 %v995_v22  ;;  %v1047_v59 = vld [vmem:[%s1136_s25 + $0x124] ss:$16 sps:$4 sm:$0xff]   ;;  %v1049_v60 = vld [vmem:[%s1136_s25 + $0x12c] ss:$16 sps:$4 sm:$0xff]   ;;  %v1051_v61 = vld [vmem:[%s1136_s25 + $0x120] ss:$16 sps:$4 sm:$0xff]  }
  0x2b   : > { %660 = vmatprep.mubr.bf16.mxu0 %v864_v48  ;;  %701 = vmatprep.mubr.bf16.mxu1 %v864_v48  ;;  %v1052_v62 = vld [vmem:[%s1136_s25 + $0x128] ss:$16 sps:$4 sm:$0xff]   ;;  %v1053_v63 = vld [vmem:[%s1136_s25 + $0x104] ss:$16 sps:$4 sm:$0xff]   ;;  %v1055_v0 = vld [vmem:[%s1136_s25 + $0x10c] ss:$16 sps:$4 sm:$0xff]  }
  0x2c   : > { %v1057_v1 = vld [vmem:[%s1136_s25 + $0x100] ss:$16 sps:$4 sm:$0xff]   ;;  %v1058_v2 = vld [vmem:[%s1136_s25 + $0x108] ss:$16 sps:$4 sm:$0xff]  }
  0x2d   : > { %639 = vmatpush1.bf16.msra.mxu0 %v997_v23  ;;  %680 = vmatpush1.bf16.msra.mxu1 %v998_v24  ;;  %v232_v4 = vld [vmem:[#allocation2 + $0x10] sm:$0xff]  ;;  %v234_v5 = vld [vmem:[#allocation2 + $0x18] sm:$0xff]  ;;  %v233_v8 = vld [vmem:[#allocation2] sm:$0xff] }
  0x2e   : > { %640 = vmatprep.subr.bf16.mxu0 %v999_v25  ;;  %681 = vmatprep.subr.bf16.mxu1 %v1001_v26  ;;  %v235_v9 = vld [vmem:[#allocation2 + $0x8] sm:$0xff] }
  0x31   : > { %641 = vmatpush1.bf16.msra.mxu0 %v1003_v27  ;;  %682 = vmatpush1.bf16.msra.mxu1 %v1004_v28 }
  0x32   : > { %642 = vmatprep.subr.bf16.mxu0 %v1005_v29  ;;  %683 = vmatprep.subr.bf16.mxu1 %v1007_v30 }
  0x35   : > { %643 = vmatpush1.bf16.msra.mxu0 %v1009_v31  ;;  %684 = vmatpush1.bf16.msra.mxu1 %v1010_v32 }
  0x36   : > { %644 = vmatprep.subr.bf16.mxu0 %v1011_v33  ;;  %685 = vmatprep.subr.bf16.mxu1 %v1013_v34 }
  0x39   : > { %645 = vmatpush2.bf16.msra.mxu0 %v1015_v35  ;;  %686 = vmatpush2.bf16.msra.mxu1 %v1016_v36 }
  0x3a   : > { %646 = vmatprep.subr.bf16.mxu0 %v1017_v37  ;;  %687 = vmatprep.subr.bf16.mxu1 %v1019_v38 }
  0x3d   : > { %647 = vmatpush2.bf16.msra.mxu0 %v1021_v39  ;;  %688 = vmatpush2.bf16.msra.mxu1 %v1022_v40 }
  0x3e   : > { %648 = vmatprep.subr.bf16.mxu0 %v1023_v41  ;;  %689 = vmatprep.subr.bf16.mxu1 %v1025_v42 }
  0x41   : > { %649 = vmatpush2.bf16.msra.mxu0 %v1027_v43  ;;  %690 = vmatpush2.bf16.msra.mxu1 %v1028_v44 }
  0x42   : > { %650 = vmatprep.subr.bf16.mxu0 %v1029_v45  ;;  %691 = vmatprep.subr.bf16.mxu1 %v1031_v46 }
  0x45   : > { %651 = vmatpush2.bf16.msra.mxu0 %v1033_v49  ;;  %692 = vmatpush2.bf16.msra.mxu1 %v1034_v50 }
  0x46   : > { %652 = vmatprep.subr.bf16.mxu0 %v1035_v51  ;;  %693 = vmatprep.subr.bf16.mxu1 %v1037_v52 }
  0x49   : > { %653 = vmatpush2.bf16.msra.mxu0 %v1039_v53  ;;  %694 = vmatpush2.bf16.msra.mxu1 %v1040_v54 }
  0x4a   : > { %654 = vmatprep.subr.bf16.mxu0 %v1041_v55  ;;  %695 = vmatprep.subr.bf16.mxu1 %v1043_v56 }
  0x4d   : > { %655 = vmatpush2.bf16.msra.mxu0 %v1045_v57  ;;  %696 = vmatpush2.bf16.msra.mxu1 %v1046_v58 }
  0x4e   : > { %656 = vmatprep.subr.bf16.mxu0 %v1047_v59  ;;  %697 = vmatprep.subr.bf16.mxu1 %v1049_v60 }
  0x51   : > { %657 = vmatpush2.bf16.msra.mxu0 %v1051_v61  ;;  %698 = vmatpush2.bf16.msra.mxu1 %v1052_v62 }
  0x52   : > { %658 = vmatprep.subr.bf16.mxu0 %v1053_v63  ;;  %699 = vmatprep.subr.bf16.mxu1 %v1055_v0 }
  0x55   : > { %659 = vmatpush2.bf16.msra.mxu0 %v1057_v1  ;;  %700 = vmatpush2.bf16.msra.mxu1 %v1058_v2 }
  0x58   : > { %661 = vmatmul.mubr.bf16.vlgmr.msra.gmra.mxu0 %v863_v3  ;;  %702 = vmatmul.mubr.bf16.vlgmr.msra.gmra.mxu1 %v863_v3 }
 0x118   : > { %v662_v6 = vpop.f32.mrf.mxu0  ;;  %v703_v7 = vpop.f32.mrf.mxu1 }
 0x119   : > { %v710_v10 = vadd.f32 %v662_v6, %v232_v4  ;;  %v712_v11 = vadd.f32 %v703_v7, %v234_v5 }
 0x11a   : > { %v664_v12 = vpop.f32.mrf.mxu0  ;;  %v705_v13 = vpop.f32.mrf.mxu1  ;;  %721 = sbr.rel (%p929_p7) target bundleno = 302 (0x12e), region = 40 }
 0x11b   : > { %714 = vst [vmem:[#allocation2 + $0x10] sm:$0xff] %v710_v10  ;;  %716 = vst [vmem:[#allocation2 + $0x18] sm:$0xff] %v712_v11  ;;  %v711_v14 = vadd.f32 %v664_v12, %v233_v8  ;;  %v713_v15 = vadd.f32 %v705_v13, %v235_v9 }
 0x11c   : > { %v666_v16 = vpop.f32.mrf.mxu0  ;;  %v707_v17 = vpop.f32.mrf.mxu1 }
 0x11d   : > { %715 = vst [vmem:[#allocation2] sm:$0xff] %v711_v14  ;;  %717 = vst [vmem:[#allocation2 + $0x8] sm:$0xff] %v713_v15 }
 0x11e   : > { %v667_v18 = vpop.f32.mrf.mxu0  ;;  %v708_v19 = vpop.f32.mrf.mxu1 }
 0x11f   : > { %v728_v20 = vlaneseq  ;;  %v726_v22 = vld [vmem:[%s1225_s2] sm:$0xf] }
 0x121   : > { %v729_v21 = vshrl.u32 %v728_v20, 7 }
 0x122   : > { %v722_v23 = vld [vmem:[#allocation2 + $0x10] sm:$0xff]  ;;  %v724_v29 = vld [vmem:[#allocation2 + $0x18] sm:$0xff] }
 0x123   : > { %v730_v24 = vsub.s32 0, %v729_v21  ;;  %v734_v25 = vsub.s32 1, %v729_v21  ;;  %v738_v26 = vsub.s32 2, %v729_v21  ;;  %v742_v27 = vsub.s32 3, %v729_v21 }
 0x124   : > { %v723_v28 = vld [vmem:[#allocation2] sm:$0xff]  ;;  %v725_v30 = vld [vmem:[#allocation2 + $0x8] sm:$0xff] }
 0x125   : > { %v731_v31 = vrot.slane %v726_v22, %v730_v24  ;;  %v735_v32 = vrot.slane %v726_v22, %v734_v25  ;;  %v739_v33 = vrot.slane %v726_v22, %v738_v26  ;;  %v743_v34 = vrot.slane %v726_v22, %v742_v27 }
 0x127   : > { %v748_v35 = vadd.f32 %v731_v31, %v722_v23  ;;  %v749_v36 = vadd.f32 %v735_v32, %v723_v28  ;;  %v750_v37 = vadd.f32 %v739_v33, %v724_v29  ;;  %v751_v38 = vadd.f32 %v743_v34, %v725_v30 }
 0x129   : > { %v752_v39 = vmax.f32 %v748_v35, 0.0  ;;  %v753_v40 = vmax.f32 %v749_v36, 0.0  ;;  %v754_v41 = vmax.f32 %v750_v37, 0.0  ;;  %v755_v42 = vmax.f32 %v751_v38, 0.0 }
 0x12b   : > { %v936_v43 = vpack.c.bf16 %v753_v40, %v752_v39  ;;  %v937_v44 = vpack.c.bf16 %v755_v42, %v754_v41 }
 0x12d   : > { %772 = vst [vmem:[%s1226_s3] sm:$0xff] %v936_v43  ;;  %773 = vst [vmem:[%s1226_s3 + $0x8] sm:$0xff] %v937_v44 }
 0x12e PF: > { %s13_s14 = sadd.s32 1, %s1083_s14   ;;  %s1227_s12 = smov %s1079_s13 }
 0x12f   : > { %p10_p8 = scmp.ge.s32.totalorder %s13_s14, 11   ;;  %s1228_s13 = smov %s1230_s15 }
 0x131   :  { %12 = sbr.rel (!%p10_p8) target bundleno = 2 (0x2), region = 73 }

// kernel: resnet18_forward.37
= control target key start
LH: loop header
LB: loop body
LE: loop exit
PB: predicated region body
PF: predicated region fallthrough
CT: control target
= control target key end

     0   :  { %s955_s1 = inlined_call_operand.vmem [shape: bf16[256,512], index: 1, kind: input, shape index: {}]   ;;  %s956_s0 = inlined_call_operand.vmem [shape: bf16[8,256], index: 0, kind: input, shape index: {}]   ;;  %s957_s2 = inlined_call_operand.vmem [shape: f32[1,512], index: 2, kind: input, shape index: {}]   ;;  %s958_s3 = inlined_call_operand.vmem [shape: bf16[8,512], index: 3, kind: output, shape index: {}]  }
   0x1   :  { %v633_v0 = vld [vmem:[%s955_s1 + $0xe4] ss:$16 sps:$4 sm:$0xff]   ;;  %v635_v1 = vld [vmem:[%s955_s1 + $0xec] ss:$16 sps:$4 sm:$0xff]   ;;  %v637_v2 = vld [vmem:[%s955_s1 + $0xe0] ss:$16 sps:$4 sm:$0xff]  }
   0x2   :  { %418 = vmatprep.subr.bf16.mxu0 %v633_v0  ;;  %v638_v3 = vld [vmem:[%s955_s1 + $0xe8] ss:$16 sps:$4 sm:$0xff]   ;;  %459 = vmatprep.subr.bf16.mxu1 %v635_v1  ;;  %v639_v4 = vld [vmem:[%s955_s1 + $0xc4] ss:$16 sps:$4 sm:$0xff]   ;;  %v641_v5 = vld [vmem:[%s955_s1 + $0xcc] ss:$16 sps:$4 sm:$0xff]  }
   0x3   :  { %419 = vmatpush1.bf16.msra.mxu0 %v637_v2  ;;  %460 = vmatpush1.bf16.msra.mxu1 %v638_v3  ;;  %v643_v6 = vld [vmem:[%s955_s1 + $0xc0] ss:$16 sps:$4 sm:$0xff]   ;;  %v644_v7 = vld [vmem:[%s955_s1 + $0xc8] ss:$16 sps:$4 sm:$0xff]   ;;  %v645_v8 = vld [vmem:[%s955_s1 + $0xa4] ss:$16 sps:$4 sm:$0xff]   ;;  %v517_v3 = vlaneseq }
   0x4   :  { %420 = vmatprep.subr.bf16.mxu0 %v639_v4  ;;  %461 = vmatprep.subr.bf16.mxu1 %v641_v5  ;;  %v647_v9 = vld [vmem:[%s955_s1 + $0xac] ss:$16 sps:$4 sm:$0xff]   ;;  %v649_v10 = vld [vmem:[%s955_s1 + $0xa0] ss:$16 sps:$4 sm:$0xff]   ;;  %v650_v11 = vld [vmem:[%s955_s1 + $0xa8] ss:$16 sps:$4 sm:$0xff]  }
   0x5   :  { %v651_v12 = vld [vmem:[%s955_s1 + $0x84] ss:$16 sps:$4 sm:$0xff]   ;;  %v653_v13 = vld [vmem:[%s955_s1 + $0x8c] ss:$16 sps:$4 sm:$0xff]   ;;  %v655_v14 = vld [vmem:[%s955_s1 + $0x80] ss:$16 sps:$4 sm:$0xff]  }
   0x6   :  { %v656_v15 = vld [vmem:[%s955_s1 + $0x88] ss:$16 sps:$4 sm:$0xff]   ;;  %v657_v16 = vld [vmem:[%s955_s1 + $0x64] ss:$16 sps:$4 sm:$0xff]   ;;  %v659_v17 = vld [vmem:[%s955_s1 + $0x6c] ss:$16 sps:$4 sm:$0xff]  }
   0x7   :  { %421 = vmatpush1.bf16.msra.mxu0 %v643_v6  ;;  %462 = vmatpush1.bf16.msra.mxu1 %v644_v7  ;;  %v661_v18 = vld [vmem:[%s955_s1 + $0x60] ss:$16 sps:$4 sm:$0xff]   ;;  %v662_v19 = vld [vmem:[%s955_s1 + $0x68] ss:$16 sps:$4 sm:$0xff]   ;;  %v663_v20 = vld [vmem:[%s955_s1 + $0x44] ss:$16 sps:$4 sm:$0xff]  }
   0x8   :  { %422 = vmatprep.subr.bf16.mxu0 %v645_v8  ;;  %463 = vmatprep.subr.bf16.mxu1 %v647_v9  ;;  %v665_v21 = vld [vmem:[%s955_s1 + $0x4c] ss:$16 sps:$4 sm:$0xff]   ;;  %v667_v22 = vld [vmem:[%s955_s1 + $0x40] ss:$16 sps:$4 sm:$0xff]   ;;  %v668_v23 = vld [vmem:[%s955_s1 + $0x48] ss:$16 sps:$4 sm:$0xff]  }
   0x9   :  { %v669_v24 = vld [vmem:[%s955_s1 + $0x24] ss:$16 sps:$4 sm:$0xff]   ;;  %v671_v25 = vld [vmem:[%s955_s1 + $0x2c] ss:$16 sps:$4 sm:$0xff]   ;;  %v673_v26 = vld [vmem:[%s955_s1 + $0x20] ss:$16 sps:$4 sm:$0xff]  }
   0xa   :  { %v674_v27 = vld [vmem:[%s955_s1 + $0x28] ss:$16 sps:$4 sm:$0xff]   ;;  %v675_v28 = vld [vmem:[%s955_s1 + $0x4] ss:$16 sps:$4 sm:$0xff]   ;;  %v677_v29 = vld [vmem:[%s955_s1 + $0xc] ss:$16 sps:$4 sm:$0xff]  }
   0xb   :  { %423 = vmatpush1.bf16.msra.mxu0 %v649_v10  ;;  %464 = vmatpush1.bf16.msra.mxu1 %v650_v11  ;;  %v679_v30 = vld [vmem:[%s955_s1] ss:$16 sps:$4 sm:$0xff]   ;;  %v680_v31 = vld [vmem:[%s955_s1 + $0x8] ss:$16 sps:$4 sm:$0xff]   ;;  %v681_v32 = vld [vmem:[%s955_s1 + $0x1e4] ss:$16 sps:$4 sm:$0xff]  }
   0xc   :  { %424 = vmatprep.subr.bf16.mxu0 %v651_v12  ;;  %465 = vmatprep.subr.bf16.mxu1 %v653_v13  ;;  %v683_v33 = vld [vmem:[%s955_s1 + $0x1ec] ss:$16 sps:$4 sm:$0xff]   ;;  %v685_v34 = vld [vmem:[%s955_s1 + $0x1e0] ss:$16 sps:$4 sm:$0xff]   ;;  %v686_v35 = vld [vmem:[%s955_s1 + $0x1e8] ss:$16 sps:$4 sm:$0xff]  }
   0xd   :  { %v687_v36 = vld [vmem:[%s955_s1 + $0x1c4] ss:$16 sps:$4 sm:$0xff]   ;;  %v689_v37 = vld [vmem:[%s955_s1 + $0x1cc] ss:$16 sps:$4 sm:$0xff]   ;;  %v691_v38 = vld [vmem:[%s955_s1 + $0x1c0] ss:$16 sps:$4 sm:$0xff]  }
   0xe   :  { %v692_v39 = vld [vmem:[%s955_s1 + $0x1c8] ss:$16 sps:$4 sm:$0xff]   ;;  %v693_v40 = vld [vmem:[%s955_s1 + $0x1a4] ss:$16 sps:$4 sm:$0xff]   ;;  %v695_v41 = vld [vmem:[%s955_s1 + $0x1ac] ss:$16 sps:$4 sm:$0xff]  }
   0xf   :  { %425 = vmatpush1.bf16.msra.mxu0 %v655_v14  ;;  %466 = vmatpush1.bf16.msra.mxu1 %v656_v15  ;;  %v697_v42 = vld [vmem:[%s955_s1 + $0x1a0] ss:$16 sps:$4 sm:$0xff]   ;;  %v698_v43 = vld [vmem:[%s955_s1 + $0x1a8] ss:$16 sps:$4 sm:$0xff]   ;;  %v699_v44 = vld [vmem:[%s955_s1 + $0x184] ss:$16 sps:$4 sm:$0xff]  }
  0x10   :  { %426 = vmatprep.subr.bf16.mxu0 %v657_v16  ;;  %467 = vmatprep.subr.bf16.mxu1 %v659_v17  ;;  %v701_v45 = vld [vmem:[%s955_s1 + $0x18c] ss:$16 sps:$4 sm:$0xff]   ;;  %v26_v46 = vld [vmem:[%s956_s0] sm:$0xff]  ;;  %v704_v49 = vld [vmem:[%s955_s1 + $0x188] ss:$16 sps:$4 sm:$0xff]   ;;  %v518_v4 = vshrl.u32 %v517_v3, 7 }
  0x11   :  { %v564_v47 = vcombine.high %v26_v46, %v26_v46  ;;  %v703_v48 = vld [vmem:[%s955_s1 + $0x180] ss:$16 sps:$4 sm:$0xff]   ;;  %v705_v50 = vld [vmem:[%s955_s1 + $0x164] ss:$16 sps:$4 sm:$0xff]   ;;  %v707_v51 = vld [vmem:[%s955_s1 + $0x16c] ss:$16 sps:$4 sm:$0xff]   ;;  %v563_v2 = vcombine.low %v26_v46, %v26_v46 }
  0x12   :  { %v709_v52 = vld [vmem:[%s955_s1 + $0x160] ss:$16 sps:$4 sm:$0xff]   ;;  %v710_v53 = vld [vmem:[%s955_s1 + $0x168] ss:$16 sps:$4 sm:$0xff]   ;;  %v711_v54 = vld [vmem:[%s955_s1 + $0x144] ss:$16 sps:$4 sm:$0xff]  }
  0x13   :  { %427 = vmatpush1.bf16.msra.mxu0 %v661_v18  ;;  %468 = vmatpush1.bf16.msra.mxu1 %v662_v19  ;;  %v713_v55 = vld [vmem:[%s955_s1 + $0x14c] ss:$16 sps:$4 sm:$0xff]   ;;  %v715_v56 = vld [vmem:[%s955_s1 + $0x140] ss:$16 sps:$4 sm:$0xff]   ;;  %v716_v57 = vld [vmem:[%s955_s1 + $0x148] ss:$16 sps:$4 sm:$0xff]  }
  0x14   :  { %428 = vmatprep.subr.bf16.mxu0 %v663_v20  ;;  %469 = vmatprep.subr.bf16.mxu1 %v665_v21  ;;  %v717_v58 = vld [vmem:[%s955_s1 + $0x124] ss:$16 sps:$4 sm:$0xff]   ;;  %v719_v59 = vld [vmem:[%s955_s1 + $0x12c] ss:$16 sps:$4 sm:$0xff]   ;;  %v721_v60 = vld [vmem:[%s955_s1 + $0x120] ss:$16 sps:$4 sm:$0xff]  }
  0x15   :  { %450 = vmatprep.mubr.bf16.mxu0 %v564_v47  ;;  %491 = vmatprep.mubr.bf16.mxu1 %v564_v47  ;;  %v722_v61 = vld [vmem:[%s955_s1 + $0x128] ss:$16 sps:$4 sm:$0xff]   ;;  %v723_v62 = vld [vmem:[%s955_s1 + $0x104] ss:$16 sps:$4 sm:$0xff]   ;;  %v725_v63 = vld [vmem:[%s955_s1 + $0x10c] ss:$16 sps:$4 sm:$0xff]  }
  0x16   :  { %v727_v0 = vld [vmem:[%s955_s1 + $0x100] ss:$16 sps:$4 sm:$0xff]   ;;  %v728_v1 = vld [vmem:[%s955_s1 + $0x108] ss:$16 sps:$4 sm:$0xff]   ;;  %v519_v5 = vsub.s32 0, %v518_v4  ;;  %v527_v6 = vsub.s32 2, %v518_v4 }
  0x17   :  { %429 = vmatpush1.bf16.msra.mxu0 %v667_v22  ;;  %470 = vmatpush1.bf16.msra.mxu1 %v668_v23  ;;  %v523_v7 = vsub.s32 1, %v518_v4  ;;  %v531_v8 = vsub.s32 3, %v518_v4  ;;  %v515_v9 = vld [vmem:[%s957_s2] sm:$0xf] }
  0x18   :  { %430 = vmatprep.subr.bf16.mxu0 %v669_v24  ;;  %471 = vmatprep.subr.bf16.mxu1 %v671_v25  ;;  %v520_v10 = vrot.slane %v515_v9, %v519_v5  ;;  %v528_v11 = vrot.slane %v515_v9, %v527_v6 }
  0x19   :  { %v524_v12 = vrot.slane %v515_v9, %v523_v7  ;;  %v532_v13 = vrot.slane %v515_v9, %v531_v8 }
  0x1b   :  { %431 = vmatpush1.bf16.msra.mxu0 %v673_v26  ;;  %472 = vmatpush1.bf16.msra.mxu1 %v674_v27 }
  0x1c   :  { %432 = vmatprep.subr.bf16.mxu0 %v675_v28  ;;  %473 = vmatprep.subr.bf16.mxu1 %v677_v29 }
  0x1f   :  { %433 = vmatpush1.bf16.msra.mxu0 %v679_v30  ;;  %474 = vmatpush1.bf16.msra.mxu1 %v680_v31 }
  0x20   :  { %434 = vmatprep.subr.bf16.mxu0 %v681_v32  ;;  %475 = vmatprep.subr.bf16.mxu1 %v683_v33 }
  0x23   :  { %435 = vmatpush2.bf16.msra.mxu0 %v685_v34  ;;  %476 = vmatpush2.bf16.msra.mxu1 %v686_v35 }
  0x24   :  { %436 = vmatprep.subr.bf16.mxu0 %v687_v36  ;;  %477 = vmatprep.subr.bf16.mxu1 %v689_v37 }
  0x27   :  { %437 = vmatpush2.bf16.msra.mxu0 %v691_v38  ;;  %478 = vmatpush2.bf16.msra.mxu1 %v692_v39 }
  0x28   :  { %438 = vmatprep.subr.bf16.mxu0 %v693_v40  ;;  %479 = vmatprep.subr.bf16.mxu1 %v695_v41 }
  0x2b   :  { %439 = vmatpush2.bf16.msra.mxu0 %v697_v42  ;;  %480 = vmatpush2.bf16.msra.mxu1 %v698_v43 }
  0x2c   :  { %440 = vmatprep.subr.bf16.mxu0 %v699_v44  ;;  %481 = vmatprep.subr.bf16.mxu1 %v701_v45 }
  0x2f   :  { %441 = vmatpush2.bf16.msra.mxu0 %v703_v48  ;;  %482 = vmatpush2.bf16.msra.mxu1 %v704_v49 }
  0x30   :  { %442 = vmatprep.subr.bf16.mxu0 %v705_v50  ;;  %483 = vmatprep.subr.bf16.mxu1 %v707_v51 }
  0x33   :  { %443 = vmatpush2.bf16.msra.mxu0 %v709_v52  ;;  %484 = vmatpush2.bf16.msra.mxu1 %v710_v53 }
  0x34   :  { %444 = vmatprep.subr.bf16.mxu0 %v711_v54  ;;  %485 = vmatprep.subr.bf16.mxu1 %v713_v55 }
  0x37   :  { %445 = vmatpush2.bf16.msra.mxu0 %v715_v56  ;;  %486 = vmatpush2.bf16.msra.mxu1 %v716_v57 }
  0x38   :  { %446 = vmatprep.subr.bf16.mxu0 %v717_v58  ;;  %487 = vmatprep.subr.bf16.mxu1 %v719_v59 }
  0x3b   :  { %447 = vmatpush2.bf16.msra.mxu0 %v721_v60  ;;  %488 = vmatpush2.bf16.msra.mxu1 %v722_v61 }
  0x3c   :  { %448 = vmatprep.subr.bf16.mxu0 %v723_v62  ;;  %489 = vmatprep.subr.bf16.mxu1 %v725_v63 }
  0x3f   :  { %449 = vmatpush2.bf16.msra.mxu0 %v727_v0  ;;  %490 = vmatpush2.bf16.msra.mxu1 %v728_v1 }
  0x42   :  { %451 = vmatmul.mubr.bf16.vlgmr.msra.gmra.mxu0 %v563_v2  ;;  %492 = vmatmul.mubr.bf16.vlgmr.msra.gmra.mxu1 %v563_v2 }
 0x102   :  { %v452_v14 = vpop.f32.mrf.mxu0  ;;  %v493_v15 = vpop.f32.mrf.mxu1 }
 0x103   :  { %v537_v18 = vadd.f32 %v520_v10, %v452_v14  ;;  %v539_v19 = vadd.f32 %v528_v11, %v493_v15 }
 0x104   :  { %v454_v16 = vpop.f32.mrf.mxu0  ;;  %v495_v17 = vpop.f32.mrf.mxu1 }
 0x105   :  { %v538_v20 = vadd.f32 %v524_v12, %v454_v16  ;;  %v540_v21 = vadd.f32 %v532_v13, %v495_v17 }
 0x106   :  { %v456_v22 = vpop.f32.mrf.mxu0  ;;  %v497_v23 = vpop.f32.mrf.mxu1 }
 0x107   :  { %v631_v24 = vpack.c.bf16 %v538_v20, %v537_v18  ;;  %v632_v25 = vpack.c.bf16 %v540_v21, %v539_v19 }
 0x108   :  { %v457_v26 = vpop.f32.mrf.mxu0  ;;  %v498_v27 = vpop.f32.mrf.mxu1 }
 0x109   :  { %557 = vst [vmem:[%s958_s3] sm:$0xff] %v631_v24  ;;  %558 = vst [vmem:[%s958_s3 + $0x8] sm:$0xff] %v632_v25 }

// kernel: resnet18_forward.38
= control target key start
LH: loop header
LB: loop body
LE: loop exit
PB: predicated region body
PF: predicated region fallthrough
CT: control target
= control target key end

     0   :  { %s1184_s15 = smov 0   ;;  %s1186_s16 = smov 0   ;;  %s1307_s0 = inlined_call_operand.vmem [shape: bf16[8,4608], index: 0, kind: input, shape index: {}]   ;;  %s1308_s1 = inlined_call_operand.vmem [shape: bf16[4608,512], index: 1, kind: input, shape index: {}]   ;;  %s1309_s2 = inlined_call_operand.vmem [shape: f32[1,512], index: 2, kind: input, shape index: {}]   ;;  %s1310_s3 = inlined_call_operand.vmem [shape: bf16[8,512], index: 3, kind: input, shape index: {}]   ;;  %s1311_s4 = inlined_call_operand.vmem [shape: bf16[8,512], index: 4, kind: output, shape index: {}]  }
   0x1   :  { %s1188_s17 = smov 0  }
   0x2 LB: > { %s23_s18 = sadd.s32 1, %s1152_s16  ;;  %p929_p0 = scmp.ge.s32.totalorder %s1156_s17, 1  ;;  %s1156_s17 = sphi %s1188_s17, %s14_s17   ;;  %s1152_s16 = sphi %s1186_s16, %s1313_s16   ;;  %s1148_s15 = sphi %s1184_s15, %s1312_s15  }
   0x3   : > { %p24_p1 = scmp.ge.s32.totalorder %s23_s18, 18  ;;  %p203_p2 = scmp.lt.s32.totalorder %s1156_s17, 19 }
   0x5   : > { %s1315_s18 = smov (%p24_p1, %s23_s18), 0  ;;  %p204_p3 = pnand %p929_p0, %p203_p2 }
   0x6   : > { %s930_s19 = sshll.u32 (!%p204_p3), %s1148_s15, 1  ;;  %s932_s20 = sshll.u32 (!%p204_p3), %s1148_s15, 5 }
   0x7   : > { %207 = sbr.rel (%p204_p3) target bundleno = 304 (0x130), region = 36  ;;  %p247_p4 = scmp.lt.s32.totalorder (!%p204_p3), %s930_s19, 35 }
   0x8   : > { %p255_p5 = scmp.lt.s32.totalorder (!%p204_p3), %s932_s20, 575  ;;  %p935_p6 = scmp.ne.s32.totalorder (!%p204_p3), %s1148_s15, 0 }
   0xc   : > { %s1317_s19 = smov (!%p247_p4, %s930_s19), 35  ;;  %s1319_s20 = smov (!%p255_p5, %s932_s20), 575 }
   0xd   : > { %s931_s21 = sshll.u32 %s1317_s19, 2  ;;  %s1008_s25 = sshll.u32 %s1319_s20, 4 }
   0xe   : > { %s1209_s24 = scalar_lea.vmem %s1307_s0, %s931_s21  ;;  %s1214_s28 = scalar_lea.vmem %s1308_s1, %s1008_s25 }
   0xf   : > { %274 = sbr.rel (%p935_p6) target bundleno = 23 (0x17), region = 40 }
  0x14   : > { %v1158_v0 = vmov 0.0  }
  0x15   : > { %275 = vst [vmem:[#allocation2 + $0x10] sm:$0xff] %v1158_v0  ;;  %276 = vst [vmem:[#allocation2] sm:$0xff] %v1158_v0 }
  0x16   : > { %277 = vst [vmem:[#allocation2 + $0x18] sm:$0xff] %v1158_v0  ;;  %278 = vst [vmem:[#allocation2 + $0x8] sm:$0xff] %v1158_v0 }
  0x17 PF: > { %v1036_v1 = vld [vmem:[%s1214_s28 + $0xe4] ss:$16 sps:$4 sm:$0xff]   ;;  %v1038_v2 = vld [vmem:[%s1214_s28 + $0xec] ss:$16 sps:$4 sm:$0xff]   ;;  %v1040_v3 = vld [vmem:[%s1214_s28 + $0xe0] ss:$16 sps:$4 sm:$0xff]  }
  0x18   : > { %675 = vmatprep.subr.bf16.mxu0 %v1036_v1  ;;  %v1041_v4 = vld [vmem:[%s1214_s28 + $0xe8] ss:$16 sps:$4 sm:$0xff]   ;;  %716 = vmatprep.subr.bf16.mxu1 %v1038_v2  ;;  %v1042_v5 = vld [vmem:[%s1214_s28 + $0xc4] ss:$16 sps:$4 sm:$0xff]   ;;  %v1044_v6 = vld [vmem:[%s1214_s28 + $0xcc] ss:$16 sps:$4 sm:$0xff]  }
  0x19   : > { %676 = vmatpush1.bf16.msra.mxu0 %v1040_v3  ;;  %717 = vmatpush1.bf16.msra.mxu1 %v1041_v4  ;;  %v1046_v7 = vld [vmem:[%s1214_s28 + $0xc0] ss:$16 sps:$4 sm:$0xff]   ;;  %v1047_v8 = vld [vmem:[%s1214_s28 + $0xc8] ss:$16 sps:$4 sm:$0xff]   ;;  %v1048_v9 = vld [vmem:[%s1214_s28 + $0xa4] ss:$16 sps:$4 sm:$0xff]  }
  0x1a   : > { %677 = vmatprep.subr.bf16.mxu0 %v1042_v5  ;;  %718 = vmatprep.subr.bf16.mxu1 %v1044_v6  ;;  %v1050_v10 = vld [vmem:[%s1214_s28 + $0xac] ss:$16 sps:$4 sm:$0xff]   ;;  %v1052_v11 = vld [vmem:[%s1214_s28 + $0xa0] ss:$16 sps:$4 sm:$0xff]   ;;  %v1053_v12 = vld [vmem:[%s1214_s28 + $0xa8] ss:$16 sps:$4 sm:$0xff]  }
  0x1b   : > { %v1054_v13 = vld [vmem:[%s1214_s28 + $0x84] ss:$16 sps:$4 sm:$0xff]   ;;  %v1056_v14 = vld [vmem:[%s1214_s28 + $0x8c] ss:$16 sps:$4 sm:$0xff]   ;;  %v1058_v15 = vld [vmem:[%s1214_s28 + $0x80] ss:$16 sps:$4 sm:$0xff]  }
  0x1c   : > { %v1059_v16 = vld [vmem:[%s1214_s28 + $0x88] ss:$16 sps:$4 sm:$0xff]   ;;  %v1060_v17 = vld [vmem:[%s1214_s28 + $0x64] ss:$16 sps:$4 sm:$0xff]   ;;  %v1062_v18 = vld [vmem:[%s1214_s28 + $0x6c] ss:$16 sps:$4 sm:$0xff]  }
  0x1d   : > { %678 = vmatpush1.bf16.msra.mxu0 %v1046_v7  ;;  %719 = vmatpush1.bf16.msra.mxu1 %v1047_v8  ;;  %v1064_v19 = vld [vmem:[%s1214_s28 + $0x60] ss:$16 sps:$4 sm:$0xff]   ;;  %v1065_v20 = vld [vmem:[%s1214_s28 + $0x68] ss:$16 sps:$4 sm:$0xff]   ;;  %v1066_v21 = vld [vmem:[%s1214_s28 + $0x44] ss:$16 sps:$4 sm:$0xff]  }
  0x1e   : > { %679 = vmatprep.subr.bf16.mxu0 %v1048_v9  ;;  %720 = vmatprep.subr.bf16.mxu1 %v1050_v10  ;;  %v1068_v22 = vld [vmem:[%s1214_s28 + $0x4c] ss:$16 sps:$4 sm:$0xff]   ;;  %v1070_v23 = vld [vmem:[%s1214_s28 + $0x40] ss:$16 sps:$4 sm:$0xff]   ;;  %v1071_v24 = vld [vmem:[%s1214_s28 + $0x48] ss:$16 sps:$4 sm:$0xff]  }
  0x1f   : > { %v1072_v25 = vld [vmem:[%s1214_s28 + $0x24] ss:$16 sps:$4 sm:$0xff]   ;;  %v1074_v26 = vld [vmem:[%s1214_s28 + $0x2c] ss:$16 sps:$4 sm:$0xff]   ;;  %v1076_v27 = vld [vmem:[%s1214_s28 + $0x20] ss:$16 sps:$4 sm:$0xff]  }
  0x20   : > { %v1077_v28 = vld [vmem:[%s1214_s28 + $0x28] ss:$16 sps:$4 sm:$0xff]   ;;  %v1078_v29 = vld [vmem:[%s1214_s28 + $0x4] ss:$16 sps:$4 sm:$0xff]   ;;  %v1080_v30 = vld [vmem:[%s1214_s28 + $0xc] ss:$16 sps:$4 sm:$0xff]  }
  0x21   : > { %680 = vmatpush1.bf16.msra.mxu0 %v1052_v11  ;;  %721 = vmatpush1.bf16.msra.mxu1 %v1053_v12  ;;  %v1082_v31 = vld [vmem:[%s1214_s28] ss:$16 sps:$4 sm:$0xff]   ;;  %v1083_v32 = vld [vmem:[%s1214_s28 + $0x8] ss:$16 sps:$4 sm:$0xff]   ;;  %v1084_v33 = vld [vmem:[%s1214_s28 + $0x1e4] ss:$16 sps:$4 sm:$0xff]  }
  0x22   : > { %681 = vmatprep.subr.bf16.mxu0 %v1054_v13  ;;  %722 = vmatprep.subr.bf16.mxu1 %v1056_v14  ;;  %v1086_v34 = vld [vmem:[%s1214_s28 + $0x1ec] ss:$16 sps:$4 sm:$0xff]   ;;  %v1088_v35 = vld [vmem:[%s1214_s28 + $0x1e0] ss:$16 sps:$4 sm:$0xff]   ;;  %v1089_v36 = vld [vmem:[%s1214_s28 + $0x1e8] ss:$16 sps:$4 sm:$0xff]  }
  0x23   : > { %v1090_v37 = vld [vmem:[%s1214_s28 + $0x1c4] ss:$16 sps:$4 sm:$0xff]   ;;  %v1092_v38 = vld [vmem:[%s1214_s28 + $0x1cc] ss:$16 sps:$4 sm:$0xff]   ;;  %v1094_v39 = vld [vmem:[%s1214_s28 + $0x1c0] ss:$16 sps:$4 sm:$0xff]  }
  0x24   : > { %v1095_v40 = vld [vmem:[%s1214_s28 + $0x1c8] ss:$16 sps:$4 sm:$0xff]   ;;  %v1096_v41 = vld [vmem:[%s1214_s28 + $0x1a4] ss:$16 sps:$4 sm:$0xff]   ;;  %v1098_v42 = vld [vmem:[%s1214_s28 + $0x1ac] ss:$16 sps:$4 sm:$0xff]  }
  0x25   : > { %682 = vmatpush1.bf16.msra.mxu0 %v1058_v15  ;;  %723 = vmatpush1.bf16.msra.mxu1 %v1059_v16  ;;  %v1100_v43 = vld [vmem:[%s1214_s28 + $0x1a0] ss:$16 sps:$4 sm:$0xff]   ;;  %v1101_v44 = vld [vmem:[%s1214_s28 + $0x1a8] ss:$16 sps:$4 sm:$0xff]   ;;  %v1102_v45 = vld [vmem:[%s1214_s28 + $0x184] ss:$16 sps:$4 sm:$0xff]  }
  0x26   : > { %683 = vmatprep.subr.bf16.mxu0 %v1060_v17  ;;  %724 = vmatprep.subr.bf16.mxu1 %v1062_v18  ;;  %v1104_v46 = vld [vmem:[%s1214_s28 + $0x18c] ss:$16 sps:$4 sm:$0xff]   ;;  %v283_v47 = vld [vmem:[%s1209_s24] sm:$0xff]  ;;  %v1107_v50 = vld [vmem:[%s1214_s28 + $0x188] ss:$16 sps:$4 sm:$0xff]   ;;  %p1002_p7 = scmp.ne.s32.totalorder %s1148_s15, 17 }
  0x27   : > { %v937_v48 = vcombine.high %v283_v47, %v283_v47  ;;  %v1106_v49 = vld [vmem:[%s1214_s28 + $0x180] ss:$16 sps:$4 sm:$0xff]   ;;  %v1108_v51 = vld [vmem:[%s1214_s28 + $0x164] ss:$16 sps:$4 sm:$0xff]   ;;  %v1110_v52 = vld [vmem:[%s1214_s28 + $0x16c] ss:$16 sps:$4 sm:$0xff]   ;;  %v936_v3 = vcombine.low %v283_v47, %v283_v47 }
  0x28   : > { %v1112_v53 = vld [vmem:[%s1214_s28 + $0x160] ss:$16 sps:$4 sm:$0xff]   ;;  %v1113_v54 = vld [vmem:[%s1214_s28 + $0x168] ss:$16 sps:$4 sm:$0xff]   ;;  %v1114_v55 = vld [vmem:[%s1214_s28 + $0x144] ss:$16 sps:$4 sm:$0xff]  }
  0x29   : > { %684 = vmatpush1.bf16.msra.mxu0 %v1064_v19  ;;  %725 = vmatpush1.bf16.msra.mxu1 %v1065_v20  ;;  %v1116_v56 = vld [vmem:[%s1214_s28 + $0x14c] ss:$16 sps:$4 sm:$0xff]   ;;  %v1118_v57 = vld [vmem:[%s1214_s28 + $0x140] ss:$16 sps:$4 sm:$0xff]   ;;  %v1119_v58 = vld [vmem:[%s1214_s28 + $0x148] ss:$16 sps:$4 sm:$0xff]  }
  0x2a   : > { %685 = vmatprep.subr.bf16.mxu0 %v1066_v21  ;;  %726 = vmatprep.subr.bf16.mxu1 %v1068_v22  ;;  %v1120_v59 = vld [vmem:[%s1214_s28 + $0x124] ss:$16 sps:$4 sm:$0xff]   ;;  %v1122_v60 = vld [vmem:[%s1214_s28 + $0x12c] ss:$16 sps:$4 sm:$0xff]   ;;  %v1124_v61 = vld [vmem:[%s1214_s28 + $0x120] ss:$16 sps:$4 sm:$0xff]  }
  0x2b   : > { %707 = vmatprep.mubr.bf16.mxu0 %v937_v48  ;;  %748 = vmatprep.mubr.bf16.mxu1 %v937_v48  ;;  %v1125_v62 = vld [vmem:[%s1214_s28 + $0x128] ss:$16 sps:$4 sm:$0xff]   ;;  %v1126_v63 = vld [vmem:[%s1214_s28 + $0x104] ss:$16 sps:$4 sm:$0xff]   ;;  %v1128_v0 = vld [vmem:[%s1214_s28 + $0x10c] ss:$16 sps:$4 sm:$0xff]  }
  0x2c   : > { %v1130_v1 = vld [vmem:[%s1214_s28 + $0x100] ss:$16 sps:$4 sm:$0xff]   ;;  %v1131_v2 = vld [vmem:[%s1214_s28 + $0x108] ss:$16 sps:$4 sm:$0xff]  }
  0x2d   : > { %686 = vmatpush1.bf16.msra.mxu0 %v1070_v23  ;;  %727 = vmatpush1.bf16.msra.mxu1 %v1071_v24  ;;  %v279_v4 = vld [vmem:[#allocation2 + $0x10] sm:$0xff]  ;;  %v281_v5 = vld [vmem:[#allocation2 + $0x18] sm:$0xff]  ;;  %v280_v8 = vld [vmem:[#allocation2] sm:$0xff] }
  0x2e   : > { %687 = vmatprep.subr.bf16.mxu0 %v1072_v25  ;;  %728 = vmatprep.subr.bf16.mxu1 %v1074_v26  ;;  %v282_v9 = vld [vmem:[#allocation2 + $0x8] sm:$0xff] }
  0x31   : > { %688 = vmatpush1.bf16.msra.mxu0 %v1076_v27  ;;  %729 = vmatpush1.bf16.msra.mxu1 %v1077_v28 }
  0x32   : > { %689 = vmatprep.subr.bf16.mxu0 %v1078_v29  ;;  %730 = vmatprep.subr.bf16.mxu1 %v1080_v30 }
  0x35   : > { %690 = vmatpush1.bf16.msra.mxu0 %v1082_v31  ;;  %731 = vmatpush1.bf16.msra.mxu1 %v1083_v32 }
  0x36   : > { %691 = vmatprep.subr.bf16.mxu0 %v1084_v33  ;;  %732 = vmatprep.subr.bf16.mxu1 %v1086_v34 }
  0x39   : > { %692 = vmatpush2.bf16.msra.mxu0 %v1088_v35  ;;  %733 = vmatpush2.bf16.msra.mxu1 %v1089_v36 }
  0x3a   : > { %693 = vmatprep.subr.bf16.mxu0 %v1090_v37  ;;  %734 = vmatprep.subr.bf16.mxu1 %v1092_v38 }
  0x3d   : > { %694 = vmatpush2.bf16.msra.mxu0 %v1094_v39  ;;  %735 = vmatpush2.bf16.msra.mxu1 %v1095_v40 }
  0x3e   : > { %695 = vmatprep.subr.bf16.mxu0 %v1096_v41  ;;  %736 = vmatprep.subr.bf16.mxu1 %v1098_v42 }
  0x41   : > { %696 = vmatpush2.bf16.msra.mxu0 %v1100_v43  ;;  %737 = vmatpush2.bf16.msra.mxu1 %v1101_v44 }
  0x42   : > { %697 = vmatprep.subr.bf16.mxu0 %v1102_v45  ;;  %738 = vmatprep.subr.bf16.mxu1 %v1104_v46 }
  0x45   : > { %698 = vmatpush2.bf16.msra.mxu0 %v1106_v49  ;;  %739 = vmatpush2.bf16.msra.mxu1 %v1107_v50 }
  0x46   : > { %699 = vmatprep.subr.bf16.mxu0 %v1108_v51  ;;  %740 = vmatprep.subr.bf16.mxu1 %v1110_v52 }
  0x49   : > { %700 = vmatpush2.bf16.msra.mxu0 %v1112_v53  ;;  %741 = vmatpush2.bf16.msra.mxu1 %v1113_v54 }
  0x4a   : > { %701 = vmatprep.subr.bf16.mxu0 %v1114_v55  ;;  %742 = vmatprep.subr.bf16.mxu1 %v1116_v56 }
  0x4d   : > { %702 = vmatpush2.bf16.msra.mxu0 %v1118_v57  ;;  %743 = vmatpush2.bf16.msra.mxu1 %v1119_v58 }
  0x4e   : > { %703 = vmatprep.subr.bf16.mxu0 %v1120_v59  ;;  %744 = vmatprep.subr.bf16.mxu1 %v1122_v60 }
  0x51   : > { %704 = vmatpush2.bf16.msra.mxu0 %v1124_v61  ;;  %745 = vmatpush2.bf16.msra.mxu1 %v1125_v62 }
  0x52   : > { %705 = vmatprep.subr.bf16.mxu0 %v1126_v63  ;;  %746 = vmatprep.subr.bf16.mxu1 %v1128_v0 }
  0x55   : > { %706 = vmatpush2.bf16.msra.mxu0 %v1130_v1  ;;  %747 = vmatpush2.bf16.msra.mxu1 %v1131_v2 }
  0x58   : > { %708 = vmatmul.mubr.bf16.vlgmr.msra.gmra.mxu0 %v936_v3  ;;  %749 = vmatmul.mubr.bf16.vlgmr.msra.gmra.mxu1 %v936_v3 }
 0x118   : > { %v709_v6 = vpop.f32.mrf.mxu0  ;;  %v750_v7 = vpop.f32.mrf.mxu1 }
 0x119   : > { %v757_v10 = vadd.f32 %v709_v6, %v279_v4  ;;  %v759_v11 = vadd.f32 %v750_v7, %v281_v5 }
 0x11a   : > { %v711_v12 = vpop.f32.mrf.mxu0  ;;  %v752_v13 = vpop.f32.mrf.mxu1  ;;  %768 = sbr.rel (%p1002_p7) target bundleno = 304 (0x130), region = 44 }
 0x11b   : > { %761 = vst [vmem:[#allocation2 + $0x10] sm:$0xff] %v757_v10  ;;  %763 = vst [vmem:[#allocation2 + $0x18] sm:$0xff] %v759_v11  ;;  %v758_v14 = vadd.f32 %v711_v12, %v280_v8  ;;  %v760_v15 = vadd.f32 %v752_v13, %v282_v9 }
 0x11c   : > { %v713_v16 = vpop.f32.mrf.mxu0  ;;  %v754_v17 = vpop.f32.mrf.mxu1 }
 0x11d   : > { %762 = vst [vmem:[#allocation2] sm:$0xff] %v758_v14  ;;  %764 = vst [vmem:[#allocation2 + $0x8] sm:$0xff] %v760_v15 }
 0x11e   : > { %v714_v18 = vpop.f32.mrf.mxu0  ;;  %v755_v19 = vpop.f32.mrf.mxu1 }
 0x11f   : > { %v775_v20 = vlaneseq  ;;  %v799_v22 = vld [vmem:[%s1310_s3] sm:$0xff]  ;;  %v800_v23 = vld [vmem:[%s1310_s3 + $0x8] sm:$0xff] }
 0x120   : > { %v773_v24 = vld [vmem:[%s1309_s2] sm:$0xf]  ;;  %v801_v31 = vunpack.c.l.bf16 %v799_v22  ;;  %v802_v32 = vunpack.c.h.bf16 %v799_v22  ;;  %v803_v35 = vunpack.c.l.bf16 %v800_v23  ;;  %v804_v36 = vunpack.c.h.bf16 %v800_v23 }
 0x121   : > { %v776_v21 = vshrl.u32 %v775_v20, 7 }
 0x122   : > { %v769_v25 = vld [vmem:[#allocation2 + $0x10] sm:$0xff]  ;;  %v771_v33 = vld [vmem:[#allocation2 + $0x18] sm:$0xff] }
 0x123   : > { %v777_v26 = vsub.s32 0, %v776_v21  ;;  %v781_v27 = vsub.s32 1, %v776_v21  ;;  %v785_v28 = vsub.s32 2, %v776_v21  ;;  %v789_v29 = vsub.s32 3, %v776_v21 }
 0x124   : > { %v770_v30 = vld [vmem:[#allocation2] sm:$0xff]  ;;  %v772_v34 = vld [vmem:[#allocation2 + $0x8] sm:$0xff] }
 0x125   : > { %v778_v37 = vrot.slane %v773_v24, %v777_v26  ;;  %v782_v38 = vrot.slane %v773_v24, %v781_v27  ;;  %v786_v39 = vrot.slane %v773_v24, %v785_v28  ;;  %v790_v40 = vrot.slane %v773_v24, %v789_v29 }
 0x127   : > { %v795_v41 = vadd.f32 %v778_v37, %v769_v25  ;;  %v796_v42 = vadd.f32 %v782_v38, %v770_v30  ;;  %v797_v43 = vadd.f32 %v786_v39, %v771_v33  ;;  %v798_v44 = vadd.f32 %v790_v40, %v772_v34 }
 0x129   : > { %v805_v45 = vadd.f32 %v801_v31, %v795_v41  ;;  %v806_v46 = vadd.f32 %v802_v32, %v796_v42  ;;  %v807_v47 = vadd.f32 %v803_v35, %v797_v43  ;;  %v808_v48 = vadd.f32 %v804_v36, %v798_v44 }
 0x12b   : > { %v809_v49 = vmax.f32 %v805_v45, 0.0  ;;  %v810_v50 = vmax.f32 %v806_v46, 0.0  ;;  %v811_v51 = vmax.f32 %v807_v47, 0.0  ;;  %v812_v52 = vmax.f32 %v808_v48, 0.0 }
 0x12d   : > { %v1009_v53 = vpack.c.bf16 %v810_v50, %v809_v49  ;;  %v1010_v54 = vpack.c.bf16 %v812_v52, %v811_v51 }
 0x12f   : > { %829 = vst [vmem:[%s1311_s4] sm:$0xff] %v1009_v53  ;;  %830 = vst [vmem:[%s1311_s4 + $0x8] sm:$0xff] %v1010_v54 }
 0x130 PF: > { %s14_s17 = sadd.s32 1, %s1156_s17   ;;  %s1312_s15 = smov %s1152_s16 }
 0x131   : > { %p11_p8 = scmp.ge.s32.totalorder %s14_s17, 20   ;;  %s1313_s16 = smov %s1315_s18 }
 0x133   :  { %13 = sbr.rel (!%p11_p8) target bundleno = 2 (0x2), region = 80 }

// kernel: resnet18_forward.39
= control target key start
LH: loop header
LB: loop body
LE: loop exit
PB: predicated region body
PF: predicated region fallthrough
CT: control target
= control target key end

     0   :  { %s1106_s12 = smov 0   ;;  %s1108_s13 = smov 0   ;;  %s1223_s0 = inlined_call_operand.vmem [shape: bf16[8,4608], index: 0, kind: input, shape index: {}]   ;;  %s1224_s1 = inlined_call_operand.vmem [shape: bf16[4608,512], index: 1, kind: input, shape index: {}]   ;;  %s1225_s2 = inlined_call_operand.vmem [shape: f32[1,512], index: 2, kind: input, shape index: {}]   ;;  %s1226_s3 = inlined_call_operand.vmem [shape: bf16[8,512], index: 3, kind: output, shape index: {}]  }
   0x1   :  { %s1110_s14 = smov 0  }
   0x2 LB: > { %s22_s15 = sadd.s32 1, %s1079_s13  ;;  %p856_p0 = scmp.ge.s32.totalorder %s1083_s14, 1  ;;  %s1083_s14 = sphi %s1110_s14, %s13_s14   ;;  %s1079_s13 = sphi %s1108_s13, %s1228_s13   ;;  %s1075_s12 = sphi %s1106_s12, %s1227_s12  }
   0x3   : > { %p23_p1 = scmp.ge.s32.totalorder %s22_s15, 18  ;;  %p168_p2 = scmp.lt.s32.totalorder %s1083_s14, 19 }
   0x5   : > { %s1230_s15 = smov (%p23_p1, %s22_s15), 0  ;;  %p169_p3 = pnand %p856_p0, %p168_p2 }
   0x6   : > { %s857_s16 = sshll.u32 (!%p169_p3), %s1075_s12, 1  ;;  %s859_s17 = sshll.u32 (!%p169_p3), %s1075_s12, 5 }
   0x7   : > { %172 = sbr.rel (%p169_p3) target bundleno = 302 (0x12e), region = 32  ;;  %p205_p4 = scmp.lt.s32.totalorder (!%p169_p3), %s857_s16, 35 }
   0x8   : > { %p213_p5 = scmp.lt.s32.totalorder (!%p169_p3), %s859_s17, 575  ;;  %p862_p6 = scmp.ne.s32.totalorder (!%p169_p3), %s1075_s12, 0 }
   0xc   : > { %s1232_s16 = smov (!%p205_p4, %s857_s16), 35  ;;  %s1234_s17 = smov (!%p213_p5, %s859_s17), 575 }
   0xd   : > { %s858_s18 = sshll.u32 %s1232_s16, 2  ;;  %s935_s22 = sshll.u32 %s1234_s17, 4 }
   0xe   : > { %s1131_s21 = scalar_lea.vmem %s1223_s0, %s858_s18  ;;  %s1136_s25 = scalar_lea.vmem %s1224_s1, %s935_s22 }
   0xf   : > { %227 = sbr.rel (%p862_p6) target bundleno = 23 (0x17), region = 36 }
  0x14   : > { %v1085_v0 = vmov 0.0  }
  0x15   : > { %228 = vst [vmem:[#allocation2 + $0x10] sm:$0xff] %v1085_v0  ;;  %229 = vst [vmem:[#allocation2] sm:$0xff] %v1085_v0 }
  0x16   : > { %230 = vst [vmem:[#allocation2 + $0x18] sm:$0xff] %v1085_v0  ;;  %231 = vst [vmem:[#allocation2 + $0x8] sm:$0xff] %v1085_v0 }
  0x17 PF: > { %v963_v1 = vld [vmem:[%s1136_s25 + $0xe4] ss:$16 sps:$4 sm:$0xff]   ;;  %v965_v2 = vld [vmem:[%s1136_s25 + $0xec] ss:$16 sps:$4 sm:$0xff]   ;;  %v967_v3 = vld [vmem:[%s1136_s25 + $0xe0] ss:$16 sps:$4 sm:$0xff]  }
  0x18   : > { %628 = vmatprep.subr.bf16.mxu0 %v963_v1  ;;  %v968_v4 = vld [vmem:[%s1136_s25 + $0xe8] ss:$16 sps:$4 sm:$0xff]   ;;  %669 = vmatprep.subr.bf16.mxu1 %v965_v2  ;;  %v969_v5 = vld [vmem:[%s1136_s25 + $0xc4] ss:$16 sps:$4 sm:$0xff]   ;;  %v971_v6 = vld [vmem:[%s1136_s25 + $0xcc] ss:$16 sps:$4 sm:$0xff]  }
  0x19   : > { %629 = vmatpush1.bf16.msra.mxu0 %v967_v3  ;;  %670 = vmatpush1.bf16.msra.mxu1 %v968_v4  ;;  %v973_v7 = vld [vmem:[%s1136_s25 + $0xc0] ss:$16 sps:$4 sm:$0xff]   ;;  %v974_v8 = vld [vmem:[%s1136_s25 + $0xc8] ss:$16 sps:$4 sm:$0xff]   ;;  %v975_v9 = vld [vmem:[%s1136_s25 + $0xa4] ss:$16 sps:$4 sm:$0xff]  }
  0x1a   : > { %630 = vmatprep.subr.bf16.mxu0 %v969_v5  ;;  %671 = vmatprep.subr.bf16.mxu1 %v971_v6  ;;  %v977_v10 = vld [vmem:[%s1136_s25 + $0xac] ss:$16 sps:$4 sm:$0xff]   ;;  %v979_v11 = vld [vmem:[%s1136_s25 + $0xa0] ss:$16 sps:$4 sm:$0xff]   ;;  %v980_v12 = vld [vmem:[%s1136_s25 + $0xa8] ss:$16 sps:$4 sm:$0xff]  }
  0x1b   : > { %v981_v13 = vld [vmem:[%s1136_s25 + $0x84] ss:$16 sps:$4 sm:$0xff]   ;;  %v983_v14 = vld [vmem:[%s1136_s25 + $0x8c] ss:$16 sps:$4 sm:$0xff]   ;;  %v985_v15 = vld [vmem:[%s1136_s25 + $0x80] ss:$16 sps:$4 sm:$0xff]  }
  0x1c   : > { %v986_v16 = vld [vmem:[%s1136_s25 + $0x88] ss:$16 sps:$4 sm:$0xff]   ;;  %v987_v17 = vld [vmem:[%s1136_s25 + $0x64] ss:$16 sps:$4 sm:$0xff]   ;;  %v989_v18 = vld [vmem:[%s1136_s25 + $0x6c] ss:$16 sps:$4 sm:$0xff]  }
  0x1d   : > { %631 = vmatpush1.bf16.msra.mxu0 %v973_v7  ;;  %672 = vmatpush1.bf16.msra.mxu1 %v974_v8  ;;  %v991_v19 = vld [vmem:[%s1136_s25 + $0x60] ss:$16 sps:$4 sm:$0xff]   ;;  %v992_v20 = vld [vmem:[%s1136_s25 + $0x68] ss:$16 sps:$4 sm:$0xff]   ;;  %v993_v21 = vld [vmem:[%s1136_s25 + $0x44] ss:$16 sps:$4 sm:$0xff]  }
  0x1e   : > { %632 = vmatprep.subr.bf16.mxu0 %v975_v9  ;;  %673 = vmatprep.subr.bf16.mxu1 %v977_v10  ;;  %v995_v22 = vld [vmem:[%s1136_s25 + $0x4c] ss:$16 sps:$4 sm:$0xff]   ;;  %v997_v23 = vld [vmem:[%s1136_s25 + $0x40] ss:$16 sps:$4 sm:$0xff]   ;;  %v998_v24 = vld [vmem:[%s1136_s25 + $0x48] ss:$16 sps:$4 sm:$0xff]  }
  0x1f   : > { %v999_v25 = vld [vmem:[%s1136_s25 + $0x24] ss:$16 sps:$4 sm:$0xff]   ;;  %v1001_v26 = vld [vmem:[%s1136_s25 + $0x2c] ss:$16 sps:$4 sm:$0xff]   ;;  %v1003_v27 = vld [vmem:[%s1136_s25 + $0x20] ss:$16 sps:$4 sm:$0xff]  }
  0x20   : > { %v1004_v28 = vld [vmem:[%s1136_s25 + $0x28] ss:$16 sps:$4 sm:$0xff]   ;;  %v1005_v29 = vld [vmem:[%s1136_s25 + $0x4] ss:$16 sps:$4 sm:$0xff]   ;;  %v1007_v30 = vld [vmem:[%s1136_s25 + $0xc] ss:$16 sps:$4 sm:$0xff]  }
  0x21   : > { %633 = vmatpush1.bf16.msra.mxu0 %v979_v11  ;;  %674 = vmatpush1.bf16.msra.mxu1 %v980_v12  ;;  %v1009_v31 = vld [vmem:[%s1136_s25] ss:$16 sps:$4 sm:$0xff]   ;;  %v1010_v32 = vld [vmem:[%s1136_s25 + $0x8] ss:$16 sps:$4 sm:$0xff]   ;;  %v1011_v33 = vld [vmem:[%s1136_s25 + $0x1e4] ss:$16 sps:$4 sm:$0xff]  }
  0x22   : > { %634 = vmatprep.subr.bf16.mxu0 %v981_v13  ;;  %675 = vmatprep.subr.bf16.mxu1 %v983_v14  ;;  %v1013_v34 = vld [vmem:[%s1136_s25 + $0x1ec] ss:$16 sps:$4 sm:$0xff]   ;;  %v1015_v35 = vld [vmem:[%s1136_s25 + $0x1e0] ss:$16 sps:$4 sm:$0xff]   ;;  %v1016_v36 = vld [vmem:[%s1136_s25 + $0x1e8] ss:$16 sps:$4 sm:$0xff]  }
  0x23   : > { %v1017_v37 = vld [vmem:[%s1136_s25 + $0x1c4] ss:$16 sps:$4 sm:$0xff]   ;;  %v1019_v38 = vld [vmem:[%s1136_s25 + $0x1cc] ss:$16 sps:$4 sm:$0xff]   ;;  %v1021_v39 = vld [vmem:[%s1136_s25 + $0x1c0] ss:$16 sps:$4 sm:$0xff]  }
  0x24   : > { %v1022_v40 = vld [vmem:[%s1136_s25 + $0x1c8] ss:$16 sps:$4 sm:$0xff]   ;;  %v1023_v41 = vld [vmem:[%s1136_s25 + $0x1a4] ss:$16 sps:$4 sm:$0xff]   ;;  %v1025_v42 = vld [vmem:[%s1136_s25 + $0x1ac] ss:$16 sps:$4 sm:$0xff]  }
  0x25   : > { %635 = vmatpush1.bf16.msra.mxu0 %v985_v15  ;;  %676 = vmatpush1.bf16.msra.mxu1 %v986_v16  ;;  %v1027_v43 = vld [vmem:[%s1136_s25 + $0x1a0] ss:$16 sps:$4 sm:$0xff]   ;;  %v1028_v44 = vld [vmem:[%s1136_s25 + $0x1a8] ss:$16 sps:$4 sm:$0xff]   ;;  %v1029_v45 = vld [vmem:[%s1136_s25 + $0x184] ss:$16 sps:$4 sm:$0xff]  }
  0x26   : > { %636 = vmatprep.subr.bf16.mxu0 %v987_v17  ;;  %677 = vmatprep.subr.bf16.mxu1 %v989_v18  ;;  %v1031_v46 = vld [vmem:[%s1136_s25 + $0x18c] ss:$16 sps:$4 sm:$0xff]   ;;  %v236_v47 = vld [vmem:[%s1131_s21] sm:$0xff]  ;;  %v1034_v50 = vld [vmem:[%s1136_s25 + $0x188] ss:$16 sps:$4 sm:$0xff]   ;;  %p929_p7 = scmp.ne.s32.totalorder %s1075_s12, 17 }
  0x27   : > { %v864_v48 = vcombine.high %v236_v47, %v236_v47  ;;  %v1033_v49 = vld [vmem:[%s1136_s25 + $0x180] ss:$16 sps:$4 sm:$0xff]   ;;  %v1035_v51 = vld [vmem:[%s1136_s25 + $0x164] ss:$16 sps:$4 sm:$0xff]   ;;  %v1037_v52 = vld [vmem:[%s1136_s25 + $0x16c] ss:$16 sps:$4 sm:$0xff]   ;;  %v863_v3 = vcombine.low %v236_v47, %v236_v47 }
  0x28   : > { %v1039_v53 = vld [vmem:[%s1136_s25 + $0x160] ss:$16 sps:$4 sm:$0xff]   ;;  %v1040_v54 = vld [vmem:[%s1136_s25 + $0x168] ss:$16 sps:$4 sm:$0xff]   ;;  %v1041_v55 = vld [vmem:[%s1136_s25 + $0x144] ss:$16 sps:$4 sm:$0xff]  }
  0x29   : > { %637 = vmatpush1.bf16.msra.mxu0 %v991_v19  ;;  %678 = vmatpush1.bf16.msra.mxu1 %v992_v20  ;;  %v1043_v56 = vld [vmem:[%s1136_s25 + $0x14c] ss:$16 sps:$4 sm:$0xff]   ;;  %v1045_v57 = vld [vmem:[%s1136_s25 + $0x140] ss:$16 sps:$4 sm:$0xff]   ;;  %v1046_v58 = vld [vmem:[%s1136_s25 + $0x148] ss:$16 sps:$4 sm:$0xff]  }
  0x2a   : > { %638 = vmatprep.subr.bf16.mxu0 %v993_v21  ;;  %679 = vmatprep.subr.bf16.mxu1 %v995_v22  ;;  %v1047_v59 = vld [vmem:[%s1136_s25 + $0x124] ss:$16 sps:$4 sm:$0xff]   ;;  %v1049_v60 = vld [vmem:[%s1136_s25 + $0x12c] ss:$16 sps:$4 sm:$0xff]   ;;  %v1051_v61 = vld [vmem:[%s1136_s25 + $0x120] ss:$16 sps:$4 sm:$0xff]  }
  0x2b   : > { %660 = vmatprep.mubr.bf16.mxu0 %v864_v48  ;;  %701 = vmatprep.mubr.bf16.mxu1 %v864_v48  ;;  %v1052_v62 = vld [vmem:[%s1136_s25 + $0x128] ss:$16 sps:$4 sm:$0xff]   ;;  %v1053_v63 = vld [vmem:[%s1136_s25 + $0x104] ss:$16 sps:$4 sm:$0xff]   ;;  %v1055_v0 = vld [vmem:[%s1136_s25 + $0x10c] ss:$16 sps:$4 sm:$0xff]  }
  0x2c   : > { %v1057_v1 = vld [vmem:[%s1136_s25 + $0x100] ss:$16 sps:$4 sm:$0xff]   ;;  %v1058_v2 = vld [vmem:[%s1136_s25 + $0x108] ss:$16 sps:$4 sm:$0xff]  }
  0x2d   : > { %639 = vmatpush1.bf16.msra.mxu0 %v997_v23  ;;  %680 = vmatpush1.bf16.msra.mxu1 %v998_v24  ;;  %v232_v4 = vld [vmem:[#allocation2 + $0x10] sm:$0xff]  ;;  %v234_v5 = vld [vmem:[#allocation2 + $0x18] sm:$0xff]  ;;  %v233_v8 = vld [vmem:[#allocation2] sm:$0xff] }
  0x2e   : > { %640 = vmatprep.subr.bf16.mxu0 %v999_v25  ;;  %681 = vmatprep.subr.bf16.mxu1 %v1001_v26  ;;  %v235_v9 = vld [vmem:[#allocation2 + $0x8] sm:$0xff] }
  0x31   : > { %641 = vmatpush1.bf16.msra.mxu0 %v1003_v27  ;;  %682 = vmatpush1.bf16.msra.mxu1 %v1004_v28 }
  0x32   : > { %642 = vmatprep.subr.bf16.mxu0 %v1005_v29  ;;  %683 = vmatprep.subr.bf16.mxu1 %v1007_v30 }
  0x35   : > { %643 = vmatpush1.bf16.msra.mxu0 %v1009_v31  ;;  %684 = vmatpush1.bf16.msra.mxu1 %v1010_v32 }
  0x36   : > { %644 = vmatprep.subr.bf16.mxu0 %v1011_v33  ;;  %685 = vmatprep.subr.bf16.mxu1 %v1013_v34 }
  0x39   : > { %645 = vmatpush2.bf16.msra.mxu0 %v1015_v35  ;;  %686 = vmatpush2.bf16.msra.mxu1 %v1016_v36 }
  0x3a   : > { %646 = vmatprep.subr.bf16.mxu0 %v1017_v37  ;;  %687 = vmatprep.subr.bf16.mxu1 %v1019_v38 }
  0x3d   : > { %647 = vmatpush2.bf16.msra.mxu0 %v1021_v39  ;;  %688 = vmatpush2.bf16.msra.mxu1 %v1022_v40 }
  0x3e   : > { %648 = vmatprep.subr.bf16.mxu0 %v1023_v41  ;;  %689 = vmatprep.subr.bf16.mxu1 %v1025_v42 }
  0x41   : > { %649 = vmatpush2.bf16.msra.mxu0 %v1027_v43  ;;  %690 = vmatpush2.bf16.msra.mxu1 %v1028_v44 }
  0x42   : > { %650 = vmatprep.subr.bf16.mxu0 %v1029_v45  ;;  %691 = vmatprep.subr.bf16.mxu1 %v1031_v46 }
  0x45   : > { %651 = vmatpush2.bf16.msra.mxu0 %v1033_v49  ;;  %692 = vmatpush2.bf16.msra.mxu1 %v1034_v50 }
  0x46   : > { %652 = vmatprep.subr.bf16.mxu0 %v1035_v51  ;;  %693 = vmatprep.subr.bf16.mxu1 %v1037_v52 }
  0x49   : > { %653 = vmatpush2.bf16.msra.mxu0 %v1039_v53  ;;  %694 = vmatpush2.bf16.msra.mxu1 %v1040_v54 }
  0x4a   : > { %654 = vmatprep.subr.bf16.mxu0 %v1041_v55  ;;  %695 = vmatprep.subr.bf16.mxu1 %v1043_v56 }
  0x4d   : > { %655 = vmatpush2.bf16.msra.mxu0 %v1045_v57  ;;  %696 = vmatpush2.bf16.msra.mxu1 %v1046_v58 }
  0x4e   : > { %656 = vmatprep.subr.bf16.mxu0 %v1047_v59  ;;  %697 = vmatprep.subr.bf16.mxu1 %v1049_v60 }
  0x51   : > { %657 = vmatpush2.bf16.msra.mxu0 %v1051_v61  ;;  %698 = vmatpush2.bf16.msra.mxu1 %v1052_v62 }
  0x52   : > { %658 = vmatprep.subr.bf16.mxu0 %v1053_v63  ;;  %699 = vmatprep.subr.bf16.mxu1 %v1055_v0 }
  0x55   : > { %659 = vmatpush2.bf16.msra.mxu0 %v1057_v1  ;;  %700 = vmatpush2.bf16.msra.mxu1 %v1058_v2 }
  0x58   : > { %661 = vmatmul.mubr.bf16.vlgmr.msra.gmra.mxu0 %v863_v3  ;;  %702 = vmatmul.mubr.bf16.vlgmr.msra.gmra.mxu1 %v863_v3 }
 0x118   : > { %v662_v6 = vpop.f32.mrf.mxu0  ;;  %v703_v7 = vpop.f32.mrf.mxu1 }
 0x119   : > { %v710_v10 = vadd.f32 %v662_v6, %v232_v4  ;;  %v712_v11 = vadd.f32 %v703_v7, %v234_v5 }
 0x11a   : > { %v664_v12 = vpop.f32.mrf.mxu0  ;;  %v705_v13 = vpop.f32.mrf.mxu1  ;;  %721 = sbr.rel (%p929_p7) target bundleno = 302 (0x12e), region = 40 }
 0x11b   : > { %714 = vst [vmem:[#allocation2 + $0x10] sm:$0xff] %v710_v10  ;;  %716 = vst [vmem:[#allocation2 + $0x18] sm:$0xff] %v712_v11  ;;  %v711_v14 = vadd.f32 %v664_v12, %v233_v8  ;;  %v713_v15 = vadd.f32 %v705_v13, %v235_v9 }
 0x11c   : > { %v666_v16 = vpop.f32.mrf.mxu0  ;;  %v707_v17 = vpop.f32.mrf.mxu1 }
 0x11d   : > { %715 = vst [vmem:[#allocation2] sm:$0xff] %v711_v14  ;;  %717 = vst [vmem:[#allocation2 + $0x8] sm:$0xff] %v713_v15 }
 0x11e   : > { %v667_v18 = vpop.f32.mrf.mxu0  ;;  %v708_v19 = vpop.f32.mrf.mxu1 }
 0x11f   : > { %v728_v20 = vlaneseq  ;;  %v726_v22 = vld [vmem:[%s1225_s2] sm:$0xf] }
 0x121   : > { %v729_v21 = vshrl.u32 %v728_v20, 7 }
 0x122   : > { %v722_v23 = vld [vmem:[#allocation2 + $0x10] sm:$0xff]  ;;  %v724_v29 = vld [vmem:[#allocation2 + $0x18] sm:$0xff] }
 0x123   : > { %v730_v24 = vsub.s32 0, %v729_v21  ;;  %v734_v25 = vsub.s32 1, %v729_v21  ;;  %v738_v26 = vsub.s32 2, %v729_v21  ;;  %v742_v27 = vsub.s32 3, %v729_v21 }
 0x124   : > { %v723_v28 = vld [vmem:[#allocation2] sm:$0xff]  ;;  %v725_v30 = vld [vmem:[#allocation2 + $0x8] sm:$0xff] }
 0x125   : > { %v731_v31 = vrot.slane %v726_v22, %v730_v24  ;;  %v735_v32 = vrot.slane %v726_v22, %v734_v25  ;;  %v739_v33 = vrot.slane %v726_v22, %v738_v26  ;;  %v743_v34 = vrot.slane %v726_v22, %v742_v27 }
 0x127   : > { %v748_v35 = vadd.f32 %v731_v31, %v722_v23  ;;  %v749_v36 = vadd.f32 %v735_v32, %v723_v28  ;;  %v750_v37 = vadd.f32 %v739_v33, %v724_v29  ;;  %v751_v38 = vadd.f32 %v743_v34, %v725_v30 }
 0x129   : > { %v752_v39 = vmax.f32 %v748_v35, 0.0  ;;  %v753_v40 = vmax.f32 %v749_v36, 0.0  ;;  %v754_v41 = vmax.f32 %v750_v37, 0.0  ;;  %v755_v42 = vmax.f32 %v751_v38, 0.0 }
 0x12b   : > { %v936_v43 = vpack.c.bf16 %v753_v40, %v752_v39  ;;  %v937_v44 = vpack.c.bf16 %v755_v42, %v754_v41 }
 0x12d   : > { %772 = vst [vmem:[%s1226_s3] sm:$0xff] %v936_v43  ;;  %773 = vst [vmem:[%s1226_s3 + $0x8] sm:$0xff] %v937_v44 }
 0x12e PF: > { %s13_s14 = sadd.s32 1, %s1083_s14   ;;  %s1227_s12 = smov %s1079_s13 }
 0x12f   : > { %p10_p8 = scmp.ge.s32.totalorder %s13_s14, 20   ;;  %s1228_s13 = smov %s1230_s15 }
 0x131   :  { %12 = sbr.rel (!%p10_p8) target bundleno = 2 (0x2), region = 73 }

// kernel: resnet18_forward.41
= control target key start
LH: loop header
LB: loop body
LE: loop exit
PB: predicated region body
PF: predicated region fallthrough
CT: control target
= control target key end

     0   :  { %vm37_vm0 = vcmask 1043456   ;;  %s781_s0 = inlined_call_operand.vmem [shape: bf16[2,4,512], index: 0, kind: input, shape index: {}]   ;;  %s782_s1 = inlined_call_operand.vmem [shape: bf16[512,128], index: 1, kind: input, shape index: {}]   ;;  %s783_s2 = inlined_call_operand.vmem [shape: f32[1,128], index: 2, kind: input, shape index: {}]   ;;  %s784_s3 = inlined_call_operand.vmem [shape: f32[2,128], index: 3, kind: input, shape index: {}]   ;;  %s785_s4 = inlined_call_operand.hbm [shape: f32[2,128], index: 4, kind: output, shape index: {}]  }
   0x1   :  { %v578_v0 = vld [vmem:[%s782_s1 + $0x78] sm:$0xff]   ;;  %v582_v4 = vld [vmem:[%s782_s1 + $0x70] sm:$0xff]   ;;  %v586_v8 = vld [vmem:[%s782_s1 + $0x68] sm:$0xff]  }
   0x2   :  { %v579_v1 = vld [vmem:[%s782_s1 + $0xf8] sm:$0xff]   ;;  %533 = vmatprep.subr.bf16.mxu0 %v578_v0  ;;  %v583_v5 = vld [vmem:[%s782_s1 + $0xf0] sm:$0xff]   ;;  %v587_v9 = vld [vmem:[%s782_s1 + $0xe8] sm:$0xff]  }
   0x3   :  { %v580_v2 = vld [vmem:[%s782_s1 + $0x38] sm:$0xff]   ;;  %555 = vmatprep.subr.bf16.mxu1 %v579_v1  ;;  %v584_v6 = vld [vmem:[%s782_s1 + $0x30] sm:$0xff]   ;;  %v588_v10 = vld [vmem:[%s782_s1 + $0x28] sm:$0xff]  }
   0x4   :  { %v581_v3 = vld [vmem:[%s782_s1 + $0xb8] sm:$0xff]   ;;  %534 = vmatpush3.bf16.msra.mxu0 %v580_v2  ;;  %v585_v7 = vld [vmem:[%s782_s1 + $0xb0] sm:$0xff]   ;;  %v589_v11 = vld [vmem:[%s782_s1 + $0xa8] sm:$0xff]  }
   0x5   :  { %556 = vmatpush3.bf16.msra.mxu1 %v581_v3  ;;  %535 = vmatprep.subr.bf16.mxu0 %v582_v4  ;;  %v590_v12 = vld [vmem:[%s782_s1 + $0x60] sm:$0xff]   ;;  %v594_v16 = vld [vmem:[%s782_s1 + $0x58] sm:$0xff]   ;;  %v598_v20 = vld [vmem:[%s782_s1 + $0x50] sm:$0xff]  }
   0x6   :  { %557 = vmatprep.subr.bf16.mxu1 %v583_v5  ;;  %v591_v13 = vld [vmem:[%s782_s1 + $0xe0] sm:$0xff]   ;;  %v595_v17 = vld [vmem:[%s782_s1 + $0xd8] sm:$0xff]   ;;  %v599_v21 = vld [vmem:[%s782_s1 + $0xd0] sm:$0xff]  }
   0x7   :  { %v592_v14 = vld [vmem:[%s782_s1 + $0x20] sm:$0xff]   ;;  %v596_v18 = vld [vmem:[%s782_s1 + $0x18] sm:$0xff]   ;;  %v600_v22 = vld [vmem:[%s782_s1 + $0x10] sm:$0xff]  }
   0x8   :  { %536 = vmatpush3.bf16.msra.mxu0 %v584_v6  ;;  %v593_v15 = vld [vmem:[%s782_s1 + $0xa0] sm:$0xff]   ;;  %v597_v19 = vld [vmem:[%s782_s1 + $0x98] sm:$0xff]   ;;  %v601_v23 = vld [vmem:[%s782_s1 + $0x90] sm:$0xff]  }
   0x9   :  { %558 = vmatpush3.bf16.msra.mxu1 %v585_v7  ;;  %537 = vmatprep.subr.bf16.mxu0 %v586_v8  ;;  %v602_v24 = vld [vmem:[%s782_s1 + $0x48] sm:$0xff]   ;;  %v606_v28 = vld [vmem:[%s782_s1 + $0x40] sm:$0xff]  }
   0xa   :  { %559 = vmatprep.subr.bf16.mxu1 %v587_v9  ;;  %v603_v25 = vld [vmem:[%s782_s1 + $0xc8] sm:$0xff]   ;;  %v607_v29 = vld [vmem:[%s782_s1 + $0xc0] sm:$0xff]  }
   0xb   :  { %v604_v26 = vld [vmem:[%s782_s1 + $0x8] sm:$0xff]   ;;  %v608_v30 = vld [vmem:[%s782_s1] sm:$0xff]  }
   0xc   :  { %538 = vmatpush3.bf16.msra.mxu0 %v588_v10  ;;  %v605_v27 = vld [vmem:[%s782_s1 + $0x88] sm:$0xff]   ;;  %v609_v31 = vld [vmem:[%s782_s1 + $0x80] sm:$0xff]  }
   0xd   :  { %560 = vmatpush3.bf16.msra.mxu1 %v589_v11  ;;  %539 = vmatprep.subr.bf16.mxu0 %v590_v12  ;;  %v19_v32 = vld [vmem:[%s781_s0] sm:$0xff]  ;;  %v20_v33 = vld [vmem:[%s781_s0 + $0x8] sm:$0xff] }
   0xe   :  { %561 = vmatprep.subr.bf16.mxu1 %v591_v13 }
  0x10   :  { %540 = vmatpush3.bf16.msra.mxu0 %v592_v14 }
  0x11   :  { %562 = vmatpush3.bf16.msra.mxu1 %v593_v15  ;;  %541 = vmatprep.subr.bf16.mxu0 %v594_v16 }
  0x12   :  { %563 = vmatprep.subr.bf16.mxu1 %v595_v17 }
  0x14   :  { %542 = vmatpush3.bf16.msra.mxu0 %v596_v18 }
  0x15   :  { %564 = vmatpush3.bf16.msra.mxu1 %v597_v19  ;;  %543 = vmatprep.subr.bf16.mxu0 %v598_v20 }
  0x16   :  { %565 = vmatprep.subr.bf16.mxu1 %v599_v21 }
  0x18   :  { %544 = vmatpush3.bf16.msra.mxu0 %v600_v22 }
  0x19   :  { %566 = vmatpush3.bf16.msra.mxu1 %v601_v23  ;;  %545 = vmatprep.subr.bf16.mxu0 %v602_v24 }
  0x1a   :  { %567 = vmatprep.subr.bf16.mxu1 %v603_v25 }
  0x1c   :  { %546 = vmatpush3.bf16.msra.mxu0 %v604_v26 }
  0x1d   :  { %568 = vmatpush3.bf16.msra.mxu1 %v605_v27  ;;  %547 = vmatprep.subr.bf16.mxu0 %v606_v28 }
  0x1e   :  { %569 = vmatprep.subr.bf16.mxu1 %v607_v29 }
  0x20   :  { %548 = vmatpush3.bf16.msra.mxu0 %v608_v30 }
  0x21   :  { %9 = vsyncpa [#allocation3], 0  ;;  %570 = vmatpush3.bf16.msra.mxu1 %v609_v31  ;;  %v21_v34 = vunpack.c.l.bf16 %v19_v32  ;;  %v23_v35 = vunpack.c.l.bf16 %v20_v33  ;;  %v22_v36 = vunpack.c.h.bf16 %v19_v32  ;;  %v24_v37 = vunpack.c.h.bf16 %v20_v33  ;;  %s632_s7 = smov [#allocation2]  }
  0x22   :  { %vm198_vm1 = vcmask 1041409   ;;  %s492_s8 = sshll.u32 %s632_s7, 4  ;;  %s493_s8 = int_to_ptr.vmem [resolvable:$true] %s492_s8 }
  0x23   :  { %v29_v38 = vcombine.high %v21_v34, %v21_v34  ;;  %v31_v39 = vcombine.high %v23_v35, %v23_v35  ;;  %v30_v40 = vcombine.high %v22_v36, %v22_v36  ;;  %v32_v41 = vcombine.high %v24_v37, %v24_v37  ;;  %p615_p1 = scmp.lt.s32.totalorder %s493_s8, %s493_s8 }
  0x24   :  { %v38_v42 = vsel %vm37_vm0, %v21_v34, 0.0  ;;  %v66_v43 = vsel %vm37_vm0, %v23_v35, 0.0  ;;  %v52_v44 = vsel %vm37_vm0, %v22_v36, 0.0  ;;  %v80_v45 = vsel %vm37_vm0, %v24_v37, 0.0 }
  0x25   :  { %v45_v46 = vsel %vm37_vm0, %v29_v38, 0.0  ;;  %v73_v47 = vsel %vm37_vm0, %v31_v39, 0.0  ;;  %v59_v48 = vsel %vm37_vm0, %v30_v40, 0.0  ;;  %v87_v49 = vsel %vm37_vm0, %v32_v41, 0.0 }
  0x26   :  { %v46_v50 = vrot.slane %v45_v46, 4  ;;  %v74_v51 = vrot.slane %v73_v47, 4  ;;  %v60_v52 = vrot.slane %v59_v48, 4  ;;  %v88_v53 = vrot.slane %v87_v49, 4 }
  0x27   :  { %v39_v54 = vrot.slane %v38_v42, 4  ;;  %v67_v55 = vrot.slane %v66_v43, 4  ;;  %v53_v56 = vrot.slane %v52_v44, 4  ;;  %v81_v57 = vrot.slane %v80_v45, 4 }
  0x28   :  { %v47_v58 = vadd.f32 %v46_v50, %v45_v46  ;;  %v75_v59 = vadd.f32 %v74_v51, %v73_v47  ;;  %v61_v60 = vadd.f32 %v60_v52, %v59_v48  ;;  %v89_v61 = vadd.f32 %v88_v53, %v87_v49 }
  0x29   :  { %v40_v62 = vadd.f32 %v39_v54, %v38_v42  ;;  %v68_v63 = vadd.f32 %v67_v55, %v66_v43  ;;  %v54_v0 = vadd.f32 %v53_v56, %v52_v44  ;;  %v82_v1 = vadd.f32 %v81_v57, %v80_v45 }
  0x2a   :  { %v48_v2 = vrot.slane %v47_v58, 2  ;;  %v76_v3 = vrot.slane %v75_v59, 2  ;;  %v62_v4 = vrot.slane %v61_v60, 2  ;;  %v90_v5 = vrot.slane %v89_v61, 2 }
  0x2b   :  { %v41_v6 = vrot.slane %v40_v62, 2  ;;  %v69_v7 = vrot.slane %v68_v63, 2  ;;  %v55_v8 = vrot.slane %v54_v0, 2  ;;  %v83_v9 = vrot.slane %v82_v1, 2 }
  0x2c   :  { %v49_v10 = vadd.f32 %v48_v2, %v47_v58  ;;  %v77_v11 = vadd.f32 %v76_v3, %v75_v59  ;;  %v63_v12 = vadd.f32 %v62_v4, %v61_v60  ;;  %v91_v13 = vadd.f32 %v90_v5, %v89_v61  ;;  %v500_v4 = vld [vmem:[%s783_s2] ss:$0 sm:$0xff]  ;;  %s610_s2 = scalar_lea.vmem %s493_s8, 32 }
  0x2d   :  { %v42_v14 = vadd.f32 %v41_v6, %v40_v62  ;;  %v70_v15 = vadd.f32 %v69_v7, %v68_v63  ;;  %v56_v16 = vadd.f32 %v55_v8, %v54_v0  ;;  %v84_v17 = vadd.f32 %v83_v9, %v82_v1  ;;  %p611_p0 = scmp.ne.s32.totalorder %s493_s8, %s610_s2  ;;  %p616_p2 = scmp.lt.s32.totalorder %s610_s2, %s610_s2 }
  0x2e   :  { %v50_v18 = vrot.slane %v49_v10, 1  ;;  %v78_v19 = vrot.slane %v77_v11, 1  ;;  %v64_v20 = vrot.slane %v63_v12, 1  ;;  %v92_v21 = vrot.slane %v91_v13, 1 }
  0x2f   :  { %v43_v22 = vrot.slane %v42_v14, 1  ;;  %v71_v23 = vrot.slane %v70_v15, 1  ;;  %v57_v24 = vrot.slane %v56_v16, 1  ;;  %v85_v25 = vrot.slane %v84_v17, 1  ;;  %p617_p3 = por %p616_p2, %p615_p1 }
  0x30   :  { %v51_v26 = vadd.f32 %v50_v18, %v49_v10  ;;  %v79_v27 = vadd.f32 %v78_v19, %v77_v11  ;;  %v65_v28 = vadd.f32 %v64_v20, %v63_v12  ;;  %v93_v29 = vadd.f32 %v92_v21, %v91_v13 }
  0x31   :  { %v44_v30 = vadd.f32 %v43_v22, %v42_v14  ;;  %v72_v31 = vadd.f32 %v71_v23, %v70_v15  ;;  %v58_v32 = vadd.f32 %v57_v24, %v56_v16  ;;  %v86_v33 = vadd.f32 %v85_v25, %v84_v17  ;;  %v483_v14 = vld [vmem:[%s784_s3] sm:$0x3]  ;;  %p618_p4 = pnand %p617_p3, %p611_p0 }
  0x32   :  { %v96_v34 = vmul.f32 0.25, %v51_v26  ;;  %v100_v35 = vmul.f32 0.25, %v79_v27  ;;  %v98_v36 = vmul.f32 0.25, %v65_v28  ;;  %v102_v37 = vmul.f32 0.25, %v93_v29 }
  0x33   :  { %v95_v38 = vmul.f32 0.25, %v44_v30  ;;  %v99_v39 = vmul.f32 0.25, %v72_v31  ;;  %v97_v40 = vmul.f32 0.25, %v58_v32  ;;  %v101_v41 = vmul.f32 0.25, %v86_v33 }
  0x34   :  { %v104_v42 = vpack.c.bf16 %v96_v34, %v96_v34  ;;  %v108_v43 = vpack.c.bf16 %v100_v35, %v100_v35  ;;  %v106_v44 = vpack.c.bf16 %v98_v36, %v98_v36  ;;  %v110_v45 = vpack.c.bf16 %v102_v37, %v102_v37 }
  0x35   :  { %v103_v46 = vpack.c.bf16 %v95_v38, %v95_v38  ;;  %v107_v47 = vpack.c.bf16 %v99_v39, %v99_v39  ;;  %v105_v48 = vpack.c.bf16 %v97_v40, %v97_v40  ;;  %v109_v49 = vpack.c.bf16 %v101_v41, %v101_v41 }
  0x36   :  { %v191_v50 = vunpack.c.l.b16 %v104_v42  ;;  %v195_v51 = vunpack.c.l.b16 %v108_v43  ;;  %v193_v52 = vunpack.c.l.b16 %v106_v44  ;;  %v197_v53 = vunpack.c.l.b16 %v110_v45 }
  0x37   :  { %v190_v54 = vunpack.c.l.b16 %v103_v46  ;;  %v194_v55 = vunpack.c.l.b16 %v107_v47  ;;  %v192_v56 = vunpack.c.l.b16 %v105_v48  ;;  %v196_v57 = vunpack.c.l.b16 %v109_v49 }
  0x38   :  { %v200_v58 = vsel %vm198_vm1, %v195_v51, %v191_v50  ;;  %v202_v59 = vsel %vm198_vm1, %v197_v53, %v193_v52 }
  0x39   :  { %v204_v60 = vpack.c.b16 %v200_v58, %v200_v58  ;;  %v206_v61 = vpack.c.b16 %v202_v59, %v202_v59  ;;  %v199_v62 = vsel %vm198_vm1, %v194_v55, %v190_v54  ;;  %v201_v63 = vsel %vm198_vm1, %v196_v57, %v192_v56 }
  0x3a   :  { %v203_v0 = vpack.c.b16 %v199_v62, %v199_v62  ;;  %v205_v1 = vpack.c.b16 %v201_v63, %v201_v63 }
  0x3b   :  { %435 = vmatprep.mubr.bf16.mxu0 %v204_v60  ;;  %475 = vmatprep.mubr.bf16.mxu1 %v206_v61 }
  0x3c   :  { %436 = vmatmul.mubr.bf16.vlgmr.msra.gmra.mxu0 %v203_v0  ;;  %476 = vmatmul.mubr.bf16.vlgmr.msra.gmra.mxu1 %v205_v1 }
  0xfc   :  { %v549_v2 = vpop.f32.mrf.mxu0  ;;  %v571_v3 = vpop.f32.mrf.mxu1 }
  0xfe   :  { %v550_v5 = vpop.f32.mrf.mxu0  ;;  %v572_v6 = vpop.f32.mrf.mxu1 }
  0xff   :  { %v551_v7 = vadd.f32 %v550_v5, %v549_v2  ;;  %v573_v11 = vadd.f32 %v572_v6, %v571_v3 }
 0x100   :  { %v552_v8 = vpop.f32.mrf.mxu0  ;;  %v574_v9 = vpop.f32.mrf.mxu1 }
 0x101   :  { %v438_v10 = vadd.f32 %v551_v7, %v500_v4 }
 0x102   :  { %v553_v12 = vpop.f32.mrf.mxu0  ;;  %v575_v13 = vpop.f32.mrf.mxu1 }
 0x103   :  { %v478_v15 = vadd.f32 %v573_v11, %v438_v10 }
 0x105   :  { %v484_v16 = vmul.f32 %v483_v14, %v478_v15 }
 0x107   :  { %485 = vst [vmem:[#allocation2] sm:$0x3] %v484_v16 }
 0x108   :  { %621 = shalt.err (!%p618_p4)
}
 0x109   :  { %495 = dma.vmem_to_hbm [thread:$0]  %s493_s8, 32, %s785_s4, [#allocation3]  }
 0x10a   :  { %630 = dma.done.wait [#allocation3], 32  }
 0x10b   :  { %631 = vsyncadd [#allocation3], 4294967264 }
 0x10c   :  { %499 = vsyncpa [#allocation3], 1 }

</bundles_post_ra>
